<compile_context>
chip_gen: v7x
topology: tpu7x:2x2x1
jax: 0.10.0
libtpu: 0.0.40
codegen_flags: <defaults>
</compile_context>

<pallas_src>
import functools

import jax
import jax.numpy as jnp
from jax.experimental import pallas as pl
from jax.experimental.pallas import tpu as pltpu


# ----------------------------- hardware caps --------------------------------

@functools.lru_cache(maxsize=1)
def _hw_caps():
    """Returns (tm_cap, tn_cap, vmem_limit_bytes), generation aware."""
    vmem = 128 * 1024 * 1024
    try:
        info = pltpu.get_tpu_info()
        vmem = int(getattr(info, "vmem_capacity_bytes", vmem))
    except Exception:
        pass
    if vmem <= 96 * 1024 * 1024:      # v7x-class: 64 MiB VMEM per TensorCore
        return 256, 256, 40 * 1024 * 1024
    return 512, 256, 64 * 1024 * 1024  # v5e / v6e: 128 MiB VMEM


def _round_up(x, m):
    return ((x + m - 1) // m) * m


def _pick_tk(kc):
    """Contraction tile: full if not 128-aligned (kc<=576 in CSRNet), else a
    128-multiple divisor of kc up to 512."""
    if kc % 128 != 0:
        return kc
    for t in (512, 384, 256, 128):
        if kc % t == 0:
            return t
    return kc


# ----------------------------- Pallas kernels ------------------------------

def _matmul_bias_act_kernel(x_ref, w_ref, b_ref, o_ref, acc_ref, *, apply_relu):
    """Tiled conv-as-matmul.

    x_ref: (TM, TK) bf16 im2col tile, w_ref: (TK, TN) bf16, b_ref: (1, TN) f32,
    o_ref: (TM, TN) f32, acc_ref: (TM, TN) f32 scratch accumulator.
    Grid = (M tiles, Cout tiles, K tiles); K is the reduction (last, arbitrary).
    """
    @pl.when(pl.program_id(2) == 0)
    def _():
        acc_ref[...] = jnp.zeros_like(acc_ref)

    acc_ref[...] += jnp.dot(x_ref[...], w_ref[...],
                            preferred_element_type=jnp.float32)

    @pl.when(pl.program_id(2) == pl.num_programs(2) - 1)
    def _():
        r = acc_ref[...] + b_ref[...]
        if apply_relu:
            r = jnp.maximum(r, 0.0)
        o_ref[...] = r.astype(o_ref.dtype)


def _maxpool_kernel(x_ref, o_ref):
    """2x2/stride-2 max pool. x_ref: (4, TM, C) window taps; o_ref: (TM, C)."""
    o_ref[...] = jnp.maximum(jnp.maximum(x_ref[0], x_ref[1]),
                             jnp.maximum(x_ref[2], x_ref[3]))


# ------------------------------- wrappers ----------------------------------

def conv2d(x, w, b, *, dilation=1, relu=True):
    """x: (N,H,W,Cin) f32; w: (kh,kw,Cin,Cout) f32; b: (1,Cout) f32.
    'same' padding = dilation (matches nn.Conv2d(padding=d, dilation=d))."""
    n, h, wd, cin = x.shape
    kh, kw, _, cout = w.shape
    m = n * h * wd

    xb = x.astype(jnp.bfloat16)  # bf16 MXU inputs; f32 accumulation in-kernel.
    if kh == 1 and kw == 1:
        patches = xb.reshape(m, cin)
    else:
        d = dilation
        xp = jnp.pad(xb, ((0, 0), (d, d), (d, d), (0, 0)))
        taps = [xp[:, i * d:i * d + h, j * d:j * d + wd, :].reshape(m, cin)
                for i in range(kh) for j in range(kw)]
        patches = jnp.concatenate(taps, axis=-1)          # (M, K*Cin)
    kc = patches.shape[1]
    wmat = w.reshape(kh * kw * cin, cout)

    tm_cap, tn_cap, vmem_limit = _hw_caps()

    # Pad tiny heads (Cout=1/2) to a lane-dense 128-wide output.
    cout_p = cout if cout >= 64 else 128
    if cout_p != cout:
        wmat = jnp.pad(wmat, ((0, 0), (0, cout_p - cout)))
        bias = jnp.pad(b, ((0, 0), (0, cout_p - cout)))
    else:
        bias = b
    wmat_b = wmat.astype(jnp.bfloat16)

    tn = min(tn_cap, cout_p)
    tk = _pick_tk(kc)
    m8 = _round_up(m, 8)
    tm = min(tm_cap, m8)
    m_pad = _round_up(m, tm)
    if m_pad != m:
        patches = jnp.pad(patches, ((0, m_pad - m), (0, 0)))

    grid = (m_pad // tm, cout_p // tn, kc // tk)
    flops = 2 * m_pad * kc * cout_p
    bytes_accessed = (m_pad * kc * 2 + kc * cout_p * 2 + m_pad * cout_p * 4)

    out = pl.pallas_call(
        functools.partial(_matmul_bias_act_kernel, apply_relu=relu),
        out_shape=jax.ShapeDtypeStruct((m_pad, cout_p), jnp.float32),
        grid=grid,
        in_specs=[
            pl.BlockSpec((tm, tk), lambda i, j, k: (i, k)),
            pl.BlockSpec((tk, tn), lambda i, j, k: (k, j)),
            pl.BlockSpec((1, tn), lambda i, j, k: (0, j)),
        ],
        out_specs=pl.BlockSpec((tm, tn), lambda i, j, k: (i, j)),
        scratch_shapes=[pltpu.VMEM((tm, tn), jnp.float32)],
        compiler_params=pltpu.CompilerParams(
            dimension_semantics=("parallel", "parallel", "arbitrary"),
            vmem_limit_bytes=vmem_limit),
        cost_estimate=pl.CostEstimate(flops=flops, transcendentals=0,
                                      bytes_accessed=bytes_accessed),
    )(patches, wmat_b, bias)

    return out[:m, :cout].reshape(n, h, wd, cout)


def maxpool2x2(x):
    """x: (N,H,W,C) -> (N,H//2,W//2,C); kernel=2 stride=2 (nn.MaxPool2d(2,2))."""
    n, h, wd, c = x.shape
    ho, wo = h // 2, wd // 2
    m = n * ho * wo
    # Layout plumbing: expose the 4 window elements as the leading axis.
    xr = (x.reshape(n, ho, 2, wo, 2, c)
           .transpose(2, 4, 0, 1, 3, 5)
           .reshape(4, m, c))

    tm_cap, _, vmem_limit = _hw_caps()
    m8 = _round_up(m, 8)
    tm = min(tm_cap, m8)
    m_pad = _round_up(m, tm)
    if m_pad != m:
        xr = jnp.pad(xr, ((0, 0), (0, m_pad - m), (0, 0)))

    out = pl.pallas_call(
        _maxpool_kernel,
        out_shape=jax.ShapeDtypeStruct((m_pad, c), jnp.float32),
        grid=(m_pad // tm,),
        in_specs=[pl.BlockSpec((4, tm, c), lambda i: (0, i, 0))],
        out_specs=pl.BlockSpec((tm, c), lambda i: (i, 0)),
        compiler_params=pltpu.CompilerParams(
            dimension_semantics=("parallel",),
            vmem_limit_bytes=vmem_limit),
    )(xr)
    return out[:m].reshape(n, ho, wo, c)


# --------------------------- parameter creation -----------------------------

FRONTEND_CFG = [64, 64, 'M', 128, 128, 'M', 256, 256, 256, 'M', 512, 512, 512]
BACKEND0_CFG = [512, 512, 512, 256]
BRANCH_CFG = [128, 64]


def _init_conv(key, cin, cout, ksize):
    # Matches CSRNet._initialize_weights: normal(std=0.01) weights, zero bias.
    w = jax.random.normal(key, (ksize, ksize, cin, cout), jnp.float32) * 0.01
    b = jnp.zeros((1, cout), jnp.float32)
    return w, b


def _make_layer_params(key, cfg, in_ch):
    weights = []
    for v in cfg:
        if v == 'M':
            continue
        key, sub = jax.random.split(key)
        weights.append(_init_conv(sub, in_ch, v, 3))
        in_ch = v
    return weights, key


def init_params(key):
    params = {}
    # TODO(synk): original model copies pretrained VGG16 weights from a .pth
    # checkpoint into the frontend; deterministic normal(std=0.01) init is
    # used here instead of file I/O.
    params['frontend'], key = _make_layer_params(key, FRONTEND_CFG, 3)
    params['backend_0'], key = _make_layer_params(key, BACKEND0_CFG, 512)
    for name in ('backend_1', 'backend_2', 'backend_3', 'backend_4'):
        params[name], key = _make_layer_params(key, BRANCH_CFG, 256)
    key, k1 = jax.random.split(key)
    params['out1'] = _init_conv(k1, 64, 1, 1)
    for name in ('out2', 'out3', 'out4'):
        key, k = jax.random.split(key)
        params[name] = _init_conv(k, 64, 2, 1)
    return params


# ------------------------------ forward pass --------------------------------

def _run(x, cfg, weights, dilation):
    wi = 0
    for v in cfg:
        if v == 'M':
            x = maxpool2x2(x)
        else:
            w, b = weights[wi]
            wi += 1
            x = conv2d(x, w, b, dilation=dilation, relu=True)
    return x


def csrnet_forward(params, x_nchw):
    x = jnp.transpose(x_nchw, (0, 2, 3, 1)).astype(jnp.float32)  # NCHW -> NHWC

    x = _run(x, FRONTEND_CFG, params['frontend'], dilation=1)
    x = _run(x, BACKEND0_CFG, params['backend_0'], dilation=2)

    # Fuse the four 256->128 branch-first convs (all consume the same x) into
    # one 256->512 conv: reads x from HBM once, lane-dense 512-wide output.
    w_cat = jnp.concatenate(
        [params[f'backend_{i}'][0][0] for i in range(1, 5)], axis=-1)
    b_cat = jnp.concatenate(
        [params[f'backend_{i}'][0][1] for i in range(1, 5)], axis=-1)
    fused = conv2d(x, w_cat, b_cat, dilation=2, relu=True)        # (N,H,W,512)
    branches = [fused[..., 128 * i:128 * (i + 1)] for i in range(4)]

    outs = []
    branch_cfg = (('backend_1', 'out1', True),    # output_layer_1 + F.relu
                  ('backend_2', 'out2', False),
                  ('backend_3', 'out3', False),
                  ('backend_4', 'out4', False))
    for idx, (bname, hname, head_relu) in enumerate(branch_cfg):
        t = branches[idx]
        for w, b in params[bname][1:]:            # remaining 128->64 conv(s)
            t = conv2d(t, w, b, dilation=2, relu=True)
        t = conv2d(t, *params[hname], dilation=1, relu=head_relu)  # 1x1 head
        outs.append(jnp.transpose(t, (0, 3, 1, 2)))                # NHWC->NCHW
    return tuple(outs)


if __name__ == "__main__":
    key = jax.random.PRNGKey(0)
    kx, kp = jax.random.split(key)
    # Small NCHW input consistent with the module (3 input channels required).
    x = jax.random.normal(kx, (2, 3, 16, 16), jnp.float32)
    params = init_params(kp)

    fwd = jax.jit(csrnet_forward)
    outs = jax.block_until_ready(fwd(params, x))

    u, l2, l3, l4 = outs
    assert u.shape == (2, 1, 2, 2), u.shape
    assert l2.shape == (2, 2, 2, 2), l2.shape
    assert l3.shape == (2, 2, 2, 2), l3.shape
    assert l4.shape == (2, 2, 2, 2), l4.shape
    print("KERNEL_OK")
</pallas_src>

<mosaic_0001>
module attributes {stable_mosaic.version = 11 : i64} {
  func.func @_matmul_bias_act_kernel(%arg0: i32, %arg1: i32, %arg2: i32, %arg3: memref<512x27xbf16, #tpu.memory_space<vmem>>, %arg4: memref<27x64xbf16, #tpu.memory_space<vmem>>, %arg5: memref<1x64xf32, #tpu.memory_space<vmem>>, %arg6: memref<512x64xf32, #tpu.memory_space<vmem>>, %arg7: memref<512x64xf32, #tpu.memory_space<vmem>>) attributes {dimension_semantics = [#tpu.dimension_semantics<parallel>, #tpu.dimension_semantics<parallel>, #tpu.dimension_semantics<arbitrary>], iteration_bounds = array<i64: 1, 1, 1>, scalar_prefetch = 0 : i64, scratch_operands = 1 : i64, tpu.core_type = #tpu.core_type<tc>, window_params = [{transform_indices = @transform_0, window_bounds = array<i64: 512, 27>}, {transform_indices = @transform_1, window_bounds = array<i64: 27, 64>}, {transform_indices = @transform_2, window_bounds = array<i64: 1, 64>}, {transform_indices = @transform_3, window_bounds = array<i64: 512, 64>}]} {
    %c0_i32 = arith.constant 0 : i32
    %0 = arith.cmpi eq, %arg2, %c0_i32 : i32
    %1 = arith.extui %0 : i1 to i32
    %c0_i32_0 = arith.constant 0 : i32
    %2 = arith.cmpi ne, %1, %c0_i32_0 : i32
    scf.if %2 {
      %cst_10 = arith.constant 0.000000e+00 : f32
      %12 = vector.broadcast %cst_10 : f32 to vector<512x64xf32>
      %c0_11 = arith.constant 0 : index
      %c0_12 = arith.constant 0 : index
      %13 = vector.load %arg7[%c0_11, %c0_12] : memref<512x64xf32, #tpu.memory_space<vmem>>, vector<512x64xf32>
      tpu.vector_store %arg7[%c0_11, %c0_12], %12 {strides = array<i32>} : memref<512x64xf32, #tpu.memory_space<vmem>>, vector<512x64xf32>,
    } else {
    }
    %c0 = arith.constant 0 : index
    %c0_1 = arith.constant 0 : index
    %3 = vector.load %arg7[%c0, %c0_1] : memref<512x64xf32, #tpu.memory_space<vmem>>, vector<512x64xf32>
    %c0_2 = arith.constant 0 : index
    %c0_3 = arith.constant 0 : index
    %4 = vector.load %arg3[%c0_2, %c0_3] : memref<512x27xbf16, #tpu.memory_space<vmem>>, vector<512x27xbf16>
    %c0_4 = arith.constant 0 : index
    %c0_5 = arith.constant 0 : index
    %5 = vector.load %arg4[%c0_4, %c0_5] : memref<27x64xbf16, #tpu.memory_space<vmem>>, vector<27x64xbf16>
    %cst = arith.constant dense<0.000000e+00> : vector<512x64xf32>
    %6 = tpu.matmul %4, %5, %cst {dimension_numbers = #tpu.dot_dimension_numbers<[1], [0], [0], [1], [0, 0, 1, 1], [], []>} : vector<512x27xbf16>, vector<27x64xbf16>, vector<512x64xf32> -> vector<512x64xf32>
    %7 = arith.addf %3, %6 : vector<512x64xf32>
    %c0_6 = arith.constant 0 : index
    %c0_7 = arith.constant 0 : index
    %8 = vector.load %arg7[%c0_6, %c0_7] : memref<512x64xf32, #tpu.memory_space<vmem>>, vector<512x64xf32>
    tpu.vector_store %arg7[%c0_6, %c0_7], %7 {strides = array<i32>} : memref<512x64xf32, #tpu.memory_space<vmem>>, vector<512x64xf32>,
    %c0_i32_8 = arith.constant 0 : i32
    %9 = arith.cmpi eq, %arg2, %c0_i32_8 : i32
    %10 = arith.extui %9 : i1 to i32
    %c0_i32_9 = arith.constant 0 : i32
    %11 = arith.cmpi ne, %10, %c0_i32_9 : i32
    scf.if %11 {
      %c0_10 = arith.constant 0 : index
      %c0_11 = arith.constant 0 : index
      %12 = vector.load %arg7[%c0_10, %c0_11] : memref<512x64xf32, #tpu.memory_space<vmem>>, vector<512x64xf32>
      %c0_12 = arith.constant 0 : index
      %c0_13 = arith.constant 0 : index
      %13 = vector.load %arg5[%c0_12, %c0_13] : memref<1x64xf32, #tpu.memory_space<vmem>>, vector<1x64xf32>
      %14 = vector.broadcast %13 : vector<1x64xf32> to vector<512x64xf32>
      %15 = arith.addf %12, %14 : vector<512x64xf32>
      %cst_14 = arith.constant 0.000000e+00 : f32
      %16 = vector.broadcast %cst_14 : f32 to vector<512x64xf32>
      %17 = arith.maximumf %15, %16 : vector<512x64xf32>
      %c0_15 = arith.constant 0 : index
      %c0_16 = arith.constant 0 : index
      %18 = vector.load %arg6[%c0_15, %c0_16] : memref<512x64xf32, #tpu.memory_space<vmem>>, vector<512x64xf32>
      tpu.vector_store %arg6[%c0_15, %c0_16], %17 {strides = array<i32>} : memref<512x64xf32, #tpu.memory_space<vmem>>, vector<512x64xf32>,
    } else {
    }
    return
  }
  func.func @transform_0(%arg0: i32, %arg1: i32, %arg2: i32) -> (i32, i32) {
    %c0_i32 = arith.constant 0 : i32
    return %arg0, %arg2 : i32, i32
  }
  func.func @transform_1(%arg0: i32, %arg1: i32, %arg2: i32) -> (i32, i32) {
    %c0_i32 = arith.constant 0 : i32
    return %arg2, %arg1 : i32, i32
  }
  func.func @transform_2(%arg0: i32, %arg1: i32, %arg2: i32) -> (i32, i32) {
    %c0_i32 = arith.constant 0 : i32
    %c0_i32_0 = arith.constant 0 : i32
    return %c0_i32, %arg1 : i32, i32
  }
  func.func @transform_3(%arg0: i32, %arg1: i32, %arg2: i32) -> (i32, i32) {
    %c0_i32 = arith.constant 0 : i32
    return %arg0, %arg1 : i32, i32
  }
}

module attributes {stable_mosaic.version = 11 : i64} {
  func.func @_matmul_bias_act_kernel(%arg0: i32, %arg1: i32, %arg2: i32, %arg3: memref<512x576xbf16, #tpu.memory_space<vmem>>, %arg4: memref<576x64xbf16, #tpu.memory_space<vmem>>, %arg5: memref<1x64xf32, #tpu.memory_space<vmem>>, %arg6: memref<512x64xf32, #tpu.memory_space<vmem>>, %arg7: memref<512x64xf32, #tpu.memory_space<vmem>>) attributes {dimension_semantics = [#tpu.dimension_semantics<parallel>, #tpu.dimension_semantics<parallel>, #tpu.dimension_semantics<arbitrary>], iteration_bounds = array<i64: 1, 1, 1>, scalar_prefetch = 0 : i64, scratch_operands = 1 : i64, tpu.core_type = #tpu.core_type<tc>, window_params = [{transform_indices = @transform_0, window_bounds = array<i64: 512, 576>}, {transform_indices = @transform_1, window_bounds = array<i64: 576, 64>}, {transform_indices = @transform_2, window_bounds = array<i64: 1, 64>}, {transform_indices = @transform_3, window_bounds = array<i64: 512, 64>}]} {
    %c0_i32 = arith.constant 0 : i32
    %0 = arith.cmpi eq, %arg2, %c0_i32 : i32
    %1 = arith.extui %0 : i1 to i32
    %c0_i32_0 = arith.constant 0 : i32
    %2 = arith.cmpi ne, %1, %c0_i32_0 : i32
    scf.if %2 {
      %cst_10 = arith.constant 0.000000e+00 : f32
      %12 = vector.broadcast %cst_10 : f32 to vector<512x64xf32>
      %c0_11 = arith.constant 0 : index
      %c0_12 = arith.constant 0 : index
      %13 = vector.load %arg7[%c0_11, %c0_12] : memref<512x64xf32, #tpu.memory_space<vmem>>, vector<512x64xf32>
      tpu.vector_store %arg7[%c0_11, %c0_12], %12 {strides = array<i32>} : memref<512x64xf32, #tpu.memory_space<vmem>>, vector<512x64xf32>,
    } else {
    }
    %c0 = arith.constant 0 : index
    %c0_1 = arith.constant 0 : index
    %3 = vector.load %arg7[%c0, %c0_1] : memref<512x64xf32, #tpu.memory_space<vmem>>, vector<512x64xf32>
    %c0_2 = arith.constant 0 : index
    %c0_3 = arith.constant 0 : index
    %4 = vector.load %arg3[%c0_2, %c0_3] : memref<512x576xbf16, #tpu.memory_space<vmem>>, vector<512x576xbf16>
    %c0_4 = arith.constant 0 : index
    %c0_5 = arith.constant 0 : index
    %5 = vector.load %arg4[%c0_4, %c0_5] : memref<576x64xbf16, #tpu.memory_space<vmem>>, vector<576x64xbf16>
    %cst = arith.constant dense<0.000000e+00> : vector<512x64xf32>
    %6 = tpu.matmul %4, %5, %cst {dimension_numbers = #tpu.dot_dimension_numbers<[1], [0], [0], [1], [0, 0, 1, 1], [], []>} : vector<512x576xbf16>, vector<576x64xbf16>, vector<512x64xf32> -> vector<512x64xf32>
    %7 = arith.addf %3, %6 : vector<512x64xf32>
    %c0_6 = arith.constant 0 : index
    %c0_7 = arith.constant 0 : index
    %8 = vector.load %arg7[%c0_6, %c0_7] : memref<512x64xf32, #tpu.memory_space<vmem>>, vector<512x64xf32>
    tpu.vector_store %arg7[%c0_6, %c0_7], %7 {strides = array<i32>} : memref<512x64xf32, #tpu.memory_space<vmem>>, vector<512x64xf32>,
    %c0_i32_8 = arith.constant 0 : i32
    %9 = arith.cmpi eq, %arg2, %c0_i32_8 : i32
    %10 = arith.extui %9 : i1 to i32
    %c0_i32_9 = arith.constant 0 : i32
    %11 = arith.cmpi ne, %10, %c0_i32_9 : i32
    scf.if %11 {
      %c0_10 = arith.constant 0 : index
      %c0_11 = arith.constant 0 : index
      %12 = vector.load %arg7[%c0_10, %c0_11] : memref<512x64xf32, #tpu.memory_space<vmem>>, vector<512x64xf32>
      %c0_12 = arith.constant 0 : index
      %c0_13 = arith.constant 0 : index
      %13 = vector.load %arg5[%c0_12, %c0_13] : memref<1x64xf32, #tpu.memory_space<vmem>>, vector<1x64xf32>
      %14 = vector.broadcast %13 : vector<1x64xf32> to vector<512x64xf32>
      %15 = arith.addf %12, %14 : vector<512x64xf32>
      %cst_14 = arith.constant 0.000000e+00 : f32
      %16 = vector.broadcast %cst_14 : f32 to vector<512x64xf32>
      %17 = arith.maximumf %15, %16 : vector<512x64xf32>
      %c0_15 = arith.constant 0 : index
      %c0_16 = arith.constant 0 : index
      %18 = vector.load %arg6[%c0_15, %c0_16] : memref<512x64xf32, #tpu.memory_space<vmem>>, vector<512x64xf32>
      tpu.vector_store %arg6[%c0_15, %c0_16], %17 {strides = array<i32>} : memref<512x64xf32, #tpu.memory_space<vmem>>, vector<512x64xf32>,
    } else {
    }
    return
  }
  func.func @transform_0(%arg0: i32, %arg1: i32, %arg2: i32) -> (i32, i32) {
    %c0_i32 = arith.constant 0 : i32
    return %arg0, %arg2 : i32, i32
  }
  func.func @transform_1(%arg0: i32, %arg1: i32, %arg2: i32) -> (i32, i32) {
    %c0_i32 = arith.constant 0 : i32
    return %arg2, %arg1 : i32, i32
  }
  func.func @transform_2(%arg0: i32, %arg1: i32, %arg2: i32) -> (i32, i32) {
    %c0_i32 = arith.constant 0 : i32
    %c0_i32_0 = arith.constant 0 : i32
    return %c0_i32, %arg1 : i32, i32
  }
  func.func @transform_3(%arg0: i32, %arg1: i32, %arg2: i32) -> (i32, i32) {
    %c0_i32 = arith.constant 0 : i32
    return %arg0, %arg1 : i32, i32
  }
}

module attributes {stable_mosaic.version = 11 : i64} {
  func.func @_maxpool_kernel(%arg0: i32, %arg1: memref<4x128x64xf32, #tpu.memory_space<vmem>>, %arg2: memref<128x64xf32, #tpu.memory_space<vmem>>) attributes {dimension_semantics = [#tpu.dimension_semantics<parallel>], iteration_bounds = array<i64: 1>, scalar_prefetch = 0 : i64, scratch_operands = 0 : i64, tpu.core_type = #tpu.core_type<tc>, window_params = [{transform_indices = @transform_0, window_bounds = array<i64: 4, 128, 64>}, {transform_indices = @transform_1, window_bounds = array<i64: 128, 64>}]} {
    %c0 = arith.constant 0 : index
    %c0_0 = arith.constant 0 : index
    %c0_1 = arith.constant 0 : index
    %0 = vector.load %arg1[%c0, %c0_0, %c0_1] : memref<4x128x64xf32, #tpu.memory_space<vmem>>, vector<1x128x64xf32>
    %1 = vector.shape_cast %0 : vector<1x128x64xf32> to vector<128x64xf32>
    %c1 = arith.constant 1 : index
    %c0_2 = arith.constant 0 : index
    %c0_3 = arith.constant 0 : index
    %2 = vector.load %arg1[%c1, %c0_2, %c0_3] : memref<4x128x64xf32, #tpu.memory_space<vmem>>, vector<1x128x64xf32>
    %3 = vector.shape_cast %2 : vector<1x128x64xf32> to vector<128x64xf32>
    %4 = arith.maximumf %1, %3 : vector<128x64xf32>
    %c2 = arith.constant 2 : index
    %c0_4 = arith.constant 0 : index
    %c0_5 = arith.constant 0 : index
    %5 = vector.load %arg1[%c2, %c0_4, %c0_5] : memref<4x128x64xf32, #tpu.memory_space<vmem>>, vector<1x128x64xf32>
    %6 = vector.shape_cast %5 : vector<1x128x64xf32> to vector<128x64xf32>
    %c3 = arith.constant 3 : index
    %c0_6 = arith.constant 0 : index
    %c0_7 = arith.constant 0 : index
    %7 = vector.load %arg1[%c3, %c0_6, %c0_7] : memref<4x128x64xf32, #tpu.memory_space<vmem>>, vector<1x128x64xf32>
    %8 = vector.shape_cast %7 : vector<1x128x64xf32> to vector<128x64xf32>
    %9 = arith.maximumf %6, %8 : vector<128x64xf32>
    %10 = arith.maximumf %4, %9 : vector<128x64xf32>
    %c0_8 = arith.constant 0 : index
    %c0_9 = arith.constant 0 : index
    %11 = vector.load %arg2[%c0_8, %c0_9] : memref<128x64xf32, #tpu.memory_space<vmem>>, vector<128x64xf32>
    tpu.vector_store %arg2[%c0_8, %c0_9], %10 {strides = array<i32>} : memref<128x64xf32, #tpu.memory_space<vmem>>, vector<128x64xf32>,
    return
  }
  func.func @transform_0(%arg0: i32) -> (i32, i32, i32) {
    %c0_i32 = arith.constant 0 : i32
    %c0_i32_0 = arith.constant 0 : i32
    %c0_i32_1 = arith.constant 0 : i32
    return %c0_i32, %arg0, %c0_i32_0 : i32, i32, i32
  }
  func.func @transform_1(%arg0: i32) -> (i32, i32) {
    %c0_i32 = arith.constant 0 : i32
    %c0_i32_0 = arith.constant 0 : i32
    return %arg0, %c0_i32 : i32, i32
  }
}

module attributes {stable_mosaic.version = 11 : i64} {
  func.func @_matmul_bias_act_kernel(%arg0: i32, %arg1: i32, %arg2: i32, %arg3: memref<128x576xbf16, #tpu.memory_space<vmem>>, %arg4: memref<576x128xbf16, #tpu.memory_space<vmem>>, %arg5: memref<1x128xf32, #tpu.memory_space<vmem>>, %arg6: memref<128x128xf32, #tpu.memory_space<vmem>>, %arg7: memref<128x128xf32, #tpu.memory_space<vmem>>) attributes {dimension_semantics = [#tpu.dimension_semantics<parallel>, #tpu.dimension_semantics<parallel>, #tpu.dimension_semantics<arbitrary>], iteration_bounds = array<i64: 1, 1, 1>, scalar_prefetch = 0 : i64, scratch_operands = 1 : i64, tpu.core_type = #tpu.core_type<tc>, window_params = [{transform_indices = @transform_0, window_bounds = array<i64: 128, 576>}, {transform_indices = @transform_1, window_bounds = array<i64: 576, 128>}, {transform_indices = @transform_2, window_bounds = array<i64: 1, 128>}, {transform_indices = @transform_3, window_bounds = array<i64: 128, 128>}]} {
    %c0_i32 = arith.constant 0 : i32
    %0 = arith.cmpi eq, %arg2, %c0_i32 : i32
    %1 = arith.extui %0 : i1 to i32
    %c0_i32_0 = arith.constant 0 : i32
    %2 = arith.cmpi ne, %1, %c0_i32_0 : i32
    scf.if %2 {
      %cst_10 = arith.constant 0.000000e+00 : f32
      %12 = vector.broadcast %cst_10 : f32 to vector<128x128xf32>
      %c0_11 = arith.constant 0 : index
      %c0_12 = arith.constant 0 : index
      %13 = vector.load %arg7[%c0_11, %c0_12] : memref<128x128xf32, #tpu.memory_space<vmem>>, vector<128x128xf32>
      tpu.vector_store %arg7[%c0_11, %c0_12], %12 {strides = array<i32>} : memref<128x128xf32, #tpu.memory_space<vmem>>, vector<128x128xf32>,
    } else {
    }
    %c0 = arith.constant 0 : index
    %c0_1 = arith.constant 0 : index
    %3 = vector.load %arg7[%c0, %c0_1] : memref<128x128xf32, #tpu.memory_space<vmem>>, vector<128x128xf32>
    %c0_2 = arith.constant 0 : index
    %c0_3 = arith.constant 0 : index
    %4 = vector.load %arg3[%c0_2, %c0_3] : memref<128x576xbf16, #tpu.memory_space<vmem>>, vector<128x576xbf16>
    %c0_4 = arith.constant 0 : index
    %c0_5 = arith.constant 0 : index
    %5 = vector.load %arg4[%c0_4, %c0_5] : memref<576x128xbf16, #tpu.memory_space<vmem>>, vector<576x128xbf16>
    %cst = arith.constant dense<0.000000e+00> : vector<128x128xf32>
    %6 = tpu.matmul %4, %5, %cst {dimension_numbers = #tpu.dot_dimension_numbers<[1], [0], [0], [1], [0, 0, 1, 1], [], []>} : vector<128x576xbf16>, vector<576x128xbf16>, vector<128x128xf32> -> vector<128x128xf32>
    %7 = arith.addf %3, %6 : vector<128x128xf32>
    %c0_6 = arith.constant 0 : index
    %c0_7 = arith.constant 0 : index
    %8 = vector.load %arg7[%c0_6, %c0_7] : memref<128x128xf32, #tpu.memory_space<vmem>>, vector<128x128xf32>
    tpu.vector_store %arg7[%c0_6, %c0_7], %7 {strides = array<i32>} : memref<128x128xf32, #tpu.memory_space<vmem>>, vector<128x128xf32>,
    %c0_i32_8 = arith.constant 0 : i32
    %9 = arith.cmpi eq, %arg2, %c0_i32_8 : i32
    %10 = arith.extui %9 : i1 to i32
    %c0_i32_9 = arith.constant 0 : i32
    %11 = arith.cmpi ne, %10, %c0_i32_9 : i32
    scf.if %11 {
      %c0_10 = arith.constant 0 : index
      %c0_11 = arith.constant 0 : index
      %12 = vector.load %arg7[%c0_10, %c0_11] : memref<128x128xf32, #tpu.memory_space<vmem>>, vector<128x128xf32>
      %c0_12 = arith.constant 0 : index
      %c0_13 = arith.constant 0 : index
      %13 = vector.load %arg5[%c0_12, %c0_13] : memref<1x128xf32, #tpu.memory_space<vmem>>, vector<1x128xf32>
      %14 = vector.broadcast %13 : vector<1x128xf32> to vector<128x128xf32>
      %15 = arith.addf %12, %14 : vector<128x128xf32>
      %cst_14 = arith.constant 0.000000e+00 : f32
      %16 = vector.broadcast %cst_14 : f32 to vector<128x128xf32>
      %17 = arith.maximumf %15, %16 : vector<128x128xf32>
      %c0_15 = arith.constant 0 : index
      %c0_16 = arith.constant 0 : index
      %18 = vector.load %arg6[%c0_15, %c0_16] : memref<128x128xf32, #tpu.memory_space<vmem>>, vector<128x128xf32>
      tpu.vector_store %arg6[%c0_15, %c0_16], %17 {strides = array<i32>} : memref<128x128xf32, #tpu.memory_space<vmem>>, vector<128x128xf32>,
    } else {
    }
    return
  }
  func.func @transform_0(%arg0: i32, %arg1: i32, %arg2: i32) -> (i32, i32) {
    %c0_i32 = arith.constant 0 : i32
    return %arg0, %arg2 : i32, i32
  }
  func.func @transform_1(%arg0: i32, %arg1: i32, %arg2: i32) -> (i32, i32) {
    %c0_i32 = arith.constant 0 : i32
    return %arg2, %arg1 : i32, i32
  }
  func.func @transform_2(%arg0: i32, %arg1: i32, %arg2: i32) -> (i32, i32) {
    %c0_i32 = arith.constant 0 : i32
    %c0_i32_0 = arith.constant 0 : i32
    return %c0_i32, %arg1 : i32, i32
  }
  func.func @transform_3(%arg0: i32, %arg1: i32, %arg2: i32) -> (i32, i32) {
    %c0_i32 = arith.constant 0 : i32
    return %arg0, %arg1 : i32, i32
  }
}

module attributes {stable_mosaic.version = 11 : i64} {
  func.func @_maxpool_kernel(%arg0: i32, %arg1: memref<4x32x128xf32, #tpu.memory_space<vmem>>, %arg2: memref<32x128xf32, #tpu.memory_space<vmem>>) attributes {dimension_semantics = [#tpu.dimension_semantics<parallel>], iteration_bounds = array<i64: 1>, scalar_prefetch = 0 : i64, scratch_operands = 0 : i64, tpu.core_type = #tpu.core_type<tc>, window_params = [{transform_indices = @transform_0, window_bounds = array<i64: 4, 32, 128>}, {transform_indices = @transform_1, window_bounds = array<i64: 32, 128>}]} {
    %c0 = arith.constant 0 : index
    %c0_0 = arith.constant 0 : index
    %c0_1 = arith.constant 0 : index
    %0 = vector.load %arg1[%c0, %c0_0, %c0_1] : memref<4x32x128xf32, #tpu.memory_space<vmem>>, vector<1x32x128xf32>
    %1 = vector.shape_cast %0 : vector<1x32x128xf32> to vector<32x128xf32>
    %c1 = arith.constant 1 : index
    %c0_2 = arith.constant 0 : index
    %c0_3 = arith.constant 0 : index
    %2 = vector.load %arg1[%c1, %c0_2, %c0_3] : memref<4x32x128xf32, #tpu.memory_space<vmem>>, vector<1x32x128xf32>
    %3 = vector.shape_cast %2 : vector<1x32x128xf32> to vector<32x128xf32>
    %4 = arith.maximumf %1, %3 : vector<32x128xf32>
    %c2 = arith.constant 2 : index
    %c0_4 = arith.constant 0 : index
    %c0_5 = arith.constant 0 : index
    %5 = vector.load %arg1[%c2, %c0_4, %c0_5] : memref<4x32x128xf32, #tpu.memory_space<vmem>>, vector<1x32x128xf32>
    %6 = vector.shape_cast %5 : vector<1x32x128xf32> to vector<32x128xf32>
    %c3 = arith.constant 3 : index
    %c0_6 = arith.constant 0 : index
    %c0_7 = arith.constant 0 : index
    %7 = vector.load %arg1[%c3, %c0_6, %c0_7] : memref<4x32x128xf32, #tpu.memory_space<vmem>>, vector<1x32x128xf32>
    %8 = vector.shape_cast %7 : vector<1x32x128xf32> to vector<32x128xf32>
    %9 = arith.maximumf %6, %8 : vector<32x128xf32>
    %10 = arith.maximumf %4, %9 : vector<32x128xf32>
    %c0_8 = arith.constant 0 : index
    %c0_9 = arith.constant 0 : index
    %11 = vector.load %arg2[%c0_8, %c0_9] : memref<32x128xf32, #tpu.memory_space<vmem>>, vector<32x128xf32>
    tpu.vector_store %arg2[%c0_8, %c0_9], %10 {strides = array<i32>} : memref<32x128xf32, #tpu.memory_space<vmem>>, vector<32x128xf32>,
    return
  }
  func.func @transform_0(%arg0: i32) -> (i32, i32, i32) {
    %c0_i32 = arith.constant 0 : i32
    %c0_i32_0 = arith.constant 0 : i32
    %c0_i32_1 = arith.constant 0 : i32
    return %c0_i32, %arg0, %c0_i32_0 : i32, i32, i32
  }
  func.func @transform_1(%arg0: i32) -> (i32, i32) {
    %c0_i32 = arith.constant 0 : i32
    %c0_i32_0 = arith.constant 0 : i32
    return %arg0, %c0_i32 : i32, i32
  }
}

module attributes {stable_mosaic.version = 11 : i64} {
  func.func @_matmul_bias_act_kernel(%arg0: i32, %arg1: i32, %arg2: i32, %arg3: memref<128x384xbf16, #tpu.memory_space<vmem>>, %arg4: memref<384x128xbf16, #tpu.memory_space<vmem>>, %arg5: memref<1x128xf32, #tpu.memory_space<vmem>>, %arg6: memref<128x128xf32, #tpu.memory_space<vmem>>, %arg7: memref<128x128xf32, #tpu.memory_space<vmem>>) attributes {dimension_semantics = [#tpu.dimension_semantics<parallel>, #tpu.dimension_semantics<parallel>, #tpu.dimension_semantics<arbitrary>], iteration_bounds = array<i64: 1, 1, 3>, scalar_prefetch = 0 : i64, scratch_operands = 1 : i64, tpu.core_type = #tpu.core_type<tc>, window_params = [{transform_indices = @transform_0, window_bounds = array<i64: 128, 384>}, {transform_indices = @transform_1, window_bounds = array<i64: 384, 128>}, {transform_indices = @transform_2, window_bounds = array<i64: 1, 128>}, {transform_indices = @transform_3, window_bounds = array<i64: 128, 128>}]} {
    %c0_i32 = arith.constant 0 : i32
    %0 = arith.cmpi eq, %arg2, %c0_i32 : i32
    %1 = arith.extui %0 : i1 to i32
    %c0_i32_0 = arith.constant 0 : i32
    %2 = arith.cmpi ne, %1, %c0_i32_0 : i32
    scf.if %2 {
      %cst_9 = arith.constant 0.000000e+00 : f32
      %12 = vector.broadcast %cst_9 : f32 to vector<128x128xf32>
      %c0_10 = arith.constant 0 : index
      %c0_11 = arith.constant 0 : index
      %13 = vector.load %arg7[%c0_10, %c0_11] : memref<128x128xf32, #tpu.memory_space<vmem>>, vector<128x128xf32>
      tpu.vector_store %arg7[%c0_10, %c0_11], %12 {strides = array<i32>} : memref<128x128xf32, #tpu.memory_space<vmem>>, vector<128x128xf32>,
    } else {
    }
    %c0 = arith.constant 0 : index
    %c0_1 = arith.constant 0 : index
    %3 = vector.load %arg7[%c0, %c0_1] : memref<128x128xf32, #tpu.memory_space<vmem>>, vector<128x128xf32>
    %c0_2 = arith.constant 0 : index
    %c0_3 = arith.constant 0 : index
    %4 = vector.load %arg3[%c0_2, %c0_3] : memref<128x384xbf16, #tpu.memory_space<vmem>>, vector<128x384xbf16>
    %c0_4 = arith.constant 0 : index
    %c0_5 = arith.constant 0 : index
    %5 = vector.load %arg4[%c0_4, %c0_5] : memref<384x128xbf16, #tpu.memory_space<vmem>>, vector<384x128xbf16>
    %cst = arith.constant dense<0.000000e+00> : vector<128x128xf32>
    %6 = tpu.matmul %4, %5, %cst {dimension_numbers = #tpu.dot_dimension_numbers<[1], [0], [0], [1], [0, 0, 1, 1], [], []>} : vector<128x384xbf16>, vector<384x128xbf16>, vector<128x128xf32> -> vector<128x128xf32>
    %7 = arith.addf %3, %6 : vector<128x128xf32>
    %c0_6 = arith.constant 0 : index
    %c0_7 = arith.constant 0 : index
    %8 = vector.load %arg7[%c0_6, %c0_7] : memref<128x128xf32, #tpu.memory_space<vmem>>, vector<128x128xf32>
    tpu.vector_store %arg7[%c0_6, %c0_7], %7 {strides = array<i32>} : memref<128x128xf32, #tpu.memory_space<vmem>>, vector<128x128xf32>,
    %c2_i32 = arith.constant 2 : i32
    %9 = arith.cmpi eq, %arg2, %c2_i32 : i32
    %10 = arith.extui %9 : i1 to i32
    %c0_i32_8 = arith.constant 0 : i32
    %11 = arith.cmpi ne, %10, %c0_i32_8 : i32
    scf.if %11 {
      %c0_9 = arith.constant 0 : index
      %c0_10 = arith.constant 0 : index
      %12 = vector.load %arg7[%c0_9, %c0_10] : memref<128x128xf32, #tpu.memory_space<vmem>>, vector<128x128xf32>
      %c0_11 = arith.constant 0 : index
      %c0_12 = arith.constant 0 : index
      %13 = vector.load %arg5[%c0_11, %c0_12] : memref<1x128xf32, #tpu.memory_space<vmem>>, vector<1x128xf32>
      %14 = vector.broadcast %13 : vector<1x128xf32> to vector<128x128xf32>
      %15 = arith.addf %12, %14 : vector<128x128xf32>
      %cst_13 = arith.constant 0.000000e+00 : f32
      %16 = vector.broadcast %cst_13 : f32 to vector<128x128xf32>
      %17 = arith.maximumf %15, %16 : vector<128x128xf32>
      %c0_14 = arith.constant 0 : index
      %c0_15 = arith.constant 0 : index
      %18 = vector.load %arg6[%c0_14, %c0_15] : memref<128x128xf32, #tpu.memory_space<vmem>>, vector<128x128xf32>
      tpu.vector_store %arg6[%c0_14, %c0_15], %17 {strides = array<i32>} : memref<128x128xf32, #tpu.memory_space<vmem>>, vector<128x128xf32>,
    } else {
    }
    return
  }
  func.func @transform_0(%arg0: i32, %arg1: i32, %arg2: i32) -> (i32, i32) {
    %c0_i32 = arith.constant 0 : i32
    return %arg0, %arg2 : i32, i32
  }
  func.func @transform_1(%arg0: i32, %arg1: i32, %arg2: i32) -> (i32, i32) {
    %c0_i32 = arith.constant 0 : i32
    return %arg2, %arg1 : i32, i32
  }
  func.func @transform_2(%arg0: i32, %arg1: i32, %arg2: i32) -> (i32, i32) {
    %c0_i32 = arith.constant 0 : i32
    %c0_i32_0 = arith.constant 0 : i32
    return %c0_i32, %arg1 : i32, i32
  }
  func.func @transform_3(%arg0: i32, %arg1: i32, %arg2: i32) -> (i32, i32) {
    %c0_i32 = arith.constant 0 : i32
    return %arg0, %arg1 : i32, i32
  }
}

module attributes {stable_mosaic.version = 11 : i64} {
  func.func @_matmul_bias_act_kernel(%arg0: i32, %arg1: i32, %arg2: i32, %arg3: memref<32x384xbf16, #tpu.memory_space<vmem>>, %arg4: memref<384x256xbf16, #tpu.memory_space<vmem>>, %arg5: memref<1x256xf32, #tpu.memory_space<vmem>>, %arg6: memref<32x256xf32, #tpu.memory_space<vmem>>, %arg7: memref<32x256xf32, #tpu.memory_space<vmem>>) attributes {dimension_semantics = [#tpu.dimension_semantics<parallel>, #tpu.dimension_semantics<parallel>, #tpu.dimension_semantics<arbitrary>], iteration_bounds = array<i64: 1, 1, 3>, scalar_prefetch = 0 : i64, scratch_operands = 1 : i64, tpu.core_type = #tpu.core_type<tc>, window_params = [{transform_indices = @transform_0, window_bounds = array<i64: 32, 384>}, {transform_indices = @transform_1, window_bounds = array<i64: 384, 256>}, {transform_indices = @transform_2, window_bounds = array<i64: 1, 256>}, {transform_indices = @transform_3, window_bounds = array<i64: 32, 256>}]} {
    %c0_i32 = arith.constant 0 : i32
    %0 = arith.cmpi eq, %arg2, %c0_i32 : i32
    %1 = arith.extui %0 : i1 to i32
    %c0_i32_0 = arith.constant 0 : i32
    %2 = arith.cmpi ne, %1, %c0_i32_0 : i32
    scf.if %2 {
      %cst_9 = arith.constant 0.000000e+00 : f32
      %12 = vector.broadcast %cst_9 : f32 to vector<32x256xf32>
      %c0_10 = arith.constant 0 : index
      %c0_11 = arith.constant 0 : index
      %13 = vector.load %arg7[%c0_10, %c0_11] : memref<32x256xf32, #tpu.memory_space<vmem>>, vector<32x256xf32>
      tpu.vector_store %arg7[%c0_10, %c0_11], %12 {strides = array<i32>} : memref<32x256xf32, #tpu.memory_space<vmem>>, vector<32x256xf32>,
    } else {
    }
    %c0 = arith.constant 0 : index
    %c0_1 = arith.constant 0 : index
    %3 = vector.load %arg7[%c0, %c0_1] : memref<32x256xf32, #tpu.memory_space<vmem>>, vector<32x256xf32>
    %c0_2 = arith.constant 0 : index
    %c0_3 = arith.constant 0 : index
    %4 = vector.load %arg3[%c0_2, %c0_3] : memref<32x384xbf16, #tpu.memory_space<vmem>>, vector<32x384xbf16>
    %c0_4 = arith.constant 0 : index
    %c0_5 = arith.constant 0 : index
    %5 = vector.load %arg4[%c0_4, %c0_5] : memref<384x256xbf16, #tpu.memory_space<vmem>>, vector<384x256xbf16>
    %cst = arith.constant dense<0.000000e+00> : vector<32x256xf32>
    %6 = tpu.matmul %4, %5, %cst {dimension_numbers = #tpu.dot_dimension_numbers<[1], [0], [0], [1], [0, 0, 1, 1], [], []>} : vector<32x384xbf16>, vector<384x256xbf16>, vector<32x256xf32> -> vector<32x256xf32>
    %7 = arith.addf %3, %6 : vector<32x256xf32>
    %c0_6 = arith.constant 0 : index
    %c0_7 = arith.constant 0 : index
    %8 = vector.load %arg7[%c0_6, %c0_7] : memref<32x256xf32, #tpu.memory_space<vmem>>, vector<32x256xf32>
    tpu.vector_store %arg7[%c0_6, %c0_7], %7 {strides = array<i32>} : memref<32x256xf32, #tpu.memory_space<vmem>>, vector<32x256xf32>,
    %c2_i32 = arith.constant 2 : i32
    %9 = arith.cmpi eq, %arg2, %c2_i32 : i32
    %10 = arith.extui %9 : i1 to i32
    %c0_i32_8 = arith.constant 0 : i32
    %11 = arith.cmpi ne, %10, %c0_i32_8 : i32
    scf.if %11 {
      %c0_9 = arith.constant 0 : index
      %c0_10 = arith.constant 0 : index
      %12 = vector.load %arg7[%c0_9, %c0_10] : memref<32x256xf32, #tpu.memory_space<vmem>>, vector<32x256xf32>
      %c0_11 = arith.constant 0 : index
      %c0_12 = arith.constant 0 : index
      %13 = vector.load %arg5[%c0_11, %c0_12] : memref<1x256xf32, #tpu.memory_space<vmem>>, vector<1x256xf32>
      %14 = vector.broadcast %13 : vector<1x256xf32> to vector<32x256xf32>
      %15 = arith.addf %12, %14 : vector<32x256xf32>
      %cst_13 = arith.constant 0.000000e+00 : f32
      %16 = vector.broadcast %cst_13 : f32 to vector<32x256xf32>
      %17 = arith.maximumf %15, %16 : vector<32x256xf32>
      %c0_14 = arith.constant 0 : index
      %c0_15 = arith.constant 0 : index
      %18 = vector.load %arg6[%c0_14, %c0_15] : memref<32x256xf32, #tpu.memory_space<vmem>>, vector<32x256xf32>
      tpu.vector_store %arg6[%c0_14, %c0_15], %17 {strides = array<i32>} : memref<32x256xf32, #tpu.memory_space<vmem>>, vector<32x256xf32>,
    } else {
    }
    return
  }
  func.func @transform_0(%arg0: i32, %arg1: i32, %arg2: i32) -> (i32, i32) {
    %c0_i32 = arith.constant 0 : i32
    return %arg0, %arg2 : i32, i32
  }
  func.func @transform_1(%arg0: i32, %arg1: i32, %arg2: i32) -> (i32, i32) {
    %c0_i32 = arith.constant 0 : i32
    return %arg2, %arg1 : i32, i32
  }
  func.func @transform_2(%arg0: i32, %arg1: i32, %arg2: i32) -> (i32, i32) {
    %c0_i32 = arith.constant 0 : i32
    %c0_i32_0 = arith.constant 0 : i32
    return %c0_i32, %arg1 : i32, i32
  }
  func.func @transform_3(%arg0: i32, %arg1: i32, %arg2: i32) -> (i32, i32) {
    %c0_i32 = arith.constant 0 : i32
    return %arg0, %arg1 : i32, i32
  }
}

module attributes {stable_mosaic.version = 11 : i64} {
  func.func @_matmul_bias_act_kernel(%arg0: i32, %arg1: i32, %arg2: i32, %arg3: memref<32x384xbf16, #tpu.memory_space<vmem>>, %arg4: memref<384x256xbf16, #tpu.memory_space<vmem>>, %arg5: memref<1x256xf32, #tpu.memory_space<vmem>>, %arg6: memref<32x256xf32, #tpu.memory_space<vmem>>, %arg7: memref<32x256xf32, #tpu.memory_space<vmem>>) attributes {dimension_semantics = [#tpu.dimension_semantics<parallel>, #tpu.dimension_semantics<parallel>, #tpu.dimension_semantics<arbitrary>], iteration_bounds = array<i64: 1, 1, 6>, scalar_prefetch = 0 : i64, scratch_operands = 1 : i64, tpu.core_type = #tpu.core_type<tc>, window_params = [{transform_indices = @transform_0, window_bounds = array<i64: 32, 384>}, {transform_indices = @transform_1, window_bounds = array<i64: 384, 256>}, {transform_indices = @transform_2, window_bounds = array<i64: 1, 256>}, {transform_indices = @transform_3, window_bounds = array<i64: 32, 256>}]} {
    %c0_i32 = arith.constant 0 : i32
    %0 = arith.cmpi eq, %arg2, %c0_i32 : i32
    %1 = arith.extui %0 : i1 to i32
    %c0_i32_0 = arith.constant 0 : i32
    %2 = arith.cmpi ne, %1, %c0_i32_0 : i32
    scf.if %2 {
      %cst_9 = arith.constant 0.000000e+00 : f32
      %12 = vector.broadcast %cst_9 : f32 to vector<32x256xf32>
      %c0_10 = arith.constant 0 : index
      %c0_11 = arith.constant 0 : index
      %13 = vector.load %arg7[%c0_10, %c0_11] : memref<32x256xf32, #tpu.memory_space<vmem>>, vector<32x256xf32>
      tpu.vector_store %arg7[%c0_10, %c0_11], %12 {strides = array<i32>} : memref<32x256xf32, #tpu.memory_space<vmem>>, vector<32x256xf32>,
    } else {
    }
    %c0 = arith.constant 0 : index
    %c0_1 = arith.constant 0 : index
    %3 = vector.load %arg7[%c0, %c0_1] : memref<32x256xf32, #tpu.memory_space<vmem>>, vector<32x256xf32>
    %c0_2 = arith.constant 0 : index
    %c0_3 = arith.constant 0 : index
    %4 = vector.load %arg3[%c0_2, %c0_3] : memref<32x384xbf16, #tpu.memory_space<vmem>>, vector<32x384xbf16>
    %c0_4 = arith.constant 0 : index
    %c0_5 = arith.constant 0 : index
    %5 = vector.load %arg4[%c0_4, %c0_5] : memref<384x256xbf16, #tpu.memory_space<vmem>>, vector<384x256xbf16>
    %cst = arith.constant dense<0.000000e+00> : vector<32x256xf32>
    %6 = tpu.matmul %4, %5, %cst {dimension_numbers = #tpu.dot_dimension_numbers<[1], [0], [0], [1], [0, 0, 1, 1], [], []>} : vector<32x384xbf16>, vector<384x256xbf16>, vector<32x256xf32> -> vector<32x256xf32>
    %7 = arith.addf %3, %6 : vector<32x256xf32>
    %c0_6 = arith.constant 0 : index
    %c0_7 = arith.constant 0 : index
    %8 = vector.load %arg7[%c0_6, %c0_7] : memref<32x256xf32, #tpu.memory_space<vmem>>, vector<32x256xf32>
    tpu.vector_store %arg7[%c0_6, %c0_7], %7 {strides = array<i32>} : memref<32x256xf32, #tpu.memory_space<vmem>>, vector<32x256xf32>,
    %c5_i32 = arith.constant 5 : i32
    %9 = arith.cmpi eq, %arg2, %c5_i32 : i32
    %10 = arith.extui %9 : i1 to i32
    %c0_i32_8 = arith.constant 0 : i32
    %11 = arith.cmpi ne, %10, %c0_i32_8 : i32
    scf.if %11 {
      %c0_9 = arith.constant 0 : index
      %c0_10 = arith.constant 0 : index
      %12 = vector.load %arg7[%c0_9, %c0_10] : memref<32x256xf32, #tpu.memory_space<vmem>>, vector<32x256xf32>
      %c0_11 = arith.constant 0 : index
      %c0_12 = arith.constant 0 : index
      %13 = vector.load %arg5[%c0_11, %c0_12] : memref<1x256xf32, #tpu.memory_space<vmem>>, vector<1x256xf32>
      %14 = vector.broadcast %13 : vector<1x256xf32> to vector<32x256xf32>
      %15 = arith.addf %12, %14 : vector<32x256xf32>
      %cst_13 = arith.constant 0.000000e+00 : f32
      %16 = vector.broadcast %cst_13 : f32 to vector<32x256xf32>
      %17 = arith.maximumf %15, %16 : vector<32x256xf32>
      %c0_14 = arith.constant 0 : index
      %c0_15 = arith.constant 0 : index
      %18 = vector.load %arg6[%c0_14, %c0_15] : memref<32x256xf32, #tpu.memory_space<vmem>>, vector<32x256xf32>
      tpu.vector_store %arg6[%c0_14, %c0_15], %17 {strides = array<i32>} : memref<32x256xf32, #tpu.memory_space<vmem>>, vector<32x256xf32>,
    } else {
    }
    return
  }
  func.func @transform_0(%arg0: i32, %arg1: i32, %arg2: i32) -> (i32, i32) {
    %c0_i32 = arith.constant 0 : i32
    return %arg0, %arg2 : i32, i32
  }
  func.func @transform_1(%arg0: i32, %arg1: i32, %arg2: i32) -> (i32, i32) {
    %c0_i32 = arith.constant 0 : i32
    return %arg2, %arg1 : i32, i32
  }
  func.func @transform_2(%arg0: i32, %arg1: i32, %arg2: i32) -> (i32, i32) {
    %c0_i32 = arith.constant 0 : i32
    %c0_i32_0 = arith.constant 0 : i32
    return %c0_i32, %arg1 : i32, i32
  }
  func.func @transform_3(%arg0: i32, %arg1: i32, %arg2: i32) -> (i32, i32) {
    %c0_i32 = arith.constant 0 : i32
    return %arg0, %arg1 : i32, i32
  }
}

module attributes {stable_mosaic.version = 11 : i64} {
  func.func @_maxpool_kernel(%arg0: i32, %arg1: memref<4x8x256xf32, #tpu.memory_space<vmem>>, %arg2: memref<8x256xf32, #tpu.memory_space<vmem>>) attributes {dimension_semantics = [#tpu.dimension_semantics<parallel>], iteration_bounds = array<i64: 1>, scalar_prefetch = 0 : i64, scratch_operands = 0 : i64, tpu.core_type = #tpu.core_type<tc>, window_params = [{transform_indices = @transform_0, window_bounds = array<i64: 4, 8, 256>}, {transform_indices = @transform_1, window_bounds = array<i64: 8, 256>}]} {
    %c0 = arith.constant 0 : index
    %c0_0 = arith.constant 0 : index
    %c0_1 = arith.constant 0 : index
    %0 = vector.load %arg1[%c0, %c0_0, %c0_1] : memref<4x8x256xf32, #tpu.memory_space<vmem>>, vector<1x8x256xf32>
    %1 = vector.shape_cast %0 : vector<1x8x256xf32> to vector<8x256xf32>
    %c1 = arith.constant 1 : index
    %c0_2 = arith.constant 0 : index
    %c0_3 = arith.constant 0 : index
    %2 = vector.load %arg1[%c1, %c0_2, %c0_3] : memref<4x8x256xf32, #tpu.memory_space<vmem>>, vector<1x8x256xf32>
    %3 = vector.shape_cast %2 : vector<1x8x256xf32> to vector<8x256xf32>
    %4 = arith.maximumf %1, %3 : vector<8x256xf32>
    %c2 = arith.constant 2 : index
    %c0_4 = arith.constant 0 : index
    %c0_5 = arith.constant 0 : index
    %5 = vector.load %arg1[%c2, %c0_4, %c0_5] : memref<4x8x256xf32, #tpu.memory_space<vmem>>, vector<1x8x256xf32>
    %6 = vector.shape_cast %5 : vector<1x8x256xf32> to vector<8x256xf32>
    %c3 = arith.constant 3 : index
    %c0_6 = arith.constant 0 : index
    %c0_7 = arith.constant 0 : index
    %7 = vector.load %arg1[%c3, %c0_6, %c0_7] : memref<4x8x256xf32, #tpu.memory_space<vmem>>, vector<1x8x256xf32>
    %8 = vector.shape_cast %7 : vector<1x8x256xf32> to vector<8x256xf32>
    %9 = arith.maximumf %6, %8 : vector<8x256xf32>
    %10 = arith.maximumf %4, %9 : vector<8x256xf32>
    %c0_8 = arith.constant 0 : index
    %c0_9 = arith.constant 0 : index
    %11 = vector.load %arg2[%c0_8, %c0_9] : memref<8x256xf32, #tpu.memory_space<vmem>>, vector<8x256xf32>
    tpu.vector_store %arg2[%c0_8, %c0_9], %10 {strides = array<i32>} : memref<8x256xf32, #tpu.memory_space<vmem>>, vector<8x256xf32>,
    return
  }
  func.func @transform_0(%arg0: i32) -> (i32, i32, i32) {
    %c0_i32 = arith.constant 0 : i32
    %c0_i32_0 = arith.constant 0 : i32
    %c0_i32_1 = arith.constant 0 : i32
    return %c0_i32, %arg0, %c0_i32_0 : i32, i32, i32
  }
  func.func @transform_1(%arg0: i32) -> (i32, i32) {
    %c0_i32 = arith.constant 0 : i32
    %c0_i32_0 = arith.constant 0 : i32
    return %arg0, %c0_i32 : i32, i32
  }
}

module attributes {stable_mosaic.version = 11 : i64} {
  func.func @_matmul_bias_act_kernel(%arg0: i32, %arg1: i32, %arg2: i32, %arg3: memref<8x384xbf16, #tpu.memory_space<vmem>>, %arg4: memref<384x256xbf16, #tpu.memory_space<vmem>>, %arg5: memref<1x256xf32, #tpu.memory_space<vmem>>, %arg6: memref<8x256xf32, #tpu.memory_space<vmem>>, %arg7: memref<8x256xf32, #tpu.memory_space<vmem>>) attributes {dimension_semantics = [#tpu.dimension_semantics<parallel>, #tpu.dimension_semantics<parallel>, #tpu.dimension_semantics<arbitrary>], iteration_bounds = array<i64: 1, 2, 6>, scalar_prefetch = 0 : i64, scratch_operands = 1 : i64, tpu.core_type = #tpu.core_type<tc>, window_params = [{transform_indices = @transform_0, window_bounds = array<i64: 8, 384>}, {transform_indices = @transform_1, window_bounds = array<i64: 384, 256>}, {transform_indices = @transform_2, window_bounds = array<i64: 1, 256>}, {transform_indices = @transform_3, window_bounds = array<i64: 8, 256>}]} {
    %c0_i32 = arith.constant 0 : i32
    %0 = arith.cmpi eq, %arg2, %c0_i32 : i32
    %1 = arith.extui %0 : i1 to i32
    %c0_i32_0 = arith.constant 0 : i32
    %2 = arith.cmpi ne, %1, %c0_i32_0 : i32
    scf.if %2 {
      %cst_9 = arith.constant 0.000000e+00 : f32
      %12 = vector.broadcast %cst_9 : f32 to vector<8x256xf32>
      %c0_10 = arith.constant 0 : index
      %c0_11 = arith.constant 0 : index
      %13 = vector.load %arg7[%c0_10, %c0_11] : memref<8x256xf32, #tpu.memory_space<vmem>>, vector<8x256xf32>
      tpu.vector_store %arg7[%c0_10, %c0_11], %12 {strides = array<i32>} : memref<8x256xf32, #tpu.memory_space<vmem>>, vector<8x256xf32>,
    } else {
    }
    %c0 = arith.constant 0 : index
    %c0_1 = arith.constant 0 : index
    %3 = vector.load %arg7[%c0, %c0_1] : memref<8x256xf32, #tpu.memory_space<vmem>>, vector<8x256xf32>
    %c0_2 = arith.constant 0 : index
    %c0_3 = arith.constant 0 : index
    %4 = vector.load %arg3[%c0_2, %c0_3] : memref<8x384xbf16, #tpu.memory_space<vmem>>, vector<8x384xbf16>
    %c0_4 = arith.constant 0 : index
    %c0_5 = arith.constant 0 : index
    %5 = vector.load %arg4[%c0_4, %c0_5] : memref<384x256xbf16, #tpu.memory_space<vmem>>, vector<384x256xbf16>
    %cst = arith.constant dense<0.000000e+00> : vector<8x256xf32>
    %6 = tpu.matmul %4, %5, %cst {dimension_numbers = #tpu.dot_dimension_numbers<[1], [0], [0], [1], [0, 0, 1, 1], [], []>} : vector<8x384xbf16>, vector<384x256xbf16>, vector<8x256xf32> -> vector<8x256xf32>
    %7 = arith.addf %3, %6 : vector<8x256xf32>
    %c0_6 = arith.constant 0 : index
    %c0_7 = arith.constant 0 : index
    %8 = vector.load %arg7[%c0_6, %c0_7] : memref<8x256xf32, #tpu.memory_space<vmem>>, vector<8x256xf32>
    tpu.vector_store %arg7[%c0_6, %c0_7], %7 {strides = array<i32>} : memref<8x256xf32, #tpu.memory_space<vmem>>, vector<8x256xf32>,
    %c5_i32 = arith.constant 5 : i32
    %9 = arith.cmpi eq, %arg2, %c5_i32 : i32
    %10 = arith.extui %9 : i1 to i32
    %c0_i32_8 = arith.constant 0 : i32
    %11 = arith.cmpi ne, %10, %c0_i32_8 : i32
    scf.if %11 {
      %c0_9 = arith.constant 0 : index
      %c0_10 = arith.constant 0 : index
      %12 = vector.load %arg7[%c0_9, %c0_10] : memref<8x256xf32, #tpu.memory_space<vmem>>, vector<8x256xf32>
      %c0_11 = arith.constant 0 : index
      %c0_12 = arith.constant 0 : index
      %13 = vector.load %arg5[%c0_11, %c0_12] : memref<1x256xf32, #tpu.memory_space<vmem>>, vector<1x256xf32>
      %14 = vector.broadcast %13 : vector<1x256xf32> to vector<8x256xf32>
      %15 = arith.addf %12, %14 : vector<8x256xf32>
      %cst_13 = arith.constant 0.000000e+00 : f32
      %16 = vector.broadcast %cst_13 : f32 to vector<8x256xf32>
      %17 = arith.maximumf %15, %16 : vector<8x256xf32>
      %c0_14 = arith.constant 0 : index
      %c0_15 = arith.constant 0 : index
      %18 = vector.load %arg6[%c0_14, %c0_15] : memref<8x256xf32, #tpu.memory_space<vmem>>, vector<8x256xf32>
      tpu.vector_store %arg6[%c0_14, %c0_15], %17 {strides = array<i32>} : memref<8x256xf32, #tpu.memory_space<vmem>>, vector<8x256xf32>,
    } else {
    }
    return
  }
  func.func @transform_0(%arg0: i32, %arg1: i32, %arg2: i32) -> (i32, i32) {
    %c0_i32 = arith.constant 0 : i32
    return %arg0, %arg2 : i32, i32
  }
  func.func @transform_1(%arg0: i32, %arg1: i32, %arg2: i32) -> (i32, i32) {
    %c0_i32 = arith.constant 0 : i32
    return %arg2, %arg1 : i32, i32
  }
  func.func @transform_2(%arg0: i32, %arg1: i32, %arg2: i32) -> (i32, i32) {
    %c0_i32 = arith.constant 0 : i32
    %c0_i32_0 = arith.constant 0 : i32
    return %c0_i32, %arg1 : i32, i32
  }
  func.func @transform_3(%arg0: i32, %arg1: i32, %arg2: i32) -> (i32, i32) {
    %c0_i32 = arith.constant 0 : i32
    return %arg0, %arg1 : i32, i32
  }
}

module attributes {stable_mosaic.version = 11 : i64} {
  func.func @_matmul_bias_act_kernel(%arg0: i32, %arg1: i32, %arg2: i32, %arg3: memref<8x512xbf16, #tpu.memory_space<vmem>>, %arg4: memref<512x256xbf16, #tpu.memory_space<vmem>>, %arg5: memref<1x256xf32, #tpu.memory_space<vmem>>, %arg6: memref<8x256xf32, #tpu.memory_space<vmem>>, %arg7: memref<8x256xf32, #tpu.memory_space<vmem>>) attributes {dimension_semantics = [#tpu.dimension_semantics<parallel>, #tpu.dimension_semantics<parallel>, #tpu.dimension_semantics<arbitrary>], iteration_bounds = array<i64: 1, 2, 9>, scalar_prefetch = 0 : i64, scratch_operands = 1 : i64, tpu.core_type = #tpu.core_type<tc>, window_params = [{transform_indices = @transform_0, window_bounds = array<i64: 8, 512>}, {transform_indices = @transform_1, window_bounds = array<i64: 512, 256>}, {transform_indices = @transform_2, window_bounds = array<i64: 1, 256>}, {transform_indices = @transform_3, window_bounds = array<i64: 8, 256>}]} {
    %c0_i32 = arith.constant 0 : i32
    %0 = arith.cmpi eq, %arg2, %c0_i32 : i32
    %1 = arith.extui %0 : i1 to i32
    %c0_i32_0 = arith.constant 0 : i32
    %2 = arith.cmpi ne, %1, %c0_i32_0 : i32
    scf.if %2 {
      %cst_9 = arith.constant 0.000000e+00 : f32
      %12 = vector.broadcast %cst_9 : f32 to vector<8x256xf32>
      %c0_10 = arith.constant 0 : index
      %c0_11 = arith.constant 0 : index
      %13 = vector.load %arg7[%c0_10, %c0_11] : memref<8x256xf32, #tpu.memory_space<vmem>>, vector<8x256xf32>
      tpu.vector_store %arg7[%c0_10, %c0_11], %12 {strides = array<i32>} : memref<8x256xf32, #tpu.memory_space<vmem>>, vector<8x256xf32>,
    } else {
    }
    %c0 = arith.constant 0 : index
    %c0_1 = arith.constant 0 : index
    %3 = vector.load %arg7[%c0, %c0_1] : memref<8x256xf32, #tpu.memory_space<vmem>>, vector<8x256xf32>
    %c0_2 = arith.constant 0 : index
    %c0_3 = arith.constant 0 : index
    %4 = vector.load %arg3[%c0_2, %c0_3] : memref<8x512xbf16, #tpu.memory_space<vmem>>, vector<8x512xbf16>
    %c0_4 = arith.constant 0 : index
    %c0_5 = arith.constant 0 : index
    %5 = vector.load %arg4[%c0_4, %c0_5] : memref<512x256xbf16, #tpu.memory_space<vmem>>, vector<512x256xbf16>
    %cst = arith.constant dense<0.000000e+00> : vector<8x256xf32>
    %6 = tpu.matmul %4, %5, %cst {dimension_numbers = #tpu.dot_dimension_numbers<[1], [0], [0], [1], [0, 0, 1, 1], [], []>} : vector<8x512xbf16>, vector<512x256xbf16>, vector<8x256xf32> -> vector<8x256xf32>
    %7 = arith.addf %3, %6 : vector<8x256xf32>
    %c0_6 = arith.constant 0 : index
    %c0_7 = arith.constant 0 : index
    %8 = vector.load %arg7[%c0_6, %c0_7] : memref<8x256xf32, #tpu.memory_space<vmem>>, vector<8x256xf32>
    tpu.vector_store %arg7[%c0_6, %c0_7], %7 {strides = array<i32>} : memref<8x256xf32, #tpu.memory_space<vmem>>, vector<8x256xf32>,
    %c8_i32 = arith.constant 8 : i32
    %9 = arith.cmpi eq, %arg2, %c8_i32 : i32
    %10 = arith.extui %9 : i1 to i32
    %c0_i32_8 = arith.constant 0 : i32
    %11 = arith.cmpi ne, %10, %c0_i32_8 : i32
    scf.if %11 {
      %c0_9 = arith.constant 0 : index
      %c0_10 = arith.constant 0 : index
      %12 = vector.load %arg7[%c0_9, %c0_10] : memref<8x256xf32, #tpu.memory_space<vmem>>, vector<8x256xf32>
      %c0_11 = arith.constant 0 : index
      %c0_12 = arith.constant 0 : index
      %13 = vector.load %arg5[%c0_11, %c0_12] : memref<1x256xf32, #tpu.memory_space<vmem>>, vector<1x256xf32>
      %14 = vector.broadcast %13 : vector<1x256xf32> to vector<8x256xf32>
      %15 = arith.addf %12, %14 : vector<8x256xf32>
      %cst_13 = arith.constant 0.000000e+00 : f32
      %16 = vector.broadcast %cst_13 : f32 to vector<8x256xf32>
      %17 = arith.maximumf %15, %16 : vector<8x256xf32>
      %c0_14 = arith.constant 0 : index
      %c0_15 = arith.constant 0 : index
      %18 = vector.load %arg6[%c0_14, %c0_15] : memref<8x256xf32, #tpu.memory_space<vmem>>, vector<8x256xf32>
      tpu.vector_store %arg6[%c0_14, %c0_15], %17 {strides = array<i32>} : memref<8x256xf32, #tpu.memory_space<vmem>>, vector<8x256xf32>,
    } else {
    }
    return
  }
  func.func @transform_0(%arg0: i32, %arg1: i32, %arg2: i32) -> (i32, i32) {
    %c0_i32 = arith.constant 0 : i32
    return %arg0, %arg2 : i32, i32
  }
  func.func @transform_1(%arg0: i32, %arg1: i32, %arg2: i32) -> (i32, i32) {
    %c0_i32 = arith.constant 0 : i32
    return %arg2, %arg1 : i32, i32
  }
  func.func @transform_2(%arg0: i32, %arg1: i32, %arg2: i32) -> (i32, i32) {
    %c0_i32 = arith.constant 0 : i32
    %c0_i32_0 = arith.constant 0 : i32
    return %c0_i32, %arg1 : i32, i32
  }
  func.func @transform_3(%arg0: i32, %arg1: i32, %arg2: i32) -> (i32, i32) {
    %c0_i32 = arith.constant 0 : i32
    return %arg0, %arg1 : i32, i32
  }
}

module attributes {stable_mosaic.version = 11 : i64} {
  func.func @_matmul_bias_act_kernel(%arg0: i32, %arg1: i32, %arg2: i32, %arg3: memref<8x512xbf16, #tpu.memory_space<vmem>>, %arg4: memref<512x256xbf16, #tpu.memory_space<vmem>>, %arg5: memref<1x256xf32, #tpu.memory_space<vmem>>, %arg6: memref<8x256xf32, #tpu.memory_space<vmem>>, %arg7: memref<8x256xf32, #tpu.memory_space<vmem>>) attributes {dimension_semantics = [#tpu.dimension_semantics<parallel>, #tpu.dimension_semantics<parallel>, #tpu.dimension_semantics<arbitrary>], iteration_bounds = array<i64: 1, 1, 9>, scalar_prefetch = 0 : i64, scratch_operands = 1 : i64, tpu.core_type = #tpu.core_type<tc>, window_params = [{transform_indices = @transform_0, window_bounds = array<i64: 8, 512>}, {transform_indices = @transform_1, window_bounds = array<i64: 512, 256>}, {transform_indices = @transform_2, window_bounds = array<i64: 1, 256>}, {transform_indices = @transform_3, window_bounds = array<i64: 8, 256>}]} {
    %c0_i32 = arith.constant 0 : i32
    %0 = arith.cmpi eq, %arg2, %c0_i32 : i32
    %1 = arith.extui %0 : i1 to i32
    %c0_i32_0 = arith.constant 0 : i32
    %2 = arith.cmpi ne, %1, %c0_i32_0 : i32
    scf.if %2 {
      %cst_9 = arith.constant 0.000000e+00 : f32
      %12 = vector.broadcast %cst_9 : f32 to vector<8x256xf32>
      %c0_10 = arith.constant 0 : index
      %c0_11 = arith.constant 0 : index
      %13 = vector.load %arg7[%c0_10, %c0_11] : memref<8x256xf32, #tpu.memory_space<vmem>>, vector<8x256xf32>
      tpu.vector_store %arg7[%c0_10, %c0_11], %12 {strides = array<i32>} : memref<8x256xf32, #tpu.memory_space<vmem>>, vector<8x256xf32>,
    } else {
    }
    %c0 = arith.constant 0 : index
    %c0_1 = arith.constant 0 : index
    %3 = vector.load %arg7[%c0, %c0_1] : memref<8x256xf32, #tpu.memory_space<vmem>>, vector<8x256xf32>
    %c0_2 = arith.constant 0 : index
    %c0_3 = arith.constant 0 : index
    %4 = vector.load %arg3[%c0_2, %c0_3] : memref<8x512xbf16, #tpu.memory_space<vmem>>, vector<8x512xbf16>
    %c0_4 = arith.constant 0 : index
    %c0_5 = arith.constant 0 : index
    %5 = vector.load %arg4[%c0_4, %c0_5] : memref<512x256xbf16, #tpu.memory_space<vmem>>, vector<512x256xbf16>
    %cst = arith.constant dense<0.000000e+00> : vector<8x256xf32>
    %6 = tpu.matmul %4, %5, %cst {dimension_numbers = #tpu.dot_dimension_numbers<[1], [0], [0], [1], [0, 0, 1, 1], [], []>} : vector<8x512xbf16>, vector<512x256xbf16>, vector<8x256xf32> -> vector<8x256xf32>
    %7 = arith.addf %3, %6 : vector<8x256xf32>
    %c0_6 = arith.constant 0 : index
    %c0_7 = arith.constant 0 : index
    %8 = vector.load %arg7[%c0_6, %c0_7] : memref<8x256xf32, #tpu.memory_space<vmem>>, vector<8x256xf32>
    tpu.vector_store %arg7[%c0_6, %c0_7], %7 {strides = array<i32>} : memref<8x256xf32, #tpu.memory_space<vmem>>, vector<8x256xf32>,
    %c8_i32 = arith.constant 8 : i32
    %9 = arith.cmpi eq, %arg2, %c8_i32 : i32
    %10 = arith.extui %9 : i1 to i32
    %c0_i32_8 = arith.constant 0 : i32
    %11 = arith.cmpi ne, %10, %c0_i32_8 : i32
    scf.if %11 {
      %c0_9 = arith.constant 0 : index
      %c0_10 = arith.constant 0 : index
      %12 = vector.load %arg7[%c0_9, %c0_10] : memref<8x256xf32, #tpu.memory_space<vmem>>, vector<8x256xf32>
      %c0_11 = arith.constant 0 : index
      %c0_12 = arith.constant 0 : index
      %13 = vector.load %arg5[%c0_11, %c0_12] : memref<1x256xf32, #tpu.memory_space<vmem>>, vector<1x256xf32>
      %14 = vector.broadcast %13 : vector<1x256xf32> to vector<8x256xf32>
      %15 = arith.addf %12, %14 : vector<8x256xf32>
      %cst_13 = arith.constant 0.000000e+00 : f32
      %16 = vector.broadcast %cst_13 : f32 to vector<8x256xf32>
      %17 = arith.maximumf %15, %16 : vector<8x256xf32>
      %c0_14 = arith.constant 0 : index
      %c0_15 = arith.constant 0 : index
      %18 = vector.load %arg6[%c0_14, %c0_15] : memref<8x256xf32, #tpu.memory_space<vmem>>, vector<8x256xf32>
      tpu.vector_store %arg6[%c0_14, %c0_15], %17 {strides = array<i32>} : memref<8x256xf32, #tpu.memory_space<vmem>>, vector<8x256xf32>,
    } else {
    }
    return
  }
  func.func @transform_0(%arg0: i32, %arg1: i32, %arg2: i32) -> (i32, i32) {
    %c0_i32 = arith.constant 0 : i32
    return %arg0, %arg2 : i32, i32
  }
  func.func @transform_1(%arg0: i32, %arg1: i32, %arg2: i32) -> (i32, i32) {
    %c0_i32 = arith.constant 0 : i32
    return %arg2, %arg1 : i32, i32
  }
  func.func @transform_2(%arg0: i32, %arg1: i32, %arg2: i32) -> (i32, i32) {
    %c0_i32 = arith.constant 0 : i32
    %c0_i32_0 = arith.constant 0 : i32
    return %c0_i32, %arg1 : i32, i32
  }
  func.func @transform_3(%arg0: i32, %arg1: i32, %arg2: i32) -> (i32, i32) {
    %c0_i32 = arith.constant 0 : i32
    return %arg0, %arg1 : i32, i32
  }
}

module attributes {stable_mosaic.version = 11 : i64} {
  func.func @_matmul_bias_act_kernel(%arg0: i32, %arg1: i32, %arg2: i32, %arg3: memref<8x384xbf16, #tpu.memory_space<vmem>>, %arg4: memref<384x64xbf16, #tpu.memory_space<vmem>>, %arg5: memref<1x64xf32, #tpu.memory_space<vmem>>, %arg6: memref<8x64xf32, #tpu.memory_space<vmem>>, %arg7: memref<8x64xf32, #tpu.memory_space<vmem>>) attributes {dimension_semantics = [#tpu.dimension_semantics<parallel>, #tpu.dimension_semantics<parallel>, #tpu.dimension_semantics<arbitrary>], iteration_bounds = array<i64: 1, 1, 3>, scalar_prefetch = 0 : i64, scratch_operands = 1 : i64, tpu.core_type = #tpu.core_type<tc>, window_params = [{transform_indices = @transform_0, window_bounds = array<i64: 8, 384>}, {transform_indices = @transform_1, window_bounds = array<i64: 384, 64>}, {transform_indices = @transform_2, window_bounds = array<i64: 1, 64>}, {transform_indices = @transform_3, window_bounds = array<i64: 8, 64>}]} {
    %c0_i32 = arith.constant 0 : i32
    %0 = arith.cmpi eq, %arg2, %c0_i32 : i32
    %1 = arith.extui %0 : i1 to i32
    %c0_i32_0 = arith.constant 0 : i32
    %2 = arith.cmpi ne, %1, %c0_i32_0 : i32
    scf.if %2 {
      %cst_9 = arith.constant 0.000000e+00 : f32
      %12 = vector.broadcast %cst_9 : f32 to vector<8x64xf32>
      %c0_10 = arith.constant 0 : index
      %c0_11 = arith.constant 0 : index
      %13 = vector.load %arg7[%c0_10, %c0_11] : memref<8x64xf32, #tpu.memory_space<vmem>>, vector<8x64xf32>
      tpu.vector_store %arg7[%c0_10, %c0_11], %12 {strides = array<i32>} : memref<8x64xf32, #tpu.memory_space<vmem>>, vector<8x64xf32>,
    } else {
    }
    %c0 = arith.constant 0 : index
    %c0_1 = arith.constant 0 : index
    %3 = vector.load %arg7[%c0, %c0_1] : memref<8x64xf32, #tpu.memory_space<vmem>>, vector<8x64xf32>
    %c0_2 = arith.constant 0 : index
    %c0_3 = arith.constant 0 : index
    %4 = vector.load %arg3[%c0_2, %c0_3] : memref<8x384xbf16, #tpu.memory_space<vmem>>, vector<8x384xbf16>
    %c0_4 = arith.constant 0 : index
    %c0_5 = arith.constant 0 : index
    %5 = vector.load %arg4[%c0_4, %c0_5] : memref<384x64xbf16, #tpu.memory_space<vmem>>, vector<384x64xbf16>
    %cst = arith.constant dense<0.000000e+00> : vector<8x64xf32>
    %6 = tpu.matmul %4, %5, %cst {dimension_numbers = #tpu.dot_dimension_numbers<[1], [0], [0], [1], [0, 0, 1, 1], [], []>} : vector<8x384xbf16>, vector<384x64xbf16>, vector<8x64xf32> -> vector<8x64xf32>
    %7 = arith.addf %3, %6 : vector<8x64xf32>
    %c0_6 = arith.constant 0 : index
    %c0_7 = arith.constant 0 : index
    %8 = vector.load %arg7[%c0_6, %c0_7] : memref<8x64xf32, #tpu.memory_space<vmem>>, vector<8x64xf32>
    tpu.vector_store %arg7[%c0_6, %c0_7], %7 {strides = array<i32>} : memref<8x64xf32, #tpu.memory_space<vmem>>, vector<8x64xf32>,
    %c2_i32 = arith.constant 2 : i32
    %9 = arith.cmpi eq, %arg2, %c2_i32 : i32
    %10 = arith.extui %9 : i1 to i32
    %c0_i32_8 = arith.constant 0 : i32
    %11 = arith.cmpi ne, %10, %c0_i32_8 : i32
    scf.if %11 {
      %c0_9 = arith.constant 0 : index
      %c0_10 = arith.constant 0 : index
      %12 = vector.load %arg7[%c0_9, %c0_10] : memref<8x64xf32, #tpu.memory_space<vmem>>, vector<8x64xf32>
      %c0_11 = arith.constant 0 : index
      %c0_12 = arith.constant 0 : index
      %13 = vector.load %arg5[%c0_11, %c0_12] : memref<1x64xf32, #tpu.memory_space<vmem>>, vector<1x64xf32>
      %14 = vector.broadcast %13 : vector<1x64xf32> to vector<8x64xf32>
      %15 = arith.addf %12, %14 : vector<8x64xf32>
      %cst_13 = arith.constant 0.000000e+00 : f32
      %16 = vector.broadcast %cst_13 : f32 to vector<8x64xf32>
      %17 = arith.maximumf %15, %16 : vector<8x64xf32>
      %c0_14 = arith.constant 0 : index
      %c0_15 = arith.constant 0 : index
      %18 = vector.load %arg6[%c0_14, %c0_15] : memref<8x64xf32, #tpu.memory_space<vmem>>, vector<8x64xf32>
      tpu.vector_store %arg6[%c0_14, %c0_15], %17 {strides = array<i32>} : memref<8x64xf32, #tpu.memory_space<vmem>>, vector<8x64xf32>,
    } else {
    }
    return
  }
  func.func @transform_0(%arg0: i32, %arg1: i32, %arg2: i32) -> (i32, i32) {
    %c0_i32 = arith.constant 0 : i32
    return %arg0, %arg2 : i32, i32
  }
  func.func @transform_1(%arg0: i32, %arg1: i32, %arg2: i32) -> (i32, i32) {
    %c0_i32 = arith.constant 0 : i32
    return %arg2, %arg1 : i32, i32
  }
  func.func @transform_2(%arg0: i32, %arg1: i32, %arg2: i32) -> (i32, i32) {
    %c0_i32 = arith.constant 0 : i32
    %c0_i32_0 = arith.constant 0 : i32
    return %c0_i32, %arg1 : i32, i32
  }
  func.func @transform_3(%arg0: i32, %arg1: i32, %arg2: i32) -> (i32, i32) {
    %c0_i32 = arith.constant 0 : i32
    return %arg0, %arg1 : i32, i32
  }
}

module attributes {stable_mosaic.version = 11 : i64} {
  func.func @_matmul_bias_act_kernel(%arg0: i32, %arg1: i32, %arg2: i32, %arg3: memref<8x64xbf16, #tpu.memory_space<vmem>>, %arg4: memref<64x128xbf16, #tpu.memory_space<vmem>>, %arg5: memref<1x128xf32, #tpu.memory_space<vmem>>, %arg6: memref<8x128xf32, #tpu.memory_space<vmem>>, %arg7: memref<8x128xf32, #tpu.memory_space<vmem>>) attributes {dimension_semantics = [#tpu.dimension_semantics<parallel>, #tpu.dimension_semantics<parallel>, #tpu.dimension_semantics<arbitrary>], iteration_bounds = array<i64: 1, 1, 1>, scalar_prefetch = 0 : i64, scratch_operands = 1 : i64, tpu.core_type = #tpu.core_type<tc>, window_params = [{transform_indices = @transform_0, window_bounds = array<i64: 8, 64>}, {transform_indices = @transform_1, window_bounds = array<i64: 64, 128>}, {transform_indices = @transform_2, window_bounds = array<i64: 1, 128>}, {transform_indices = @transform_3, window_bounds = array<i64: 8, 128>}]} {
    %c0_i32 = arith.constant 0 : i32
    %0 = arith.cmpi eq, %arg2, %c0_i32 : i32
    %1 = arith.extui %0 : i1 to i32
    %c0_i32_0 = arith.constant 0 : i32
    %2 = arith.cmpi ne, %1, %c0_i32_0 : i32
    scf.if %2 {
      %cst_10 = arith.constant 0.000000e+00 : f32
      %12 = vector.broadcast %cst_10 : f32 to vector<8x128xf32>
      %c0_11 = arith.constant 0 : index
      %c0_12 = arith.constant 0 : index
      %13 = vector.load %arg7[%c0_11, %c0_12] : memref<8x128xf32, #tpu.memory_space<vmem>>, vector<8x128xf32>
      tpu.vector_store %arg7[%c0_11, %c0_12], %12 {strides = array<i32>} : memref<8x128xf32, #tpu.memory_space<vmem>>, vector<8x128xf32>,
    } else {
    }
    %c0 = arith.constant 0 : index
    %c0_1 = arith.constant 0 : index
    %3 = vector.load %arg7[%c0, %c0_1] : memref<8x128xf32, #tpu.memory_space<vmem>>, vector<8x128xf32>
    %c0_2 = arith.constant 0 : index
    %c0_3 = arith.constant 0 : index
    %4 = vector.load %arg3[%c0_2, %c0_3] : memref<8x64xbf16, #tpu.memory_space<vmem>>, vector<8x64xbf16>
    %c0_4 = arith.constant 0 : index
    %c0_5 = arith.constant 0 : index
    %5 = vector.load %arg4[%c0_4, %c0_5] : memref<64x128xbf16, #tpu.memory_space<vmem>>, vector<64x128xbf16>
    %cst = arith.constant dense<0.000000e+00> : vector<8x128xf32>
    %6 = tpu.matmul %4, %5, %cst {dimension_numbers = #tpu.dot_dimension_numbers<[1], [0], [0], [1], [0, 0, 1, 1], [], []>} : vector<8x64xbf16>, vector<64x128xbf16>, vector<8x128xf32> -> vector<8x128xf32>
    %7 = arith.addf %3, %6 : vector<8x128xf32>
    %c0_6 = arith.constant 0 : index
    %c0_7 = arith.constant 0 : index
    %8 = vector.load %arg7[%c0_6, %c0_7] : memref<8x128xf32, #tpu.memory_space<vmem>>, vector<8x128xf32>
    tpu.vector_store %arg7[%c0_6, %c0_7], %7 {strides = array<i32>} : memref<8x128xf32, #tpu.memory_space<vmem>>, vector<8x128xf32>,
    %c0_i32_8 = arith.constant 0 : i32
    %9 = arith.cmpi eq, %arg2, %c0_i32_8 : i32
    %10 = arith.extui %9 : i1 to i32
    %c0_i32_9 = arith.constant 0 : i32
    %11 = arith.cmpi ne, %10, %c0_i32_9 : i32
    scf.if %11 {
      %c0_10 = arith.constant 0 : index
      %c0_11 = arith.constant 0 : index
      %12 = vector.load %arg7[%c0_10, %c0_11] : memref<8x128xf32, #tpu.memory_space<vmem>>, vector<8x128xf32>
      %c0_12 = arith.constant 0 : index
      %c0_13 = arith.constant 0 : index
      %13 = vector.load %arg5[%c0_12, %c0_13] : memref<1x128xf32, #tpu.memory_space<vmem>>, vector<1x128xf32>
      %14 = vector.broadcast %13 : vector<1x128xf32> to vector<8x128xf32>
      %15 = arith.addf %12, %14 : vector<8x128xf32>
      %c0_14 = arith.constant 0 : index
      %c0_15 = arith.constant 0 : index
      %16 = vector.load %arg6[%c0_14, %c0_15] : memref<8x128xf32, #tpu.memory_space<vmem>>, vector<8x128xf32>
      tpu.vector_store %arg6[%c0_14, %c0_15], %15 {strides = array<i32>} : memref<8x128xf32, #tpu.memory_space<vmem>>, vector<8x128xf32>,
    } else {
    }
    return
  }
  func.func @transform_0(%arg0: i32, %arg1: i32, %arg2: i32) -> (i32, i32) {
    %c0_i32 = arith.constant 0 : i32
    return %arg0, %arg2 : i32, i32
  }
  func.func @transform_1(%arg0: i32, %arg1: i32, %arg2: i32) -> (i32, i32) {
    %c0_i32 = arith.constant 0 : i32
    return %arg2, %arg1 : i32, i32
  }
  func.func @transform_2(%arg0: i32, %arg1: i32, %arg2: i32) -> (i32, i32) {
    %c0_i32 = arith.constant 0 : i32
    %c0_i32_0 = arith.constant 0 : i32
    return %c0_i32, %arg1 : i32, i32
  }
  func.func @transform_3(%arg0: i32, %arg1: i32, %arg2: i32) -> (i32, i32) {
    %c0_i32 = arith.constant 0 : i32
    return %arg0, %arg1 : i32, i32
  }
}

module attributes {stable_mosaic.version = 11 : i64} {
  func.func @_matmul_bias_act_kernel(%arg0: i32, %arg1: i32, %arg2: i32, %arg3: memref<8x64xbf16, #tpu.memory_space<vmem>>, %arg4: memref<64x128xbf16, #tpu.memory_space<vmem>>, %arg5: memref<1x128xf32, #tpu.memory_space<vmem>>, %arg6: memref<8x128xf32, #tpu.memory_space<vmem>>, %arg7: memref<8x128xf32, #tpu.memory_space<vmem>>) attributes {dimension_semantics = [#tpu.dimension_semantics<parallel>, #tpu.dimension_semantics<parallel>, #tpu.dimension_semantics<arbitrary>], iteration_bounds = array<i64: 1, 1, 1>, scalar_prefetch = 0 : i64, scratch_operands = 1 : i64, tpu.core_type = #tpu.core_type<tc>, window_params = [{transform_indices = @transform_0, window_bounds = array<i64: 8, 64>}, {transform_indices = @transform_1, window_bounds = array<i64: 64, 128>}, {transform_indices = @transform_2, window_bounds = array<i64: 1, 128>}, {transform_indices = @transform_3, window_bounds = array<i64: 8, 128>}]} {
    %c0_i32 = arith.constant 0 : i32
    %0 = arith.cmpi eq, %arg2, %c0_i32 : i32
    %1 = arith.extui %0 : i1 to i32
    %c0_i32_0 = arith.constant 0 : i32
    %2 = arith.cmpi ne, %1, %c0_i32_0 : i32
    scf.if %2 {
      %cst_10 = arith.constant 0.000000e+00 : f32
      %12 = vector.broadcast %cst_10 : f32 to vector<8x128xf32>
      %c0_11 = arith.constant 0 : index
      %c0_12 = arith.constant 0 : index
      %13 = vector.load %arg7[%c0_11, %c0_12] : memref<8x128xf32, #tpu.memory_space<vmem>>, vector<8x128xf32>
      tpu.vector_store %arg7[%c0_11, %c0_12], %12 {strides = array<i32>} : memref<8x128xf32, #tpu.memory_space<vmem>>, vector<8x128xf32>,
    } else {
    }
    %c0 = arith.constant 0 : index
    %c0_1 = arith.constant 0 : index
    %3 = vector.load %arg7[%c0, %c0_1] : memref<8x128xf32, #tpu.memory_space<vmem>>, vector<8x128xf32>
    %c0_2 = arith.constant 0 : index
    %c0_3 = arith.constant 0 : index
    %4 = vector.load %arg3[%c0_2, %c0_3] : memref<8x64xbf16, #tpu.memory_space<vmem>>, vector<8x64xbf16>
    %c0_4 = arith.constant 0 : index
    %c0_5 = arith.constant 0 : index
    %5 = vector.load %arg4[%c0_4, %c0_5] : memref<64x128xbf16, #tpu.memory_space<vmem>>, vector<64x128xbf16>
    %cst = arith.constant dense<0.000000e+00> : vector<8x128xf32>
    %6 = tpu.matmul %4, %5, %cst {dimension_numbers = #tpu.dot_dimension_numbers<[1], [0], [0], [1], [0, 0, 1, 1], [], []>} : vector<8x64xbf16>, vector<64x128xbf16>, vector<8x128xf32> -> vector<8x128xf32>
    %7 = arith.addf %3, %6 : vector<8x128xf32>
    %c0_6 = arith.constant 0 : index
    %c0_7 = arith.constant 0 : index
    %8 = vector.load %arg7[%c0_6, %c0_7] : memref<8x128xf32, #tpu.memory_space<vmem>>, vector<8x128xf32>
    tpu.vector_store %arg7[%c0_6, %c0_7], %7 {strides = array<i32>} : memref<8x128xf32, #tpu.memory_space<vmem>>, vector<8x128xf32>,
    %c0_i32_8 = arith.constant 0 : i32
    %9 = arith.cmpi eq, %arg2, %c0_i32_8 : i32
    %10 = arith.extui %9 : i1 to i32
    %c0_i32_9 = arith.constant 0 : i32
    %11 = arith.cmpi ne, %10, %c0_i32_9 : i32
    scf.if %11 {
      %c0_10 = arith.constant 0 : index
      %c0_11 = arith.constant 0 : index
      %12 = vector.load %arg7[%c0_10, %c0_11] : memref<8x128xf32, #tpu.memory_space<vmem>>, vector<8x128xf32>
      %c0_12 = arith.constant 0 : index
      %c0_13 = arith.constant 0 : index
      %13 = vector.load %arg5[%c0_12, %c0_13] : memref<1x128xf32, #tpu.memory_space<vmem>>, vector<1x128xf32>
      %14 = vector.broadcast %13 : vector<1x128xf32> to vector<8x128xf32>
      %15 = arith.addf %12, %14 : vector<8x128xf32>
      %cst_14 = arith.constant 0.000000e+00 : f32
      %16 = vector.broadcast %cst_14 : f32 to vector<8x128xf32>
      %17 = arith.maximumf %15, %16 : vector<8x128xf32>
      %c0_15 = arith.constant 0 : index
      %c0_16 = arith.constant 0 : index
      %18 = vector.load %arg6[%c0_15, %c0_16] : memref<8x128xf32, #tpu.memory_space<vmem>>, vector<8x128xf32>
      tpu.vector_store %arg6[%c0_15, %c0_16], %17 {strides = array<i32>} : memref<8x128xf32, #tpu.memory_space<vmem>>, vector<8x128xf32>,
    } else {
    }
    return
  }
  func.func @transform_0(%arg0: i32, %arg1: i32, %arg2: i32) -> (i32, i32) {
    %c0_i32 = arith.constant 0 : i32
    return %arg0, %arg2 : i32, i32
  }
  func.func @transform_1(%arg0: i32, %arg1: i32, %arg2: i32) -> (i32, i32) {
    %c0_i32 = arith.constant 0 : i32
    return %arg2, %arg1 : i32, i32
  }
  func.func @transform_2(%arg0: i32, %arg1: i32, %arg2: i32) -> (i32, i32) {
    %c0_i32 = arith.constant 0 : i32
    %c0_i32_0 = arith.constant 0 : i32
    return %c0_i32, %arg1 : i32, i32
  }
  func.func @transform_3(%arg0: i32, %arg1: i32, %arg2: i32) -> (i32, i32) {
    %c0_i32 = arith.constant 0 : i32
    return %arg0, %arg1 : i32, i32
  }
}

</mosaic_0001>

<bundles_post_ra>
// kernel: csrnet_forward.26
= control target key start
LH: loop header
LB: loop body
LE: loop exit
PB: predicated region body
PF: predicated region fallthrough
CT: control target
= control target key end

     0   :  { %8 = vsyncpa [#allocation4], 0  ;;  %s1984_s0 = inlined_call_operand.hbm [shape: bf16[512,27], index: 0, kind: input, shape index: {}]   ;;  %s1985_s1 = inlined_call_operand.hbm [shape: bf16[27,64], index: 1, kind: input, shape index: {}]   ;;  %s1986_s2 = inlined_call_operand.hbm [shape: f32[1,64], index: 2, kind: input, shape index: {}]   ;;  %s1987_s3 = inlined_call_operand.hbm [shape: f32[512,64], index: 3, kind: output, shape index: {}]  }
   0x1   :  { %9 = vsyncpa [#allocation7], 0 }
   0x2   :  { %10 = vsyncpa [#allocation5], 0  ;;  %s1544_s12 = smov [#allocation6]   ;;  %s1545_s14 = smov [#allocation3]  }
   0x3   :  { %s28_s13 = sshll.u32 %s1544_s12, 4  ;;  %s16_s15 = sshll.u32 %s1545_s14, 4  ;;  %s29_s13 = int_to_ptr.vmem [resolvable:$true] %s28_s13  ;;  %s1574_s15 = int_to_ptr.vmem [resolvable:$true] %s16_s15 }
   0x4   :  { %s1450_s18 = scalar_lea.hbm %s1985_s1, 256 }
   0x5   :  { %p1451_p0 = scmp.ne.s32.totalorder %s1985_s1, %s1450_s18  ;;  %p1454_p1 = scmp.lt.u32.totalorder %s1450_s18, %s1985_s1 }
   0x7   :  { %p1456_p2 = pnand %p1454_p1, %p1451_p0 }
   0x9   :  { %1459 = shalt.err (!%p1456_p2)
}
   0xa   :  { %s1460_s23 = scalar_lea.vmem %s29_s13, 256  ;;  %p1465_p4 = scmp.lt.s32.totalorder %s29_s13, %s29_s13 }
   0xb   :  { %p1461_p3 = scmp.ne.s32.totalorder %s29_s13, %s1460_s23  ;;  %p1466_p5 = scmp.lt.s32.totalorder %s1460_s23, %s1460_s23 }
   0xd   :  { %p1467_p6 = por %p1466_p5, %p1465_p4 }
   0xf   :  { %p1468_p7 = pnand %p1467_p6, %p1461_p3 }
  0x11   :  { %1471 = shalt.err (!%p1468_p7)
}
  0x12   :  { %s1546_s24 = smov 64   ;;  %s1547_s25 = smov 4  }
  0x13   :  { %34 = dma.hbm_to_vmem [thread:$0]  %s1985_s1, 256, %s29_s13, [#allocation7], %s1546_s24, %s1546_s24, %s1547_s25  }
  0x14   :  { %s1472_s30 = scalar_lea.hbm %s1984_s0, 4096 }
  0x15   :  { %p1473_p8 = scmp.ne.s32.totalorder %s1984_s0, %s1472_s30  ;;  %p1476_p9 = scmp.lt.u32.totalorder %s1472_s30, %s1984_s0 }
  0x17   :  { %p1478_p10 = pnand %p1476_p9, %p1473_p8 }
  0x19   :  { %1481 = shalt.err (!%p1478_p10)
}
  0x1a   :  { %s1482_s8 = scalar_lea.vmem %s1574_s15, 4096  ;;  %p1487_p12 = scmp.lt.s32.totalorder %s1574_s15, %s1574_s15 }
  0x1b   :  { %p1483_p11 = scmp.ne.s32.totalorder %s1574_s15, %s1482_s8  ;;  %p1488_p13 = scmp.lt.s32.totalorder %s1482_s8, %s1482_s8 }
  0x1d   :  { %p1489_p0 = por %p1488_p13, %p1487_p12 }
  0x1f   :  { %p1490_p1 = pnand %p1489_p0, %p1483_p11 }
  0x21   :  { %1493 = shalt.err (!%p1490_p1)
}
  0x22   :  { %22 = dma.hbm_to_vmem [thread:$0]  %s1984_s0, 4096, %s1574_s15, [#allocation4], %s1546_s24, %s1546_s24, %s1547_s25  }
  0x23   :  { %s1548_s10 = smov [#allocation8]   ;;  %s1494_s14 = scalar_lea.hbm %s1986_s2, 16 }
  0x24   :  { %s41_s11 = sshll.u32 %s1548_s10, 4  ;;  %p1495_p2 = scmp.ne.s32.totalorder %s1986_s2, %s1494_s14  ;;  %s42_s11 = int_to_ptr.vmem [resolvable:$true] %s41_s11 }
  0x25   :  { %p1498_p3 = scmp.lt.u32.totalorder %s1494_s14, %s1986_s2 }
  0x27   :  { %p1500_p4 = pnand %p1498_p3, %p1495_p2 }
  0x29   :  { %1503 = shalt.err (!%p1500_p4)
}
  0x2a   :  { %s1504_s20 = scalar_lea.vmem %s42_s11, 16  ;;  %s1508_s0 = scalar_lea.vmem %s42_s11, 32 }
  0x2b   :  { %p1505_p5 = scmp.ne.s32.totalorder %s42_s11, %s1504_s20  ;;  %p1509_p6 = scmp.lt.s32.totalorder %s42_s11, %s42_s11 }
  0x2c   :  { %p1510_p7 = scmp.lt.s32.totalorder %s1508_s0, %s1504_s20 }
  0x2e   :  { %p1511_p8 = por %p1510_p7, %p1509_p6 }
  0x30   :  { %p1512_p9 = pnand %p1511_p8, %p1505_p5 }
  0x32   :  { %1515 = shalt.err (!%p1512_p9)
}
  0x33   :  { %44 = dma.hbm_to_vmem [thread:$0]  %s1986_s2, 16, %s42_s11, [#allocation7]  }
  0x34   :  { %1538 = dma.done.wait [#allocation4], 4096  }
  0x35   :  { %1539 = vsyncadd [#allocation4], 4294963200 }
  0x36   :  { %1540 = dma.done.wait [#allocation7], 272  }
  0x37   :  { %1541 = vsyncadd [#allocation7], 4294967024  ;;  %vm524_vm0 = vcmask 1044480   ;;  %vm59_vm1 = vcmask 523264   ;;  %v1549_v0 = vmov 0.0   ;;  %vm525_vm2 = vcmask 1045504  }
  0x38   :  { %62 = vst.msk [vmem:[#allocation2 + $0x10] sm:$0xff] %vm59_vm1, %v1549_v0  ;;  %60 = vst.msk [vmem:[#allocation2] sm:$0xff] %vm59_vm1, %v1549_v0  ;;  %v1550_v1 = vmov 65535   ;;  %vm427_vm3 = vcmask 220160   ;;  %v1416_v3 = vld [vmem:[#allocation6] sm:$0xff]   ;;  %v1420_v9 = vld [vmem:[#allocation3 + $0x8] sm:$0xff]  }
  0x39   :  { %61 = vst.msk [vmem:[#allocation2 + $0x8] sm:$0xff] %vm59_vm1, %v1549_v0  ;;  %63 = vst.msk [vmem:[#allocation2 + $0x18] sm:$0xff] %vm59_vm1, %v1549_v0  ;;  %v526_v2 = vsel %vm524_vm0, 4294967295, %v1550_v1  ;;  %v1417_v5 = vld [vmem:[#allocation6 + $0x8] sm:$0x3f]   ;;  %1334 = vmatprep.subr.bf16.mxu0 %v1416_v3  ;;  %1402 = vmatprep.subr.bf16.mxu1 %v1416_v3  ;;  %v1418_v6 = vld [vmem:[#allocation3] sm:$0xff]  }
  0x3a   :  { %64 = vst.msk [vmem:[#allocation2 + $0x20] sm:$0xff] %vm59_vm1, %v1549_v0  ;;  %65 = vst.msk [vmem:[#allocation2 + $0x28] sm:$0xff] %vm59_vm1, %v1549_v0  ;;  %v527_v4 = vsel %vm525_vm2, %v526_v2, 0  ;;  %1335 = vmatpush3.bf16.msra.mxu0 %v1416_v3  ;;  %1404 = vmatpush3.bf16.msra.mxu1 %v1416_v3  ;;  %v1419_v8 = vld [vmem:[#allocation3 + $0x80] sm:$0xff]   ;;  %v1421_v10 = vld [vmem:[#allocation3 + $0x88] sm:$0xff]   ;;  %s1551_s2 = smov [#allocation9]  }
  0x3b   :  { %66 = vst.msk [vmem:[#allocation2 + $0x30] sm:$0xff] %vm59_vm1, %v1549_v0  ;;  %67 = vst.msk [vmem:[#allocation2 + $0x38] sm:$0xff] %vm59_vm1, %v1549_v0  ;;  %v529_v7 = vand.u32 %v1417_v5, %v527_v4  ;;  %1338 = vmatprep.mubr.msk.bf16.mxu0 %vm427_vm3, %v1418_v6  ;;  %1370 = vmatprep.mubr.msk.bf16.mxu1 %vm427_vm3, %v1419_v8  ;;  %v1422_v11 = vld [vmem:[#allocation3 + $0x10] sm:$0xff]   ;;  %v1424_v13 = vld [vmem:[#allocation3 + $0x18] sm:$0xff]   ;;  %s1220_s22 = sshll.u32 %s1551_s2, 4  ;;  %s1221_s22 = int_to_ptr.vmem [resolvable:$true] %s1220_s22 }
  0x3c   :  { %68 = vst.msk [vmem:[#allocation2 + $0x40] sm:$0xff] %vm59_vm1, %v1549_v0  ;;  %69 = vst.msk [vmem:[#allocation2 + $0x48] sm:$0xff] %vm59_vm1, %v1549_v0  ;;  %v1423_v12 = vld [vmem:[#allocation3 + $0x90] sm:$0xff]   ;;  %v1425_v14 = vld [vmem:[#allocation3 + $0x98] sm:$0xff]   ;;  %s1516_s23 = scalar_lea.vmem %s1221_s22, 8192  ;;  %p1521_p11 = scmp.lt.s32.totalorder %s1221_s22, %s1221_s22 }
  0x3d   :  { %70 = vst.msk [vmem:[#allocation2 + $0x50] sm:$0xff] %vm59_vm1, %v1549_v0  ;;  %71 = vst.msk [vmem:[#allocation2 + $0x58] sm:$0xff] %vm59_vm1, %v1549_v0  ;;  %1336 = vmatprep.subr.bf16.mxu0 %v529_v7  ;;  %1403 = vmatprep.subr.bf16.mxu1 %v529_v7  ;;  %v1426_v15 = vld [vmem:[#allocation3 + $0x20] sm:$0xff]   ;;  %v1428_v17 = vld [vmem:[#allocation3 + $0x28] sm:$0xff]   ;;  %p1517_p10 = scmp.ne.s32.totalorder %s1221_s22, %s1516_s23  ;;  %p1522_p12 = scmp.lt.s32.totalorder %s1516_s23, %s1516_s23 }
  0x3e   :  { %72 = vst.msk [vmem:[#allocation2 + $0x60] sm:$0xff] %vm59_vm1, %v1549_v0  ;;  %73 = vst.msk [vmem:[#allocation2 + $0x68] sm:$0xff] %vm59_vm1, %v1549_v0  ;;  %1337 = vmatpush3.bf16.msra.mxu0 %v529_v7  ;;  %1405 = vmatpush3.bf16.msra.mxu1 %v529_v7  ;;  %v1427_v16 = vld [vmem:[#allocation3 + $0xa0] sm:$0xff]   ;;  %v1429_v18 = vld [vmem:[#allocation3 + $0xa8] sm:$0xff]  }
  0x3f   :  { %74 = vst.msk [vmem:[#allocation2 + $0x70] sm:$0xff] %vm59_vm1, %v1549_v0  ;;  %75 = vst.msk [vmem:[#allocation2 + $0x78] sm:$0xff] %vm59_vm1, %v1549_v0  ;;  %v1430_v19 = vld [vmem:[#allocation3 + $0x30] sm:$0xff]   ;;  %v1432_v21 = vld [vmem:[#allocation3 + $0x38] sm:$0xff]   ;;  %p1523_p13 = por %p1522_p12, %p1521_p11 }
  0x40   :  { %76 = vst.msk [vmem:[#allocation2 + $0x80] sm:$0xff] %vm59_vm1, %v1549_v0  ;;  %77 = vst.msk [vmem:[#allocation2 + $0x88] sm:$0xff] %vm59_vm1, %v1549_v0  ;;  %v1431_v20 = vld [vmem:[#allocation3 + $0xb0] sm:$0xff]   ;;  %v1433_v22 = vld [vmem:[#allocation3 + $0xb8] sm:$0xff]  }
  0x41   :  { %78 = vst.msk [vmem:[#allocation2 + $0x90] sm:$0xff] %vm59_vm1, %v1549_v0  ;;  %79 = vst.msk [vmem:[#allocation2 + $0x98] sm:$0xff] %vm59_vm1, %v1549_v0  ;;  %1339 = vmatmul.mubr.msk.bf16.vlgmr.msra.gmra.mrb[0].mxu0 %vm427_vm3, %v1420_v9  ;;  %1371 = vmatmul.mubr.msk.bf16.vlgmr.msra.gmra.mrb[0].mxu1 %vm427_vm3, %v1421_v10  ;;  %v1434_v23 = vld [vmem:[#allocation3 + $0x40] sm:$0xff]   ;;  %v1436_v25 = vld [vmem:[#allocation3 + $0x48] sm:$0xff]   ;;  %p1524_p0 = pnand %p1523_p13, %p1517_p10 }
  0x42   :  { %80 = vst.msk [vmem:[#allocation2 + $0xa0] sm:$0xff] %vm59_vm1, %v1549_v0  ;;  %81 = vst.msk [vmem:[#allocation2 + $0xa8] sm:$0xff] %vm59_vm1, %v1549_v0  ;;  %1342 = vmatprep.mubr.msk.bf16.mxu0 %vm427_vm3, %v1422_v11  ;;  %1374 = vmatprep.mubr.msk.bf16.mxu1 %vm427_vm3, %v1423_v12  ;;  %v1435_v24 = vld [vmem:[#allocation3 + $0xc0] sm:$0xff]   ;;  %v1437_v26 = vld [vmem:[#allocation3 + $0xc8] sm:$0xff]  }
  0x43   :  { %82 = vst.msk [vmem:[#allocation2 + $0xb0] sm:$0xff] %vm59_vm1, %v1549_v0  ;;  %83 = vst.msk [vmem:[#allocation2 + $0xb8] sm:$0xff] %vm59_vm1, %v1549_v0  ;;  %v1438_v27 = vld [vmem:[#allocation3 + $0x50] sm:$0xff]   ;;  %v1440_v29 = vld [vmem:[#allocation3 + $0x58] sm:$0xff]  }
  0x44   :  { %84 = vst.msk [vmem:[#allocation2 + $0xc0] sm:$0xff] %vm59_vm1, %v1549_v0  ;;  %85 = vst.msk [vmem:[#allocation2 + $0xc8] sm:$0xff] %vm59_vm1, %v1549_v0  ;;  %v1439_v28 = vld [vmem:[#allocation3 + $0xd0] sm:$0xff]   ;;  %v1441_v30 = vld [vmem:[#allocation3 + $0xd8] sm:$0xff]  }
  0x45   :  { %86 = vst.msk [vmem:[#allocation2 + $0xd0] sm:$0xff] %vm59_vm1, %v1549_v0  ;;  %87 = vst.msk [vmem:[#allocation2 + $0xd8] sm:$0xff] %vm59_vm1, %v1549_v0  ;;  %v1442_v31 = vld [vmem:[#allocation3 + $0x60] sm:$0xff]   ;;  %v1444_v33 = vld [vmem:[#allocation3 + $0x68] sm:$0xff]  }
  0x46   :  { %88 = vst.msk [vmem:[#allocation2 + $0xe0] sm:$0xff] %vm59_vm1, %v1549_v0  ;;  %89 = vst.msk [vmem:[#allocation2 + $0xe8] sm:$0xff] %vm59_vm1, %v1549_v0  ;;  %v1443_v32 = vld [vmem:[#allocation3 + $0xe0] sm:$0xff]   ;;  %v1445_v34 = vld [vmem:[#allocation3 + $0xe8] sm:$0xff]  }
  0x47   :  { %90 = vst.msk [vmem:[#allocation2 + $0xf0] sm:$0xff] %vm59_vm1, %v1549_v0  ;;  %91 = vst.msk [vmem:[#allocation2 + $0xf8] sm:$0xff] %vm59_vm1, %v1549_v0  ;;  %v1446_v35 = vld [vmem:[#allocation3 + $0x70] sm:$0xff]   ;;  %v1448_v37 = vld [vmem:[#allocation3 + $0x78] sm:$0xff]  }
  0x48   :  { %92 = vst.msk [vmem:[#allocation2 + $0x100] sm:$0xff] %vm59_vm1, %v1549_v0  ;;  %93 = vst.msk [vmem:[#allocation2 + $0x108] sm:$0xff] %vm59_vm1, %v1549_v0  ;;  %v1447_v36 = vld [vmem:[#allocation3 + $0xf0] sm:$0xff]   ;;  %v1449_v38 = vld [vmem:[#allocation3 + $0xf8] sm:$0xff]  }
  0x49   :  { %94 = vst.msk [vmem:[#allocation2 + $0x110] sm:$0xff] %vm59_vm1, %v1549_v0  ;;  %95 = vst.msk [vmem:[#allocation2 + $0x118] sm:$0xff] %vm59_vm1, %v1549_v0  ;;  %1343 = vmatmul.mubr.msk.bf16.gmra.mrb[4].mxu0 %vm427_vm3, %v1424_v13  ;;  %1375 = vmatmul.mubr.msk.bf16.gmra.mrb[4].mxu1 %vm427_vm3, %v1425_v14  ;;  %v126_v39 = vld [vmem:[#allocation2 + $0x10] sm:$0xff]  ;;  %v124_v41 = vld [vmem:[#allocation2] sm:$0xff] }
  0x4a   :  { %96 = vst.msk [vmem:[#allocation2 + $0x120] sm:$0xff] %vm59_vm1, %v1549_v0  ;;  %97 = vst.msk [vmem:[#allocation2 + $0x128] sm:$0xff] %vm59_vm1, %v1549_v0  ;;  %1346 = vmatprep.mubr.msk.bf16.mxu0 %vm427_vm3, %v1426_v15  ;;  %1378 = vmatprep.mubr.msk.bf16.mxu1 %vm427_vm3, %v1427_v16  ;;  %v127_v45 = vld [vmem:[#allocation2 + $0x18] sm:$0xff]  ;;  %v125_v51 = vld [vmem:[#allocation2 + $0x8] sm:$0xff] }
  0x4b   :  { %98 = vst.msk [vmem:[#allocation2 + $0x130] sm:$0xff] %vm59_vm1, %v1549_v0  ;;  %99 = vst.msk [vmem:[#allocation2 + $0x138] sm:$0xff] %vm59_vm1, %v1549_v0  ;;  %v130_v63 = vld [vmem:[#allocation2 + $0x30] sm:$0xff]  ;;  %v128_v1 = vld [vmem:[#allocation2 + $0x20] sm:$0xff] }
  0x4c   :  { %100 = vst.msk [vmem:[#allocation2 + $0x140] sm:$0xff] %vm59_vm1, %v1549_v0  ;;  %101 = vst.msk [vmem:[#allocation2 + $0x148] sm:$0xff] %vm59_vm1, %v1549_v0  ;;  %v1786_v3 = vld [vmem:[#allocation8] ss:$0 sm:$0xff]  ;;  %v131_v6 = vld [vmem:[#allocation2 + $0x38] sm:$0xff] }
  0x4d   :  { %102 = vst.msk [vmem:[#allocation2 + $0x150] sm:$0xff] %vm59_vm1, %v1549_v0  ;;  %103 = vst.msk [vmem:[#allocation2 + $0x158] sm:$0xff] %vm59_vm1, %v1549_v0  ;;  %v129_v12 = vld [vmem:[#allocation2 + $0x28] sm:$0xff] }
  0x4e   :  { %104 = vst.msk [vmem:[#allocation2 + $0x160] sm:$0xff] %vm59_vm1, %v1549_v0  ;;  %105 = vst.msk [vmem:[#allocation2 + $0x168] sm:$0xff] %vm59_vm1, %v1549_v0 }
  0x4f   :  { %106 = vst.msk [vmem:[#allocation2 + $0x170] sm:$0xff] %vm59_vm1, %v1549_v0  ;;  %107 = vst.msk [vmem:[#allocation2 + $0x178] sm:$0xff] %vm59_vm1, %v1549_v0  ;;  %v156_v42 = vld [vmem:[#allocation2 + $0x100] sm:$0xff]  ;;  %v157_v52 = vld [vmem:[#allocation2 + $0x108] sm:$0xff] }
  0x50   :  { %108 = vst.msk [vmem:[#allocation2 + $0x180] sm:$0xff] %vm59_vm1, %v1549_v0  ;;  %109 = vst.msk [vmem:[#allocation2 + $0x188] sm:$0xff] %vm59_vm1, %v1549_v0  ;;  %v158_v40 = vld [vmem:[#allocation2 + $0x110] sm:$0xff]  ;;  %v159_v46 = vld [vmem:[#allocation2 + $0x118] sm:$0xff] }
  0x51   :  { %110 = vst.msk [vmem:[#allocation2 + $0x190] sm:$0xff] %vm59_vm1, %v1549_v0  ;;  %111 = vst.msk [vmem:[#allocation2 + $0x198] sm:$0xff] %vm59_vm1, %v1549_v0  ;;  %1347 = vmatmul.mubr.msk.bf16.gmra.mrb[8].mxu0 %vm427_vm3, %v1428_v17  ;;  %1379 = vmatmul.mubr.msk.bf16.gmra.mrb[8].mxu1 %vm427_vm3, %v1429_v18  ;;  %v160_v2 = vld [vmem:[#allocation2 + $0x120] sm:$0xff]  ;;  %v161_v13 = vld [vmem:[#allocation2 + $0x128] sm:$0xff] }
  0x52   :  { %112 = vst.msk [vmem:[#allocation2 + $0x1a0] sm:$0xff] %vm59_vm1, %v1549_v0  ;;  %113 = vst.msk [vmem:[#allocation2 + $0x1a8] sm:$0xff] %vm59_vm1, %v1549_v0  ;;  %1350 = vmatprep.mubr.msk.bf16.mxu0 %vm427_vm3, %v1430_v19  ;;  %1382 = vmatprep.mubr.msk.bf16.mxu1 %vm427_vm3, %v1431_v20  ;;  %v163_v7 = vld [vmem:[#allocation2 + $0x138] sm:$0xff] }
  0x53   :  { %114 = vst.msk [vmem:[#allocation2 + $0x1b0] sm:$0xff] %vm59_vm1, %v1549_v0  ;;  %115 = vst.msk [vmem:[#allocation2 + $0x1b8] sm:$0xff] %vm59_vm1, %v1549_v0 }
  0x54   :  { %116 = vst.msk [vmem:[#allocation2 + $0x1c0] sm:$0xff] %vm59_vm1, %v1549_v0  ;;  %117 = vst.msk [vmem:[#allocation2 + $0x1c8] sm:$0xff] %vm59_vm1, %v1549_v0 }
  0x55   :  { %118 = vst.msk [vmem:[#allocation2 + $0x1d0] sm:$0xff] %vm59_vm1, %v1549_v0  ;;  %119 = vst.msk [vmem:[#allocation2 + $0x1d8] sm:$0xff] %vm59_vm1, %v1549_v0 }
  0x56   :  { %120 = vst.msk [vmem:[#allocation2 + $0x1e0] sm:$0xff] %vm59_vm1, %v1549_v0  ;;  %121 = vst.msk [vmem:[#allocation2 + $0x1e8] sm:$0xff] %vm59_vm1, %v1549_v0 }
  0x57   :  { %122 = vst.msk [vmem:[#allocation2 + $0x1f0] sm:$0xff] %vm59_vm1, %v1549_v0  ;;  %123 = vst.msk [vmem:[#allocation2 + $0x1f8] sm:$0xff] %vm59_vm1, %v1549_v0  ;;  %v162_v0 = vld [vmem:[#allocation2 + $0x130] sm:$0xff] }
  0x59   :  { %1351 = vmatmul.mubr.msk.bf16.gmra.mrb[12].mxu0 %vm427_vm3, %v1432_v21  ;;  %1383 = vmatmul.mubr.msk.bf16.gmra.mrb[12].mxu1 %vm427_vm3, %v1433_v22 }
  0x5a   :  { %1354 = vmatprep.mubr.msk.bf16.mxu0 %vm427_vm3, %v1434_v23  ;;  %1386 = vmatprep.mubr.msk.bf16.mxu1 %vm427_vm3, %v1435_v24 }
  0x61   :  { %1355 = vmatmul.mubr.msk.bf16.gmra.mrb[16].mxu0 %vm427_vm3, %v1436_v25  ;;  %1387 = vmatmul.mubr.msk.bf16.gmra.mrb[16].mxu1 %vm427_vm3, %v1437_v26 }
  0x62   :  { %1358 = vmatprep.mubr.msk.bf16.mxu0 %vm427_vm3, %v1438_v27  ;;  %1390 = vmatprep.mubr.msk.bf16.mxu1 %vm427_vm3, %v1439_v28 }
  0x69   :  { %1359 = vmatmul.mubr.msk.bf16.gmra.mrb[20].mxu0 %vm427_vm3, %v1440_v29  ;;  %1391 = vmatmul.mubr.msk.bf16.gmra.mrb[20].mxu1 %vm427_vm3, %v1441_v30 }
  0x6a   :  { %1362 = vmatprep.mubr.msk.bf16.mxu0 %vm427_vm3, %v1442_v31  ;;  %1394 = vmatprep.mubr.msk.bf16.mxu1 %vm427_vm3, %v1443_v32 }
  0x71   :  { %1363 = vmatmul.mubr.msk.bf16.gmra.mrb[24].mxu0 %vm427_vm3, %v1444_v33  ;;  %1395 = vmatmul.mubr.msk.bf16.gmra.mrb[24].mxu1 %vm427_vm3, %v1445_v34 }
  0x72   :  { %1366 = vmatprep.mubr.msk.bf16.mxu0 %vm427_vm3, %v1446_v35  ;;  %1398 = vmatprep.mubr.msk.bf16.mxu1 %vm427_vm3, %v1447_v36 }
  0x79   :  { %1367 = vmatmul.mubr.msk.bf16.gmra.mrb[28].mxu0 %vm427_vm3, %v1448_v37  ;;  %1399 = vmatmul.mubr.msk.bf16.gmra.mrb[28].mxu1 %vm427_vm3, %v1449_v38 }
 0x114   :  { %v1340_v43 = vpop.f32.mrb[0].mxu0  ;;  %v1372_v44 = vpop.f32.mrb[0].mxu1 }
 0x115   :  { %v822_v47 = vadd.f32 %v1340_v43, %v126_v39  ;;  %v854_v48 = vadd.f32 %v1372_v44, %v158_v40  ;;  %v565_v49 = vpop.f32.mrb[1].mxu0  ;;  %v693_v50 = vpop.f32.mrb[1].mxu1  ;;  %v134_v44 = vld [vmem:[#allocation2 + $0x50] sm:$0xff] }
 0x116   :  { %v820_v53 = vadd.f32 %v565_v49, %v124_v41  ;;  %v852_v54 = vadd.f32 %v693_v50, %v156_v42  ;;  %v1341_v55 = vpop.f32.mrb[2].mxu0  ;;  %v1373_v56 = vpop.f32.mrb[2].mxu1  ;;  %v164_v49 = vld [vmem:[#allocation2 + $0x140] sm:$0xff] }
 0x117   :  { %887 = vst.msk [vmem:[#allocation2 + $0x10] sm:$0xff] %vm59_vm1, %v822_v47  ;;  %919 = vst.msk [vmem:[#allocation2 + $0x110] sm:$0xff] %vm59_vm1, %v854_v48  ;;  %v823_v57 = vadd.f32 %v1341_v55, %v127_v45  ;;  %v855_v58 = vadd.f32 %v1373_v56, %v159_v46  ;;  %v568_v59 = vpop.f32.mrb[3].mxu0  ;;  %v696_v60 = vpop.f32.mrb[3].mxu1  ;;  %v166_v45 = vld [vmem:[#allocation2 + $0x150] sm:$0xff]  ;;  %v132_v48 = vld [vmem:[#allocation2 + $0x40] sm:$0xff] }
 0x118   :  { %885 = vst.msk [vmem:[#allocation2] sm:$0xff] %vm59_vm1, %v820_v53  ;;  %917 = vst.msk [vmem:[#allocation2 + $0x100] sm:$0xff] %vm59_vm1, %v852_v54  ;;  %v821_v61 = vadd.f32 %v568_v59, %v125_v51  ;;  %v853_v62 = vadd.f32 %v696_v60, %v157_v52  ;;  %v135_v54 = vld [vmem:[#allocation2 + $0x58] sm:$0xff]  ;;  %v133_v60 = vld [vmem:[#allocation2 + $0x48] sm:$0xff] }
 0x119   :  { %888 = vst.msk [vmem:[#allocation2 + $0x18] sm:$0xff] %vm59_vm1, %v823_v57  ;;  %920 = vst.msk [vmem:[#allocation2 + $0x118] sm:$0xff] %vm59_vm1, %v855_v58  ;;  %v167_v55 = vld [vmem:[#allocation2 + $0x158] sm:$0xff] }
 0x11a   :  { %886 = vst.msk [vmem:[#allocation2 + $0x8] sm:$0xff] %vm59_vm1, %v821_v61  ;;  %918 = vst.msk [vmem:[#allocation2 + $0x108] sm:$0xff] %vm59_vm1, %v853_v62  ;;  %v165_v61 = vld [vmem:[#allocation2 + $0x148] sm:$0xff] }
 0x11c   :  { %v1344_v4 = vpop.f32.mrb[4].mxu0  ;;  %v1376_v5 = vpop.f32.mrb[4].mxu1 }
 0x11d   :  { %v826_v8 = vadd.f32 %v1344_v4, %v130_v63  ;;  %v858_v9 = vadd.f32 %v1376_v5, %v162_v0  ;;  %v581_v10 = vpop.f32.mrb[5].mxu0  ;;  %v709_v11 = vpop.f32.mrb[5].mxu1 }
 0x11e   :  { %v954_v14 = vld [vmem:[#allocation2 + $0x10] sm:$0xff]  ;;  %v824_v16 = vadd.f32 %v581_v10, %v128_v1  ;;  %v856_v17 = vadd.f32 %v709_v11, %v160_v2  ;;  %v1345_v18 = vpop.f32.mrb[6].mxu0  ;;  %v1377_v19 = vpop.f32.mrb[6].mxu1 }
 0x11f   :  { %v986_v15 = vld [vmem:[#allocation2 + $0x110] sm:$0xff]  ;;  %v1025_v20 = vadd.f32 %v1786_v3, %v954_v14  ;;  %v952_v22 = vld [vmem:[#allocation2] sm:$0xff]  ;;  %891 = vst.msk [vmem:[#allocation2 + $0x30] sm:$0xff] %vm59_vm1, %v826_v8  ;;  %923 = vst.msk [vmem:[#allocation2 + $0x130] sm:$0xff] %vm59_vm1, %v858_v9  ;;  %v827_v24 = vadd.f32 %v1345_v18, %v131_v6  ;;  %v859_v25 = vadd.f32 %v1377_v19, %v163_v7  ;;  %v584_v26 = vpop.f32.mrb[7].mxu0  ;;  %v712_v27 = vpop.f32.mrb[7].mxu1 }
 0x120   :  { %v1057_v21 = vadd.f32 %v1786_v3, %v986_v15  ;;  %v984_v23 = vld [vmem:[#allocation2 + $0x100] sm:$0xff]  ;;  %v1023_v28 = vadd.f32 %v1786_v3, %v952_v22  ;;  %v955_v30 = vld [vmem:[#allocation2 + $0x18] sm:$0xff]  ;;  %889 = vst.msk [vmem:[#allocation2 + $0x20] sm:$0xff] %vm59_vm1, %v824_v16  ;;  %921 = vst.msk [vmem:[#allocation2 + $0x120] sm:$0xff] %vm59_vm1, %v856_v17  ;;  %v825_v32 = vadd.f32 %v584_v26, %v129_v12 }
 0x121   :  { %v1055_v29 = vadd.f32 %v1786_v3, %v984_v23  ;;  %v987_v31 = vld [vmem:[#allocation2 + $0x118] sm:$0xff]  ;;  %v857_v33 = vadd.f32 %v712_v27, %v161_v13  ;;  %v1089_v34 = vmax.f32 %v1025_v20, 0.0  ;;  %v1026_v36 = vadd.f32 %v1786_v3, %v955_v30  ;;  %v953_v38 = vld [vmem:[#allocation2 + $0x8] sm:$0xff]  ;;  %892 = vst.msk [vmem:[#allocation2 + $0x38] sm:$0xff] %vm59_vm1, %v827_v24  ;;  %924 = vst.msk [vmem:[#allocation2 + $0x138] sm:$0xff] %vm59_vm1, %v859_v25 }
 0x122   :  { %v1121_v35 = vmax.f32 %v1057_v21, 0.0  ;;  %v1058_v37 = vadd.f32 %v1786_v3, %v987_v31  ;;  %v985_v39 = vld [vmem:[#allocation2 + $0x108] sm:$0xff]  ;;  %v1087_v40 = vmax.f32 %v1023_v28, 0.0  ;;  %v1024_v42 = vadd.f32 %v1786_v3, %v953_v38  ;;  %890 = vst.msk [vmem:[#allocation2 + $0x28] sm:$0xff] %vm59_vm1, %v825_v32  ;;  %v170_v30 = vld [vmem:[#allocation2 + $0x170] sm:$0xff] }
 0x123   :  { %v1119_v41 = vmax.f32 %v1055_v29, 0.0  ;;  %v1056_v43 = vadd.f32 %v1786_v3, %v985_v39  ;;  %922 = vst.msk [vmem:[#allocation2 + $0x128] sm:$0xff] %vm59_vm1, %v857_v33  ;;  %1153 = vst.msk [vmem:[#allocation9 + $0x10] sm:$0xff] %vm59_vm1, %v1089_v34  ;;  %v1090_v46 = vmax.f32 %v1026_v36, 0.0  ;;  %v138_v29 = vld [vmem:[#allocation2 + $0x70] sm:$0xff]  ;;  %v136_v33 = vld [vmem:[#allocation2 + $0x60] sm:$0xff] }
 0x124   :  { %1185 = vst.msk [vmem:[#allocation9 + $0x110] sm:$0xff] %vm59_vm1, %v1121_v35  ;;  %v1122_v47 = vmax.f32 %v1058_v37, 0.0  ;;  %1151 = vst.msk [vmem:[#allocation9] sm:$0xff] %vm59_vm1, %v1087_v40  ;;  %v1088_v50 = vmax.f32 %v1024_v42, 0.0  ;;  %v1348_v52 = vpop.f32.mrb[8].mxu0  ;;  %v1380_v53 = vpop.f32.mrb[8].mxu1 }
 0x125   :  { %1183 = vst.msk [vmem:[#allocation9 + $0x100] sm:$0xff] %vm59_vm1, %v1119_v41  ;;  %v1120_v51 = vmax.f32 %v1056_v43, 0.0  ;;  %1154 = vst.msk [vmem:[#allocation9 + $0x18] sm:$0xff] %vm59_vm1, %v1090_v46  ;;  %v830_v56 = vadd.f32 %v1348_v52, %v134_v44  ;;  %v862_v57 = vadd.f32 %v1380_v53, %v166_v45  ;;  %v597_v58 = vpop.f32.mrb[9].mxu0  ;;  %v725_v59 = vpop.f32.mrb[9].mxu1  ;;  %v168_v34 = vld [vmem:[#allocation2 + $0x160] sm:$0xff] }
 0x126   :  { %1186 = vst.msk [vmem:[#allocation9 + $0x118] sm:$0xff] %vm59_vm1, %v1122_v47  ;;  %1152 = vst.msk [vmem:[#allocation9 + $0x8] sm:$0xff] %vm59_vm1, %v1088_v50  ;;  %v958_v62 = vld [vmem:[#allocation2 + $0x30] sm:$0xff]  ;;  %v828_v0 = vadd.f32 %v597_v58, %v132_v48  ;;  %v860_v1 = vadd.f32 %v725_v59, %v164_v49  ;;  %v1349_v2 = vpop.f32.mrb[10].mxu0  ;;  %v1381_v4 = vpop.f32.mrb[10].mxu1  ;;  %v139_v39 = vld [vmem:[#allocation2 + $0x78] sm:$0xff] }
 0x127   :  { %1184 = vst.msk [vmem:[#allocation9 + $0x108] sm:$0xff] %vm59_vm1, %v1120_v51  ;;  %v990_v63 = vld [vmem:[#allocation2 + $0x130] sm:$0xff]  ;;  %v1029_v5 = vadd.f32 %v1786_v3, %v958_v62  ;;  %v956_v7 = vld [vmem:[#allocation2 + $0x20] sm:$0xff]  ;;  %895 = vst.msk [vmem:[#allocation2 + $0x50] sm:$0xff] %vm59_vm1, %v830_v56  ;;  %v831_v9 = vadd.f32 %v1349_v2, %v135_v54  ;;  %v863_v10 = vadd.f32 %v1381_v4, %v167_v55  ;;  %v600_v11 = vpop.f32.mrb[11].mxu0  ;;  %v728_v12 = vpop.f32.mrb[11].mxu1 }
 0x128   :  { %v1061_v6 = vadd.f32 %v1786_v3, %v990_v63  ;;  %v988_v8 = vld [vmem:[#allocation2 + $0x120] sm:$0xff]  ;;  %927 = vst.msk [vmem:[#allocation2 + $0x150] sm:$0xff] %vm59_vm1, %v862_v57  ;;  %v1027_v13 = vadd.f32 %v1786_v3, %v956_v7  ;;  %v959_v15 = vld [vmem:[#allocation2 + $0x38] sm:$0xff]  ;;  %893 = vst.msk [vmem:[#allocation2 + $0x40] sm:$0xff] %vm59_vm1, %v828_v0  ;;  %v829_v17 = vadd.f32 %v600_v11, %v133_v60 }
 0x129   :  { %v1059_v14 = vadd.f32 %v1786_v3, %v988_v8  ;;  %v991_v16 = vld [vmem:[#allocation2 + $0x138] sm:$0xff]  ;;  %925 = vst.msk [vmem:[#allocation2 + $0x140] sm:$0xff] %vm59_vm1, %v860_v1  ;;  %v861_v18 = vadd.f32 %v728_v12, %v165_v61  ;;  %v1093_v19 = vmax.f32 %v1029_v5, 0.0  ;;  %v1030_v21 = vadd.f32 %v1786_v3, %v959_v15  ;;  %v957_v23 = vld [vmem:[#allocation2 + $0x28] sm:$0xff]  ;;  %896 = vst.msk [vmem:[#allocation2 + $0x58] sm:$0xff] %vm59_vm1, %v831_v9 }
 0x12a   :  { %v1125_v20 = vmax.f32 %v1061_v6, 0.0  ;;  %v1062_v22 = vadd.f32 %v1786_v3, %v991_v16  ;;  %v989_v24 = vld [vmem:[#allocation2 + $0x128] sm:$0xff]  ;;  %928 = vst.msk [vmem:[#allocation2 + $0x158] sm:$0xff] %vm59_vm1, %v863_v10  ;;  %v1091_v25 = vmax.f32 %v1027_v13, 0.0  ;;  %v1028_v27 = vadd.f32 %v1786_v3, %v957_v23  ;;  %894 = vst.msk [vmem:[#allocation2 + $0x48] sm:$0xff] %vm59_vm1, %v829_v17  ;;  %v171_v40 = vld [vmem:[#allocation2 + $0x178] sm:$0xff] }
 0x12b   :  { %v1123_v26 = vmax.f32 %v1059_v14, 0.0  ;;  %v1060_v28 = vadd.f32 %v1786_v3, %v989_v24  ;;  %926 = vst.msk [vmem:[#allocation2 + $0x148] sm:$0xff] %vm59_vm1, %v861_v18  ;;  %1157 = vst.msk [vmem:[#allocation9 + $0x30] sm:$0xff] %vm59_vm1, %v1093_v19  ;;  %v1094_v31 = vmax.f32 %v1030_v21, 0.0  ;;  %v137_v45 = vld [vmem:[#allocation2 + $0x68] sm:$0xff]  ;;  %v142_v14 = vld [vmem:[#allocation2 + $0x90] sm:$0xff] }
 0x12c   :  { %1189 = vst.msk [vmem:[#allocation9 + $0x130] sm:$0xff] %vm59_vm1, %v1125_v20  ;;  %v1126_v32 = vmax.f32 %v1062_v22, 0.0  ;;  %1155 = vst.msk [vmem:[#allocation9 + $0x20] sm:$0xff] %vm59_vm1, %v1091_v25  ;;  %v1092_v35 = vmax.f32 %v1028_v27, 0.0  ;;  %v1352_v37 = vpop.f32.mrb[12].mxu0  ;;  %v1384_v38 = vpop.f32.mrb[12].mxu1 }
 0x12d   :  { %1187 = vst.msk [vmem:[#allocation9 + $0x120] sm:$0xff] %vm59_vm1, %v1123_v26  ;;  %v1124_v36 = vmax.f32 %v1060_v28, 0.0  ;;  %1158 = vst.msk [vmem:[#allocation9 + $0x38] sm:$0xff] %vm59_vm1, %v1094_v31  ;;  %v834_v41 = vadd.f32 %v1352_v37, %v138_v29  ;;  %v866_v42 = vadd.f32 %v1384_v38, %v170_v30  ;;  %v613_v43 = vpop.f32.mrb[13].mxu0  ;;  %v741_v44 = vpop.f32.mrb[13].mxu1  ;;  %v169_v46 = vld [vmem:[#allocation2 + $0x168] sm:$0xff] }
 0x12e   :  { %1190 = vst.msk [vmem:[#allocation9 + $0x138] sm:$0xff] %vm59_vm1, %v1126_v32  ;;  %1156 = vst.msk [vmem:[#allocation9 + $0x28] sm:$0xff] %vm59_vm1, %v1092_v35  ;;  %v962_v47 = vld [vmem:[#allocation2 + $0x50] sm:$0xff]  ;;  %v832_v49 = vadd.f32 %v613_v43, %v136_v33  ;;  %v864_v50 = vadd.f32 %v741_v44, %v168_v34  ;;  %v1353_v51 = vpop.f32.mrb[14].mxu0  ;;  %v1385_v52 = vpop.f32.mrb[14].mxu1  ;;  %v140_v18 = vld [vmem:[#allocation2 + $0x80] sm:$0xff] }
 0x12f   :  { %1188 = vst.msk [vmem:[#allocation9 + $0x128] sm:$0xff] %vm59_vm1, %v1124_v36  ;;  %v994_v48 = vld [vmem:[#allocation2 + $0x150] sm:$0xff]  ;;  %v1033_v53 = vadd.f32 %v1786_v3, %v962_v47  ;;  %v960_v55 = vld [vmem:[#allocation2 + $0x40] sm:$0xff]  ;;  %899 = vst.msk [vmem:[#allocation2 + $0x70] sm:$0xff] %vm59_vm1, %v834_v41  ;;  %v835_v57 = vadd.f32 %v1353_v51, %v139_v39  ;;  %v867_v58 = vadd.f32 %v1385_v52, %v171_v40  ;;  %v616_v59 = vpop.f32.mrb[15].mxu0  ;;  %v744_v60 = vpop.f32.mrb[15].mxu1 }
 0x130   :  { %v1065_v54 = vadd.f32 %v1786_v3, %v994_v48  ;;  %v992_v56 = vld [vmem:[#allocation2 + $0x140] sm:$0xff]  ;;  %931 = vst.msk [vmem:[#allocation2 + $0x170] sm:$0xff] %vm59_vm1, %v866_v42  ;;  %v1031_v61 = vadd.f32 %v1786_v3, %v960_v55  ;;  %v963_v63 = vld [vmem:[#allocation2 + $0x58] sm:$0xff]  ;;  %897 = vst.msk [vmem:[#allocation2 + $0x60] sm:$0xff] %vm59_vm1, %v832_v49  ;;  %v833_v1 = vadd.f32 %v616_v59, %v137_v45 }
 0x131   :  { %v1063_v62 = vadd.f32 %v1786_v3, %v992_v56  ;;  %v995_v0 = vld [vmem:[#allocation2 + $0x158] sm:$0xff]  ;;  %929 = vst.msk [vmem:[#allocation2 + $0x160] sm:$0xff] %vm59_vm1, %v864_v50  ;;  %v865_v2 = vadd.f32 %v744_v60, %v169_v46  ;;  %v1097_v4 = vmax.f32 %v1033_v53, 0.0  ;;  %v1034_v6 = vadd.f32 %v1786_v3, %v963_v63  ;;  %v961_v8 = vld [vmem:[#allocation2 + $0x48] sm:$0xff]  ;;  %900 = vst.msk [vmem:[#allocation2 + $0x78] sm:$0xff] %vm59_vm1, %v835_v57 }
 0x132   :  { %v1129_v5 = vmax.f32 %v1065_v54, 0.0  ;;  %v1066_v7 = vadd.f32 %v1786_v3, %v995_v0  ;;  %v993_v9 = vld [vmem:[#allocation2 + $0x148] sm:$0xff]  ;;  %932 = vst.msk [vmem:[#allocation2 + $0x178] sm:$0xff] %vm59_vm1, %v867_v58  ;;  %v1095_v10 = vmax.f32 %v1031_v61, 0.0  ;;  %v1032_v12 = vadd.f32 %v1786_v3, %v961_v8  ;;  %898 = vst.msk [vmem:[#allocation2 + $0x68] sm:$0xff] %vm59_vm1, %v833_v1  ;;  %v174_v15 = vld [vmem:[#allocation2 + $0x190] sm:$0xff] }
 0x133   :  { %v1127_v11 = vmax.f32 %v1063_v62, 0.0  ;;  %v1064_v13 = vadd.f32 %v1786_v3, %v993_v9  ;;  %930 = vst.msk [vmem:[#allocation2 + $0x168] sm:$0xff] %vm59_vm1, %v865_v2  ;;  %1161 = vst.msk [vmem:[#allocation9 + $0x50] sm:$0xff] %vm59_vm1, %v1097_v4  ;;  %v1098_v16 = vmax.f32 %v1034_v6, 0.0  ;;  %v172_v19 = vld [vmem:[#allocation2 + $0x180] sm:$0xff]  ;;  %v143_v24 = vld [vmem:[#allocation2 + $0x98] sm:$0xff] }
 0x134   :  { %1193 = vst.msk [vmem:[#allocation9 + $0x150] sm:$0xff] %vm59_vm1, %v1129_v5  ;;  %v1130_v17 = vmax.f32 %v1066_v7, 0.0  ;;  %1159 = vst.msk [vmem:[#allocation9 + $0x40] sm:$0xff] %vm59_vm1, %v1095_v10  ;;  %v1096_v20 = vmax.f32 %v1032_v12, 0.0  ;;  %v1356_v22 = vpop.f32.mrb[16].mxu0  ;;  %v1388_v23 = vpop.f32.mrb[16].mxu1 }
 0x135   :  { %1191 = vst.msk [vmem:[#allocation9 + $0x140] sm:$0xff] %vm59_vm1, %v1127_v11  ;;  %v1128_v21 = vmax.f32 %v1064_v13, 0.0  ;;  %v175_v25 = vld [vmem:[#allocation2 + $0x198] sm:$0xff]  ;;  %1162 = vst.msk [vmem:[#allocation9 + $0x58] sm:$0xff] %vm59_vm1, %v1098_v16  ;;  %v838_v26 = vadd.f32 %v1356_v22, %v142_v14  ;;  %v870_v27 = vadd.f32 %v1388_v23, %v174_v15  ;;  %v629_v28 = vpop.f32.mrb[17].mxu0  ;;  %v757_v29 = vpop.f32.mrb[17].mxu1 }
 0x136   :  { %1194 = vst.msk [vmem:[#allocation9 + $0x158] sm:$0xff] %vm59_vm1, %v1130_v17  ;;  %v141_v30 = vld [vmem:[#allocation2 + $0x88] sm:$0xff]  ;;  %1160 = vst.msk [vmem:[#allocation9 + $0x48] sm:$0xff] %vm59_vm1, %v1096_v20  ;;  %v966_v32 = vld [vmem:[#allocation2 + $0x70] sm:$0xff]  ;;  %v836_v34 = vadd.f32 %v629_v28, %v140_v18  ;;  %v868_v35 = vadd.f32 %v757_v29, %v172_v19  ;;  %v1357_v36 = vpop.f32.mrb[18].mxu0  ;;  %v1389_v37 = vpop.f32.mrb[18].mxu1 }
 0x137   :  { %v173_v31 = vld [vmem:[#allocation2 + $0x188] sm:$0xff]  ;;  %1192 = vst.msk [vmem:[#allocation9 + $0x148] sm:$0xff] %vm59_vm1, %v1128_v21  ;;  %v998_v33 = vld [vmem:[#allocation2 + $0x170] sm:$0xff]  ;;  %v1037_v38 = vadd.f32 %v1786_v3, %v966_v32  ;;  %v964_v40 = vld [vmem:[#allocation2 + $0x60] sm:$0xff]  ;;  %v839_v42 = vadd.f32 %v1357_v36, %v143_v24  ;;  %v871_v43 = vadd.f32 %v1389_v37, %v175_v25  ;;  %v632_v44 = vpop.f32.mrb[19].mxu0  ;;  %v760_v45 = vpop.f32.mrb[19].mxu1 }
 0x138   :  { %v1069_v39 = vadd.f32 %v1786_v3, %v998_v33  ;;  %v996_v41 = vld [vmem:[#allocation2 + $0x160] sm:$0xff]  ;;  %903 = vst.msk [vmem:[#allocation2 + $0x90] sm:$0xff] %vm59_vm1, %v838_v26  ;;  %935 = vst.msk [vmem:[#allocation2 + $0x190] sm:$0xff] %vm59_vm1, %v870_v27  ;;  %v1035_v46 = vadd.f32 %v1786_v3, %v964_v40  ;;  %v967_v48 = vld [vmem:[#allocation2 + $0x78] sm:$0xff]  ;;  %v837_v50 = vadd.f32 %v632_v44, %v141_v30 }
 0x139   :  { %v1067_v47 = vadd.f32 %v1786_v3, %v996_v41  ;;  %v999_v49 = vld [vmem:[#allocation2 + $0x178] sm:$0xff]  ;;  %901 = vst.msk [vmem:[#allocation2 + $0x80] sm:$0xff] %vm59_vm1, %v836_v34  ;;  %933 = vst.msk [vmem:[#allocation2 + $0x180] sm:$0xff] %vm59_vm1, %v868_v35  ;;  %v869_v51 = vadd.f32 %v760_v45, %v173_v31  ;;  %v1101_v52 = vmax.f32 %v1037_v38, 0.0  ;;  %v1038_v54 = vadd.f32 %v1786_v3, %v967_v48  ;;  %v965_v56 = vld [vmem:[#allocation2 + $0x68] sm:$0xff] }
 0x13a   :  { %v1133_v53 = vmax.f32 %v1069_v39, 0.0  ;;  %v1070_v55 = vadd.f32 %v1786_v3, %v999_v49  ;;  %v997_v57 = vld [vmem:[#allocation2 + $0x168] sm:$0xff]  ;;  %904 = vst.msk [vmem:[#allocation2 + $0x98] sm:$0xff] %vm59_vm1, %v839_v42  ;;  %936 = vst.msk [vmem:[#allocation2 + $0x198] sm:$0xff] %vm59_vm1, %v871_v43  ;;  %v1099_v58 = vmax.f32 %v1035_v46, 0.0  ;;  %v1036_v60 = vadd.f32 %v1786_v3, %v965_v56  ;;  %v146_v62 = vld [vmem:[#allocation2 + $0xb0] sm:$0xff] }
 0x13b   :  { %v1131_v59 = vmax.f32 %v1067_v47, 0.0  ;;  %v1068_v61 = vadd.f32 %v1786_v3, %v997_v57  ;;  %902 = vst.msk [vmem:[#allocation2 + $0x88] sm:$0xff] %vm59_vm1, %v837_v50  ;;  %934 = vst.msk [vmem:[#allocation2 + $0x188] sm:$0xff] %vm59_vm1, %v869_v51  ;;  %v178_v63 = vld [vmem:[#allocation2 + $0x1b0] sm:$0xff]  ;;  %v1102_v0 = vmax.f32 %v1038_v54, 0.0  ;;  %v144_v2 = vld [vmem:[#allocation2 + $0xa0] sm:$0xff] }
 0x13c   :  { %1165 = vst.msk [vmem:[#allocation9 + $0x70] sm:$0xff] %vm59_vm1, %v1101_v52  ;;  %1197 = vst.msk [vmem:[#allocation9 + $0x170] sm:$0xff] %vm59_vm1, %v1133_v53  ;;  %v1134_v1 = vmax.f32 %v1070_v55, 0.0  ;;  %v176_v4 = vld [vmem:[#allocation2 + $0x1a0] sm:$0xff]  ;;  %v1100_v5 = vmax.f32 %v1036_v60, 0.0  ;;  %v1360_v7 = vpop.f32.mrb[20].mxu0 }
 0x13d   :  { %1163 = vst.msk [vmem:[#allocation9 + $0x60] sm:$0xff] %vm59_vm1, %v1099_v58  ;;  %1195 = vst.msk [vmem:[#allocation9 + $0x160] sm:$0xff] %vm59_vm1, %v1131_v59  ;;  %v1132_v6 = vmax.f32 %v1068_v61, 0.0  ;;  %v1392_v8 = vpop.f32.mrb[20].mxu1  ;;  %v147_v9 = vld [vmem:[#allocation2 + $0xb8] sm:$0xff]  ;;  %v842_v11 = vadd.f32 %v1360_v7, %v146_v62  ;;  %v645_v13 = vpop.f32.mrb[21].mxu0 }
 0x13e   :  { %v179_v10 = vld [vmem:[#allocation2 + $0x1b8] sm:$0xff]  ;;  %1166 = vst.msk [vmem:[#allocation9 + $0x78] sm:$0xff] %vm59_vm1, %v1102_v0  ;;  %1198 = vst.msk [vmem:[#allocation9 + $0x178] sm:$0xff] %vm59_vm1, %v1134_v1  ;;  %v874_v12 = vadd.f32 %v1392_v8, %v178_v63  ;;  %v773_v14 = vpop.f32.mrb[21].mxu1  ;;  %v145_v15 = vld [vmem:[#allocation2 + $0xa8] sm:$0xff]  ;;  %v840_v19 = vadd.f32 %v645_v13, %v144_v2  ;;  %v1361_v21 = vpop.f32.mrb[22].mxu0 }
 0x13f   :  { %v177_v16 = vld [vmem:[#allocation2 + $0x1a8] sm:$0xff]  ;;  %1164 = vst.msk [vmem:[#allocation9 + $0x68] sm:$0xff] %vm59_vm1, %v1100_v5  ;;  %1196 = vst.msk [vmem:[#allocation9 + $0x168] sm:$0xff] %vm59_vm1, %v1132_v6  ;;  %v970_v17 = vld [vmem:[#allocation2 + $0x90] sm:$0xff]  ;;  %v872_v20 = vadd.f32 %v773_v14, %v176_v4  ;;  %v1393_v22 = vpop.f32.mrb[22].mxu1  ;;  %v843_v27 = vadd.f32 %v1361_v21, %v147_v9  ;;  %v648_v29 = vpop.f32.mrb[23].mxu0 }
 0x140   :  { %v1002_v18 = vld [vmem:[#allocation2 + $0x190] sm:$0xff]  ;;  %v1041_v23 = vadd.f32 %v1786_v3, %v970_v17  ;;  %v968_v25 = vld [vmem:[#allocation2 + $0x80] sm:$0xff]  ;;  %907 = vst.msk [vmem:[#allocation2 + $0xb0] sm:$0xff] %vm59_vm1, %v842_v11  ;;  %939 = vst.msk [vmem:[#allocation2 + $0x1b0] sm:$0xff] %vm59_vm1, %v874_v12  ;;  %v875_v28 = vadd.f32 %v1393_v22, %v179_v10  ;;  %v776_v30 = vpop.f32.mrb[23].mxu1  ;;  %v841_v35 = vadd.f32 %v648_v29, %v145_v15 }
 0x141   :  { %v1073_v24 = vadd.f32 %v1786_v3, %v1002_v18  ;;  %v1000_v26 = vld [vmem:[#allocation2 + $0x180] sm:$0xff]  ;;  %v1039_v31 = vadd.f32 %v1786_v3, %v968_v25  ;;  %v971_v33 = vld [vmem:[#allocation2 + $0x98] sm:$0xff]  ;;  %905 = vst.msk [vmem:[#allocation2 + $0xa0] sm:$0xff] %vm59_vm1, %v840_v19  ;;  %937 = vst.msk [vmem:[#allocation2 + $0x1a0] sm:$0xff] %vm59_vm1, %v872_v20  ;;  %v873_v36 = vadd.f32 %v776_v30, %v177_v16 }
 0x142   :  { %v1071_v32 = vadd.f32 %v1786_v3, %v1000_v26  ;;  %v1003_v34 = vld [vmem:[#allocation2 + $0x198] sm:$0xff]  ;;  %v1105_v37 = vmax.f32 %v1041_v23, 0.0  ;;  %v1042_v39 = vadd.f32 %v1786_v3, %v971_v33  ;;  %v969_v41 = vld [vmem:[#allocation2 + $0x88] sm:$0xff]  ;;  %908 = vst.msk [vmem:[#allocation2 + $0xb8] sm:$0xff] %vm59_vm1, %v843_v27  ;;  %940 = vst.msk [vmem:[#allocation2 + $0x1b8] sm:$0xff] %vm59_vm1, %v875_v28 }
 0x143   :  { %v1137_v38 = vmax.f32 %v1073_v24, 0.0  ;;  %v1074_v40 = vadd.f32 %v1786_v3, %v1003_v34  ;;  %v1001_v42 = vld [vmem:[#allocation2 + $0x188] sm:$0xff]  ;;  %v1103_v43 = vmax.f32 %v1039_v31, 0.0  ;;  %v1040_v45 = vadd.f32 %v1786_v3, %v969_v41  ;;  %906 = vst.msk [vmem:[#allocation2 + $0xa8] sm:$0xff] %vm59_vm1, %v841_v35  ;;  %938 = vst.msk [vmem:[#allocation2 + $0x1a8] sm:$0xff] %vm59_vm1, %v873_v36  ;;  %v150_v47 = vld [vmem:[#allocation2 + $0xd0] sm:$0xff] }
 0x144   :  { %v1135_v44 = vmax.f32 %v1071_v32, 0.0  ;;  %v1072_v46 = vadd.f32 %v1786_v3, %v1001_v42  ;;  %v182_v48 = vld [vmem:[#allocation2 + $0x1d0] sm:$0xff]  ;;  %1169 = vst.msk [vmem:[#allocation9 + $0x90] sm:$0xff] %vm59_vm1, %v1105_v37  ;;  %v1106_v49 = vmax.f32 %v1042_v39, 0.0  ;;  %v148_v51 = vld [vmem:[#allocation2 + $0xc0] sm:$0xff]  ;;  %v1364_v55 = vpop.f32.mrb[24].mxu0 }
 0x145   :  { %1201 = vst.msk [vmem:[#allocation9 + $0x190] sm:$0xff] %vm59_vm1, %v1137_v38  ;;  %v1138_v50 = vmax.f32 %v1074_v40, 0.0  ;;  %v180_v52 = vld [vmem:[#allocation2 + $0x1c0] sm:$0xff]  ;;  %1167 = vst.msk [vmem:[#allocation9 + $0x80] sm:$0xff] %vm59_vm1, %v1103_v43  ;;  %v1104_v53 = vmax.f32 %v1040_v45, 0.0  ;;  %v1396_v56 = vpop.f32.mrb[24].mxu1  ;;  %v846_v59 = vadd.f32 %v1364_v55, %v150_v47 }
 0x146   :  { %1199 = vst.msk [vmem:[#allocation9 + $0x180] sm:$0xff] %vm59_vm1, %v1135_v44  ;;  %v1136_v54 = vmax.f32 %v1072_v46, 0.0  ;;  %v151_v57 = vld [vmem:[#allocation2 + $0xd8] sm:$0xff]  ;;  %1170 = vst.msk [vmem:[#allocation9 + $0x98] sm:$0xff] %vm59_vm1, %v1106_v49  ;;  %v878_v60 = vadd.f32 %v1396_v56, %v182_v48  ;;  %v661_v61 = vpop.f32.mrb[25].mxu0  ;;  %v789_v62 = vpop.f32.mrb[25].mxu1 }
 0x147   :  { %v183_v58 = vld [vmem:[#allocation2 + $0x1d8] sm:$0xff]  ;;  %1202 = vst.msk [vmem:[#allocation9 + $0x198] sm:$0xff] %vm59_vm1, %v1138_v50  ;;  %v149_v63 = vld [vmem:[#allocation2 + $0xc8] sm:$0xff]  ;;  %1168 = vst.msk [vmem:[#allocation9 + $0x88] sm:$0xff] %vm59_vm1, %v1104_v53  ;;  %v844_v4 = vadd.f32 %v661_v61, %v148_v51  ;;  %v876_v5 = vadd.f32 %v789_v62, %v180_v52  ;;  %v1365_v6 = vpop.f32.mrb[26].mxu0  ;;  %v1397_v7 = vpop.f32.mrb[26].mxu1 }
 0x148   :  { %v181_v0 = vld [vmem:[#allocation2 + $0x1c8] sm:$0xff]  ;;  %1200 = vst.msk [vmem:[#allocation9 + $0x188] sm:$0xff] %vm59_vm1, %v1136_v54  ;;  %v974_v1 = vld [vmem:[#allocation2 + $0xb0] sm:$0xff]  ;;  %v972_v10 = vld [vmem:[#allocation2 + $0xa0] sm:$0xff]  ;;  %v847_v12 = vadd.f32 %v1365_v6, %v151_v57  ;;  %v879_v13 = vadd.f32 %v1397_v7, %v183_v58  ;;  %v664_v14 = vpop.f32.mrb[27].mxu0  ;;  %v792_v15 = vpop.f32.mrb[27].mxu1 }
 0x149   :  { %v1006_v2 = vld [vmem:[#allocation2 + $0x1b0] sm:$0xff]  ;;  %v1045_v8 = vadd.f32 %v1786_v3, %v974_v1  ;;  %v1004_v11 = vld [vmem:[#allocation2 + $0x1a0] sm:$0xff]  ;;  %911 = vst.msk [vmem:[#allocation2 + $0xd0] sm:$0xff] %vm59_vm1, %v846_v59  ;;  %943 = vst.msk [vmem:[#allocation2 + $0x1d0] sm:$0xff] %vm59_vm1, %v878_v60  ;;  %v1043_v16 = vadd.f32 %v1786_v3, %v972_v10  ;;  %v845_v20 = vadd.f32 %v664_v14, %v149_v63 }
 0x14a   :  { %v1077_v9 = vadd.f32 %v1786_v3, %v1006_v2  ;;  %v1075_v17 = vadd.f32 %v1786_v3, %v1004_v11  ;;  %v975_v18 = vld [vmem:[#allocation2 + $0xb8] sm:$0xff]  ;;  %909 = vst.msk [vmem:[#allocation2 + $0xc0] sm:$0xff] %vm59_vm1, %v844_v4  ;;  %941 = vst.msk [vmem:[#allocation2 + $0x1c0] sm:$0xff] %vm59_vm1, %v876_v5  ;;  %v877_v21 = vadd.f32 %v792_v15, %v181_v0  ;;  %v973_v26 = vld [vmem:[#allocation2 + $0xa8] sm:$0xff] }
 0x14b   :  { %v1007_v19 = vld [vmem:[#allocation2 + $0x1b8] sm:$0xff]  ;;  %v1109_v22 = vmax.f32 %v1045_v8, 0.0  ;;  %v1046_v24 = vadd.f32 %v1786_v3, %v975_v18  ;;  %v1005_v27 = vld [vmem:[#allocation2 + $0x1a8] sm:$0xff]  ;;  %912 = vst.msk [vmem:[#allocation2 + $0xd8] sm:$0xff] %vm59_vm1, %v847_v12  ;;  %944 = vst.msk [vmem:[#allocation2 + $0x1d8] sm:$0xff] %vm59_vm1, %v879_v13  ;;  %v1107_v28 = vmax.f32 %v1043_v16, 0.0  ;;  %v1044_v30 = vadd.f32 %v1786_v3, %v973_v26 }
 0x14c   :  { %v1141_v23 = vmax.f32 %v1077_v9, 0.0  ;;  %v1078_v25 = vadd.f32 %v1786_v3, %v1007_v19  ;;  %v1139_v29 = vmax.f32 %v1075_v17, 0.0  ;;  %v1076_v31 = vadd.f32 %v1786_v3, %v1005_v27  ;;  %910 = vst.msk [vmem:[#allocation2 + $0xc8] sm:$0xff] %vm59_vm1, %v845_v20  ;;  %942 = vst.msk [vmem:[#allocation2 + $0x1c8] sm:$0xff] %vm59_vm1, %v877_v21  ;;  %v154_v32 = vld [vmem:[#allocation2 + $0xf0] sm:$0xff]  ;;  %v152_v36 = vld [vmem:[#allocation2 + $0xe0] sm:$0xff] }
 0x14d   :  { %v186_v33 = vld [vmem:[#allocation2 + $0x1f0] sm:$0xff]  ;;  %1173 = vst.msk [vmem:[#allocation9 + $0xb0] sm:$0xff] %vm59_vm1, %v1109_v22  ;;  %v1110_v34 = vmax.f32 %v1046_v24, 0.0  ;;  %v184_v37 = vld [vmem:[#allocation2 + $0x1e0] sm:$0xff]  ;;  %1171 = vst.msk [vmem:[#allocation9 + $0xa0] sm:$0xff] %vm59_vm1, %v1107_v28  ;;  %v1108_v38 = vmax.f32 %v1044_v30, 0.0 }
 0x14e   :  { %1205 = vst.msk [vmem:[#allocation9 + $0x1b0] sm:$0xff] %vm59_vm1, %v1141_v23  ;;  %v1142_v35 = vmax.f32 %v1078_v25, 0.0  ;;  %1203 = vst.msk [vmem:[#allocation9 + $0x1a0] sm:$0xff] %vm59_vm1, %v1139_v29  ;;  %v1140_v39 = vmax.f32 %v1076_v31, 0.0  ;;  %v1368_v40 = vpop.f32.mrb[28].mxu0  ;;  %v1400_v41 = vpop.f32.mrb[28].mxu1 }
 0x14f   :  { %v155_v42 = vld [vmem:[#allocation2 + $0xf8] sm:$0xff]  ;;  %1174 = vst.msk [vmem:[#allocation9 + $0xb8] sm:$0xff] %vm59_vm1, %v1110_v34  ;;  %v850_v44 = vadd.f32 %v1368_v40, %v154_v32  ;;  %v882_v45 = vadd.f32 %v1400_v41, %v186_v33  ;;  %v677_v46 = vpop.f32.mrb[29].mxu0  ;;  %v805_v47 = vpop.f32.mrb[29].mxu1  ;;  %v153_v48 = vld [vmem:[#allocation2 + $0xe8] sm:$0xff]  ;;  %1172 = vst.msk [vmem:[#allocation9 + $0xa8] sm:$0xff] %vm59_vm1, %v1108_v38 }
 0x150   :  { %v187_v43 = vld [vmem:[#allocation2 + $0x1f8] sm:$0xff]  ;;  %1206 = vst.msk [vmem:[#allocation9 + $0x1b8] sm:$0xff] %vm59_vm1, %v1142_v35  ;;  %v185_v49 = vld [vmem:[#allocation2 + $0x1e8] sm:$0xff]  ;;  %1204 = vst.msk [vmem:[#allocation9 + $0x1a8] sm:$0xff] %vm59_vm1, %v1140_v39  ;;  %v848_v52 = vadd.f32 %v677_v46, %v152_v36  ;;  %v880_v53 = vadd.f32 %v805_v47, %v184_v37  ;;  %v1369_v54 = vpop.f32.mrb[30].mxu0  ;;  %v1401_v55 = vpop.f32.mrb[30].mxu1 }
 0x151   :  { %v978_v50 = vld [vmem:[#allocation2 + $0xd0] sm:$0xff]  ;;  %v976_v58 = vld [vmem:[#allocation2 + $0xc0] sm:$0xff]  ;;  %915 = vst.msk [vmem:[#allocation2 + $0xf0] sm:$0xff] %vm59_vm1, %v850_v44  ;;  %947 = vst.msk [vmem:[#allocation2 + $0x1f0] sm:$0xff] %vm59_vm1, %v882_v45  ;;  %v851_v60 = vadd.f32 %v1369_v54, %v155_v42  ;;  %v883_v61 = vadd.f32 %v1401_v55, %v187_v43  ;;  %v680_v62 = vpop.f32.mrb[31].mxu0  ;;  %v808_v63 = vpop.f32.mrb[31].mxu1 }
 0x152   :  { %v1010_v51 = vld [vmem:[#allocation2 + $0x1d0] sm:$0xff]  ;;  %v1049_v56 = vadd.f32 %v1786_v3, %v978_v50  ;;  %v1008_v59 = vld [vmem:[#allocation2 + $0x1c0] sm:$0xff]  ;;  %v1047_v0 = vadd.f32 %v1786_v3, %v976_v58  ;;  %v979_v2 = vld [vmem:[#allocation2 + $0xd8] sm:$0xff]  ;;  %913 = vst.msk [vmem:[#allocation2 + $0xe0] sm:$0xff] %vm59_vm1, %v848_v52  ;;  %v849_v5 = vadd.f32 %v680_v62, %v153_v48  ;;  %v881_v6 = vadd.f32 %v808_v63, %v185_v49 }
 0x153   :  { %v1081_v57 = vadd.f32 %v1786_v3, %v1010_v51  ;;  %v1079_v1 = vadd.f32 %v1786_v3, %v1008_v59  ;;  %v1011_v4 = vld [vmem:[#allocation2 + $0x1d8] sm:$0xff]  ;;  %945 = vst.msk [vmem:[#allocation2 + $0x1e0] sm:$0xff] %vm59_vm1, %v880_v53  ;;  %v1050_v9 = vadd.f32 %v1786_v3, %v979_v2  ;;  %v977_v11 = vld [vmem:[#allocation2 + $0xc8] sm:$0xff]  ;;  %916 = vst.msk [vmem:[#allocation2 + $0xf8] sm:$0xff] %vm59_vm1, %v851_v60 }
 0x154   :  { %v1113_v7 = vmax.f32 %v1049_v56, 0.0  ;;  %v1082_v10 = vadd.f32 %v1786_v3, %v1011_v4  ;;  %v1009_v12 = vld [vmem:[#allocation2 + $0x1c8] sm:$0xff]  ;;  %948 = vst.msk [vmem:[#allocation2 + $0x1f8] sm:$0xff] %vm59_vm1, %v883_v61  ;;  %v1111_v13 = vmax.f32 %v1047_v0, 0.0  ;;  %v1048_v15 = vadd.f32 %v1786_v3, %v977_v11  ;;  %914 = vst.msk [vmem:[#allocation2 + $0xe8] sm:$0xff] %vm59_vm1, %v849_v5 }
 0x155   :  { %v1145_v8 = vmax.f32 %v1081_v57, 0.0  ;;  %v1143_v14 = vmax.f32 %v1079_v1, 0.0  ;;  %v1080_v16 = vadd.f32 %v1786_v3, %v1009_v12  ;;  %946 = vst.msk [vmem:[#allocation2 + $0x1e8] sm:$0xff] %vm59_vm1, %v881_v6  ;;  %v1114_v17 = vmax.f32 %v1050_v9, 0.0 }
 0x156   :  { %1177 = vst.msk [vmem:[#allocation9 + $0xd0] sm:$0xff] %vm59_vm1, %v1113_v7  ;;  %v1146_v18 = vmax.f32 %v1082_v10, 0.0  ;;  %1175 = vst.msk [vmem:[#allocation9 + $0xc0] sm:$0xff] %vm59_vm1, %v1111_v13  ;;  %v1112_v19 = vmax.f32 %v1048_v15, 0.0 }
 0x157   :  { %1209 = vst.msk [vmem:[#allocation9 + $0x1d0] sm:$0xff] %vm59_vm1, %v1145_v8  ;;  %1207 = vst.msk [vmem:[#allocation9 + $0x1c0] sm:$0xff] %vm59_vm1, %v1143_v14  ;;  %v1144_v20 = vmax.f32 %v1080_v16, 0.0 }
 0x158   :  { %1178 = vst.msk [vmem:[#allocation9 + $0xd8] sm:$0xff] %vm59_vm1, %v1114_v17  ;;  %1210 = vst.msk [vmem:[#allocation9 + $0x1d8] sm:$0xff] %vm59_vm1, %v1146_v18  ;;  %v982_v21 = vld [vmem:[#allocation2 + $0xf0] sm:$0xff] }
 0x159   :  { %1176 = vst.msk [vmem:[#allocation9 + $0xc8] sm:$0xff] %vm59_vm1, %v1112_v19  ;;  %1208 = vst.msk [vmem:[#allocation9 + $0x1c8] sm:$0xff] %vm59_vm1, %v1144_v20  ;;  %v1014_v22 = vld [vmem:[#allocation2 + $0x1f0] sm:$0xff]  ;;  %v1053_v23 = vadd.f32 %v1786_v3, %v982_v21  ;;  %v980_v25 = vld [vmem:[#allocation2 + $0xe0] sm:$0xff] }
 0x15a   :  { %v1085_v24 = vadd.f32 %v1786_v3, %v1014_v22  ;;  %v1012_v26 = vld [vmem:[#allocation2 + $0x1e0] sm:$0xff]  ;;  %v1051_v27 = vadd.f32 %v1786_v3, %v980_v25  ;;  %v983_v29 = vld [vmem:[#allocation2 + $0xf8] sm:$0xff] }
 0x15b   :  { %v1083_v28 = vadd.f32 %v1786_v3, %v1012_v26  ;;  %v1015_v30 = vld [vmem:[#allocation2 + $0x1f8] sm:$0xff]  ;;  %v1117_v31 = vmax.f32 %v1053_v23, 0.0  ;;  %v1054_v33 = vadd.f32 %v1786_v3, %v983_v29  ;;  %v981_v35 = vld [vmem:[#allocation2 + $0xe8] sm:$0xff] }
 0x15c   :  { %v1149_v32 = vmax.f32 %v1085_v24, 0.0  ;;  %v1086_v34 = vadd.f32 %v1786_v3, %v1015_v30  ;;  %v1013_v36 = vld [vmem:[#allocation2 + $0x1e8] sm:$0xff]  ;;  %v1115_v37 = vmax.f32 %v1051_v27, 0.0  ;;  %v1052_v39 = vadd.f32 %v1786_v3, %v981_v35 }
 0x15d   :  { %v1147_v38 = vmax.f32 %v1083_v28, 0.0  ;;  %v1084_v40 = vadd.f32 %v1786_v3, %v1013_v36  ;;  %1181 = vst.msk [vmem:[#allocation9 + $0xf0] sm:$0xff] %vm59_vm1, %v1117_v31  ;;  %v1118_v41 = vmax.f32 %v1054_v33, 0.0 }
 0x15e   :  { %1213 = vst.msk [vmem:[#allocation9 + $0x1f0] sm:$0xff] %vm59_vm1, %v1149_v32  ;;  %v1150_v42 = vmax.f32 %v1086_v34, 0.0  ;;  %1179 = vst.msk [vmem:[#allocation9 + $0xe0] sm:$0xff] %vm59_vm1, %v1115_v37  ;;  %v1116_v43 = vmax.f32 %v1052_v39, 0.0 }
 0x15f   :  { %1211 = vst.msk [vmem:[#allocation9 + $0x1e0] sm:$0xff] %vm59_vm1, %v1147_v38  ;;  %v1148_v44 = vmax.f32 %v1084_v40, 0.0  ;;  %1182 = vst.msk [vmem:[#allocation9 + $0xf8] sm:$0xff] %vm59_vm1, %v1118_v41 }
 0x160   :  { %1214 = vst.msk [vmem:[#allocation9 + $0x1f8] sm:$0xff] %vm59_vm1, %v1150_v42  ;;  %1180 = vst.msk [vmem:[#allocation9 + $0xe8] sm:$0xff] %vm59_vm1, %v1116_v43 }
 0x161   :  { %1212 = vst.msk [vmem:[#allocation9 + $0x1e8] sm:$0xff] %vm59_vm1, %v1148_v44 }
 0x162   :  { %1527 = shalt.err (!%p1524_p0)
}
 0x163   :  { %s1528_s26 = scalar_lea.hbm %s1987_s3, 8192 }
 0x164   :  { %p1529_p1 = scmp.ne.s32.totalorder %s1987_s3, %s1528_s26  ;;  %p1532_p2 = scmp.lt.u32.totalorder %s1528_s26, %s1987_s3 }
 0x166   :  { %p1534_p3 = pnand %p1532_p2, %p1529_p1 }
 0x168   :  { %1537 = shalt.err (!%p1534_p3)
}
 0x169   :  { %s1552_s4 = smov 128   ;;  %s1553_s5 = smov 8  }
 0x16a   :  { %1226 = dma.vmem_to_hbm [thread:$0]  %s1221_s22, 8192, %s1987_s3, [#allocation5], %s1552_s4, %s1552_s4, %s1553_s5  }
 0x16b   :  { %1542 = dma.done.wait [#allocation5], 8192  }
 0x16c   :  { %1543 = vsyncadd [#allocation5], 4294959104 }
 0x16d   :  { %1230 = vsyncpa [#allocation4], 1 }
 0x16e   :  { %1231 = vsyncpa [#allocation7], 1 }
 0x16f   :  { %1232 = vsyncpa [#allocation5], 1 }

// kernel: csrnet_forward.28
= control target key start
LH: loop header
LB: loop body
LE: loop exit
PB: predicated region body
PF: predicated region fallthrough
CT: control target
= control target key end

     0   :  { %6 = vsyncpa [#allocation3], 0  ;;  %s284_s0 = inlined_call_operand.hbm [shape: f32[4,128,64], index: 0, kind: input, shape index: {}]   ;;  %s285_s1 = inlined_call_operand.hbm [shape: f32[128,64], index: 1, kind: output, shape index: {}]  }
   0x1   :  { %7 = vsyncpa [#allocation4], 0  ;;  %s224_s6 = smov [#allocation2]   ;;  %s176_s10 = scalar_lea.hbm %s284_s0, 8192 }
   0x2   :  { %s13_s7 = sshll.u32 %s224_s6, 4  ;;  %p177_p0 = scmp.ne.s32.totalorder %s284_s0, %s176_s10  ;;  %s14_s7 = int_to_ptr.vmem [resolvable:$true] %s13_s7 }
   0x3   :  { %p180_p1 = scmp.lt.u32.totalorder %s176_s10, %s284_s0 }
   0x5   :  { %p182_p2 = pnand %p180_p1, %p177_p0 }
   0x7   :  { %185 = shalt.err (!%p182_p2)
}
   0x8   :  { %s186_s15 = scalar_lea.vmem %s14_s7, 8192  ;;  %p191_p4 = scmp.lt.s32.totalorder %s14_s7, %s14_s7 }
   0x9   :  { %p187_p3 = scmp.ne.s32.totalorder %s14_s7, %s186_s15  ;;  %p192_p5 = scmp.lt.s32.totalorder %s186_s15, %s186_s15 }
   0xb   :  { %p193_p6 = por %p192_p5, %p191_p4 }
   0xd   :  { %p194_p7 = pnand %p193_p6, %p187_p3 }
   0xf   :  { %197 = shalt.err (!%p194_p7)
}
  0x10   :  { %s225_s16 = smov 128   ;;  %s226_s17 = smov 8  }
  0x11   :  { %19 = dma.hbm_to_vmem [thread:$0]  %s284_s0, 8192, %s14_s7, [#allocation3], %s225_s16, %s225_s16, %s226_s17  }
  0x12   :  { %220 = dma.done.wait [#allocation3], 8192  }
  0x13   :  { %221 = vsyncadd [#allocation3], 4294959104  ;;  %v23_v0 = vld [vmem:[#allocation2] sm:$0xff]  ;;  %v24_v5 = vld [vmem:[#allocation2 + $0x8] sm:$0xff]  ;;  %vm138_vm0 = vcmask 523264   ;;  %s227_s0 = smov [#allocation5]  }
  0x14   :  { %v40_v1 = vld [vmem:[#allocation2 + $0x80] sm:$0xff]  ;;  %v41_v6 = vld [vmem:[#allocation2 + $0x88] sm:$0xff]  ;;  %v25_v11 = vld [vmem:[#allocation2 + $0x10] sm:$0xff]  ;;  %s160_s20 = sshll.u32 %s227_s0, 4  ;;  %s161_s20 = int_to_ptr.vmem [resolvable:$true] %s160_s20 }
  0x15   :  { %v73_v2 = vld [vmem:[#allocation2 + $0x100] sm:$0xff]  ;;  %v56_v3 = vmax.f32 %v23_v0, %v40_v1  ;;  %v57_v8 = vmax.f32 %v24_v5, %v41_v6  ;;  %v74_v9 = vld [vmem:[#allocation2 + $0x108] sm:$0xff]  ;;  %v42_v13 = vld [vmem:[#allocation2 + $0x90] sm:$0xff]  ;;  %s198_s21 = scalar_lea.vmem %s161_s20, 2048  ;;  %p203_p9 = scmp.lt.s32.totalorder %s161_s20, %s161_s20 }
  0x16   :  { %v90_v4 = vld [vmem:[#allocation2 + $0x180] sm:$0xff]  ;;  %v91_v10 = vld [vmem:[#allocation2 + $0x188] sm:$0xff]  ;;  %v75_v14 = vld [vmem:[#allocation2 + $0x110] sm:$0xff]  ;;  %v58_v17 = vmax.f32 %v25_v11, %v42_v13  ;;  %p199_p8 = scmp.ne.s32.totalorder %s161_s20, %s198_s21  ;;  %p204_p10 = scmp.lt.s32.totalorder %s198_s21, %s198_s21 }
  0x17   :  { %v106_v7 = vmax.f32 %v73_v2, %v90_v4  ;;  %v107_v12 = vmax.f32 %v74_v9, %v91_v10  ;;  %v92_v15 = vld [vmem:[#allocation2 + $0x190] sm:$0xff]  ;;  %v26_v19 = vld [vmem:[#allocation2 + $0x18] sm:$0xff]  ;;  %v27_v25 = vld [vmem:[#allocation2 + $0x20] sm:$0xff] }
  0x18   :  { %v108_v18 = vmax.f32 %v75_v14, %v92_v15  ;;  %v43_v20 = vld [vmem:[#allocation2 + $0x98] sm:$0xff]  ;;  %v44_v26 = vld [vmem:[#allocation2 + $0xa0] sm:$0xff]  ;;  %v28_v32 = vld [vmem:[#allocation2 + $0x28] sm:$0xff]  ;;  %p205_p11 = por %p204_p10, %p203_p9 }
  0x19   :  { %v122_v16 = vmax.f32 %v56_v3, %v106_v7  ;;  %v76_v21 = vld [vmem:[#allocation2 + $0x118] sm:$0xff]  ;;  %v123_v22 = vmax.f32 %v57_v8, %v107_v12  ;;  %v59_v23 = vmax.f32 %v26_v19, %v43_v20  ;;  %v60_v29 = vmax.f32 %v27_v25, %v44_v26  ;;  %v77_v30 = vld [vmem:[#allocation2 + $0x120] sm:$0xff]  ;;  %v45_v34 = vld [vmem:[#allocation2 + $0xa8] sm:$0xff] }
  0x1a   :  { %v93_v24 = vld [vmem:[#allocation2 + $0x198] sm:$0xff]  ;;  %v124_v27 = vmax.f32 %v58_v17, %v108_v18  ;;  %v94_v31 = vld [vmem:[#allocation2 + $0x1a0] sm:$0xff]  ;;  %v78_v35 = vld [vmem:[#allocation2 + $0x128] sm:$0xff]  ;;  %v61_v38 = vmax.f32 %v28_v32, %v45_v34  ;;  %p206_p12 = pnand %p205_p11, %p199_p8 }
  0x1b   :  { %139 = vst.msk [vmem:[#allocation5] sm:$0xff] %vm138_vm0, %v122_v16  ;;  %v109_v28 = vmax.f32 %v76_v21, %v93_v24  ;;  %140 = vst.msk [vmem:[#allocation5 + $0x8] sm:$0xff] %vm138_vm0, %v123_v22  ;;  %v110_v33 = vmax.f32 %v77_v30, %v94_v31  ;;  %v95_v36 = vld [vmem:[#allocation2 + $0x1a8] sm:$0xff]  ;;  %v29_v40 = vld [vmem:[#allocation2 + $0x30] sm:$0xff] }
  0x1c   :  { %141 = vst.msk [vmem:[#allocation5 + $0x10] sm:$0xff] %vm138_vm0, %v124_v27  ;;  %v111_v39 = vmax.f32 %v78_v35, %v95_v36  ;;  %v46_v41 = vld [vmem:[#allocation2 + $0xb0] sm:$0xff]  ;;  %v30_v46 = vld [vmem:[#allocation2 + $0x38] sm:$0xff]  ;;  %v31_v53 = vld [vmem:[#allocation2 + $0x40] sm:$0xff] }
  0x1d   :  { %v125_v37 = vmax.f32 %v59_v23, %v109_v28  ;;  %v79_v42 = vld [vmem:[#allocation2 + $0x130] sm:$0xff]  ;;  %v126_v43 = vmax.f32 %v60_v29, %v110_v33  ;;  %v62_v44 = vmax.f32 %v29_v40, %v46_v41  ;;  %v47_v47 = vld [vmem:[#allocation2 + $0xb8] sm:$0xff]  ;;  %v48_v55 = vld [vmem:[#allocation2 + $0xc0] sm:$0xff] }
  0x1e   :  { %v96_v45 = vld [vmem:[#allocation2 + $0x1b0] sm:$0xff]  ;;  %v127_v48 = vmax.f32 %v61_v38, %v111_v39  ;;  %v63_v50 = vmax.f32 %v30_v46, %v47_v47  ;;  %v80_v51 = vld [vmem:[#allocation2 + $0x138] sm:$0xff]  ;;  %v81_v56 = vld [vmem:[#allocation2 + $0x140] sm:$0xff]  ;;  %v64_v59 = vmax.f32 %v31_v53, %v48_v55 }
  0x1f   :  { %142 = vst.msk [vmem:[#allocation5 + $0x18] sm:$0xff] %vm138_vm0, %v125_v37  ;;  %v112_v49 = vmax.f32 %v79_v42, %v96_v45  ;;  %v97_v52 = vld [vmem:[#allocation2 + $0x1b8] sm:$0xff]  ;;  %143 = vst.msk [vmem:[#allocation5 + $0x20] sm:$0xff] %vm138_vm0, %v126_v43  ;;  %v98_v57 = vld [vmem:[#allocation2 + $0x1c0] sm:$0xff] }
  0x20   :  { %v113_v54 = vmax.f32 %v80_v51, %v97_v52  ;;  %144 = vst.msk [vmem:[#allocation5 + $0x28] sm:$0xff] %vm138_vm0, %v127_v48  ;;  %v114_v60 = vmax.f32 %v81_v56, %v98_v57  ;;  %v32_v61 = vld [vmem:[#allocation2 + $0x48] sm:$0xff]  ;;  %v33_v3 = vld [vmem:[#allocation2 + $0x50] sm:$0xff]  ;;  %v34_v10 = vld [vmem:[#allocation2 + $0x58] sm:$0xff] }
  0x21   :  { %v128_v58 = vmax.f32 %v62_v44, %v112_v49  ;;  %v49_v62 = vld [vmem:[#allocation2 + $0xc8] sm:$0xff]  ;;  %v50_v4 = vld [vmem:[#allocation2 + $0xd0] sm:$0xff]  ;;  %v51_v12 = vld [vmem:[#allocation2 + $0xd8] sm:$0xff] }
  0x22   :  { %v82_v63 = vld [vmem:[#allocation2 + $0x148] sm:$0xff]  ;;  %v129_v0 = vmax.f32 %v63_v50, %v113_v54  ;;  %v65_v1 = vmax.f32 %v32_v61, %v49_v62  ;;  %v130_v5 = vmax.f32 %v64_v59, %v114_v60  ;;  %v66_v7 = vmax.f32 %v33_v3, %v50_v4  ;;  %v83_v8 = vld [vmem:[#allocation2 + $0x150] sm:$0xff]  ;;  %v84_v13 = vld [vmem:[#allocation2 + $0x158] sm:$0xff] }
  0x23   :  { %v99_v2 = vld [vmem:[#allocation2 + $0x1c8] sm:$0xff]  ;;  %145 = vst.msk [vmem:[#allocation5 + $0x30] sm:$0xff] %vm138_vm0, %v128_v58  ;;  %v100_v9 = vld [vmem:[#allocation2 + $0x1d0] sm:$0xff]  ;;  %v101_v14 = vld [vmem:[#allocation2 + $0x1d8] sm:$0xff]  ;;  %v67_v16 = vmax.f32 %v34_v10, %v51_v12 }
  0x24   :  { %v115_v6 = vmax.f32 %v82_v63, %v99_v2  ;;  %146 = vst.msk [vmem:[#allocation5 + $0x38] sm:$0xff] %vm138_vm0, %v129_v0  ;;  %v116_v11 = vmax.f32 %v83_v8, %v100_v9  ;;  %147 = vst.msk [vmem:[#allocation5 + $0x40] sm:$0xff] %vm138_vm0, %v130_v5  ;;  %v117_v17 = vmax.f32 %v84_v13, %v101_v14  ;;  %v35_v18 = vld [vmem:[#allocation2 + $0x60] sm:$0xff]  ;;  %v36_v24 = vld [vmem:[#allocation2 + $0x68] sm:$0xff] }
  0x25   :  { %v52_v19 = vld [vmem:[#allocation2 + $0xe0] sm:$0xff]  ;;  %v53_v25 = vld [vmem:[#allocation2 + $0xe8] sm:$0xff]  ;;  %v37_v31 = vld [vmem:[#allocation2 + $0x70] sm:$0xff] }
  0x26   :  { %v131_v15 = vmax.f32 %v65_v1, %v115_v6  ;;  %v85_v20 = vld [vmem:[#allocation2 + $0x160] sm:$0xff]  ;;  %v132_v21 = vmax.f32 %v66_v7, %v116_v11  ;;  %v68_v22 = vmax.f32 %v35_v18, %v52_v19  ;;  %v133_v26 = vmax.f32 %v67_v16, %v117_v17  ;;  %v86_v29 = vld [vmem:[#allocation2 + $0x168] sm:$0xff]  ;;  %v54_v33 = vld [vmem:[#allocation2 + $0xf0] sm:$0xff] }
  0x27   :  { %v102_v23 = vld [vmem:[#allocation2 + $0x1e0] sm:$0xff]  ;;  %v69_v28 = vmax.f32 %v36_v24, %v53_v25  ;;  %v103_v30 = vld [vmem:[#allocation2 + $0x1e8] sm:$0xff]  ;;  %v87_v34 = vld [vmem:[#allocation2 + $0x170] sm:$0xff]  ;;  %v70_v37 = vmax.f32 %v37_v31, %v54_v33 }
  0x28   :  { %148 = vst.msk [vmem:[#allocation5 + $0x48] sm:$0xff] %vm138_vm0, %v131_v15  ;;  %v118_v27 = vmax.f32 %v85_v20, %v102_v23  ;;  %149 = vst.msk [vmem:[#allocation5 + $0x50] sm:$0xff] %vm138_vm0, %v132_v21  ;;  %v119_v32 = vmax.f32 %v86_v29, %v103_v30  ;;  %v104_v35 = vld [vmem:[#allocation2 + $0x1f0] sm:$0xff]  ;;  %v38_v39 = vld [vmem:[#allocation2 + $0x78] sm:$0xff] }
  0x29   :  { %150 = vst.msk [vmem:[#allocation5 + $0x58] sm:$0xff] %vm138_vm0, %v133_v26  ;;  %v120_v38 = vmax.f32 %v87_v34, %v104_v35  ;;  %v55_v40 = vld [vmem:[#allocation2 + $0xf8] sm:$0xff] }
  0x2a   :  { %v134_v36 = vmax.f32 %v68_v22, %v118_v27  ;;  %v88_v41 = vld [vmem:[#allocation2 + $0x178] sm:$0xff]  ;;  %v135_v42 = vmax.f32 %v69_v28, %v119_v32  ;;  %v71_v43 = vmax.f32 %v38_v39, %v55_v40 }
  0x2b   :  { %v105_v44 = vld [vmem:[#allocation2 + $0x1f8] sm:$0xff]  ;;  %v136_v45 = vmax.f32 %v70_v37, %v120_v38 }
  0x2c   :  { %151 = vst.msk [vmem:[#allocation5 + $0x60] sm:$0xff] %vm138_vm0, %v134_v36  ;;  %v121_v46 = vmax.f32 %v88_v41, %v105_v44  ;;  %152 = vst.msk [vmem:[#allocation5 + $0x68] sm:$0xff] %vm138_vm0, %v135_v42 }
  0x2d   :  { %153 = vst.msk [vmem:[#allocation5 + $0x70] sm:$0xff] %vm138_vm0, %v136_v45 }
  0x2e   :  { %v137_v47 = vmax.f32 %v71_v43, %v121_v46 }
  0x30   :  { %154 = vst.msk [vmem:[#allocation5 + $0x78] sm:$0xff] %vm138_vm0, %v137_v47 }
  0x31   :  { %209 = shalt.err (!%p206_p12)
}
  0x32   :  { %s210_s24 = scalar_lea.hbm %s285_s1, 2048 }
  0x33   :  { %p211_p13 = scmp.ne.s32.totalorder %s285_s1, %s210_s24  ;;  %p214_p0 = scmp.lt.u32.totalorder %s210_s24, %s285_s1 }
  0x35   :  { %p216_p1 = pnand %p214_p0, %p211_p13 }
  0x37   :  { %219 = shalt.err (!%p216_p1)
}
  0x38   :  { %166 = dma.vmem_to_hbm [thread:$0]  %s161_s20, 2048, %s285_s1, [#allocation4], %s225_s16, %s225_s16, %s226_s17  }
  0x39   :  { %222 = dma.done.wait [#allocation4], 2048  }
  0x3a   :  { %223 = vsyncadd [#allocation4], 4294965248 }
  0x3b   :  { %170 = vsyncpa [#allocation3], 1 }
  0x3c   :  { %171 = vsyncpa [#allocation4], 1 }

// kernel: csrnet_forward.27
= control target key start
LH: loop header
LB: loop body
LE: loop exit
PB: predicated region body
PF: predicated region fallthrough
CT: control target
= control target key end

     0   :  { %8 = vsyncpa [#allocation4], 0  ;;  %s4474_s0 = inlined_call_operand.hbm [shape: bf16[512,576], index: 0, kind: input, shape index: {}]   ;;  %s4475_s1 = inlined_call_operand.hbm [shape: bf16[576,64], index: 1, kind: input, shape index: {}]   ;;  %s4476_s2 = inlined_call_operand.hbm [shape: f32[1,64], index: 2, kind: input, shape index: {}]   ;;  %s4477_s3 = inlined_call_operand.hbm [shape: f32[512,64], index: 3, kind: output, shape index: {}]  }
   0x1   :  { %9 = vsyncpa [#allocation7], 0 }
   0x2   :  { %10 = vsyncpa [#allocation5], 0  ;;  %s3660_s12 = smov [#allocation6]   ;;  %s3566_s16 = scalar_lea.hbm %s4475_s1, 4608 }
   0x3   :  { %s28_s13 = sshll.u32 %s3660_s12, 4  ;;  %p3567_p0 = scmp.ne.s32.totalorder %s4475_s1, %s3566_s16  ;;  %s29_s13 = int_to_ptr.vmem [resolvable:$true] %s28_s13 }
   0x4   :  { %p3570_p1 = scmp.lt.u32.totalorder %s3566_s16, %s4475_s1 }
   0x6   :  { %p3572_p2 = pnand %p3570_p1, %p3567_p0 }
   0x8   :  { %3575 = shalt.err (!%p3572_p2)
}
   0x9   :  { %s3576_s21 = scalar_lea.vmem %s29_s13, 4608  ;;  %p3581_p4 = scmp.lt.s32.totalorder %s29_s13, %s29_s13 }
   0xa   :  { %p3577_p3 = scmp.ne.s32.totalorder %s29_s13, %s3576_s21  ;;  %p3582_p5 = scmp.lt.s32.totalorder %s3576_s21, %s3576_s21 }
   0xc   :  { %p3583_p6 = por %p3582_p5, %p3581_p4 }
   0xe   :  { %p3584_p7 = pnand %p3583_p6, %p3577_p3 }
  0x10   :  { %3587 = shalt.err (!%p3584_p7)
}
  0x11   :  { %s3661_s22 = smov 64   ;;  %s3662_s23 = smov 4  }
  0x12   :  { %34 = dma.hbm_to_vmem [thread:$0]  %s4475_s1, 4608, %s29_s13, [#allocation7], %s3661_s22, %s3661_s22, %s3662_s23  }
  0x13   :  { %s3663_s26 = smov [#allocation3]   ;;  %s3588_s30 = scalar_lea.hbm %s4474_s0, 20480 }
  0x14   :  { %s16_s27 = sshll.u32 %s3663_s26, 4  ;;  %p3589_p8 = scmp.ne.s32.totalorder %s4474_s0, %s3588_s30  ;;  %s17_s27 = int_to_ptr.vmem [resolvable:$true] %s16_s27 }
  0x15   :  { %p3592_p9 = scmp.lt.u32.totalorder %s3588_s30, %s4474_s0 }
  0x17   :  { %p3594_p10 = pnand %p3592_p9, %p3589_p8 }
  0x19   :  { %3597 = shalt.err (!%p3594_p10)
}
  0x1a   :  { %s3598_s8 = scalar_lea.vmem %s17_s27, 20480  ;;  %p3603_p12 = scmp.lt.s32.totalorder %s17_s27, %s17_s27 }
  0x1b   :  { %p3599_p11 = scmp.ne.s32.totalorder %s17_s27, %s3598_s8  ;;  %p3604_p13 = scmp.lt.s32.totalorder %s3598_s8, %s3598_s8 }
  0x1d   :  { %p3605_p0 = por %p3604_p13, %p3603_p12 }
  0x1f   :  { %p3606_p1 = pnand %p3605_p0, %p3599_p11 }
  0x21   :  { %3609 = shalt.err (!%p3606_p1)
}
  0x22   :  { %s3664_s1 = smov 320   ;;  %s3665_s9 = smov 20  }
  0x23   :  { %22 = dma.hbm_to_vmem [thread:$0]  %s4474_s0, 20480, %s17_s27, [#allocation4], %s3664_s1, %s3664_s1, %s3665_s9  }
  0x24   :  { %s3666_s12 = smov [#allocation8]   ;;  %s3610_s16 = scalar_lea.hbm %s4476_s2, 16 }
  0x25   :  { %s41_s13 = sshll.u32 %s3666_s12, 4  ;;  %p3611_p2 = scmp.ne.s32.totalorder %s4476_s2, %s3610_s16  ;;  %s42_s13 = int_to_ptr.vmem [resolvable:$true] %s41_s13 }
  0x26   :  { %p3614_p3 = scmp.lt.u32.totalorder %s3610_s16, %s4476_s2 }
  0x28   :  { %p3616_p4 = pnand %p3614_p3, %p3611_p2 }
  0x2a   :  { %3619 = shalt.err (!%p3616_p4)
}
  0x2b   :  { %s3620_s21 = scalar_lea.vmem %s42_s13, 16  ;;  %s3624_s0 = scalar_lea.vmem %s42_s13, 32 }
  0x2c   :  { %p3621_p5 = scmp.ne.s32.totalorder %s42_s13, %s3620_s21  ;;  %p3625_p6 = scmp.lt.s32.totalorder %s42_s13, %s42_s13 }
  0x2d   :  { %p3626_p7 = scmp.lt.s32.totalorder %s3624_s0, %s3620_s21 }
  0x2f   :  { %p3627_p8 = por %p3626_p7, %p3625_p6 }
  0x31   :  { %p3628_p9 = pnand %p3627_p8, %p3621_p5 }
  0x33   :  { %3631 = shalt.err (!%p3628_p9)
}
  0x34   :  { %44 = dma.hbm_to_vmem [thread:$0]  %s4476_s2, 16, %s42_s13, [#allocation7]  }
  0x35   :  { %3654 = dma.done.wait [#allocation4], 20480  }
  0x36   :  { %3655 = vsyncadd [#allocation4], 4294946816 }
  0x37   :  { %3656 = dma.done.wait [#allocation7], 4624  }
  0x38   :  { %3657 = vsyncadd [#allocation7], 4294962672  ;;  %v3667_v0 = vmov 0   ;;  %v3305_v1 = vld [vmem:[#allocation6] sm:$0xff]   ;;  %v3306_v2 = vld [vmem:[#allocation6 + $0x8] sm:$0xff]   ;;  %vm59_vm0 = vcmask 523264  }
  0x39   :  { %1565 = vmatprep.subr.bf16.mxu0 %v3667_v0  ;;  %3181 = vmatprep.subr.bf16.mxu1 %v3667_v0  ;;  %v3307_v3 = vld [vmem:[#allocation6 + $0x10] sm:$0xff]   ;;  %v3308_v4 = vld [vmem:[#allocation6 + $0x18] sm:$0xff]   ;;  %v3309_v5 = vld [vmem:[#allocation6 + $0x20] sm:$0xff]   ;;  %s3669_s2 = smov [#allocation9]  }
  0x3a   :  { %1566 = vmatpush1.bf16.msra.mxu0 %v3305_v1  ;;  %3197 = vmatpush1.bf16.msra.mxu1 %v3305_v1  ;;  %v3323_v6 = vld [vmem:[#allocation3 + $0x4] ss:$20 sps:$4 sm:$0xff]   ;;  %v3310_v7 = vld [vmem:[#allocation6 + $0x28] sm:$0xff]   ;;  %v3311_v9 = vld [vmem:[#allocation6 + $0x30] sm:$0xff]   ;;  %s2831_s24 = sshll.u32 %s3669_s2, 4  ;;  %s2832_s24 = int_to_ptr.vmem [resolvable:$true] %s2831_s24 }
  0x3b   :  { %1567 = vmatprep.subr.bf16.mxu0 %v3667_v0  ;;  %3182 = vmatprep.subr.bf16.mxu1 %v3667_v0  ;;  %v3326_v8 = vld [vmem:[#allocation3 + $0x144] ss:$20 sps:$4 sm:$0xff]   ;;  %v3314_v12 = vld [vmem:[#allocation6 + $0x48] sm:$0xff]   ;;  %v3315_v13 = vld [vmem:[#allocation6 + $0x50] sm:$0xff]   ;;  %s3632_s25 = scalar_lea.vmem %s2832_s24, 8192  ;;  %p3637_p11 = scmp.lt.s32.totalorder %s2832_s24, %s2832_s24 }
  0x3c   :  { %1597 = vmatprep.mubr.bf16.mxu0 %v3323_v6  ;;  %1661 = vmatprep.mubr.bf16.mxu1 %v3326_v8  ;;  %v3312_v10 = vld [vmem:[#allocation6 + $0x38] sm:$0xff]   ;;  %v3313_v11 = vld [vmem:[#allocation6 + $0x40] sm:$0xff]   ;;  %v3318_v16 = vld [vmem:[#allocation6 + $0x68] sm:$0xff]   ;;  %p3633_p10 = scmp.ne.s32.totalorder %s2832_s24, %s3632_s25  ;;  %p3638_p12 = scmp.lt.s32.totalorder %s3632_s25, %s3632_s25 }
  0x3d   :  { %v3316_v14 = vld [vmem:[#allocation6 + $0x58] sm:$0xff]   ;;  %v3317_v15 = vld [vmem:[#allocation6 + $0x60] sm:$0xff]   ;;  %v3319_v17 = vld [vmem:[#allocation6 + $0x70] sm:$0xff]  }
  0x3e   :  { %1568 = vmatpush1.bf16.msra.mxu0 %v3306_v2  ;;  %3198 = vmatpush1.bf16.msra.mxu1 %v3306_v2  ;;  %v3320_v18 = vld [vmem:[#allocation6 + $0x78] sm:$0xff]   ;;  %v3328_v19 = vld [vmem:[#allocation6 + $0x100] sm:$0xff]   ;;  %v3377_v25 = vld [vmem:[#allocation6 + $0x108] sm:$0xff]   ;;  %p3639_p13 = por %p3638_p12, %p3637_p11 }
  0x3f   :  { %1569 = vmatprep.subr.bf16.mxu0 %v3667_v0  ;;  %3183 = vmatprep.subr.bf16.mxu1 %v3667_v0  ;;  %v3321_v20 = vld [vmem:[#allocation3] ss:$20 sps:$4 sm:$0xff]   ;;  %v3329_v26 = vld [vmem:[#allocation6 + $0x88] sm:$0xff]   ;;  %v3337_v33 = vld [vmem:[#allocation6 + $0x98] sm:$0xff]  }
  0x40   :  { %v3324_v21 = vld [vmem:[#allocation3 + $0x140] ss:$20 sps:$4 sm:$0xff]   ;;  %v3334_v27 = vld [vmem:[#allocation3 + $0x28] ss:$20 sps:$4 sm:$0xff]   ;;  %v3342_v34 = vld [vmem:[#allocation3 + $0x50] ss:$20 sps:$4 sm:$0xff]   ;;  %p3640_p0 = pnand %p3639_p13, %p3633_p10 }
  0x41   :  { %v3327_v22 = vld [vmem:[#allocation6 + $0x80] sm:$0xff]   ;;  %v3335_v28 = vld [vmem:[#allocation3 + $0x168] ss:$20 sps:$4 sm:$0xff]   ;;  %v3336_v29 = vld [vmem:[#allocation6 + $0x90] sm:$0xff]  }
  0x42   :  { %1570 = vmatpush1.bf16.msra.mxu0 %v3307_v3  ;;  %3199 = vmatpush1.bf16.msra.mxu1 %v3307_v3  ;;  %v3330_v23 = vld [vmem:[#allocation3 + $0x2c] ss:$20 sps:$4 sm:$0xff]   ;;  %v3417_v30 = vld [vmem:[#allocation6 + $0x110] sm:$0xff]   ;;  %v3354_v43 = vld [vmem:[#allocation3 + $0xa4] ss:$20 sps:$4 sm:$0xff]  }
  0x43   :  { %1571 = vmatprep.subr.bf16.mxu0 %v3667_v0  ;;  %3184 = vmatprep.subr.bf16.mxu1 %v3667_v0  ;;  %v3332_v24 = vld [vmem:[#allocation3 + $0x16c] ss:$20 sps:$4 sm:$0xff]   ;;  %v3338_v31 = vld [vmem:[#allocation3 + $0x54] ss:$20 sps:$4 sm:$0xff]   ;;  %v3343_v35 = vld [vmem:[#allocation3 + $0x190] ss:$20 sps:$4 sm:$0xff]  }
  0x44   :  { %v3340_v32 = vld [vmem:[#allocation3 + $0x194] ss:$20 sps:$4 sm:$0xff]   ;;  %v3344_v36 = vld [vmem:[#allocation6 + $0xa0] sm:$0xff]   ;;  %v3346_v37 = vld [vmem:[#allocation3 + $0x7c] ss:$20 sps:$4 sm:$0xff]  }
  0x45   :  { %v3348_v38 = vld [vmem:[#allocation3 + $0x1bc] ss:$20 sps:$4 sm:$0xff]   ;;  %v3345_v39 = vld [vmem:[#allocation6 + $0xa8] sm:$0xff]   ;;  %v3356_v45 = vld [vmem:[#allocation3 + $0x1e4] ss:$20 sps:$4 sm:$0xff]  }
  0x46   :  { %1572 = vmatpush1.bf16.msra.mxu0 %v3308_v4  ;;  %3200 = vmatpush1.bf16.msra.mxu1 %v3308_v4  ;;  %v3350_v40 = vld [vmem:[#allocation3 + $0x78] ss:$20 sps:$4 sm:$0xff]   ;;  %v3352_v42 = vld [vmem:[#allocation6 + $0xb0] sm:$0xff]   ;;  %v3360_v49 = vld [vmem:[#allocation6 + $0xc0] sm:$0xff]  }
  0x47   :  { %1573 = vmatprep.subr.bf16.mxu0 %v3667_v0  ;;  %3185 = vmatprep.subr.bf16.mxu1 %v3667_v0  ;;  %v3351_v41 = vld [vmem:[#allocation3 + $0x1b8] ss:$20 sps:$4 sm:$0xff]   ;;  %v3358_v47 = vld [vmem:[#allocation3 + $0xa0] ss:$20 sps:$4 sm:$0xff]   ;;  %v3366_v53 = vld [vmem:[#allocation3 + $0xc8] ss:$20 sps:$4 sm:$0xff]  }
  0x48   :  { %v3454_v44 = vld [vmem:[#allocation6 + $0x118] sm:$0xff]   ;;  %v3359_v48 = vld [vmem:[#allocation3 + $0x1e0] ss:$20 sps:$4 sm:$0xff]   ;;  %v3361_v52 = vld [vmem:[#allocation6 + $0xc8] sm:$0xff]  }
  0x49   :  { %v3353_v46 = vld [vmem:[#allocation6 + $0xb8] sm:$0xff]   ;;  %v3362_v50 = vld [vmem:[#allocation3 + $0xcc] ss:$20 sps:$4 sm:$0xff]   ;;  %v3368_v55 = vld [vmem:[#allocation6 + $0xd0] sm:$0xff]  }
  0x4a   :  { %1574 = vmatpush1.bf16.msra.mxu0 %v3309_v5  ;;  %3201 = vmatpush1.bf16.msra.mxu1 %v3309_v5  ;;  %v3364_v51 = vld [vmem:[#allocation3 + $0x20c] ss:$20 sps:$4 sm:$0xff]   ;;  %v3367_v54 = vld [vmem:[#allocation3 + $0x208] ss:$20 sps:$4 sm:$0xff]   ;;  %v3374_v59 = vld [vmem:[#allocation3 + $0xf0] ss:$20 sps:$4 sm:$0xff]  }
  0x4b   :  { %1575 = vmatprep.subr.bf16.mxu0 %v3667_v0  ;;  %3186 = vmatprep.subr.bf16.mxu1 %v3667_v0  ;;  %v3370_v56 = vld [vmem:[#allocation3 + $0xf4] ss:$20 sps:$4 sm:$0xff]   ;;  %v3369_v58 = vld [vmem:[#allocation6 + $0xd8] sm:$0xff]   ;;  %v3375_v60 = vld [vmem:[#allocation3 + $0x230] ss:$20 sps:$4 sm:$0xff]  }
  0x4c   :  { %v3372_v57 = vld [vmem:[#allocation3 + $0x234] ss:$20 sps:$4 sm:$0xff]   ;;  %v3376_v61 = vld [vmem:[#allocation6 + $0xe0] sm:$0xff]   ;;  %v3379_v62 = vld [vmem:[#allocation3 + $0x11c] ss:$20 sps:$4 sm:$0xff]  }
  0x4d   :  { %v3381_v63 = vld [vmem:[#allocation3 + $0x25c] ss:$20 sps:$4 sm:$0xff]   ;;  %v3378_v1 = vld [vmem:[#allocation6 + $0xe8] sm:$0xff]   ;;  %v3387_v5 = vld [vmem:[#allocation3 + $0x284] ss:$20 sps:$4 sm:$0xff]  }
  0x4e   :  { %1576 = vmatpush1.bf16.msra.mxu0 %v3310_v7  ;;  %3202 = vmatpush1.bf16.msra.mxu1 %v3310_v7  ;;  %v3383_v2 = vld [vmem:[#allocation3 + $0x118] ss:$20 sps:$4 sm:$0xff]   ;;  %v3385_v4 = vld [vmem:[#allocation6 + $0xf0] sm:$0xff]   ;;  %v3389_v8 = vld [vmem:[#allocation3 + $0x8] ss:$20 sps:$4 sm:$0xff]  }
  0x4f   :  { %1577 = vmatprep.subr.bf16.mxu0 %v3667_v0  ;;  %3187 = vmatprep.subr.bf16.mxu1 %v3667_v0  ;;  %v3384_v3 = vld [vmem:[#allocation3 + $0x258] ss:$20 sps:$4 sm:$0xff]  }
  0x50   :  { %v3391_v6 = vld [vmem:[#allocation3 + $0xc] ss:$20 sps:$4 sm:$0xff]   ;;  %v3386_v7 = vld [vmem:[#allocation6 + $0xf8] sm:$0xff]  }
  0x52   :  { %1578 = vmatpush1.bf16.msra.mxu0 %v3311_v9  ;;  %3203 = vmatpush1.bf16.msra.mxu1 %v3311_v9  ;;  %v3392_v9 = vld [vmem:[#allocation3 + $0x280] ss:$20 sps:$4 sm:$0xff]  }
  0x53   :  { %1579 = vmatprep.subr.bf16.mxu0 %v3667_v0  ;;  %3188 = vmatprep.subr.bf16.mxu1 %v3667_v0 }
  0x56   :  { %1580 = vmatpush1.bf16.msra.mxu0 %v3312_v10  ;;  %3204 = vmatpush1.bf16.msra.mxu1 %v3312_v10  ;;  %v3393_v10 = vld [vmem:[#allocation3 + $0x2ac] ss:$20 sps:$4 sm:$0xff]  }
  0x57   :  { %1581 = vmatprep.subr.bf16.mxu0 %v3667_v0  ;;  %3189 = vmatprep.subr.bf16.mxu1 %v3667_v0 }
  0x5a   :  { %1582 = vmatpush1.bf16.msra.mxu0 %v3313_v11  ;;  %3205 = vmatpush1.bf16.msra.mxu1 %v3313_v11  ;;  %v3395_v11 = vld [vmem:[#allocation3 + $0x34] ss:$20 sps:$4 sm:$0xff]  }
  0x5b   :  { %1583 = vmatprep.subr.bf16.mxu0 %v3667_v0  ;;  %3190 = vmatprep.subr.bf16.mxu1 %v3667_v0 }
  0x5e   :  { %1584 = vmatpush1.bf16.msra.mxu0 %v3314_v12  ;;  %3206 = vmatpush1.bf16.msra.mxu1 %v3314_v12  ;;  %v3397_v12 = vld [vmem:[#allocation3 + $0x2a8] ss:$20 sps:$4 sm:$0xff]  }
  0x5f   :  { %1585 = vmatprep.subr.bf16.mxu0 %v3667_v0  ;;  %3191 = vmatprep.subr.bf16.mxu1 %v3667_v0 }
  0x62   :  { %1586 = vmatpush1.bf16.msra.mxu0 %v3315_v13  ;;  %3207 = vmatpush1.bf16.msra.mxu1 %v3315_v13  ;;  %v3398_v13 = vld [vmem:[#allocation3 + $0x30] ss:$20 sps:$4 sm:$0xff]  }
  0x63   :  { %1587 = vmatprep.subr.bf16.mxu0 %v3667_v0  ;;  %3192 = vmatprep.subr.bf16.mxu1 %v3667_v0 }
  0x66   :  { %1588 = vmatpush1.bf16.msra.mxu0 %v3316_v14  ;;  %3208 = vmatpush1.bf16.msra.mxu1 %v3316_v14  ;;  %v3399_v14 = vld [vmem:[#allocation3 + $0x2d4] ss:$20 sps:$4 sm:$0xff]  }
  0x67   :  { %1589 = vmatprep.subr.bf16.mxu0 %v3667_v0  ;;  %3193 = vmatprep.subr.bf16.mxu1 %v3667_v0 }
  0x6a   :  { %1590 = vmatpush1.bf16.msra.mxu0 %v3317_v15  ;;  %3209 = vmatpush1.bf16.msra.mxu1 %v3317_v15  ;;  %v3401_v15 = vld [vmem:[#allocation3 + $0x5c] ss:$20 sps:$4 sm:$0xff]  }
  0x6b   :  { %1591 = vmatprep.subr.bf16.mxu0 %v3667_v0  ;;  %3194 = vmatprep.subr.bf16.mxu1 %v3667_v0 }
  0x6e   :  { %1592 = vmatpush1.bf16.msra.mxu0 %v3318_v16  ;;  %3210 = vmatpush1.bf16.msra.mxu1 %v3318_v16  ;;  %v3403_v16 = vld [vmem:[#allocation3 + $0x2d0] ss:$20 sps:$4 sm:$0xff]  }
  0x6f   :  { %1593 = vmatprep.subr.bf16.mxu0 %v3667_v0  ;;  %3195 = vmatprep.subr.bf16.mxu1 %v3667_v0 }
  0x72   :  { %1594 = vmatpush1.bf16.msra.mxu0 %v3319_v17  ;;  %3211 = vmatpush1.bf16.msra.mxu1 %v3319_v17  ;;  %v3405_v17 = vld [vmem:[#allocation3 + $0x2fc] ss:$20 sps:$4 sm:$0xff]  }
  0x73   :  { %1595 = vmatprep.subr.bf16.mxu0 %v3667_v0  ;;  %3196 = vmatprep.subr.bf16.mxu1 %v3667_v0 }
  0x76   :  { %1596 = vmatpush1.bf16.msra.mxu0 %v3320_v18  ;;  %3212 = vmatpush1.bf16.msra.mxu1 %v3320_v18  ;;  %v3407_v18 = vld [vmem:[#allocation3 + $0x84] ss:$20 sps:$4 sm:$0xff]  }
  0x77   :  { %1854 = vmatprep.subr.bf16.mxu0 %v3667_v0  ;;  %3109 = vmatprep.subr.bf16.mxu1 %v3328_v19 }
  0x79   :  { %1598 = vmatmul.mubr.bf16.vlgmr.msra.gmra.mrb[0].mxu0 %v3321_v20  ;;  %1662 = vmatmul.mubr.bf16.vlgmr.msra.gmra.mrb[0].mxu1 %v3324_v21  ;;  %v3410_v20 = vld [vmem:[#allocation3 + $0x80] ss:$20 sps:$4 sm:$0xff]   ;;  %v3411_v21 = vld [vmem:[#allocation3 + $0x324] ss:$20 sps:$4 sm:$0xff]  }
  0x7a   :  { %1855 = vmatpush1.bf16.msra.mxu0 %v3327_v22  ;;  %3110 = vmatpush3.bf16.msra.mxu1 %v3328_v19  ;;  %v3409_v19 = vld [vmem:[#allocation3 + $0x2f8] ss:$20 sps:$4 sm:$0xff]  }
  0x7b   :  { %1856 = vmatprep.subr.bf16.mxu0 %v3667_v0  ;;  %1605 = vmatprep.mubr.bf16.mxu0 %v3330_v23  ;;  %v3413_v22 = vld [vmem:[#allocation3 + $0xac] ss:$20 sps:$4 sm:$0xff]  }
  0x7c   :  { %1669 = vmatprep.mubr.bf16.mxu1 %v3332_v24  ;;  %3111 = vmatprep.subr.bf16.mxu1 %v3377_v25  ;;  %v3415_v23 = vld [vmem:[#allocation3 + $0x320] ss:$20 sps:$4 sm:$0xff]   ;;  %v3416_v24 = vld [vmem:[#allocation3 + $0xa8] ss:$20 sps:$4 sm:$0xff]  }
  0x7e   :  { %1857 = vmatpush1.bf16.msra.mxu0 %v3329_v26  ;;  %3112 = vmatpush3.bf16.msra.mxu1 %v3377_v25  ;;  %v3418_v25 = vld [vmem:[#allocation3 + $0x34c] ss:$20 sps:$4 sm:$0xff]   ;;  %v3420_v26 = vld [vmem:[#allocation3 + $0xd4] ss:$20 sps:$4 sm:$0xff]  }
  0x7f   :  { %1858 = vmatprep.subr.bf16.mxu0 %v3667_v0  ;;  %3113 = vmatprep.subr.bf16.mxu1 %v3417_v30 }
  0x81   :  { %1606 = vmatmul.mubr.bf16.gmra.mrb[4].mxu0 %v3334_v27  ;;  %1670 = vmatmul.mubr.bf16.gmra.mrb[4].mxu1 %v3335_v28  ;;  %v3422_v27 = vld [vmem:[#allocation3 + $0x348] ss:$20 sps:$4 sm:$0xff]   ;;  %v3423_v28 = vld [vmem:[#allocation3 + $0xd0] ss:$20 sps:$4 sm:$0xff]  }
  0x82   :  { %1859 = vmatpush1.bf16.msra.mxu0 %v3336_v29  ;;  %1613 = vmatprep.mubr.bf16.mxu0 %v3338_v31  ;;  %v3424_v29 = vld [vmem:[#allocation3 + $0x374] ss:$20 sps:$4 sm:$0xff]   ;;  %v3428_v31 = vld [vmem:[#allocation3 + $0x370] ss:$20 sps:$4 sm:$0xff]  }
  0x83   :  { %1860 = vmatprep.subr.bf16.mxu0 %v3667_v0  ;;  %1677 = vmatprep.mubr.bf16.mxu1 %v3340_v32  ;;  %v3429_v32 = vld [vmem:[#allocation3 + $0xf8] ss:$20 sps:$4 sm:$0xff]  }
  0x84   :  { %3114 = vmatpush3.bf16.msra.mxu1 %v3417_v30  ;;  %v3426_v30 = vld [vmem:[#allocation3 + $0xfc] ss:$20 sps:$4 sm:$0xff]  }
  0x85   :  { %3115 = vmatprep.subr.bf16.mxu1 %v3454_v44 }
  0x86   :  { %1861 = vmatpush1.bf16.msra.mxu0 %v3337_v33  ;;  %v3430_v33 = vld [vmem:[#allocation3 + $0x39c] ss:$20 sps:$4 sm:$0xff]  }
  0x87   :  { %1862 = vmatprep.subr.bf16.mxu0 %v3667_v0 }
  0x88   :  { %3116 = vmatpush3.bf16.msra.mxu1 %v3454_v44  ;;  %v3447_v44 = vld [vmem:[#allocation3 + $0x170] ss:$20 sps:$4 sm:$0xff]  }
  0x89   :  { %1614 = vmatmul.mubr.bf16.gmra.mrb[8].mxu0 %v3342_v34  ;;  %1678 = vmatmul.mubr.bf16.gmra.mrb[8].mxu1 %v3343_v35  ;;  %v3432_v34 = vld [vmem:[#allocation3 + $0x124] ss:$20 sps:$4 sm:$0xff]  }
  0x8a   :  { %1863 = vmatpush1.bf16.msra.mxu0 %v3344_v36  ;;  %1621 = vmatprep.mubr.bf16.mxu0 %v3346_v37  ;;  %v3434_v35 = vld [vmem:[#allocation3 + $0x398] ss:$20 sps:$4 sm:$0xff]   ;;  %v3435_v36 = vld [vmem:[#allocation3 + $0x120] ss:$20 sps:$4 sm:$0xff]  }
  0x8b   :  { %1864 = vmatprep.subr.bf16.mxu0 %v3667_v0  ;;  %1685 = vmatprep.mubr.bf16.mxu1 %v3348_v38  ;;  %v3436_v37 = vld [vmem:[#allocation3 + $0x3c4] ss:$20 sps:$4 sm:$0xff]   ;;  %v3438_v38 = vld [vmem:[#allocation3 + $0x14c] ss:$20 sps:$4 sm:$0xff]  }
  0x8e   :  { %1865 = vmatpush1.bf16.msra.mxu0 %v3345_v39  ;;  %v3440_v39 = vld [vmem:[#allocation3 + $0x3c0] ss:$20 sps:$4 sm:$0xff]  }
  0x8f   :  { %1866 = vmatprep.subr.bf16.mxu0 %v3667_v0 }
  0x91   :  { %1622 = vmatmul.mubr.bf16.gmra.mrb[12].mxu0 %v3350_v40  ;;  %1686 = vmatmul.mubr.bf16.gmra.mrb[12].mxu1 %v3351_v41  ;;  %v3441_v40 = vld [vmem:[#allocation3 + $0x148] ss:$20 sps:$4 sm:$0xff]   ;;  %v3442_v41 = vld [vmem:[#allocation3 + $0x3ec] ss:$20 sps:$4 sm:$0xff]  }
  0x92   :  { %1867 = vmatpush1.bf16.msra.mxu0 %v3352_v42  ;;  %1629 = vmatprep.mubr.bf16.mxu0 %v3354_v43  ;;  %v3444_v42 = vld [vmem:[#allocation3 + $0x174] ss:$20 sps:$4 sm:$0xff]  }
  0x93   :  { %1868 = vmatprep.subr.bf16.mxu0 %v3667_v0  ;;  %1693 = vmatprep.mubr.bf16.mxu1 %v3356_v45  ;;  %v3446_v43 = vld [vmem:[#allocation3 + $0x3e8] ss:$20 sps:$4 sm:$0xff]  }
  0x94   :  { %v3448_v45 = vld [vmem:[#allocation3 + $0x414] ss:$20 sps:$4 sm:$0xff]  }
  0x96   :  { %1869 = vmatpush1.bf16.msra.mxu0 %v3353_v46  ;;  %v3450_v46 = vld [vmem:[#allocation3 + $0x19c] ss:$20 sps:$4 sm:$0xff]  }
  0x97   :  { %1870 = vmatprep.subr.bf16.mxu0 %v3667_v0 }
  0x99   :  { %1630 = vmatmul.mubr.bf16.gmra.mrb[16].mxu0 %v3358_v47  ;;  %1694 = vmatmul.mubr.bf16.gmra.mrb[16].mxu1 %v3359_v48  ;;  %v3452_v47 = vld [vmem:[#allocation3 + $0x410] ss:$20 sps:$4 sm:$0xff]   ;;  %v3453_v48 = vld [vmem:[#allocation3 + $0x198] ss:$20 sps:$4 sm:$0xff]  }
  0x9a   :  { %1871 = vmatpush1.bf16.msra.mxu0 %v3360_v49  ;;  %1637 = vmatprep.mubr.bf16.mxu0 %v3362_v50  ;;  %v3455_v49 = vld [vmem:[#allocation3 + $0x43c] ss:$20 sps:$4 sm:$0xff]   ;;  %v3457_v50 = vld [vmem:[#allocation3 + $0x1c4] ss:$20 sps:$4 sm:$0xff]  }
  0x9b   :  { %1872 = vmatprep.subr.bf16.mxu0 %v3667_v0  ;;  %1701 = vmatprep.mubr.bf16.mxu1 %v3364_v51  ;;  %v3459_v51 = vld [vmem:[#allocation3 + $0x438] ss:$20 sps:$4 sm:$0xff]  }
  0x9e   :  { %1873 = vmatpush1.bf16.msra.mxu0 %v3361_v52  ;;  %v3460_v52 = vld [vmem:[#allocation3 + $0x1c0] ss:$20 sps:$4 sm:$0xff]  }
  0x9f   :  { %1874 = vmatprep.subr.bf16.mxu0 %v3667_v0 }
  0xa1   :  { %1638 = vmatmul.mubr.bf16.gmra.mrb[20].mxu0 %v3366_v53  ;;  %1702 = vmatmul.mubr.bf16.gmra.mrb[20].mxu1 %v3367_v54  ;;  %v3461_v53 = vld [vmem:[#allocation3 + $0x464] ss:$20 sps:$4 sm:$0xff]   ;;  %v3463_v54 = vld [vmem:[#allocation3 + $0x1ec] ss:$20 sps:$4 sm:$0xff]  }
  0xa2   :  { %1875 = vmatpush1.bf16.msra.mxu0 %v3368_v55  ;;  %1645 = vmatprep.mubr.bf16.mxu0 %v3370_v56  ;;  %v3465_v55 = vld [vmem:[#allocation3 + $0x460] ss:$20 sps:$4 sm:$0xff]   ;;  %v3466_v56 = vld [vmem:[#allocation3 + $0x1e8] ss:$20 sps:$4 sm:$0xff]  }
  0xa3   :  { %1876 = vmatprep.subr.bf16.mxu0 %v3667_v0  ;;  %1709 = vmatprep.mubr.bf16.mxu1 %v3372_v57  ;;  %v3467_v57 = vld [vmem:[#allocation3 + $0x48c] ss:$20 sps:$4 sm:$0xff]  }
  0xa6   :  { %1877 = vmatpush1.bf16.msra.mxu0 %v3369_v58  ;;  %v3469_v58 = vld [vmem:[#allocation3 + $0x214] ss:$20 sps:$4 sm:$0xff]  }
  0xa7   :  { %1878 = vmatprep.subr.bf16.mxu0 %v3667_v0 }
  0xa9   :  { %1646 = vmatmul.mubr.bf16.gmra.mrb[24].mxu0 %v3374_v59  ;;  %1710 = vmatmul.mubr.bf16.gmra.mrb[24].mxu1 %v3375_v60  ;;  %v3471_v59 = vld [vmem:[#allocation3 + $0x488] ss:$20 sps:$4 sm:$0xff]   ;;  %v3472_v60 = vld [vmem:[#allocation3 + $0x210] ss:$20 sps:$4 sm:$0xff]  }
  0xaa   :  { %1879 = vmatpush1.bf16.msra.mxu0 %v3376_v61  ;;  %1653 = vmatprep.mubr.bf16.mxu0 %v3379_v62  ;;  %v3473_v61 = vld [vmem:[#allocation3 + $0x4b4] ss:$20 sps:$4 sm:$0xff]   ;;  %v3475_v62 = vld [vmem:[#allocation3 + $0x23c] ss:$20 sps:$4 sm:$0xff]  }
  0xab   :  { %1880 = vmatprep.subr.bf16.mxu0 %v3667_v0  ;;  %1717 = vmatprep.mubr.bf16.mxu1 %v3381_v63  ;;  %v3477_v63 = vld [vmem:[#allocation3 + $0x4b0] ss:$20 sps:$4 sm:$0xff]  }
  0xae   :  { %1881 = vmatpush1.bf16.msra.mxu0 %v3378_v1  ;;  %v3478_v1 = vld [vmem:[#allocation3 + $0x238] ss:$20 sps:$4 sm:$0xff]  }
  0xaf   :  { %1882 = vmatprep.subr.bf16.mxu0 %v3667_v0 }
  0xb1   :  { %1654 = vmatmul.mubr.bf16.gmra.mrb[28].mxu0 %v3383_v2  ;;  %1718 = vmatmul.mubr.bf16.gmra.mrb[28].mxu1 %v3384_v3  ;;  %v3479_v2 = vld [vmem:[#allocation3 + $0x4dc] ss:$20 sps:$4 sm:$0xff]   ;;  %v3481_v3 = vld [vmem:[#allocation3 + $0x264] ss:$20 sps:$4 sm:$0xff]  }
  0xb2   :  { %1883 = vmatpush1.bf16.msra.mxu0 %v3385_v4  ;;  %1725 = vmatprep.mubr.bf16.mxu1 %v3387_v5  ;;  %v3483_v4 = vld [vmem:[#allocation3 + $0x4d8] ss:$20 sps:$4 sm:$0xff]   ;;  %v3484_v5 = vld [vmem:[#allocation3 + $0x260] ss:$20 sps:$4 sm:$0xff]  }
  0xb3   :  { %1884 = vmatprep.subr.bf16.mxu0 %v3667_v0  ;;  %1886 = vmatprep.mubr.bf16.mxu0 %v3391_v6  ;;  %v3404_v0 = vld [vmem:[#allocation3 + $0x58] ss:$20 sps:$4 sm:$0xff]  }
  0xb4   :  { %v3485_v6 = vld [vmem:[#allocation3 + $0x28c] ss:$20 sps:$4 sm:$0xff]  }
  0xb6   :  { %1885 = vmatpush1.bf16.msra.mxu0 %v3386_v7  ;;  %v3487_v7 = vld [vmem:[#allocation3 + $0x10] ss:$20 sps:$4 sm:$0xff]  }
  0xb9   :  { %1726 = vmatmul.mubr.bf16.gmra.mrb[32].mxu1 %v3392_v9  ;;  %1887 = vmatmul.mubr.bf16.vlgmr.msra.gmra.mrb[0].mxu0 %v3389_v8  ;;  %v3488_v8 = vld [vmem:[#allocation3 + $0x288] ss:$20 sps:$4 sm:$0xff]   ;;  %v3489_v9 = vld [vmem:[#allocation3 + $0x38] ss:$20 sps:$4 sm:$0xff]  }
  0xba   :  { %1733 = vmatprep.mubr.bf16.mxu1 %v3393_v10  ;;  %1894 = vmatprep.mubr.bf16.mxu0 %v3395_v11  ;;  %v3490_v10 = vld [vmem:[#allocation3 + $0x2b4] ss:$20 sps:$4 sm:$0xff]  }
  0xbb   :  { %v3492_v11 = vld [vmem:[#allocation3 + $0x60] ss:$20 sps:$4 sm:$0xff]  }
  0xc1   :  { %1734 = vmatmul.mubr.bf16.gmra.mrb[36].mxu1 %v3397_v12  ;;  %1895 = vmatmul.mubr.bf16.gmra.mrb[4].mxu0 %v3398_v13  ;;  %v3493_v12 = vld [vmem:[#allocation3 + $0x2b0] ss:$20 sps:$4 sm:$0xff]   ;;  %v3494_v13 = vld [vmem:[#allocation3 + $0x88] ss:$20 sps:$4 sm:$0xff]  }
  0xc2   :  { %1741 = vmatprep.mubr.bf16.mxu1 %v3399_v14  ;;  %1902 = vmatprep.mubr.bf16.mxu0 %v3401_v15  ;;  %v3495_v14 = vld [vmem:[#allocation3 + $0x2dc] ss:$20 sps:$4 sm:$0xff]  }
  0xc3   :  { %v3497_v15 = vld [vmem:[#allocation3 + $0xb0] ss:$20 sps:$4 sm:$0xff]  }
  0xc9   :  { %1742 = vmatmul.mubr.bf16.gmra.mrb[40].mxu1 %v3403_v16  ;;  %1903 = vmatmul.mubr.bf16.gmra.mrb[8].mxu0 %v3404_v0  ;;  %v3498_v16 = vld [vmem:[#allocation3 + $0x2d8] ss:$20 sps:$4 sm:$0xff]  }
  0xca   :  { %1749 = vmatprep.mubr.bf16.mxu1 %v3405_v17  ;;  %1910 = vmatprep.mubr.bf16.mxu0 %v3407_v18  ;;  %v3499_v0 = vld [vmem:[#allocation3 + $0xd8] ss:$20 sps:$4 sm:$0xff]   ;;  %v3502_v18 = vld [vmem:[#allocation3 + $0x100] ss:$20 sps:$4 sm:$0xff]  }
  0xcb   :  { %v3500_v17 = vld [vmem:[#allocation3 + $0x304] ss:$20 sps:$4 sm:$0xff]  }
  0xd1   :  { %1750 = vmatmul.mubr.bf16.gmra.mrb[44].mxu1 %v3409_v19  ;;  %1911 = vmatmul.mubr.bf16.gmra.mrb[12].mxu0 %v3410_v20 }
  0xd2   :  { %1757 = vmatprep.mubr.bf16.mxu1 %v3411_v21  ;;  %1918 = vmatprep.mubr.bf16.mxu0 %v3413_v22  ;;  %v3503_v21 = vld [vmem:[#allocation3 + $0x300] ss:$20 sps:$4 sm:$0xff]   ;;  %v3504_v22 = vld [vmem:[#allocation3 + $0x128] ss:$20 sps:$4 sm:$0xff]  }
  0xd9   :  { %1758 = vmatmul.mubr.bf16.gmra.mrb[48].mxu1 %v3415_v23  ;;  %1919 = vmatmul.mubr.bf16.gmra.mrb[16].mxu0 %v3416_v24  ;;  %v3505_v24 = vld [vmem:[#allocation3 + $0x32c] ss:$20 sps:$4 sm:$0xff]  }
  0xda   :  { %1765 = vmatprep.mubr.bf16.mxu1 %v3418_v25  ;;  %1926 = vmatprep.mubr.bf16.mxu0 %v3420_v26  ;;  %v3507_v25 = vld [vmem:[#allocation3 + $0x150] ss:$20 sps:$4 sm:$0xff]  }
  0xe1   :  { %1766 = vmatmul.mubr.bf16.gmra.mrb[52].mxu1 %v3422_v27  ;;  %1927 = vmatmul.mubr.bf16.gmra.mrb[20].mxu0 %v3423_v28 }
  0xe2   :  { %1773 = vmatprep.mubr.bf16.mxu1 %v3424_v29  ;;  %1934 = vmatprep.mubr.bf16.mxu0 %v3426_v30  ;;  %v3508_v29 = vld [vmem:[#allocation3 + $0x328] ss:$20 sps:$4 sm:$0xff]   ;;  %v3509_v30 = vld [vmem:[#allocation3 + $0x178] ss:$20 sps:$4 sm:$0xff]  }
  0xe9   :  { %1774 = vmatmul.mubr.bf16.gmra.mrb[56].mxu1 %v3428_v31  ;;  %1935 = vmatmul.mubr.bf16.gmra.mrb[24].mxu0 %v3429_v32  ;;  %v3510_v32 = vld [vmem:[#allocation3 + $0x354] ss:$20 sps:$4 sm:$0xff]  }
  0xea   :  { %1781 = vmatprep.mubr.bf16.mxu1 %v3430_v33  ;;  %1942 = vmatprep.mubr.bf16.mxu0 %v3432_v34  ;;  %v3512_v33 = vld [vmem:[#allocation3 + $0x1a0] ss:$20 sps:$4 sm:$0xff]  }
  0xf1   :  { %1782 = vmatmul.mubr.bf16.gmra.mrb[60].mxu1 %v3434_v35  ;;  %1943 = vmatmul.mubr.bf16.gmra.mrb[28].mxu0 %v3435_v36 }
  0xf2   :  { %1789 = vmatprep.mubr.bf16.mxu1 %v3436_v37  ;;  %1950 = vmatprep.mubr.bf16.mxu0 %v3438_v38  ;;  %v3513_v37 = vld [vmem:[#allocation3 + $0x350] ss:$20 sps:$4 sm:$0xff]   ;;  %v3514_v38 = vld [vmem:[#allocation3 + $0x1c8] ss:$20 sps:$4 sm:$0xff]  }
  0xf9   :  { %1790 = vmatmul.mubr.bf16.gmra.mrb[64].mxu1 %v3440_v39  ;;  %1951 = vmatmul.mubr.bf16.gmra.mrb[32].mxu0 %v3441_v40  ;;  %v3515_v40 = vld [vmem:[#allocation3 + $0x37c] ss:$20 sps:$4 sm:$0xff]  }
  0xfa   :  { %1797 = vmatprep.mubr.bf16.mxu1 %v3442_v41  ;;  %1958 = vmatprep.mubr.bf16.mxu0 %v3444_v42  ;;  %v3517_v41 = vld [vmem:[#allocation3 + $0x1f0] ss:$20 sps:$4 sm:$0xff]  }
 0x101   :  { %1798 = vmatmul.mubr.bf16.gmra.mrb[68].mxu1 %v3446_v43  ;;  %1959 = vmatmul.mubr.bf16.gmra.mrb[36].mxu0 %v3447_v44 }
 0x102   :  { %1805 = vmatprep.mubr.bf16.mxu1 %v3448_v45  ;;  %1966 = vmatprep.mubr.bf16.mxu0 %v3450_v46  ;;  %v3518_v45 = vld [vmem:[#allocation3 + $0x378] ss:$20 sps:$4 sm:$0xff]  }
 0x103   :  { %v3519_v46 = vld [vmem:[#allocation3 + $0x218] ss:$20 sps:$4 sm:$0xff]  }
 0x109   :  { %1806 = vmatmul.mubr.bf16.gmra.mrb[72].mxu1 %v3452_v47  ;;  %1967 = vmatmul.mubr.bf16.gmra.mrb[40].mxu0 %v3453_v48  ;;  %v3520_v48 = vld [vmem:[#allocation3 + $0x3a4] ss:$20 sps:$4 sm:$0xff]  }
 0x10a   :  { %1813 = vmatprep.mubr.bf16.mxu1 %v3455_v49  ;;  %1974 = vmatprep.mubr.bf16.mxu0 %v3457_v50  ;;  %v3522_v49 = vld [vmem:[#allocation3 + $0x240] ss:$20 sps:$4 sm:$0xff]  }
 0x111   :  { %1814 = vmatmul.mubr.bf16.gmra.mrb[76].mxu1 %v3459_v51  ;;  %1975 = vmatmul.mubr.bf16.gmra.mrb[44].mxu0 %v3460_v52 }
 0x112   :  { %1821 = vmatprep.mubr.bf16.mxu1 %v3461_v53  ;;  %1982 = vmatprep.mubr.bf16.mxu0 %v3463_v54  ;;  %v3523_v53 = vld [vmem:[#allocation3 + $0x3a0] ss:$20 sps:$4 sm:$0xff]   ;;  %v3524_v54 = vld [vmem:[#allocation3 + $0x268] ss:$20 sps:$4 sm:$0xff]  }
 0x119   :  { %1822 = vmatmul.mubr.bf16.gmra.mrb[80].mxu1 %v3465_v55  ;;  %1983 = vmatmul.mubr.bf16.gmra.mrb[48].mxu0 %v3466_v56  ;;  %v3525_v56 = vld [vmem:[#allocation3 + $0x3cc] ss:$20 sps:$4 sm:$0xff]  }
 0x11a   :  { %1829 = vmatprep.mubr.bf16.mxu1 %v3467_v57  ;;  %1990 = vmatprep.mubr.bf16.mxu0 %v3469_v58  ;;  %v3527_v57 = vld [vmem:[#allocation3 + $0x290] ss:$20 sps:$4 sm:$0xff]  }
 0x121   :  { %1830 = vmatmul.mubr.bf16.gmra.mrb[84].mxu1 %v3471_v59  ;;  %1991 = vmatmul.mubr.bf16.gmra.mrb[52].mxu0 %v3472_v60 }
 0x122   :  { %1837 = vmatprep.mubr.bf16.mxu1 %v3473_v61  ;;  %1998 = vmatprep.mubr.bf16.mxu0 %v3475_v62  ;;  %v3528_v61 = vld [vmem:[#allocation3 + $0x3c8] ss:$20 sps:$4 sm:$0xff]   ;;  %v3529_v62 = vld [vmem:[#allocation3 + $0x2b8] ss:$20 sps:$4 sm:$0xff]  }
 0x129   :  { %1838 = vmatmul.mubr.bf16.gmra.mrb[88].mxu1 %v3477_v63  ;;  %1999 = vmatmul.mubr.bf16.gmra.mrb[56].mxu0 %v3478_v1  ;;  %v3530_v1 = vld [vmem:[#allocation3 + $0x3f4] ss:$20 sps:$4 sm:$0xff]  }
 0x12a   :  { %1845 = vmatprep.mubr.bf16.mxu1 %v3479_v2  ;;  %2006 = vmatprep.mubr.bf16.mxu0 %v3481_v3  ;;  %v3532_v2 = vld [vmem:[#allocation3 + $0x2e0] ss:$20 sps:$4 sm:$0xff]  }
 0x131   :  { %1846 = vmatmul.mubr.bf16.gmra.mrb[92].mxu1 %v3483_v4  ;;  %2007 = vmatmul.mubr.bf16.gmra.mrb[60].mxu0 %v3484_v5 }
 0x132   :  { %2014 = vmatprep.mubr.bf16.mxu0 %v3485_v6  ;;  %3117 = vmatprep.mubr.msk.bf16.mxu1 %vm59_vm0, %v3487_v7  ;;  %v3533_v6 = vld [vmem:[#allocation3 + $0x3f0] ss:$20 sps:$4 sm:$0xff]   ;;  %v3534_v7 = vld [vmem:[#allocation3 + $0x308] ss:$20 sps:$4 sm:$0xff]  }
 0x139   :  { %2015 = vmatmul.mubr.bf16.gmra.mrb[64].mxu0 %v3488_v8  ;;  %3118 = vmatmul.mubr.msk.bf16.vlgmr.msra.gmra.mrb[96].mxu1 %vm59_vm0, %v3489_v9  ;;  %v3535_v9 = vld [vmem:[#allocation3 + $0x41c] ss:$20 sps:$4 sm:$0xff]  }
 0x13a   :  { %2022 = vmatprep.mubr.bf16.mxu0 %v3490_v10  ;;  %3121 = vmatprep.mubr.msk.bf16.mxu1 %vm59_vm0, %v3492_v11  ;;  %v3537_v10 = vld [vmem:[#allocation3 + $0x330] ss:$20 sps:$4 sm:$0xff]  }
 0x141   :  { %2023 = vmatmul.mubr.bf16.gmra.mrb[68].mxu0 %v3493_v12  ;;  %3122 = vmatmul.mubr.msk.bf16.gmra.mrb[100].mxu1 %vm59_vm0, %v3494_v13 }
 0x142   :  { %2030 = vmatprep.mubr.bf16.mxu0 %v3495_v14  ;;  %3125 = vmatprep.mubr.msk.bf16.mxu1 %vm59_vm0, %v3497_v15  ;;  %v3827_v14 = vld [vmem:[#allocation3 + $0x418] ss:$20 sps:$4 sm:$0xff]  }
 0x143   :  { %v3829_v15 = vld [vmem:[#allocation3 + $0x358] ss:$20 sps:$4 sm:$0xff]  }
 0x149   :  { %2031 = vmatmul.mubr.bf16.gmra.mrb[72].mxu0 %v3498_v16  ;;  %3126 = vmatmul.mubr.msk.bf16.gmra.mrb[104].mxu1 %vm59_vm0, %v3499_v0  ;;  %v3833_v0 = vld [vmem:[#allocation3 + $0x444] ss:$20 sps:$4 sm:$0xff]  }
 0x14a   :  { %2038 = vmatprep.mubr.bf16.mxu0 %v3500_v17  ;;  %3129 = vmatprep.mubr.msk.bf16.mxu1 %vm59_vm0, %v3502_v18  ;;  %v3835_v17 = vld [vmem:[#allocation3 + $0x380] ss:$20 sps:$4 sm:$0xff]  }
 0x14c   :  { %v3783_v19 = vpop.f32.mrb[0].mxu1 }
 0x14d   :  { %v1665_v20 = vpop.f32.mrb[1].mxu1 }
 0x14e   :  { %v3785_v23 = vpop.f32.mrb[2].mxu1  ;;  %v3668_v20 = vmov 0.0  }
 0x14f   :  { %v1668_v26 = vpop.f32.mrb[3].mxu1  ;;  %62 = vst.msk [vmem:[#allocation2 + $0x10] sm:$0xff] %vm59_vm0, %v3668_v20  ;;  %60 = vst.msk [vmem:[#allocation2] sm:$0xff] %vm59_vm0, %v3668_v20 }
 0x150   :  { %61 = vst.msk [vmem:[#allocation2 + $0x8] sm:$0xff] %vm59_vm0, %v3668_v20  ;;  %63 = vst.msk [vmem:[#allocation2 + $0x18] sm:$0xff] %vm59_vm0, %v3668_v20  ;;  %v3543_v26 = vld [vmem:[#allocation3 + $0x440] ss:$20 sps:$4 sm:$0xff]  }
 0x151   :  { %2039 = vmatmul.mubr.bf16.gmra.mrb[76].mxu0 %v3503_v21  ;;  %3130 = vmatmul.mubr.msk.bf16.gmra.mrb[108].mxu1 %vm59_vm0, %v3504_v22  ;;  %64 = vst.msk [vmem:[#allocation2 + $0x20] sm:$0xff] %vm59_vm0, %v3668_v20  ;;  %65 = vst.msk [vmem:[#allocation2 + $0x28] sm:$0xff] %vm59_vm0, %v3668_v20 }
 0x152   :  { %2046 = vmatprep.mubr.bf16.mxu0 %v3505_v24  ;;  %3133 = vmatprep.mubr.msk.bf16.mxu1 %vm59_vm0, %v3507_v25  ;;  %66 = vst.msk [vmem:[#allocation2 + $0x30] sm:$0xff] %vm59_vm0, %v3668_v20  ;;  %67 = vst.msk [vmem:[#allocation2 + $0x38] sm:$0xff] %vm59_vm0, %v3668_v20 }
 0x153   :  { %68 = vst.msk [vmem:[#allocation2 + $0x40] sm:$0xff] %vm59_vm0, %v3668_v20  ;;  %69 = vst.msk [vmem:[#allocation2 + $0x48] sm:$0xff] %vm59_vm0, %v3668_v20 }
 0x154   :  { %v3789_v27 = vpop.f32.mrb[4].mxu1  ;;  %70 = vst.msk [vmem:[#allocation2 + $0x50] sm:$0xff] %vm59_vm0, %v3668_v20  ;;  %71 = vst.msk [vmem:[#allocation2 + $0x58] sm:$0xff] %vm59_vm0, %v3668_v20 }
 0x155   :  { %v1673_v28 = vpop.f32.mrb[5].mxu1  ;;  %72 = vst.msk [vmem:[#allocation2 + $0x60] sm:$0xff] %vm59_vm0, %v3668_v20  ;;  %73 = vst.msk [vmem:[#allocation2 + $0x68] sm:$0xff] %vm59_vm0, %v3668_v20 }
 0x156   :  { %v3791_v31 = vpop.f32.mrb[6].mxu1  ;;  %74 = vst.msk [vmem:[#allocation2 + $0x70] sm:$0xff] %vm59_vm0, %v3668_v20  ;;  %75 = vst.msk [vmem:[#allocation2 + $0x78] sm:$0xff] %vm59_vm0, %v3668_v20  ;;  %v3544_v28 = vld [vmem:[#allocation3 + $0x3a8] ss:$20 sps:$4 sm:$0xff]  }
 0x157   :  { %v1676_v34 = vpop.f32.mrb[7].mxu1  ;;  %76 = vst.msk [vmem:[#allocation2 + $0x80] sm:$0xff] %vm59_vm0, %v3668_v20  ;;  %77 = vst.msk [vmem:[#allocation2 + $0x88] sm:$0xff] %vm59_vm0, %v3668_v20 }
 0x158   :  { %78 = vst.msk [vmem:[#allocation2 + $0x90] sm:$0xff] %vm59_vm0, %v3668_v20  ;;  %79 = vst.msk [vmem:[#allocation2 + $0x98] sm:$0xff] %vm59_vm0, %v3668_v20 }
 0x159   :  { %2047 = vmatmul.mubr.bf16.gmra.mrb[80].mxu0 %v3508_v29  ;;  %3134 = vmatmul.mubr.msk.bf16.gmra.mrb[112].mxu1 %vm59_vm0, %v3509_v30  ;;  %80 = vst.msk [vmem:[#allocation2 + $0xa0] sm:$0xff] %vm59_vm0, %v3668_v20  ;;  %81 = vst.msk [vmem:[#allocation2 + $0xa8] sm:$0xff] %vm59_vm0, %v3668_v20 }
 0x15a   :  { %2054 = vmatprep.mubr.bf16.mxu0 %v3510_v32  ;;  %3137 = vmatprep.mubr.msk.bf16.mxu1 %vm59_vm0, %v3512_v33  ;;  %82 = vst.msk [vmem:[#allocation2 + $0xb0] sm:$0xff] %vm59_vm0, %v3668_v20  ;;  %83 = vst.msk [vmem:[#allocation2 + $0xb8] sm:$0xff] %vm59_vm0, %v3668_v20  ;;  %v3545_v32 = vld [vmem:[#allocation3 + $0x46c] ss:$20 sps:$4 sm:$0xff]   ;;  %v3547_v33 = vld [vmem:[#allocation3 + $0x3d0] ss:$20 sps:$4 sm:$0xff]  }
 0x15b   :  { %84 = vst.msk [vmem:[#allocation2 + $0xc0] sm:$0xff] %vm59_vm0, %v3668_v20  ;;  %85 = vst.msk [vmem:[#allocation2 + $0xc8] sm:$0xff] %vm59_vm0, %v3668_v20 }
 0x15c   :  { %v3795_v35 = vpop.f32.mrb[8].mxu1  ;;  %86 = vst.msk [vmem:[#allocation2 + $0xd0] sm:$0xff] %vm59_vm0, %v3668_v20  ;;  %87 = vst.msk [vmem:[#allocation2 + $0xd8] sm:$0xff] %vm59_vm0, %v3668_v20 }
 0x15d   :  { %v1681_v36 = vpop.f32.mrb[9].mxu1  ;;  %88 = vst.msk [vmem:[#allocation2 + $0xe0] sm:$0xff] %vm59_vm0, %v3668_v20  ;;  %89 = vst.msk [vmem:[#allocation2 + $0xe8] sm:$0xff] %vm59_vm0, %v3668_v20 }
 0x15e   :  { %v3797_v39 = vpop.f32.mrb[10].mxu1  ;;  %90 = vst.msk [vmem:[#allocation2 + $0xf0] sm:$0xff] %vm59_vm0, %v3668_v20  ;;  %91 = vst.msk [vmem:[#allocation2 + $0xf8] sm:$0xff] %vm59_vm0, %v3668_v20 }
 0x15f   :  { %v1684_v42 = vpop.f32.mrb[11].mxu1  ;;  %92 = vst.msk [vmem:[#allocation2 + $0x100] sm:$0xff] %vm59_vm0, %v3668_v20  ;;  %93 = vst.msk [vmem:[#allocation2 + $0x108] sm:$0xff] %vm59_vm0, %v3668_v20 }
 0x160   :  { %94 = vst.msk [vmem:[#allocation2 + $0x110] sm:$0xff] %vm59_vm0, %v3668_v20  ;;  %95 = vst.msk [vmem:[#allocation2 + $0x118] sm:$0xff] %vm59_vm0, %v3668_v20  ;;  %v3548_v42 = vld [vmem:[#allocation3 + $0x468] ss:$20 sps:$4 sm:$0xff]  }
 0x161   :  { %2055 = vmatmul.mubr.bf16.gmra.mrb[84].mxu0 %v3513_v37  ;;  %3138 = vmatmul.mubr.msk.bf16.gmra.mrb[116].mxu1 %vm59_vm0, %v3514_v38  ;;  %96 = vst.msk [vmem:[#allocation2 + $0x120] sm:$0xff] %vm59_vm0, %v3668_v20  ;;  %97 = vst.msk [vmem:[#allocation2 + $0x128] sm:$0xff] %vm59_vm0, %v3668_v20 }
 0x162   :  { %2062 = vmatprep.mubr.bf16.mxu0 %v3515_v40  ;;  %3141 = vmatprep.mubr.msk.bf16.mxu1 %vm59_vm0, %v3517_v41  ;;  %98 = vst.msk [vmem:[#allocation2 + $0x130] sm:$0xff] %vm59_vm0, %v3668_v20  ;;  %99 = vst.msk [vmem:[#allocation2 + $0x138] sm:$0xff] %vm59_vm0, %v3668_v20 }
 0x163   :  { %100 = vst.msk [vmem:[#allocation2 + $0x140] sm:$0xff] %vm59_vm0, %v3668_v20  ;;  %101 = vst.msk [vmem:[#allocation2 + $0x148] sm:$0xff] %vm59_vm0, %v3668_v20 }
 0x164   :  { %v3801_v43 = vpop.f32.mrb[12].mxu1  ;;  %102 = vst.msk [vmem:[#allocation2 + $0x150] sm:$0xff] %vm59_vm0, %v3668_v20  ;;  %103 = vst.msk [vmem:[#allocation2 + $0x158] sm:$0xff] %vm59_vm0, %v3668_v20 }
 0x165   :  { %v1689_v44 = vpop.f32.mrb[13].mxu1  ;;  %104 = vst.msk [vmem:[#allocation2 + $0x160] sm:$0xff] %vm59_vm0, %v3668_v20  ;;  %105 = vst.msk [vmem:[#allocation2 + $0x168] sm:$0xff] %vm59_vm0, %v3668_v20 }
 0x166   :  { %v3803_v47 = vpop.f32.mrb[14].mxu1  ;;  %106 = vst.msk [vmem:[#allocation2 + $0x170] sm:$0xff] %vm59_vm0, %v3668_v20  ;;  %107 = vst.msk [vmem:[#allocation2 + $0x178] sm:$0xff] %vm59_vm0, %v3668_v20  ;;  %v3549_v44 = vld [vmem:[#allocation3 + $0x3f8] ss:$20 sps:$4 sm:$0xff]  }
 0x167   :  { %v1692_v50 = vpop.f32.mrb[15].mxu1  ;;  %108 = vst.msk [vmem:[#allocation2 + $0x180] sm:$0xff] %vm59_vm0, %v3668_v20  ;;  %109 = vst.msk [vmem:[#allocation2 + $0x188] sm:$0xff] %vm59_vm0, %v3668_v20 }
 0x168   :  { %110 = vst.msk [vmem:[#allocation2 + $0x190] sm:$0xff] %vm59_vm0, %v3668_v20  ;;  %111 = vst.msk [vmem:[#allocation2 + $0x198] sm:$0xff] %vm59_vm0, %v3668_v20 }
 0x169   :  { %2063 = vmatmul.mubr.bf16.gmra.mrb[88].mxu0 %v3518_v45  ;;  %3142 = vmatmul.mubr.msk.bf16.gmra.mrb[120].mxu1 %vm59_vm0, %v3519_v46  ;;  %112 = vst.msk [vmem:[#allocation2 + $0x1a0] sm:$0xff] %vm59_vm0, %v3668_v20  ;;  %113 = vst.msk [vmem:[#allocation2 + $0x1a8] sm:$0xff] %vm59_vm0, %v3668_v20 }
 0x16a   :  { %2070 = vmatprep.mubr.bf16.mxu0 %v3520_v48  ;;  %3145 = vmatprep.mubr.msk.bf16.mxu1 %vm59_vm0, %v3522_v49  ;;  %114 = vst.msk [vmem:[#allocation2 + $0x1b0] sm:$0xff] %vm59_vm0, %v3668_v20  ;;  %115 = vst.msk [vmem:[#allocation2 + $0x1b8] sm:$0xff] %vm59_vm0, %v3668_v20  ;;  %v3550_v48 = vld [vmem:[#allocation3 + $0x494] ss:$20 sps:$4 sm:$0xff]  }
 0x16b   :  { %116 = vst.msk [vmem:[#allocation2 + $0x1c0] sm:$0xff] %vm59_vm0, %v3668_v20  ;;  %117 = vst.msk [vmem:[#allocation2 + $0x1c8] sm:$0xff] %vm59_vm0, %v3668_v20  ;;  %v3552_v49 = vld [vmem:[#allocation3 + $0x420] ss:$20 sps:$4 sm:$0xff]  }
 0x16c   :  { %v3807_v51 = vpop.f32.mrb[16].mxu1  ;;  %118 = vst.msk [vmem:[#allocation2 + $0x1d0] sm:$0xff] %vm59_vm0, %v3668_v20  ;;  %119 = vst.msk [vmem:[#allocation2 + $0x1d8] sm:$0xff] %vm59_vm0, %v3668_v20 }
 0x16d   :  { %v1697_v52 = vpop.f32.mrb[17].mxu1  ;;  %120 = vst.msk [vmem:[#allocation2 + $0x1e0] sm:$0xff] %vm59_vm0, %v3668_v20  ;;  %121 = vst.msk [vmem:[#allocation2 + $0x1e8] sm:$0xff] %vm59_vm0, %v3668_v20 }
 0x16e   :  { %v3809_v55 = vpop.f32.mrb[18].mxu1  ;;  %122 = vst.msk [vmem:[#allocation2 + $0x1f0] sm:$0xff] %vm59_vm0, %v3668_v20  ;;  %123 = vst.msk [vmem:[#allocation2 + $0x1f8] sm:$0xff] %vm59_vm0, %v3668_v20 }
 0x16f   :  { %v1700_v58 = vpop.f32.mrb[19].mxu1 }
 0x170   :  { %v3553_v58 = vld [vmem:[#allocation3 + $0x490] ss:$20 sps:$4 sm:$0xff]  }
 0x171   :  { %2071 = vmatmul.mubr.bf16.gmra.mrb[92].mxu0 %v3523_v53  ;;  %3146 = vmatmul.mubr.msk.bf16.gmra.mrb[124].mxu1 %vm59_vm0, %v3524_v54 }
 0x172   :  { %2078 = vmatprep.mubr.bf16.mxu0 %v3525_v56  ;;  %3149 = vmatprep.mubr.msk.bf16.mxu1 %vm59_vm0, %v3527_v57 }
 0x174   :  { %v3813_v59 = vpop.f32.mrb[20].mxu1 }
 0x175   :  { %v1705_v60 = vpop.f32.mrb[21].mxu1 }
 0x176   :  { %v3815_v63 = vpop.f32.mrb[22].mxu1  ;;  %v3554_v60 = vld [vmem:[#allocation3 + $0x448] ss:$20 sps:$4 sm:$0xff]  }
 0x177   :  { %v1708_v3 = vpop.f32.mrb[23].mxu1 }
 0x179   :  { %2079 = vmatmul.mubr.bf16.gmra.mrb[96].mxu0 %v3528_v61  ;;  %3150 = vmatmul.mubr.msk.bf16.gmra.mrb[128].mxu1 %vm59_vm0, %v3529_v62 }
 0x17a   :  { %2086 = vmatprep.mubr.bf16.mxu0 %v3530_v1  ;;  %3153 = vmatprep.mubr.msk.bf16.mxu1 %vm59_vm0, %v3532_v2  ;;  %v3555_v1 = vld [vmem:[#allocation3 + $0x4bc] ss:$20 sps:$4 sm:$0xff]  }
 0x17b   :  { %v3557_v2 = vld [vmem:[#allocation3 + $0x470] ss:$20 sps:$4 sm:$0xff]  }
 0x17c   :  { %v3819_v4 = vpop.f32.mrb[24].mxu1 }
 0x17d   :  { %v1713_v5 = vpop.f32.mrb[25].mxu1 }
 0x17e   :  { %v3821_v8 = vpop.f32.mrb[26].mxu1 }
 0x17f   :  { %v1716_v11 = vpop.f32.mrb[27].mxu1 }
 0x180   :  { %v3558_v11 = vld [vmem:[#allocation3 + $0x4b8] ss:$20 sps:$4 sm:$0xff]  }
 0x181   :  { %2087 = vmatmul.mubr.bf16.gmra.mrb[100].mxu0 %v3533_v6  ;;  %3154 = vmatmul.mubr.msk.bf16.gmra.mrb[132].mxu1 %vm59_vm0, %v3534_v7 }
 0x182   :  { %2094 = vmatprep.mubr.bf16.mxu0 %v3535_v9  ;;  %3157 = vmatprep.mubr.msk.bf16.mxu1 %vm59_vm0, %v3537_v10 }
 0x184   :  { %v3825_v12 = vpop.f32.mrb[28].mxu1 }
 0x185   :  { %v1721_v13 = vpop.f32.mrb[29].mxu1 }
 0x186   :  { %v3831_v16 = vpop.f32.mrb[30].mxu1  ;;  %v3559_v13 = vld [vmem:[#allocation3 + $0x498] ss:$20 sps:$4 sm:$0xff]  }
 0x187   :  { %v1724_v18 = vpop.f32.mrb[31].mxu1 }
 0x189   :  { %2095 = vmatmul.mubr.bf16.gmra.mrb[104].mxu0 %v3827_v14  ;;  %3158 = vmatmul.mubr.msk.bf16.gmra.mrb[136].mxu1 %vm59_vm0, %v3829_v15 }
 0x18a   :  { %2102 = vmatprep.mubr.bf16.mxu0 %v3833_v0  ;;  %3161 = vmatprep.mubr.msk.bf16.mxu1 %vm59_vm0, %v3835_v17  ;;  %v3560_v0 = vld [vmem:[#allocation3 + $0x4e4] ss:$20 sps:$4 sm:$0xff]   ;;  %v3562_v17 = vld [vmem:[#allocation3 + $0x4c0] ss:$20 sps:$4 sm:$0xff]  }
 0x18c   :  { %v3971_v21 = vpop.f32.mrb[32].mxu1  ;;  %v3973_v22 = vpop.f32.mrb[0].mxu0 }
 0x18d   :  { %v1729_v24 = vpop.f32.mrb[33].mxu1  ;;  %v1890_v25 = vpop.f32.mrb[1].mxu0 }
 0x18e   :  { %v3975_v29 = vpop.f32.mrb[34].mxu1  ;;  %v3977_v30 = vpop.f32.mrb[2].mxu0 }
 0x18f   :  { %v1732_v34 = vpop.f32.mrb[35].mxu1  ;;  %v1893_v36 = vpop.f32.mrb[3].mxu0 }
 0x191   :  { %2103 = vmatmul.mubr.bf16.gmra.mrb[108].mxu0 %v3543_v26  ;;  %3162 = vmatmul.mubr.msk.bf16.gmra.mrb[140].mxu1 %vm59_vm0, %v3544_v28 }
 0x192   :  { %2110 = vmatprep.mubr.bf16.mxu0 %v3545_v32  ;;  %3165 = vmatprep.mubr.msk.bf16.mxu1 %vm59_vm0, %v3547_v33  ;;  %v3563_v32 = vld [vmem:[#allocation3 + $0x4e0] ss:$20 sps:$4 sm:$0xff]   ;;  %v3564_v33 = vld [vmem:[#allocation3 + $0x4e8] ss:$20 sps:$4 sm:$0xff]  }
 0x194   :  { %v3981_v37 = vpop.f32.mrb[36].mxu1  ;;  %v3983_v38 = vpop.f32.mrb[4].mxu0 }
 0x195   :  { %v1737_v40 = vpop.f32.mrb[37].mxu1  ;;  %v1898_v41 = vpop.f32.mrb[5].mxu0 }
 0x196   :  { %v3985_v45 = vpop.f32.mrb[38].mxu1  ;;  %v3987_v46 = vpop.f32.mrb[6].mxu0 }
 0x197   :  { %v1740_v50 = vpop.f32.mrb[39].mxu1  ;;  %v1901_v52 = vpop.f32.mrb[7].mxu0 }
 0x199   :  { %2111 = vmatmul.mubr.bf16.gmra.mrb[112].mxu0 %v3548_v42  ;;  %3166 = vmatmul.mubr.msk.bf16.gmra.mrb[144].mxu1 %vm59_vm0, %v3549_v44 }
 0x19a   :  { %2118 = vmatprep.mubr.bf16.mxu0 %v3550_v48  ;;  %3169 = vmatprep.mubr.msk.bf16.mxu1 %vm59_vm0, %v3552_v49 }
 0x19c   :  { %v3991_v53 = vpop.f32.mrb[40].mxu1  ;;  %v3993_v54 = vpop.f32.mrb[8].mxu0 }
 0x19d   :  { %v1745_v56 = vpop.f32.mrb[41].mxu1  ;;  %v1906_v57 = vpop.f32.mrb[9].mxu0 }
 0x19e   :  { %v3995_v61 = vpop.f32.mrb[42].mxu1  ;;  %v3997_v62 = vpop.f32.mrb[10].mxu0 }
 0x19f   :  { %v1748_v3 = vpop.f32.mrb[43].mxu1  ;;  %v1909_v5 = vpop.f32.mrb[11].mxu0 }
 0x1a1   :  { %2119 = vmatmul.mubr.bf16.gmra.mrb[116].mxu0 %v3553_v58  ;;  %3170 = vmatmul.mubr.msk.bf16.gmra.mrb[148].mxu1 %vm59_vm0, %v3554_v60 }
 0x1a2   :  { %2126 = vmatprep.mubr.bf16.mxu0 %v3555_v1  ;;  %3173 = vmatprep.mubr.msk.bf16.mxu1 %vm59_vm0, %v3557_v2 }
 0x1a4   :  { %v4001_v6 = vpop.f32.mrb[44].mxu1  ;;  %v4003_v7 = vpop.f32.mrb[12].mxu0 }
 0x1a5   :  { %v1753_v9 = vpop.f32.mrb[45].mxu1  ;;  %v1914_v10 = vpop.f32.mrb[13].mxu0 }
 0x1a6   :  { %v4005_v14 = vpop.f32.mrb[46].mxu1  ;;  %v4007_v15 = vpop.f32.mrb[14].mxu0 }
 0x1a7   :  { %v1756_v18 = vpop.f32.mrb[47].mxu1  ;;  %v1917_v20 = vpop.f32.mrb[15].mxu0 }
 0x1a9   :  { %2127 = vmatmul.mubr.bf16.gmra.mrb[120].mxu0 %v3558_v11  ;;  %3174 = vmatmul.mubr.msk.bf16.gmra.mrb[152].mxu1 %vm59_vm0, %v3559_v13 }
 0x1aa   :  { %2134 = vmatprep.mubr.bf16.mxu0 %v3560_v0  ;;  %3177 = vmatprep.mubr.msk.bf16.mxu1 %vm59_vm0, %v3562_v17 }
 0x1ac   :  { %v4011_v24 = vpop.f32.mrb[48].mxu1  ;;  %v4013_v25 = vpop.f32.mrb[16].mxu0 }
 0x1ad   :  { %v1761_v26 = vpop.f32.mrb[49].mxu1  ;;  %v1922_v28 = vpop.f32.mrb[17].mxu0 }
 0x1ae   :  { %v4015_v34 = vpop.f32.mrb[50].mxu1  ;;  %v4017_v36 = vpop.f32.mrb[18].mxu0 }
 0x1af   :  { %v1764_v40 = vpop.f32.mrb[51].mxu1  ;;  %v1925_v41 = vpop.f32.mrb[19].mxu0 }
 0x1b1   :  { %2135 = vmatmul.mubr.bf16.gmra.mrb[124].mxu0 %v3563_v32  ;;  %3178 = vmatmul.mubr.msk.bf16.gmra.mrb[156].mxu1 %vm59_vm0, %v3564_v33 }
 0x1b4   :  { %v4020_v42 = vpop.f32.mrb[52].mxu1  ;;  %v4022_v44 = vpop.f32.mrb[20].mxu0 }
 0x1b5   :  { %v1769_v48 = vpop.f32.mrb[53].mxu1  ;;  %v1930_v49 = vpop.f32.mrb[21].mxu0 }
 0x1b6   :  { %v4024_v50 = vpop.f32.mrb[54].mxu1  ;;  %v4026_v52 = vpop.f32.mrb[22].mxu0 }
 0x1b7   :  { %v1772_v56 = vpop.f32.mrb[55].mxu1  ;;  %v1933_v57 = vpop.f32.mrb[23].mxu0 }
 0x1bc   :  { %v4028_v58 = vpop.f32.mrb[56].mxu1  ;;  %v4030_v60 = vpop.f32.mrb[24].mxu0 }
 0x1bd   :  { %v1777_v1 = vpop.f32.mrb[57].mxu1  ;;  %v1938_v2 = vpop.f32.mrb[25].mxu0 }
 0x1be   :  { %v4032_v3 = vpop.f32.mrb[58].mxu1  ;;  %v4034_v5 = vpop.f32.mrb[26].mxu0 }
 0x1bf   :  { %v1780_v9 = vpop.f32.mrb[59].mxu1  ;;  %v1941_v10 = vpop.f32.mrb[27].mxu0 }
 0x1c4   :  { %v4036_v11 = vpop.f32.mrb[60].mxu1  ;;  %v4038_v13 = vpop.f32.mrb[28].mxu0 }
 0x1c5   :  { %v1785_v0 = vpop.f32.mrb[61].mxu1  ;;  %v1946_v17 = vpop.f32.mrb[29].mxu0 }
 0x1c6   :  { %v4040_v18 = vpop.f32.mrb[62].mxu1  ;;  %v4042_v20 = vpop.f32.mrb[30].mxu0 }
 0x1c7   :  { %v1788_v26 = vpop.f32.mrb[63].mxu1  ;;  %v1949_v28 = vpop.f32.mrb[31].mxu0 }
 0x1cc   :  { %v4044_v32 = vpop.f32.mrb[64].mxu1  ;;  %v1952_v33 = vpop.f32.mrb[32].mxu0 }
 0x1cd   :  { %4478 = vst [vmem:[#allocation13_spill] sm:$0xff] %v4044_v32  ;;  %v4047_v40 = vadd.f32 %v1952_v33, %v3783_v19  ;;  %v1793_v41 = vpop.f32.mrb[65].mxu1  ;;  %v1954_v48 = vpop.f32.mrb[33].mxu0 }
 0x1ce   :  { %v4049_v49 = vpop.f32.mrb[66].mxu1  ;;  %v1955_v56 = vpop.f32.mrb[34].mxu0 }
 0x1cf   :  { %4479 = vst [vmem:[#allocation14_spill] sm:$0xff] %v4049_v49  ;;  %v4052_v57 = vadd.f32 %v1955_v56, %v3785_v23  ;;  %v1796_v1 = vpop.f32.mrb[67].mxu1  ;;  %v1957_v2 = vpop.f32.mrb[35].mxu0  ;;  %v127_v49 = vld [vmem:[#allocation2 + $0x18] sm:$0xff] }
 0x1d4   :  { %v4054_v9 = vpop.f32.mrb[68].mxu1  ;;  %v1960_v10 = vpop.f32.mrb[36].mxu0 }
 0x1d5   :  { %4480 = vst [vmem:[#allocation15_spill] sm:$0xff] %v4054_v9  ;;  %v4057_v0 = vadd.f32 %v1960_v10, %v3789_v27  ;;  %v1801_v17 = vpop.f32.mrb[69].mxu1  ;;  %v1962_v26 = vpop.f32.mrb[37].mxu0 }
 0x1d6   :  { %v4059_v19 = vpop.f32.mrb[70].mxu1  ;;  %v1963_v28 = vpop.f32.mrb[38].mxu0 }
 0x1d7   :  { %4481 = vst [vmem:[#allocation16_spill] sm:$0xff] %v4059_v19  ;;  %v4062_v33 = vadd.f32 %v1963_v28, %v3791_v31  ;;  %v1804_v41 = vpop.f32.mrb[71].mxu1  ;;  %v1965_v48 = vpop.f32.mrb[39].mxu0 }
 0x1dc   :  { %v4064_v23 = vpop.f32.mrb[72].mxu1  ;;  %v1968_v56 = vpop.f32.mrb[40].mxu0 }
 0x1dd   :  { %4482 = vst [vmem:[#allocation17_spill] sm:$0xff] %v4064_v23  ;;  %v4067_v1 = vadd.f32 %v1968_v56, %v3795_v35  ;;  %v1809_v2 = vpop.f32.mrb[73].mxu1  ;;  %v1970_v9 = vpop.f32.mrb[41].mxu0 }
 0x1de   :  { %v4069_v27 = vpop.f32.mrb[74].mxu1  ;;  %v1971_v10 = vpop.f32.mrb[42].mxu0 }
 0x1df   :  { %4483 = vst [vmem:[#allocation18_spill] sm:$0xff] %v4069_v27  ;;  %v4072_v17 = vadd.f32 %v1971_v10, %v3797_v39  ;;  %v1812_v26 = vpop.f32.mrb[75].mxu1  ;;  %v1973_v19 = vpop.f32.mrb[43].mxu0 }
 0x1e4   :  { %v4074_v31 = vpop.f32.mrb[76].mxu1  ;;  %v1976_v28 = vpop.f32.mrb[44].mxu0 }
 0x1e5   :  { %4484 = vst [vmem:[#allocation19_spill] sm:$0xff] %v4074_v31  ;;  %v4077_v41 = vadd.f32 %v1976_v28, %v3801_v43  ;;  %v1817_v48 = vpop.f32.mrb[77].mxu1  ;;  %v1978_v23 = vpop.f32.mrb[45].mxu0 }
 0x1e6   :  { %v4079_v35 = vpop.f32.mrb[78].mxu1  ;;  %v1979_v56 = vpop.f32.mrb[46].mxu0 }
 0x1e7   :  { %4485 = vst [vmem:[#allocation20_spill] sm:$0xff] %v4079_v35  ;;  %v4082_v9 = vadd.f32 %v1979_v56, %v3803_v47  ;;  %v1820_v2 = vpop.f32.mrb[79].mxu1  ;;  %v1981_v27 = vpop.f32.mrb[47].mxu0 }
 0x1ec   :  { %v4084_v39 = vpop.f32.mrb[80].mxu1  ;;  %v1984_v10 = vpop.f32.mrb[48].mxu0 }
 0x1ed   :  { %4486 = vst [vmem:[#allocation21_spill] sm:$0xff] %v4084_v39  ;;  %v4087_v19 = vadd.f32 %v1984_v10, %v3807_v51  ;;  %v1825_v26 = vpop.f32.mrb[81].mxu1  ;;  %v1986_v31 = vpop.f32.mrb[49].mxu0 }
 0x1ee   :  { %v4089_v43 = vpop.f32.mrb[82].mxu1  ;;  %v1987_v28 = vpop.f32.mrb[50].mxu0 }
 0x1ef   :  { %4487 = vst [vmem:[#allocation22_spill] sm:$0xff] %v4089_v43  ;;  %v4092_v23 = vadd.f32 %v1987_v28, %v3809_v55  ;;  %v1828_v48 = vpop.f32.mrb[83].mxu1  ;;  %v1989_v35 = vpop.f32.mrb[51].mxu0 }
 0x1f4   :  { %v4094_v47 = vpop.f32.mrb[84].mxu1  ;;  %v1992_v56 = vpop.f32.mrb[52].mxu0 }
 0x1f5   :  { %4488 = vst [vmem:[#allocation23_spill] sm:$0xff] %v4094_v47  ;;  %v4097_v27 = vadd.f32 %v1992_v56, %v3813_v59  ;;  %v1833_v2 = vpop.f32.mrb[85].mxu1  ;;  %v1994_v39 = vpop.f32.mrb[53].mxu0 }
 0x1f6   :  { %v4099_v51 = vpop.f32.mrb[86].mxu1  ;;  %v1995_v10 = vpop.f32.mrb[54].mxu0 }
 0x1f7   :  { %4489 = vst [vmem:[#allocation24_spill] sm:$0xff] %v4099_v51  ;;  %v4102_v31 = vadd.f32 %v1995_v10, %v3815_v63  ;;  %v1836_v26 = vpop.f32.mrb[87].mxu1  ;;  %v1997_v43 = vpop.f32.mrb[55].mxu0 }
 0x1fc   :  { %v4104_v55 = vpop.f32.mrb[88].mxu1  ;;  %v2000_v28 = vpop.f32.mrb[56].mxu0 }
 0x1fd   :  { %4490 = vst [vmem:[#allocation25_spill] sm:$0xff] %v4104_v55  ;;  %v4107_v35 = vadd.f32 %v2000_v28, %v3819_v4  ;;  %v1841_v48 = vpop.f32.mrb[89].mxu1  ;;  %v2002_v47 = vpop.f32.mrb[57].mxu0 }
 0x1fe   :  { %v4109_v59 = vpop.f32.mrb[90].mxu1  ;;  %v2003_v56 = vpop.f32.mrb[58].mxu0 }
 0x1ff   :  { %4491 = vst [vmem:[#allocation26_spill] sm:$0xff] %v4109_v59  ;;  %v4112_v39 = vadd.f32 %v2003_v56, %v3821_v8  ;;  %v1844_v2 = vpop.f32.mrb[91].mxu1  ;;  %v2005_v51 = vpop.f32.mrb[59].mxu0  ;;  %v126_v56 = vld [vmem:[#allocation2 + $0x10] sm:$0xff] }
 0x201   :  { %4492 = vst [vmem:[#allocation27_spill] sm:$0xff] %v4112_v39  ;;  %v125_v39 = vld [vmem:[#allocation2 + $0x8] sm:$0xff] }
 0x204   :  { %v4114_v63 = vpop.f32.mrb[92].mxu1  ;;  %v2008_v10 = vpop.f32.mrb[60].mxu0 }
 0x205   :  { %4493 = vst [vmem:[#allocation28_spill] sm:$0xff] %v4114_v63  ;;  %v4117_v43 = vadd.f32 %v2008_v10, %v3825_v12  ;;  %v1849_v26 = vpop.f32.mrb[93].mxu1  ;;  %v2010_v55 = vpop.f32.mrb[61].mxu0  ;;  %v124_v10 = vld [vmem:[#allocation2] sm:$0xff] }
 0x206   :  { %v4119_v4 = vpop.f32.mrb[94].mxu1  ;;  %v2011_v28 = vpop.f32.mrb[62].mxu0 }
 0x207   :  { %4494 = vst [vmem:[#allocation29_spill] sm:$0xff] %v4119_v4  ;;  %v4122_v47 = vadd.f32 %v2011_v28, %v3831_v16  ;;  %v1852_v48 = vpop.f32.mrb[95].mxu1  ;;  %v2013_v59 = vpop.f32.mrb[63].mxu0 }
 0x20c   :  { %v2016_v8 = vpop.f32.mrb[64].mxu0  ;;  %v3119_v2 = vpop.f32.mrb[96].mxu1 }
 0x20d   :  { %v4125_v51 = vadd.f32 %v2016_v8, %v3971_v21  ;;  %v2186_v63 = vadd.f32 %v3119_v2, %v3983_v38  ;;  %v2018_v12 = vpop.f32.mrb[65].mxu0  ;;  %v2177_v26 = vpop.f32.mrb[97].mxu1 }
 0x20e   :  { %v2178_v55 = vadd.f32 %v2177_v26, %v3973_v22  ;;  %v2019_v4 = vpop.f32.mrb[66].mxu0  ;;  %v3120_v32 = vpop.f32.mrb[98].mxu1  ;;  %v131_v26 = vld [vmem:[#allocation2 + $0x38] sm:$0xff] }
 0x20f   :  { %v2434_v16 = vadd.f32 %v2186_v63, %v126_v56  ;;  %v4130_v28 = vadd.f32 %v2019_v4, %v3975_v29  ;;  %v2189_v59 = vadd.f32 %v3120_v32, %v3987_v46  ;;  %v2021_v48 = vpop.f32.mrb[67].mxu0  ;;  %v2180_v21 = vpop.f32.mrb[99].mxu1  ;;  %v130_v63 = vld [vmem:[#allocation2 + $0x30] sm:$0xff] }
 0x210   :  { %v2432_v8 = vadd.f32 %v2178_v55, %v124_v10  ;;  %v2181_v38 = vadd.f32 %v2180_v21, %v3977_v30  ;;  %v128_v30 = vld [vmem:[#allocation2 + $0x20] sm:$0xff]  ;;  %v129_v21 = vld [vmem:[#allocation2 + $0x28] sm:$0xff] }
 0x211   :  { %2498 = vst.msk [vmem:[#allocation2 + $0x10] sm:$0xff] %vm59_vm0, %v2434_v16  ;;  %v2435_v2 = vadd.f32 %v2189_v59, %v127_v49  ;;  %v4142_v10 = vld [vmem:[#allocation8] ss:$0 sm:$0xff] }
 0x212   :  { %2496 = vst.msk [vmem:[#allocation2] sm:$0xff] %vm59_vm0, %v2432_v8  ;;  %v2433_v22 = vadd.f32 %v2181_v38, %v125_v39 }
 0x213   :  { %2499 = vst.msk [vmem:[#allocation2 + $0x18] sm:$0xff] %vm59_vm0, %v2435_v2 }
 0x214   :  { %2497 = vst.msk [vmem:[#allocation2 + $0x8] sm:$0xff] %vm59_vm0, %v2433_v22  ;;  %v2024_v29 = vpop.f32.mrb[68].mxu0  ;;  %v3123_v4 = vpop.f32.mrb[100].mxu1 }
 0x215   :  { %v4139_v46 = vadd.f32 %v2024_v29, %v3981_v37  ;;  %v2202_v32 = vadd.f32 %v3123_v4, %v4003_v7  ;;  %v2026_v56 = vpop.f32.mrb[69].mxu0  ;;  %v2193_v12 = vpop.f32.mrb[101].mxu1 }
 0x216   :  { %v2194_v49 = vadd.f32 %v2193_v12, %v3993_v54  ;;  %v2027_v39 = vpop.f32.mrb[70].mxu0  ;;  %v3124_v55 = vpop.f32.mrb[102].mxu1 }
 0x217   :  { %v2438_v16 = vadd.f32 %v2202_v32, %v130_v63  ;;  %v4146_v59 = vadd.f32 %v2027_v39, %v3985_v45  ;;  %v2205_v48 = vadd.f32 %v3124_v55, %v4007_v15  ;;  %v2029_v37 = vpop.f32.mrb[71].mxu0  ;;  %v2196_v8 = vpop.f32.mrb[103].mxu1 }
 0x218   :  { %v2565_v7 = vld [vmem:[#allocation2 + $0x10] sm:$0xff]  ;;  %v2436_v38 = vadd.f32 %v2194_v49, %v128_v30  ;;  %v2197_v2 = vadd.f32 %v2196_v8, %v3997_v62  ;;  %v132_v37 = vld [vmem:[#allocation2 + $0x40] sm:$0xff] }
 0x219   :  { %v2636_v22 = vadd.f32 %v4142_v10, %v2565_v7  ;;  %v2563_v29 = vld [vmem:[#allocation2] sm:$0xff]  ;;  %2502 = vst.msk [vmem:[#allocation2 + $0x30] sm:$0xff] %vm59_vm0, %v2438_v16  ;;  %v2439_v54 = vadd.f32 %v2205_v48, %v131_v26  ;;  %v134_v49 = vld [vmem:[#allocation2 + $0x50] sm:$0xff] }
 0x21a   :  { %v2634_v63 = vadd.f32 %v4142_v10, %v2563_v29  ;;  %v2566_v4 = vld [vmem:[#allocation2 + $0x18] sm:$0xff]  ;;  %2500 = vst.msk [vmem:[#allocation2 + $0x20] sm:$0xff] %vm59_vm0, %v2436_v38  ;;  %v2437_v45 = vadd.f32 %v2197_v2, %v129_v21 }
 0x21b   :  { %v2700_v15 = vmax.f32 %v2636_v22, 0.0  ;;  %v2637_v32 = vadd.f32 %v4142_v10, %v2566_v4  ;;  %v2564_v56 = vld [vmem:[#allocation2 + $0x8] sm:$0xff]  ;;  %2503 = vst.msk [vmem:[#allocation2 + $0x38] sm:$0xff] %vm59_vm0, %v2439_v54  ;;  %v135_v2 = vld [vmem:[#allocation2 + $0x58] sm:$0xff] }
 0x21c   :  { %v2698_v30 = vmax.f32 %v2634_v63, 0.0  ;;  %v2635_v62 = vadd.f32 %v4142_v10, %v2564_v56  ;;  %2501 = vst.msk [vmem:[#allocation2 + $0x28] sm:$0xff] %vm59_vm0, %v2437_v45  ;;  %v2032_v12 = vpop.f32.mrb[72].mxu0  ;;  %v3127_v39 = vpop.f32.mrb[104].mxu1  ;;  %v133_v63 = vld [vmem:[#allocation2 + $0x48] sm:$0xff] }
 0x21d   :  { %2764 = vst.msk [vmem:[#allocation9 + $0x10] sm:$0xff] %vm59_vm0, %v2700_v15  ;;  %v2701_v26 = vmax.f32 %v2637_v32, 0.0  ;;  %v4160_v55 = vadd.f32 %v2032_v12, %v3991_v53  ;;  %v2218_v16 = vadd.f32 %v3127_v39, %v4022_v44  ;;  %v2034_v48 = vpop.f32.mrb[73].mxu0  ;;  %v2209_v21 = vpop.f32.mrb[105].mxu1 }
 0x21e   :  { %2762 = vst.msk [vmem:[#allocation9] sm:$0xff] %vm59_vm0, %v2698_v30  ;;  %v2699_v8 = vmax.f32 %v2635_v62, 0.0  ;;  %v2210_v7 = vadd.f32 %v2209_v21, %v4013_v25  ;;  %v2035_v38 = vpop.f32.mrb[74].mxu0  ;;  %v3128_v22 = vpop.f32.mrb[106].mxu1  ;;  %v138_v48 = vld [vmem:[#allocation2 + $0x70] sm:$0xff] }
 0x21f   :  { %2765 = vst.msk [vmem:[#allocation9 + $0x18] sm:$0xff] %vm59_vm0, %v2701_v26  ;;  %v2442_v29 = vadd.f32 %v2218_v16, %v134_v49  ;;  %v4167_v54 = vadd.f32 %v2035_v38, %v3995_v61  ;;  %v2221_v53 = vadd.f32 %v3128_v22, %v4026_v52  ;;  %v2037_v44 = vpop.f32.mrb[75].mxu0  ;;  %v2212_v4 = vpop.f32.mrb[107].mxu1 }
 0x220   :  { %2763 = vst.msk [vmem:[#allocation9 + $0x8] sm:$0xff] %vm59_vm0, %v2699_v8  ;;  %v2569_v45 = vld [vmem:[#allocation2 + $0x30] sm:$0xff]  ;;  %v2440_v15 = vadd.f32 %v2210_v7, %v132_v37  ;;  %v2213_v25 = vadd.f32 %v2212_v4, %v4017_v36 }
 0x221   :  { %v2640_v32 = vadd.f32 %v4142_v10, %v2569_v45  ;;  %v2567_v56 = vld [vmem:[#allocation2 + $0x20] sm:$0xff]  ;;  %2506 = vst.msk [vmem:[#allocation2 + $0x50] sm:$0xff] %vm59_vm0, %v2442_v29  ;;  %v2443_v30 = vadd.f32 %v2221_v53, %v135_v2 }
 0x222   :  { %v2638_v61 = vadd.f32 %v4142_v10, %v2567_v56  ;;  %v2570_v62 = vld [vmem:[#allocation2 + $0x38] sm:$0xff]  ;;  %2504 = vst.msk [vmem:[#allocation2 + $0x40] sm:$0xff] %vm59_vm0, %v2440_v15  ;;  %v2441_v52 = vadd.f32 %v2213_v25, %v133_v63  ;;  %v136_v2 = vld [vmem:[#allocation2 + $0x60] sm:$0xff]  ;;  %v137_v25 = vld [vmem:[#allocation2 + $0x68] sm:$0xff] }
 0x223   :  { %v2704_v12 = vmax.f32 %v2640_v32, 0.0  ;;  %v2641_v49 = vadd.f32 %v4142_v10, %v2570_v62  ;;  %v2568_v39 = vld [vmem:[#allocation2 + $0x28] sm:$0xff]  ;;  %2507 = vst.msk [vmem:[#allocation2 + $0x58] sm:$0xff] %vm59_vm0, %v2443_v30  ;;  %v139_v63 = vld [vmem:[#allocation2 + $0x78] sm:$0xff] }
 0x224   :  { %v2702_v26 = vmax.f32 %v2638_v61, 0.0  ;;  %v2639_v36 = vadd.f32 %v4142_v10, %v2568_v39  ;;  %2505 = vst.msk [vmem:[#allocation2 + $0x48] sm:$0xff] %vm59_vm0, %v2441_v52  ;;  %v2040_v16 = vpop.f32.mrb[76].mxu0  ;;  %v3131_v37 = vpop.f32.mrb[108].mxu1 }
 0x225   :  { %2768 = vst.msk [vmem:[#allocation9 + $0x30] sm:$0xff] %vm59_vm0, %v2704_v12  ;;  %v2705_v21 = vmax.f32 %v2641_v49, 0.0  ;;  %v4182_v8 = vadd.f32 %v2040_v16, %v4001_v6  ;;  %v2234_v7 = vadd.f32 %v3131_v37, %v4038_v13  ;;  %v2042_v38 = vpop.f32.mrb[77].mxu0  ;;  %v2225_v22 = vpop.f32.mrb[109].mxu1 }
 0x226   :  { %2766 = vst.msk [vmem:[#allocation9 + $0x20] sm:$0xff] %vm59_vm0, %v2702_v26  ;;  %v2703_v29 = vmax.f32 %v2639_v36, 0.0  ;;  %v2226_v53 = vadd.f32 %v2225_v22, %v4030_v60  ;;  %v2043_v44 = vpop.f32.mrb[78].mxu0  ;;  %v3132_v4 = vpop.f32.mrb[110].mxu1  ;;  %v140_v22 = vld [vmem:[#allocation2 + $0x80] sm:$0xff] }
 0x227   :  { %2769 = vst.msk [vmem:[#allocation9 + $0x38] sm:$0xff] %vm59_vm0, %v2705_v21  ;;  %v2446_v45 = vadd.f32 %v2234_v7, %v138_v48  ;;  %v4189_v15 = vadd.f32 %v2043_v44, %v4005_v14  ;;  %v2237_v6 = vadd.f32 %v3132_v4, %v4042_v20  ;;  %v2045_v13 = vpop.f32.mrb[79].mxu0  ;;  %v2228_v32 = vpop.f32.mrb[111].mxu1  ;;  %v142_v48 = vld [vmem:[#allocation2 + $0x90] sm:$0xff]  ;;  %v143_v4 = vld [vmem:[#allocation2 + $0x98] sm:$0xff] }
 0x228   :  { %2767 = vst.msk [vmem:[#allocation9 + $0x28] sm:$0xff] %vm59_vm0, %v2703_v29  ;;  %v2573_v56 = vld [vmem:[#allocation2 + $0x50] sm:$0xff]  ;;  %v2444_v30 = vadd.f32 %v2226_v53, %v136_v2  ;;  %v2229_v60 = vadd.f32 %v2228_v32, %v4034_v5 }
 0x229   :  { %v2644_v61 = vadd.f32 %v4142_v10, %v2573_v56  ;;  %v2571_v62 = vld [vmem:[#allocation2 + $0x40] sm:$0xff]  ;;  %2510 = vst.msk [vmem:[#allocation2 + $0x70] sm:$0xff] %vm59_vm0, %v2446_v45  ;;  %v2447_v52 = vadd.f32 %v2237_v6, %v139_v63 }
 0x22a   :  { %v2642_v14 = vadd.f32 %v4142_v10, %v2571_v62  ;;  %v2574_v12 = vld [vmem:[#allocation2 + $0x58] sm:$0xff]  ;;  %2508 = vst.msk [vmem:[#allocation2 + $0x60] sm:$0xff] %vm59_vm0, %v2444_v30  ;;  %v2445_v20 = vadd.f32 %v2229_v60, %v137_v25  ;;  %v141_v25 = vld [vmem:[#allocation2 + $0x88] sm:$0xff] }
 0x22b   :  { %v2708_v49 = vmax.f32 %v2644_v61, 0.0  ;;  %v2645_v39 = vadd.f32 %v4142_v10, %v2574_v12  ;;  %v2572_v26 = vld [vmem:[#allocation2 + $0x48] sm:$0xff]  ;;  %2511 = vst.msk [vmem:[#allocation2 + $0x78] sm:$0xff] %vm59_vm0, %v2447_v52 }
 0x22c   :  { %v2706_v36 = vmax.f32 %v2642_v14, 0.0  ;;  %v2643_v5 = vadd.f32 %v4142_v10, %v2572_v26  ;;  %2509 = vst.msk [vmem:[#allocation2 + $0x68] sm:$0xff] %vm59_vm0, %v2445_v20  ;;  %v2048_v16 = vpop.f32.mrb[80].mxu0  ;;  %v3135_v37 = vpop.f32.mrb[112].mxu1  ;;  %v146_v26 = vld [vmem:[#allocation2 + $0xb0] sm:$0xff] }
 0x22d   :  { %2772 = vst.msk [vmem:[#allocation9 + $0x50] sm:$0xff] %vm59_vm0, %v2708_v49  ;;  %v2709_v21 = vmax.f32 %v2645_v39, 0.0  ;;  %v4204_v7 = vadd.f32 %v2048_v16, %v4011_v24  ;;  %v2250_v38 = vadd.f32 %v3135_v37, %v4057_v0  ;;  %v2050_v2 = vpop.f32.mrb[81].mxu0  ;;  %v2241_v29 = vpop.f32.mrb[113].mxu1 }
 0x22e   :  { %2770 = vst.msk [vmem:[#allocation9 + $0x40] sm:$0xff] %vm59_vm0, %v2706_v36  ;;  %v2707_v53 = vmax.f32 %v2643_v5, 0.0  ;;  %v2242_v44 = vadd.f32 %v2241_v29, %v4047_v40  ;;  %v2051_v63 = vpop.f32.mrb[82].mxu0  ;;  %v3136_v45 = vpop.f32.mrb[114].mxu1 }
 0x22f   :  { %2773 = vst.msk [vmem:[#allocation9 + $0x58] sm:$0xff] %vm59_vm0, %v2709_v21  ;;  %v2450_v6 = vadd.f32 %v2250_v38, %v142_v48  ;;  %v4211_v13 = vadd.f32 %v2051_v63, %v4015_v34  ;;  %v2253_v24 = vadd.f32 %v3136_v45, %v4062_v33  ;;  %v2053_v0 = vpop.f32.mrb[83].mxu0  ;;  %v2244_v32 = vpop.f32.mrb[115].mxu1  ;;  %v144_v21 = vld [vmem:[#allocation2 + $0xa0] sm:$0xff]  ;;  %v145_v45 = vld [vmem:[#allocation2 + $0xa8] sm:$0xff] }
 0x230   :  { %2771 = vst.msk [vmem:[#allocation9 + $0x48] sm:$0xff] %vm59_vm0, %v2707_v53  ;;  %v2577_v56 = vld [vmem:[#allocation2 + $0x70] sm:$0xff]  ;;  %v2448_v30 = vadd.f32 %v2242_v44, %v140_v22  ;;  %v2245_v40 = vadd.f32 %v2244_v32, %v4052_v57  ;;  %v147_v53 = vld [vmem:[#allocation2 + $0xb8] sm:$0xff] }
 0x231   :  { %v2648_v60 = vadd.f32 %v4142_v10, %v2577_v56  ;;  %v2575_v61 = vld [vmem:[#allocation2 + $0x60] sm:$0xff]  ;;  %2514 = vst.msk [vmem:[#allocation2 + $0x90] sm:$0xff] %vm59_vm0, %v2450_v6  ;;  %v2451_v62 = vadd.f32 %v2253_v24, %v143_v4 }
 0x232   :  { %v2646_v34 = vadd.f32 %v4142_v10, %v2575_v61  ;;  %v2578_v52 = vld [vmem:[#allocation2 + $0x78] sm:$0xff]  ;;  %2512 = vst.msk [vmem:[#allocation2 + $0x80] sm:$0xff] %vm59_vm0, %v2448_v30  ;;  %v2449_v33 = vadd.f32 %v2245_v40, %v141_v25 }
 0x233   :  { %v2712_v14 = vmax.f32 %v2648_v60, 0.0  ;;  %v2649_v12 = vadd.f32 %v4142_v10, %v2578_v52  ;;  %v2576_v20 = vld [vmem:[#allocation2 + $0x68] sm:$0xff]  ;;  %2515 = vst.msk [vmem:[#allocation2 + $0x98] sm:$0xff] %vm59_vm0, %v2451_v62  ;;  %v150_v52 = vld [vmem:[#allocation2 + $0xd0] sm:$0xff] }
 0x234   :  { %v2710_v49 = vmax.f32 %v2646_v34, 0.0  ;;  %v2647_v57 = vadd.f32 %v4142_v10, %v2576_v20  ;;  %2513 = vst.msk [vmem:[#allocation2 + $0x88] sm:$0xff] %vm59_vm0, %v2449_v33  ;;  %v2056_v39 = vpop.f32.mrb[84].mxu0  ;;  %v3139_v36 = vpop.f32.mrb[116].mxu1 }
 0x235   :  { %2776 = vst.msk [vmem:[#allocation9 + $0x70] sm:$0xff] %vm59_vm0, %v2712_v14  ;;  %v2713_v5 = vmax.f32 %v2649_v12, 0.0  ;;  %v4226_v16 = vadd.f32 %v2056_v39, %v4020_v42  ;;  %v2266_v48 = vadd.f32 %v3139_v36, %v4077_v41  ;;  %v2058_v37 = vpop.f32.mrb[85].mxu0  ;;  %v2257_v38 = vpop.f32.mrb[117].mxu1 }
 0x236   :  { %2774 = vst.msk [vmem:[#allocation9 + $0x60] sm:$0xff] %vm59_vm0, %v2710_v49  ;;  %v2711_v2 = vmax.f32 %v2647_v57, 0.0  ;;  %v2258_v22 = vadd.f32 %v2257_v38, %v4067_v1  ;;  %v2059_v29 = vpop.f32.mrb[86].mxu0  ;;  %v3140_v44 = vpop.f32.mrb[118].mxu1  ;;  %v148_v57 = vld [vmem:[#allocation2 + $0xc0] sm:$0xff] }
 0x237   :  { %2777 = vst.msk [vmem:[#allocation9 + $0x78] sm:$0xff] %vm59_vm0, %v2713_v5  ;;  %v2454_v63 = vadd.f32 %v2266_v48, %v146_v26  ;;  %v4233_v4 = vadd.f32 %v2059_v29, %v4024_v50  ;;  %v2269_v42 = vadd.f32 %v3140_v44, %v4082_v9  ;;  %v2061_v41 = vpop.f32.mrb[87].mxu0  ;;  %v2260_v6 = vpop.f32.mrb[119].mxu1  ;;  %v151_v48 = vld [vmem:[#allocation2 + $0xd8] sm:$0xff] }
 0x238   :  { %2775 = vst.msk [vmem:[#allocation9 + $0x68] sm:$0xff] %vm59_vm0, %v2711_v2  ;;  %v2581_v24 = vld [vmem:[#allocation2 + $0x90] sm:$0xff]  ;;  %v2452_v0 = vadd.f32 %v2258_v22, %v144_v21  ;;  %v2261_v1 = vadd.f32 %v2260_v6, %v4072_v17  ;;  %v149_v2 = vld [vmem:[#allocation2 + $0xc8] sm:$0xff] }
 0x239   :  { %v2652_v25 = vadd.f32 %v4142_v10, %v2581_v24  ;;  %v2579_v32 = vld [vmem:[#allocation2 + $0x80] sm:$0xff]  ;;  %2518 = vst.msk [vmem:[#allocation2 + $0xb0] sm:$0xff] %vm59_vm0, %v2454_v63  ;;  %v2455_v56 = vadd.f32 %v2269_v42, %v147_v53 }
 0x23a   :  { %v2650_v50 = vadd.f32 %v4142_v10, %v2579_v32  ;;  %v2582_v30 = vld [vmem:[#allocation2 + $0x98] sm:$0xff]  ;;  %2516 = vst.msk [vmem:[#allocation2 + $0xa0] sm:$0xff] %vm59_vm0, %v2452_v0  ;;  %v2453_v9 = vadd.f32 %v2261_v1, %v145_v45 }
 0x23b   :  { %v2716_v40 = vmax.f32 %v2652_v25, 0.0  ;;  %v2653_v60 = vadd.f32 %v4142_v10, %v2582_v30  ;;  %v2580_v61 = vld [vmem:[#allocation2 + $0x88] sm:$0xff]  ;;  %2519 = vst.msk [vmem:[#allocation2 + $0xb8] sm:$0xff] %vm59_vm0, %v2455_v56  ;;  %v154_v25 = vld [vmem:[#allocation2 + $0xf0] sm:$0xff] }
 0x23c   :  { %v2714_v62 = vmax.f32 %v2650_v50, 0.0  ;;  %v2651_v17 = vadd.f32 %v4142_v10, %v2580_v61  ;;  %2517 = vst.msk [vmem:[#allocation2 + $0xa8] sm:$0xff] %vm59_vm0, %v2453_v9  ;;  %v2064_v34 = vpop.f32.mrb[88].mxu0  ;;  %v3143_v33 = vpop.f32.mrb[120].mxu1 }
 0x23d   :  { %2780 = vst.msk [vmem:[#allocation9 + $0x90] sm:$0xff] %vm59_vm0, %v2716_v40  ;;  %v2717_v14 = vmax.f32 %v2653_v60, 0.0  ;;  %v4248_v12 = vadd.f32 %v2064_v34, %v4028_v58  ;;  %v2282_v20 = vadd.f32 %v3143_v33, %v4097_v27  ;;  %v2066_v49 = vpop.f32.mrb[89].mxu0  ;;  %v2273_v39 = vpop.f32.mrb[121].mxu1  ;;  %v152_v40 = vld [vmem:[#allocation2 + $0xe0] sm:$0xff]  ;;  %v155_v34 = vld [vmem:[#allocation2 + $0xf8] sm:$0xff] }
 0x23e   :  { %2778 = vst.msk [vmem:[#allocation9 + $0x80] sm:$0xff] %vm59_vm0, %v2714_v62  ;;  %v2715_v26 = vmax.f32 %v2651_v17, 0.0  ;;  %v2274_v36 = vadd.f32 %v2273_v39, %v4087_v19  ;;  %v2067_v5 = vpop.f32.mrb[90].mxu0  ;;  %v3144_v37 = vpop.f32.mrb[122].mxu1 }
 0x23f   :  { %2781 = vst.msk [vmem:[#allocation9 + $0x98] sm:$0xff] %vm59_vm0, %v2717_v14  ;;  %v2458_v21 = vadd.f32 %v2282_v20, %v150_v52  ;;  %v4255_v38 = vadd.f32 %v2067_v5, %v4032_v3  ;;  %v2285_v58 = vadd.f32 %v3144_v37, %v4102_v31  ;;  %v2069_v27 = vpop.f32.mrb[91].mxu0  ;;  %v2276_v22 = vpop.f32.mrb[123].mxu1  ;;  %v153_v20 = vld [vmem:[#allocation2 + $0xe8] sm:$0xff] }
 0x240   :  { %2779 = vst.msk [vmem:[#allocation9 + $0x88] sm:$0xff] %vm59_vm0, %v2715_v26  ;;  %v2585_v29 = vld [vmem:[#allocation2 + $0xb0] sm:$0xff]  ;;  %v2456_v53 = vadd.f32 %v2274_v36, %v148_v57  ;;  %v2277_v19 = vadd.f32 %v2276_v22, %v4092_v23 }
 0x241   :  { %v2656_v44 = vadd.f32 %v4142_v10, %v2585_v29  ;;  %v2583_v63 = vld [vmem:[#allocation2 + $0xa0] sm:$0xff]  ;;  %2522 = vst.msk [vmem:[#allocation2 + $0xd0] sm:$0xff] %vm59_vm0, %v2458_v21  ;;  %v2459_v42 = vadd.f32 %v2285_v58, %v151_v48  ;;  %v4495_v26 = vld [vmem:[#allocation27_spill] sm:$0xff] }
 0x242   :  { %v2654_v3 = vadd.f32 %v4142_v10, %v2583_v63  ;;  %v2586_v41 = vld [vmem:[#allocation2 + $0xb8] sm:$0xff]  ;;  %2520 = vst.msk [vmem:[#allocation2 + $0xc0] sm:$0xff] %vm59_vm0, %v2456_v53  ;;  %v2457_v31 = vadd.f32 %v2277_v19, %v149_v2  ;;  %v158_v53 = vld [vmem:[#allocation2 + $0x110] sm:$0xff]  ;;  %v4496_v63 = vld [vmem:[#allocation13_spill] sm:$0xff] }
 0x243   :  { %v2720_v45 = vmax.f32 %v2656_v44, 0.0  ;;  %v2657_v6 = vadd.f32 %v4142_v10, %v2586_v41  ;;  %v2584_v24 = vld [vmem:[#allocation2 + $0xa8] sm:$0xff]  ;;  %2523 = vst.msk [vmem:[#allocation2 + $0xd8] sm:$0xff] %vm59_vm0, %v2459_v42 }
 0x244   :  { %v2718_v0 = vmax.f32 %v2654_v3, 0.0  ;;  %v2655_v23 = vadd.f32 %v4142_v10, %v2584_v24  ;;  %2521 = vst.msk [vmem:[#allocation2 + $0xc8] sm:$0xff] %vm59_vm0, %v2457_v31  ;;  %v2072_v1 = vpop.f32.mrb[92].mxu0  ;;  %v3147_v32 = vpop.f32.mrb[124].mxu1  ;;  %v156_v31 = vld [vmem:[#allocation2 + $0x100] sm:$0xff] }
 0x245   :  { %2784 = vst.msk [vmem:[#allocation9 + $0xb0] sm:$0xff] %vm59_vm0, %v2720_v45  ;;  %v2721_v56 = vmax.f32 %v2657_v6, 0.0  ;;  %v4270_v50 = vadd.f32 %v2072_v1, %v4036_v11  ;;  %v2298_v30 = vadd.f32 %v3147_v32, %v4117_v43  ;;  %v2074_v9 = vpop.f32.mrb[93].mxu0  ;;  %v2289_v60 = vpop.f32.mrb[125].mxu1  ;;  %v4497_v32 = vld [vmem:[#allocation14_spill] sm:$0xff] }
 0x246   :  { %2782 = vst.msk [vmem:[#allocation9 + $0xa0] sm:$0xff] %vm59_vm0, %v2718_v0  ;;  %v2719_v61 = vmax.f32 %v2655_v23, 0.0  ;;  %v2290_v62 = vadd.f32 %v2289_v60, %v4107_v35  ;;  %v2075_v17 = vpop.f32.mrb[94].mxu0  ;;  %v3148_v52 = vpop.f32.mrb[126].mxu1  ;;  %v159_v23 = vld [vmem:[#allocation2 + $0x118] sm:$0xff]  ;;  %v157_v9 = vld [vmem:[#allocation2 + $0x108] sm:$0xff] }
 0x247   :  { %2785 = vst.msk [vmem:[#allocation9 + $0xb8] sm:$0xff] %vm59_vm0, %v2721_v56  ;;  %v2462_v33 = vadd.f32 %v2298_v30, %v154_v25  ;;  %v4277_v14 = vadd.f32 %v2075_v17, %v4040_v18  ;;  %v2301_v11 = vadd.f32 %v3148_v52, %v4122_v47  ;;  %v2077_v43 = vpop.f32.mrb[95].mxu0  ;;  %v2292_v49 = vpop.f32.mrb[127].mxu1 }
 0x248   :  { %2783 = vst.msk [vmem:[#allocation9 + $0xa8] sm:$0xff] %vm59_vm0, %v2719_v61  ;;  %v2589_v57 = vld [vmem:[#allocation2 + $0xd0] sm:$0xff]  ;;  %v2460_v39 = vadd.f32 %v2290_v62, %v152_v40  ;;  %v2293_v35 = vadd.f32 %v2292_v49, %v4495_v26 }
 0x249   :  { %v2660_v36 = vadd.f32 %v4142_v10, %v2589_v57  ;;  %v2587_v5 = vld [vmem:[#allocation2 + $0xc0] sm:$0xff]  ;;  %2526 = vst.msk [vmem:[#allocation2 + $0xf0] sm:$0xff] %vm59_vm0, %v2462_v33  ;;  %v2463_v48 = vadd.f32 %v2301_v11, %v155_v34 }
 0x24a   :  { %v2658_v18 = vadd.f32 %v4142_v10, %v2587_v5  ;;  %v2590_v37 = vld [vmem:[#allocation2 + $0xd8] sm:$0xff]  ;;  %2524 = vst.msk [vmem:[#allocation2 + $0xe0] sm:$0xff] %vm59_vm0, %v2460_v39  ;;  %v2461_v47 = vadd.f32 %v2293_v35, %v153_v20  ;;  %v162_v39 = vld [vmem:[#allocation2 + $0x130] sm:$0xff] }
 0x24b   :  { %v2724_v21 = vmax.f32 %v2660_v36, 0.0  ;;  %v2661_v58 = vadd.f32 %v4142_v10, %v2590_v37  ;;  %v2588_v27 = vld [vmem:[#allocation2 + $0xc8] sm:$0xff]  ;;  %2527 = vst.msk [vmem:[#allocation2 + $0xf8] sm:$0xff] %vm59_vm0, %v2463_v48  ;;  %v4498_v36 = vld [vmem:[#allocation15_spill] sm:$0xff]  ;;  %v160_v37 = vld [vmem:[#allocation2 + $0x120] sm:$0xff] }
 0x24c   :  { %v2722_v2 = vmax.f32 %v2658_v18, 0.0  ;;  %v2659_v22 = vadd.f32 %v4142_v10, %v2588_v27  ;;  %2525 = vst.msk [vmem:[#allocation2 + $0xe8] sm:$0xff] %vm59_vm0, %v2461_v47  ;;  %v2080_v29 = vpop.f32.mrb[96].mxu0  ;;  %v3151_v19 = vpop.f32.mrb[128].mxu1 }
 0x24d   :  { %2788 = vst.msk [vmem:[#allocation9 + $0xd0] sm:$0xff] %vm59_vm0, %v2724_v21  ;;  %v2725_v44 = vmax.f32 %v2661_v58, 0.0  ;;  %v4292_v42 = vadd.f32 %v2080_v29, %v4496_v63  ;;  %v2314_v3 = vadd.f32 %v3151_v19, %v4139_v46  ;;  %v2082_v41 = vpop.f32.mrb[97].mxu0  ;;  %v2305_v45 = vpop.f32.mrb[129].mxu1  ;;  %v161_v63 = vld [vmem:[#allocation2 + $0x128] sm:$0xff] }
 0x24e   :  { %2786 = vst.msk [vmem:[#allocation9 + $0xc0] sm:$0xff] %vm59_vm0, %v2722_v2  ;;  %v2723_v6 = vmax.f32 %v2659_v22, 0.0  ;;  %v2306_v24 = vadd.f32 %v2305_v45, %v4125_v51  ;;  %v2083_v0 = vpop.f32.mrb[98].mxu0  ;;  %v3152_v1 = vpop.f32.mrb[130].mxu1  ;;  %v163_v2 = vld [vmem:[#allocation2 + $0x138] sm:$0xff] }
 0x24f   :  { %2789 = vst.msk [vmem:[#allocation9 + $0xd8] sm:$0xff] %vm59_vm0, %v2725_v44  ;;  %v2466_v25 = vadd.f32 %v2314_v3, %v158_v53  ;;  %v4299_v56 = vadd.f32 %v2083_v0, %v4497_v32  ;;  %v2317_v30 = vadd.f32 %v3152_v1, %v4146_v59  ;;  %v2085_v46 = vpop.f32.mrb[99].mxu0  ;;  %v2308_v40 = vpop.f32.mrb[131].mxu1  ;;  %v4499_v53 = vld [vmem:[#allocation16_spill] sm:$0xff] }
 0x250   :  { %2787 = vst.msk [vmem:[#allocation9 + $0xc8] sm:$0xff] %vm59_vm0, %v2723_v6  ;;  %v2593_v60 = vld [vmem:[#allocation2 + $0xf0] sm:$0xff]  ;;  %v2464_v61 = vadd.f32 %v2306_v24, %v156_v31  ;;  %v2309_v51 = vadd.f32 %v2308_v40, %v4130_v28 }
 0x251   :  { %v2664_v62 = vadd.f32 %v4142_v10, %v2593_v60  ;;  %v2591_v17 = vld [vmem:[#allocation2 + $0xe0] sm:$0xff]  ;;  %2530 = vst.msk [vmem:[#allocation2 + $0x110] sm:$0xff] %vm59_vm0, %v2466_v25  ;;  %v2467_v34 = vadd.f32 %v2317_v30, %v159_v23 }
 0x252   :  { %v2662_v52 = vadd.f32 %v4142_v10, %v2591_v17  ;;  %v2594_v33 = vld [vmem:[#allocation2 + $0xf8] sm:$0xff]  ;;  %2528 = vst.msk [vmem:[#allocation2 + $0x100] sm:$0xff] %vm59_vm0, %v2464_v61  ;;  %v2465_v59 = vadd.f32 %v2309_v51, %v157_v9  ;;  %v166_v9 = vld [vmem:[#allocation2 + $0x150] sm:$0xff]  ;;  %v4500_v61 = vld [vmem:[#allocation17_spill] sm:$0xff] }
 0x253   :  { %v2728_v11 = vmax.f32 %v2664_v62, 0.0  ;;  %v2665_v43 = vadd.f32 %v4142_v10, %v2594_v33  ;;  %v2592_v20 = vld [vmem:[#allocation2 + $0xe8] sm:$0xff]  ;;  %2531 = vst.msk [vmem:[#allocation2 + $0x118] sm:$0xff] %vm59_vm0, %v2467_v34  ;;  %v164_v34 = vld [vmem:[#allocation2 + $0x140] sm:$0xff] }
 0x254   :  { %v2726_v49 = vmax.f32 %v2662_v52, 0.0  ;;  %v2663_v28 = vadd.f32 %v4142_v10, %v2592_v20  ;;  %2529 = vst.msk [vmem:[#allocation2 + $0x108] sm:$0xff] %vm59_vm0, %v2465_v59  ;;  %v2088_v57 = vpop.f32.mrb[100].mxu0  ;;  %v3155_v26 = vpop.f32.mrb[132].mxu1 }
 0x255   :  { %2792 = vst.msk [vmem:[#allocation9 + $0xf0] sm:$0xff] %vm59_vm0, %v2728_v11  ;;  %v2729_v35 = vmax.f32 %v2665_v43, 0.0  ;;  %v4314_v5 = vadd.f32 %v2088_v57, %v4498_v36  ;;  %v2330_v48 = vadd.f32 %v3155_v26, %v4182_v8  ;;  %v2090_v18 = vpop.f32.mrb[101].mxu0  ;;  %v2321_v47 = vpop.f32.mrb[133].mxu1  ;;  %v167_v43 = vld [vmem:[#allocation2 + $0x158] sm:$0xff]  ;;  %v165_v26 = vld [vmem:[#allocation2 + $0x148] sm:$0xff] }
 0x256   :  { %2790 = vst.msk [vmem:[#allocation9 + $0xe0] sm:$0xff] %vm59_vm0, %v2726_v49  ;;  %v2727_v21 = vmax.f32 %v2663_v28, 0.0  ;;  %v2322_v58 = vadd.f32 %v2321_v47, %v4160_v55  ;;  %v2091_v27 = vpop.f32.mrb[102].mxu0  ;;  %v3156_v22 = vpop.f32.mrb[134].mxu1  ;;  %v4501_v28 = vld [vmem:[#allocation18_spill] sm:$0xff] }
 0x257   :  { %2793 = vst.msk [vmem:[#allocation9 + $0xf8] sm:$0xff] %vm59_vm0, %v2729_v35  ;;  %v2470_v29 = vadd.f32 %v2330_v48, %v162_v39  ;;  %v4321_v19 = vadd.f32 %v2091_v27, %v4499_v53  ;;  %v2333_v44 = vadd.f32 %v3156_v22, %v4189_v15  ;;  %v2093_v8 = vpop.f32.mrb[103].mxu0  ;;  %v2324_v3 = vpop.f32.mrb[135].mxu1 }
 0x258   :  { %2791 = vst.msk [vmem:[#allocation9 + $0xe8] sm:$0xff] %vm59_vm0, %v2727_v21  ;;  %v2597_v41 = vld [vmem:[#allocation2 + $0x110] sm:$0xff]  ;;  %v2468_v31 = vadd.f32 %v2322_v58, %v160_v37  ;;  %v2325_v55 = vadd.f32 %v2324_v3, %v4167_v54 }
 0x259   :  { %v2668_v45 = vadd.f32 %v4142_v10, %v2597_v41  ;;  %v2595_v6 = vld [vmem:[#allocation2 + $0x100] sm:$0xff]  ;;  %2534 = vst.msk [vmem:[#allocation2 + $0x130] sm:$0xff] %vm59_vm0, %v2470_v29  ;;  %v2471_v24 = vadd.f32 %v2333_v44, %v163_v2  ;;  %v170_v44 = vld [vmem:[#allocation2 + $0x170] sm:$0xff] }
 0x25a   :  { %v2666_v0 = vadd.f32 %v4142_v10, %v2595_v6  ;;  %v2598_v23 = vld [vmem:[#allocation2 + $0x118] sm:$0xff]  ;;  %2532 = vst.msk [vmem:[#allocation2 + $0x120] sm:$0xff] %vm59_vm0, %v2468_v31  ;;  %v2469_v15 = vadd.f32 %v2325_v55, %v161_v63 }
 0x25b   :  { %v2732_v1 = vmax.f32 %v2668_v45, 0.0  ;;  %v2669_v25 = vadd.f32 %v4142_v10, %v2598_v23  ;;  %v2596_v32 = vld [vmem:[#allocation2 + $0x108] sm:$0xff]  ;;  %2535 = vst.msk [vmem:[#allocation2 + $0x138] sm:$0xff] %vm59_vm0, %v2471_v24  ;;  %v4502_v3 = vld [vmem:[#allocation19_spill] sm:$0xff]  ;;  %v168_v45 = vld [vmem:[#allocation2 + $0x160] sm:$0xff] }
 0x25c   :  { %v2730_v30 = vmax.f32 %v2666_v0, 0.0  ;;  %v2667_v54 = vadd.f32 %v4142_v10, %v2596_v32  ;;  %2533 = vst.msk [vmem:[#allocation2 + $0x128] sm:$0xff] %vm59_vm0, %v2469_v15  ;;  %v2096_v46 = vpop.f32.mrb[104].mxu0  ;;  %v3159_v40 = vpop.f32.mrb[136].mxu1  ;;  %v171_v15 = vld [vmem:[#allocation2 + $0x178] sm:$0xff] }
 0x25d   :  { %2796 = vst.msk [vmem:[#allocation9 + $0x110] sm:$0xff] %vm59_vm0, %v2732_v1  ;;  %v2733_v60 = vmax.f32 %v2669_v25, 0.0  ;;  %v4336_v51 = vadd.f32 %v2096_v46, %v4500_v61  ;;  %v2346_v62 = vadd.f32 %v3159_v40, %v4226_v16  ;;  %v2098_v17 = vpop.f32.mrb[105].mxu0  ;;  %v2337_v52 = vpop.f32.mrb[137].mxu1  ;;  %v4503_v32 = vld [vmem:[#allocation20_spill] sm:$0xff]  ;;  %v169_v46 = vld [vmem:[#allocation2 + $0x168] sm:$0xff] }
 0x25e   :  { %2794 = vst.msk [vmem:[#allocation9 + $0x100] sm:$0xff] %vm59_vm0, %v2730_v30  ;;  %v2731_v33 = vmax.f32 %v2667_v54, 0.0  ;;  %v2338_v59 = vadd.f32 %v2337_v52, %v4204_v7  ;;  %v2099_v11 = vpop.f32.mrb[106].mxu0  ;;  %v3160_v20 = vpop.f32.mrb[138].mxu1 }
 0x25f   :  { %2797 = vst.msk [vmem:[#allocation9 + $0x118] sm:$0xff] %vm59_vm0, %v2733_v60  ;;  %v2474_v49 = vadd.f32 %v2346_v62, %v166_v9  ;;  %v4343_v57 = vadd.f32 %v2099_v11, %v4501_v28  ;;  %v2349_v39 = vadd.f32 %v3160_v20, %v4233_v4  ;;  %v2101_v16 = vpop.f32.mrb[107].mxu0  ;;  %v2340_v35 = vpop.f32.mrb[139].mxu1 }
 0x260   :  { %2795 = vst.msk [vmem:[#allocation9 + $0x108] sm:$0xff] %vm59_vm0, %v2731_v33  ;;  %v2601_v36 = vld [vmem:[#allocation2 + $0x130] sm:$0xff]  ;;  %v2472_v48 = vadd.f32 %v2338_v59, %v164_v34  ;;  %v2341_v7 = vadd.f32 %v2340_v35, %v4211_v13  ;;  %v4504_v16 = vld [vmem:[#allocation21_spill] sm:$0xff] }
 0x261   :  { %v2672_v18 = vadd.f32 %v4142_v10, %v2601_v36  ;;  %v2599_v37 = vld [vmem:[#allocation2 + $0x120] sm:$0xff]  ;;  %2538 = vst.msk [vmem:[#allocation2 + $0x150] sm:$0xff] %vm59_vm0, %v2474_v49  ;;  %v2475_v47 = vadd.f32 %v2349_v39, %v167_v43  ;;  %v174_v49 = vld [vmem:[#allocation2 + $0x190] sm:$0xff] }
 0x262   :  { %v2670_v21 = vadd.f32 %v4142_v10, %v2599_v37  ;;  %v2602_v58 = vld [vmem:[#allocation2 + $0x138] sm:$0xff]  ;;  %2536 = vst.msk [vmem:[#allocation2 + $0x140] sm:$0xff] %vm59_vm0, %v2472_v48  ;;  %v2473_v4 = vadd.f32 %v2341_v7, %v165_v26  ;;  %v172_v48 = vld [vmem:[#allocation2 + $0x180] sm:$0xff] }
 0x263   :  { %v2736_v27 = vmax.f32 %v2672_v18, 0.0  ;;  %v2673_v2 = vadd.f32 %v4142_v10, %v2602_v58  ;;  %v2600_v22 = vld [vmem:[#allocation2 + $0x128] sm:$0xff]  ;;  %2539 = vst.msk [vmem:[#allocation2 + $0x158] sm:$0xff] %vm59_vm0, %v2475_v47 }
 0x264   :  { %v2734_v29 = vmax.f32 %v2670_v21, 0.0  ;;  %v2671_v13 = vadd.f32 %v4142_v10, %v2600_v22  ;;  %2537 = vst.msk [vmem:[#allocation2 + $0x148] sm:$0xff] %vm59_vm0, %v2473_v4  ;;  %v2104_v53 = vpop.f32.mrb[108].mxu0  ;;  %v3163_v8 = vpop.f32.mrb[140].mxu1  ;;  %v175_v21 = vld [vmem:[#allocation2 + $0x198] sm:$0xff] }
 0x265   :  { %2800 = vst.msk [vmem:[#allocation9 + $0x130] sm:$0xff] %vm59_vm0, %v2736_v27  ;;  %v2737_v63 = vmax.f32 %v2673_v2, 0.0  ;;  %v4358_v41 = vadd.f32 %v2104_v53, %v4502_v3  ;;  %v2362_v31 = vadd.f32 %v3163_v8, %v4270_v50  ;;  %v2106_v55 = vpop.f32.mrb[109].mxu0  ;;  %v2353_v6 = vpop.f32.mrb[141].mxu1  ;;  %v4505_v27 = vld [vmem:[#allocation22_spill] sm:$0xff] }
 0x266   :  { %2798 = vst.msk [vmem:[#allocation9 + $0x120] sm:$0xff] %vm59_vm0, %v2734_v29  ;;  %v2735_v24 = vmax.f32 %v2671_v13, 0.0  ;;  %v2354_v0 = vadd.f32 %v2353_v6, %v4248_v12  ;;  %v2107_v23 = vpop.f32.mrb[110].mxu0  ;;  %v3164_v1 = vpop.f32.mrb[142].mxu1  ;;  %v173_v29 = vld [vmem:[#allocation2 + $0x188] sm:$0xff] }
 0x267   :  { %2801 = vst.msk [vmem:[#allocation9 + $0x138] sm:$0xff] %vm59_vm0, %v2737_v63  ;;  %v2478_v25 = vadd.f32 %v2362_v31, %v170_v44  ;;  %v4365_v30 = vadd.f32 %v2107_v23, %v4503_v32  ;;  %v2365_v54 = vadd.f32 %v3164_v1, %v4277_v14  ;;  %v2109_v50 = vpop.f32.mrb[111].mxu0  ;;  %v2356_v9 = vpop.f32.mrb[143].mxu1  ;;  %v4506_v32 = vld [vmem:[#allocation23_spill] sm:$0xff] }
 0x268   :  { %2799 = vst.msk [vmem:[#allocation9 + $0x128] sm:$0xff] %vm59_vm0, %v2735_v24  ;;  %v2605_v40 = vld [vmem:[#allocation2 + $0x150] sm:$0xff]  ;;  %v2476_v60 = vadd.f32 %v2354_v0, %v168_v45  ;;  %v2357_v12 = vadd.f32 %v2356_v9, %v4255_v38  ;;  %v176_v9 = vld [vmem:[#allocation2 + $0x1a0] sm:$0xff] }
 0x269   :  { %v2676_v61 = vadd.f32 %v4142_v10, %v2605_v40  ;;  %v2603_v62 = vld [vmem:[#allocation2 + $0x140] sm:$0xff]  ;;  %2542 = vst.msk [vmem:[#allocation2 + $0x170] sm:$0xff] %vm59_vm0, %v2478_v25  ;;  %v2479_v17 = vadd.f32 %v2365_v54, %v171_v15  ;;  %v178_v15 = vld [vmem:[#allocation2 + $0x1b0] sm:$0xff] }
 0x26a   :  { %v2674_v34 = vadd.f32 %v4142_v10, %v2603_v62  ;;  %v2606_v52 = vld [vmem:[#allocation2 + $0x158] sm:$0xff]  ;;  %2540 = vst.msk [vmem:[#allocation2 + $0x160] sm:$0xff] %vm59_vm0, %v2476_v60  ;;  %v2477_v14 = vadd.f32 %v2357_v12, %v169_v46 }
 0x26b   :  { %v2740_v33 = vmax.f32 %v2676_v61, 0.0  ;;  %v2677_v59 = vadd.f32 %v4142_v10, %v2606_v52  ;;  %v2604_v11 = vld [vmem:[#allocation2 + $0x148] sm:$0xff]  ;;  %2543 = vst.msk [vmem:[#allocation2 + $0x178] sm:$0xff] %vm59_vm0, %v2479_v17  ;;  %v179_v61 = vld [vmem:[#allocation2 + $0x1b8] sm:$0xff] }
 0x26c   :  { %v2738_v43 = vmax.f32 %v2674_v34, 0.0  ;;  %v2675_v38 = vadd.f32 %v4142_v10, %v2604_v11  ;;  %2541 = vst.msk [vmem:[#allocation2 + $0x168] sm:$0xff] %vm59_vm0, %v2477_v14  ;;  %v2112_v20 = vpop.f32.mrb[112].mxu0  ;;  %v3167_v28 = vpop.f32.mrb[144].mxu1  ;;  %v4507_v34 = vld [vmem:[#allocation24_spill] sm:$0xff] }
 0x26d   :  { %2804 = vst.msk [vmem:[#allocation9 + $0x150] sm:$0xff] %vm59_vm0, %v2740_v33  ;;  %v2741_v39 = vmax.f32 %v2677_v59, 0.0  ;;  %v4380_v26 = vadd.f32 %v2112_v20, %v4504_v16  ;;  %v2378_v35 = vadd.f32 %v3167_v28, %v4314_v5  ;;  %v2114_v36 = vpop.f32.mrb[113].mxu0  ;;  %v2369_v7 = vpop.f32.mrb[145].mxu1 }
 0x26e   :  { %2802 = vst.msk [vmem:[#allocation9 + $0x140] sm:$0xff] %vm59_vm0, %v2738_v43  ;;  %v2739_v18 = vmax.f32 %v2675_v38, 0.0  ;;  %v2370_v37 = vadd.f32 %v2369_v7, %v4292_v42  ;;  %v2115_v47 = vpop.f32.mrb[114].mxu0  ;;  %v3168_v58 = vpop.f32.mrb[146].mxu1 }
 0x26f   :  { %2805 = vst.msk [vmem:[#allocation9 + $0x158] sm:$0xff] %vm59_vm0, %v2741_v39  ;;  %v2482_v4 = vadd.f32 %v2378_v35, %v174_v49  ;;  %v4387_v2 = vadd.f32 %v2115_v47, %v4505_v27  ;;  %v2381_v22 = vadd.f32 %v3168_v58, %v4321_v19  ;;  %v2117_v5 = vpop.f32.mrb[115].mxu0  ;;  %v2372_v13 = vpop.f32.mrb[147].mxu1  ;;  %v4508_v58 = vld [vmem:[#allocation25_spill] sm:$0xff] }
 0x270   :  { %2803 = vst.msk [vmem:[#allocation9 + $0x148] sm:$0xff] %vm59_vm0, %v2739_v18  ;;  %v2609_v53 = vld [vmem:[#allocation2 + $0x170] sm:$0xff]  ;;  %v2480_v44 = vadd.f32 %v2370_v37, %v172_v48  ;;  %v2373_v42 = vadd.f32 %v2372_v13, %v4299_v56  ;;  %v180_v5 = vld [vmem:[#allocation2 + $0x1c0] sm:$0xff] }
 0x271   :  { %v2680_v8 = vadd.f32 %v4142_v10, %v2609_v53  ;;  %v2607_v63 = vld [vmem:[#allocation2 + $0x160] sm:$0xff]  ;;  %2546 = vst.msk [vmem:[#allocation2 + $0x190] sm:$0xff] %vm59_vm0, %v2482_v4  ;;  %v2483_v3 = vadd.f32 %v2381_v22, %v175_v21  ;;  %v182_v37 = vld [vmem:[#allocation2 + $0x1d0] sm:$0xff] }
 0x272   :  { %v2678_v31 = vadd.f32 %v4142_v10, %v2607_v63  ;;  %v2610_v55 = vld [vmem:[#allocation2 + $0x178] sm:$0xff]  ;;  %2544 = vst.msk [vmem:[#allocation2 + $0x180] sm:$0xff] %vm59_vm0, %v2480_v44  ;;  %v2481_v19 = vadd.f32 %v2373_v42, %v173_v29 }
 0x273   :  { %v2744_v45 = vmax.f32 %v2680_v8, 0.0  ;;  %v2681_v6 = vadd.f32 %v4142_v10, %v2610_v55  ;;  %v2608_v24 = vld [vmem:[#allocation2 + $0x168] sm:$0xff]  ;;  %2547 = vst.msk [vmem:[#allocation2 + $0x198] sm:$0xff] %vm59_vm0, %v2483_v3  ;;  %v183_v42 = vld [vmem:[#allocation2 + $0x1d8] sm:$0xff] }
 0x274   :  { %v2742_v0 = vmax.f32 %v2678_v31, 0.0  ;;  %v2679_v56 = vadd.f32 %v4142_v10, %v2608_v24  ;;  %2545 = vst.msk [vmem:[#allocation2 + $0x188] sm:$0xff] %vm59_vm0, %v2481_v19  ;;  %v2120_v23 = vpop.f32.mrb[116].mxu0  ;;  %v3171_v1 = vpop.f32.mrb[148].mxu1  ;;  %v4509_v3 = vld [vmem:[#allocation26_spill] sm:$0xff] }
 0x275   :  { %2808 = vst.msk [vmem:[#allocation9 + $0x170] sm:$0xff] %vm59_vm0, %v2744_v45  ;;  %v2745_v25 = vmax.f32 %v2681_v6, 0.0  ;;  %v2121_v54 = vadd.f32 %v2120_v23, %v4506_v32  ;;  %v2394_v50 = vadd.f32 %v3171_v1, %v4358_v41  ;;  %v2122_v46 = vpop.f32.mrb[117].mxu0  ;;  %v2385_v40 = vpop.f32.mrb[149].mxu1  ;;  %v177_v41 = vld [vmem:[#allocation2 + $0x1a8] sm:$0xff] }
 0x276   :  { %2806 = vst.msk [vmem:[#allocation9 + $0x160] sm:$0xff] %vm59_vm0, %v2742_v0  ;;  %v2743_v60 = vmax.f32 %v2679_v56, 0.0  ;;  %v2386_v10 = vadd.f32 %v2385_v40, %v4336_v51  ;;  %v2123_v12 = vpop.f32.mrb[118].mxu0  ;;  %v3172_v62 = vpop.f32.mrb[150].mxu1  ;;  %v4410_v51 = vld [vmem:[#allocation8] ss:$0 sm:$0xff] }
 0x277   :  { %2809 = vst.msk [vmem:[#allocation9 + $0x178] sm:$0xff] %vm59_vm0, %v2745_v25  ;;  %v2486_v17 = vadd.f32 %v2394_v50, %v178_v15  ;;  %v2124_v52 = vadd.f32 %v2123_v12, %v4507_v34  ;;  %v2397_v14 = vadd.f32 %v3172_v62, %v4365_v30  ;;  %v2125_v33 = vpop.f32.mrb[119].mxu0  ;;  %v2388_v59 = vpop.f32.mrb[151].mxu1  ;;  %v181_v45 = vld [vmem:[#allocation2 + $0x1c8] sm:$0xff]  ;;  %v4510_v12 = vld [vmem:[#allocation28_spill] sm:$0xff] }
 0x278   :  { %2807 = vst.msk [vmem:[#allocation9 + $0x168] sm:$0xff] %vm59_vm0, %v2743_v60  ;;  %v2613_v11 = vld [vmem:[#allocation2 + $0x190] sm:$0xff]  ;;  %v2484_v43 = vadd.f32 %v2386_v10, %v176_v9  ;;  %v2389_v38 = vadd.f32 %v2388_v59, %v4343_v57 }
 0x279   :  { %v2684_v20 = vadd.f32 %v4410_v51, %v2613_v11  ;;  %v2611_v49 = vld [vmem:[#allocation2 + $0x180] sm:$0xff]  ;;  %2550 = vst.msk [vmem:[#allocation2 + $0x1b0] sm:$0xff] %vm59_vm0, %v2486_v17  ;;  %v2487_v28 = vadd.f32 %v2397_v14, %v179_v61  ;;  %v186_v14 = vld [vmem:[#allocation2 + $0x1f0] sm:$0xff] }
 0x27a   :  { %v2682_v39 = vadd.f32 %v4410_v51, %v2611_v49  ;;  %v2614_v30 = vld [vmem:[#allocation2 + $0x198] sm:$0xff]  ;;  %2548 = vst.msk [vmem:[#allocation2 + $0x1a0] sm:$0xff] %vm59_vm0, %v2484_v43  ;;  %v2485_v16 = vadd.f32 %v2389_v38, %v177_v41  ;;  %v184_v17 = vld [vmem:[#allocation2 + $0x1e0] sm:$0xff]  ;;  %v185_v49 = vld [vmem:[#allocation2 + $0x1e8] sm:$0xff] }
 0x27b   :  { %v2748_v35 = vmax.f32 %v2684_v20, 0.0  ;;  %v2685_v36 = vadd.f32 %v4410_v51, %v2614_v30  ;;  %v2612_v48 = vld [vmem:[#allocation2 + $0x188] sm:$0xff]  ;;  %2551 = vst.msk [vmem:[#allocation2 + $0x1b8] sm:$0xff] %vm59_vm0, %v2487_v28 }
 0x27c   :  { %v2746_v57 = vmax.f32 %v2682_v39, 0.0  ;;  %v2683_v7 = vadd.f32 %v4410_v51, %v2612_v48  ;;  %2549 = vst.msk [vmem:[#allocation2 + $0x1a8] sm:$0xff] %vm59_vm0, %v2485_v16  ;;  %v2128_v18 = vpop.f32.mrb[120].mxu0  ;;  %v3175_v47 = vpop.f32.mrb[152].mxu1  ;;  %v4511_v43 = vld [vmem:[#allocation29_spill] sm:$0xff]  ;;  %v187_v16 = vld [vmem:[#allocation2 + $0x1f8] sm:$0xff] }
 0x27d   :  { %2812 = vst.msk [vmem:[#allocation9 + $0x190] sm:$0xff] %vm59_vm0, %v2748_v35  ;;  %v2749_v21 = vmax.f32 %v2685_v36, 0.0  ;;  %v2129_v4 = vadd.f32 %v2128_v18, %v4508_v58  ;;  %v2410_v27 = vadd.f32 %v3175_v47, %v2121_v54  ;;  %v2130_v22 = vpop.f32.mrb[121].mxu0  ;;  %v2401_v29 = vpop.f32.mrb[153].mxu1 }
 0x27e   :  { %2810 = vst.msk [vmem:[#allocation9 + $0x180] sm:$0xff] %vm59_vm0, %v2746_v57  ;;  %v2747_v13 = vmax.f32 %v2683_v7, 0.0  ;;  %v2402_v53 = vadd.f32 %v2401_v29, %v4380_v26  ;;  %v2131_v44 = vpop.f32.mrb[122].mxu0  ;;  %v3176_v8 = vpop.f32.mrb[154].mxu1 }
 0x27f   :  { %2813 = vst.msk [vmem:[#allocation9 + $0x198] sm:$0xff] %vm59_vm0, %v2749_v21  ;;  %v2490_v63 = vadd.f32 %v2410_v27, %v182_v37  ;;  %v2132_v31 = vadd.f32 %v2131_v44, %v4509_v3  ;;  %v2413_v55 = vadd.f32 %v3176_v8, %v2124_v52  ;;  %v2133_v19 = vpop.f32.mrb[123].mxu0  ;;  %v2404_v6 = vpop.f32.mrb[155].mxu1 }
 0x280   :  { %2811 = vst.msk [vmem:[#allocation9 + $0x188] sm:$0xff] %vm59_vm0, %v2747_v13  ;;  %v2617_v24 = vld [vmem:[#allocation2 + $0x1b0] sm:$0xff]  ;;  %v2488_v0 = vadd.f32 %v2402_v53, %v180_v5  ;;  %v2405_v56 = vadd.f32 %v2404_v6, %v4387_v2 }
 0x281   :  { %v2688_v26 = vadd.f32 %v4410_v51, %v2617_v24  ;;  %v2615_v23 = vld [vmem:[#allocation2 + $0x1a0] sm:$0xff]  ;;  %2554 = vst.msk [vmem:[#allocation2 + $0x1d0] sm:$0xff] %vm59_vm0, %v2490_v63  ;;  %v2491_v15 = vadd.f32 %v2413_v55, %v183_v42 }
 0x282   :  { %v2686_v1 = vadd.f32 %v4410_v51, %v2615_v23  ;;  %v2618_v25 = vld [vmem:[#allocation2 + $0x1b8] sm:$0xff]  ;;  %2552 = vst.msk [vmem:[#allocation2 + $0x1c0] sm:$0xff] %vm59_vm0, %v2488_v0  ;;  %v2489_v32 = vadd.f32 %v2405_v56, %v181_v45 }
 0x283   :  { %v2752_v54 = vmax.f32 %v2688_v26, 0.0  ;;  %v2689_v50 = vadd.f32 %v4410_v51, %v2618_v25  ;;  %v2616_v46 = vld [vmem:[#allocation2 + $0x1a8] sm:$0xff]  ;;  %2555 = vst.msk [vmem:[#allocation2 + $0x1d8] sm:$0xff] %vm59_vm0, %v2491_v15 }
 0x284   :  { %v2750_v9 = vmax.f32 %v2686_v1, 0.0  ;;  %v2687_v2 = vadd.f32 %v4410_v51, %v2616_v46  ;;  %2553 = vst.msk [vmem:[#allocation2 + $0x1c8] sm:$0xff] %vm59_vm0, %v2489_v32  ;;  %v2136_v40 = vpop.f32.mrb[124].mxu0  ;;  %v3179_v60 = vpop.f32.mrb[156].mxu1 }
 0x285   :  { %2816 = vst.msk [vmem:[#allocation9 + $0x1b0] sm:$0xff] %vm59_vm0, %v2752_v54  ;;  %v2753_v10 = vmax.f32 %v2689_v50, 0.0  ;;  %v2137_v61 = vadd.f32 %v2136_v40, %v4510_v12  ;;  %v2138_v62 = vpop.f32.mrb[125].mxu0  ;;  %v2417_v34 = vpop.f32.mrb[157].mxu1 }
 0x286   :  { %2814 = vst.msk [vmem:[#allocation9 + $0x1a0] sm:$0xff] %vm59_vm0, %v2750_v9  ;;  %v2751_v52 = vmax.f32 %v2687_v2, 0.0  ;;  %v2418_v33 = vadd.f32 %v2417_v34, %v2129_v4  ;;  %v2139_v41 = vpop.f32.mrb[126].mxu0  ;;  %v3180_v59 = vpop.f32.mrb[158].mxu1 }
 0x287   :  { %2817 = vst.msk [vmem:[#allocation9 + $0x1b8] sm:$0xff] %vm59_vm0, %v2753_v10  ;;  %v2426_v11 = vadd.f32 %v3179_v60, %v2137_v61  ;;  %v2140_v38 = vadd.f32 %v2139_v41, %v4511_v43  ;;  %v2141_v20 = vpop.f32.mrb[127].mxu0  ;;  %v2420_v28 = vpop.f32.mrb[159].mxu1 }
 0x288   :  { %2815 = vst.msk [vmem:[#allocation9 + $0x1a8] sm:$0xff] %vm59_vm0, %v2751_v52  ;;  %v2621_v39 = vld [vmem:[#allocation2 + $0x1d0] sm:$0xff]  ;;  %v2492_v30 = vadd.f32 %v2418_v33, %v184_v17  ;;  %v2421_v35 = vadd.f32 %v2420_v28, %v2132_v31 }
 0x289   :  { %v2692_v36 = vadd.f32 %v4410_v51, %v2621_v39  ;;  %v2619_v48 = vld [vmem:[#allocation2 + $0x1c0] sm:$0xff]  ;;  %v2494_v57 = vadd.f32 %v2426_v11, %v186_v14  ;;  %v2429_v7 = vadd.f32 %v3180_v59, %v2140_v38 }
 0x28a   :  { %v2690_v18 = vadd.f32 %v4410_v51, %v2619_v48  ;;  %v2622_v37 = vld [vmem:[#allocation2 + $0x1d8] sm:$0xff]  ;;  %2556 = vst.msk [vmem:[#allocation2 + $0x1e0] sm:$0xff] %vm59_vm0, %v2492_v30  ;;  %v2493_v47 = vadd.f32 %v2421_v35, %v185_v49 }
 0x28b   :  { %v2756_v21 = vmax.f32 %v2692_v36, 0.0  ;;  %v2693_v58 = vadd.f32 %v4410_v51, %v2622_v37  ;;  %v2620_v4 = vld [vmem:[#allocation2 + $0x1c8] sm:$0xff]  ;;  %2558 = vst.msk [vmem:[#allocation2 + $0x1f0] sm:$0xff] %vm59_vm0, %v2494_v57  ;;  %v2495_v27 = vadd.f32 %v2429_v7, %v187_v16 }
 0x28c   :  { %v2754_v22 = vmax.f32 %v2690_v18, 0.0  ;;  %v2691_v5 = vadd.f32 %v4410_v51, %v2620_v4  ;;  %2557 = vst.msk [vmem:[#allocation2 + $0x1e8] sm:$0xff] %vm59_vm0, %v2493_v47 }
 0x28d   :  { %2820 = vst.msk [vmem:[#allocation9 + $0x1d0] sm:$0xff] %vm59_vm0, %v2756_v21  ;;  %v2757_v29 = vmax.f32 %v2693_v58, 0.0  ;;  %2559 = vst.msk [vmem:[#allocation2 + $0x1f8] sm:$0xff] %vm59_vm0, %v2495_v27 }
 0x28e   :  { %2818 = vst.msk [vmem:[#allocation9 + $0x1c0] sm:$0xff] %vm59_vm0, %v2754_v22  ;;  %v2755_v13 = vmax.f32 %v2691_v5, 0.0 }
 0x28f   :  { %2821 = vst.msk [vmem:[#allocation9 + $0x1d8] sm:$0xff] %vm59_vm0, %v2757_v29 }
 0x290   :  { %2819 = vst.msk [vmem:[#allocation9 + $0x1c8] sm:$0xff] %vm59_vm0, %v2755_v13 }
 0x291   :  { %v2623_v53 = vld [vmem:[#allocation2 + $0x1e0] sm:$0xff] }
 0x292   :  { %v2625_v44 = vld [vmem:[#allocation2 + $0x1f0] sm:$0xff]  ;;  %v2694_v42 = vadd.f32 %v4410_v51, %v2623_v53 }
 0x293   :  { %v2696_v8 = vadd.f32 %v4410_v51, %v2625_v44  ;;  %v2624_v63 = vld [vmem:[#allocation2 + $0x1e8] sm:$0xff] }
 0x294   :  { %v2758_v3 = vmax.f32 %v2694_v42, 0.0  ;;  %v2626_v31 = vld [vmem:[#allocation2 + $0x1f8] sm:$0xff]  ;;  %v2695_v55 = vadd.f32 %v4410_v51, %v2624_v63 }
 0x295   :  { %v2760_v19 = vmax.f32 %v2696_v8, 0.0  ;;  %v2697_v45 = vadd.f32 %v4410_v51, %v2626_v31 }
 0x296   :  { %2822 = vst.msk [vmem:[#allocation9 + $0x1e0] sm:$0xff] %vm59_vm0, %v2758_v3  ;;  %v2759_v6 = vmax.f32 %v2695_v55, 0.0 }
 0x297   :  { %2824 = vst.msk [vmem:[#allocation9 + $0x1f0] sm:$0xff] %vm59_vm0, %v2760_v19  ;;  %v2761_v24 = vmax.f32 %v2697_v45, 0.0 }
 0x298   :  { %2823 = vst.msk [vmem:[#allocation9 + $0x1e8] sm:$0xff] %vm59_vm0, %v2759_v6 }
 0x299   :  { %2825 = vst.msk [vmem:[#allocation9 + $0x1f8] sm:$0xff] %vm59_vm0, %v2761_v24 }
 0x29a   :  { %3643 = shalt.err (!%p3640_p0)
}
 0x29b   :  { %s3644_s28 = scalar_lea.hbm %s4477_s3, 8192 }
 0x29c   :  { %p3645_p1 = scmp.ne.s32.totalorder %s4477_s3, %s3644_s28  ;;  %p3648_p2 = scmp.lt.u32.totalorder %s3644_s28, %s4477_s3 }
 0x29e   :  { %p3650_p3 = pnand %p3648_p2, %p3645_p1 }
 0x2a0   :  { %3653 = shalt.err (!%p3650_p3)
}
 0x2a1   :  { %s3670_s6 = smov 128   ;;  %s3671_s7 = smov 8  }
 0x2a2   :  { %2837 = dma.vmem_to_hbm [thread:$0]  %s2832_s24, 8192, %s4477_s3, [#allocation5], %s3670_s6, %s3670_s6, %s3671_s7  }
 0x2a3   :  { %3658 = dma.done.wait [#allocation5], 8192  }
 0x2a4   :  { %3659 = vsyncadd [#allocation5], 4294959104 }
 0x2a5   :  { %2841 = vsyncpa [#allocation4], 1 }
 0x2a6   :  { %2842 = vsyncpa [#allocation7], 1 }
 0x2a7   :  { %2843 = vsyncpa [#allocation5], 1 }

// kernel: csrnet_forward.29
= control target key start
LH: loop header
LB: loop body
LE: loop exit
PB: predicated region body
PF: predicated region fallthrough
CT: control target
= control target key end

     0   :  { %8 = vsyncpa [#allocation4], 0  ;;  %s1657_s0 = inlined_call_operand.hbm [shape: bf16[128,576], index: 0, kind: input, shape index: {}]   ;;  %s1658_s1 = inlined_call_operand.hbm [shape: bf16[576,128], index: 1, kind: input, shape index: {}]   ;;  %s1659_s2 = inlined_call_operand.hbm [shape: f32[1,128], index: 2, kind: input, shape index: {}]   ;;  %s1660_s3 = inlined_call_operand.hbm [shape: f32[128,128], index: 3, kind: output, shape index: {}]  }
   0x1   :  { %9 = vsyncpa [#allocation7], 0 }
   0x2   :  { %10 = vsyncpa [#allocation5], 0  ;;  %s1520_s12 = smov [#allocation6]   ;;  %s1426_s16 = scalar_lea.hbm %s1658_s1, 4608 }
   0x3   :  { %s28_s13 = sshll.u32 %s1520_s12, 4  ;;  %p1427_p0 = scmp.ne.s32.totalorder %s1658_s1, %s1426_s16  ;;  %s29_s13 = int_to_ptr.vmem [resolvable:$true] %s28_s13 }
   0x4   :  { %p1430_p1 = scmp.lt.u32.totalorder %s1426_s16, %s1658_s1 }
   0x6   :  { %p1432_p2 = pnand %p1430_p1, %p1427_p0 }
   0x8   :  { %1435 = shalt.err (!%p1432_p2)
}
   0x9   :  { %s1436_s21 = scalar_lea.vmem %s29_s13, 4608  ;;  %p1441_p4 = scmp.lt.s32.totalorder %s29_s13, %s29_s13 }
   0xa   :  { %p1437_p3 = scmp.ne.s32.totalorder %s29_s13, %s1436_s21  ;;  %p1442_p5 = scmp.lt.s32.totalorder %s1436_s21, %s1436_s21 }
   0xc   :  { %p1443_p6 = por %p1442_p5, %p1441_p4 }
   0xe   :  { %p1444_p7 = pnand %p1443_p6, %p1437_p3 }
  0x10   :  { %1447 = shalt.err (!%p1444_p7)
}
  0x11   :  { %s1521_s22 = smov 64   ;;  %s1522_s23 = smov 4  }
  0x12   :  { %34 = dma.hbm_to_vmem [thread:$0]  %s1658_s1, 4608, %s29_s13, [#allocation7], %s1521_s22, %s1521_s22, %s1522_s23  }
  0x13   :  { %s1523_s26 = smov [#allocation3]   ;;  %s1448_s30 = scalar_lea.hbm %s1657_s0, 5120 }
  0x14   :  { %s16_s27 = sshll.u32 %s1523_s26, 4  ;;  %p1449_p8 = scmp.ne.s32.totalorder %s1657_s0, %s1448_s30  ;;  %s17_s27 = int_to_ptr.vmem [resolvable:$true] %s16_s27 }
  0x15   :  { %p1452_p9 = scmp.lt.u32.totalorder %s1448_s30, %s1657_s0 }
  0x17   :  { %p1454_p10 = pnand %p1452_p9, %p1449_p8 }
  0x19   :  { %1457 = shalt.err (!%p1454_p10)
}
  0x1a   :  { %s1458_s8 = scalar_lea.vmem %s17_s27, 5120  ;;  %p1463_p12 = scmp.lt.s32.totalorder %s17_s27, %s17_s27 }
  0x1b   :  { %p1459_p11 = scmp.ne.s32.totalorder %s17_s27, %s1458_s8  ;;  %p1464_p13 = scmp.lt.s32.totalorder %s1458_s8, %s1458_s8 }
  0x1d   :  { %p1465_p0 = por %p1464_p13, %p1463_p12 }
  0x1f   :  { %p1466_p1 = pnand %p1465_p0, %p1459_p11 }
  0x21   :  { %1469 = shalt.err (!%p1466_p1)
}
  0x22   :  { %s1524_s1 = smov 320   ;;  %s1525_s9 = smov 20  }
  0x23   :  { %22 = dma.hbm_to_vmem [thread:$0]  %s1657_s0, 5120, %s17_s27, [#allocation4], %s1524_s1, %s1524_s1, %s1525_s9  }
  0x24   :  { %s1526_s12 = smov [#allocation8]   ;;  %s1470_s16 = scalar_lea.hbm %s1659_s2, 16 }
  0x25   :  { %s41_s13 = sshll.u32 %s1526_s12, 4  ;;  %p1471_p2 = scmp.ne.s32.totalorder %s1659_s2, %s1470_s16  ;;  %s42_s13 = int_to_ptr.vmem [resolvable:$true] %s41_s13 }
  0x26   :  { %p1474_p3 = scmp.lt.u32.totalorder %s1470_s16, %s1659_s2 }
  0x28   :  { %p1476_p4 = pnand %p1474_p3, %p1471_p2 }
  0x2a   :  { %1479 = shalt.err (!%p1476_p4)
}
  0x2b   :  { %s1480_s21 = scalar_lea.vmem %s42_s13, 16  ;;  %s1484_s0 = scalar_lea.vmem %s42_s13, 32 }
  0x2c   :  { %p1481_p5 = scmp.ne.s32.totalorder %s42_s13, %s1480_s21  ;;  %p1485_p6 = scmp.lt.s32.totalorder %s42_s13, %s42_s13 }
  0x2d   :  { %p1486_p7 = scmp.lt.s32.totalorder %s1484_s0, %s1480_s21 }
  0x2f   :  { %p1487_p8 = por %p1486_p7, %p1485_p6 }
  0x31   :  { %p1488_p9 = pnand %p1487_p8, %p1481_p5 }
  0x33   :  { %1491 = shalt.err (!%p1488_p9)
}
  0x34   :  { %44 = dma.hbm_to_vmem [thread:$0]  %s1659_s2, 16, %s42_s13, [#allocation7]  }
  0x35   :  { %1514 = dma.done.wait [#allocation4], 5120  }
  0x36   :  { %1515 = vsyncadd [#allocation4], 4294962176 }
  0x37   :  { %1516 = dma.done.wait [#allocation7], 4624  }
  0x38   :  { %1517 = vsyncadd [#allocation7], 4294962672  ;;  %v1334_v0 = vld [vmem:[#allocation6 + $0x40] sm:$0xff]   ;;  %v1338_v4 = vld [vmem:[#allocation6 + $0x48] sm:$0xff]   ;;  %vm627_vm0 = vcmask 523264   ;;  %s1527_s2 = smov [#allocation9]  }
  0x39   :  { %v1335_v1 = vld [vmem:[#allocation6 + $0xc0] sm:$0xff]   ;;  %1152 = vmatprep.subr.bf16.mxu0 %v1334_v0  ;;  %v1339_v5 = vld [vmem:[#allocation6 + $0xc8] sm:$0xff]   ;;  %v1342_v8 = vld [vmem:[#allocation6 + $0x50] sm:$0xff]   ;;  %s1054_s24 = sshll.u32 %s1527_s2, 4  ;;  %s1055_s24 = int_to_ptr.vmem [resolvable:$true] %s1054_s24 }
  0x3a   :  { %v1336_v2 = vld [vmem:[#allocation6] sm:$0xff]   ;;  %1216 = vmatprep.subr.bf16.mxu1 %v1335_v1  ;;  %v1340_v6 = vld [vmem:[#allocation6 + $0x8] sm:$0xff]   ;;  %v1343_v9 = vld [vmem:[#allocation6 + $0xd0] sm:$0xff]   ;;  %s1492_s25 = scalar_lea.vmem %s1055_s24, 2048  ;;  %p1497_p11 = scmp.lt.s32.totalorder %s1055_s24, %s1055_s24 }
  0x3b   :  { %v1337_v3 = vld [vmem:[#allocation6 + $0x80] sm:$0xff]   ;;  %1153 = vmatpush3.bf16.msra.mxu0 %v1336_v2  ;;  %v1341_v7 = vld [vmem:[#allocation6 + $0x88] sm:$0xff]   ;;  %v1344_v10 = vld [vmem:[#allocation6 + $0x10] sm:$0xff]   ;;  %p1493_p10 = scmp.ne.s32.totalorder %s1055_s24, %s1492_s25  ;;  %p1498_p12 = scmp.lt.s32.totalorder %s1492_s25, %s1492_s25 }
  0x3c   :  { %1217 = vmatpush3.bf16.msra.mxu1 %v1337_v3  ;;  %1154 = vmatprep.subr.bf16.mxu0 %v1338_v4  ;;  %v1345_v11 = vld [vmem:[#allocation6 + $0x90] sm:$0xff]   ;;  %v1346_v12 = vld [vmem:[#allocation6 + $0x58] sm:$0xff]   ;;  %v1350_v16 = vld [vmem:[#allocation6 + $0x60] sm:$0xff]  }
  0x3d   :  { %1218 = vmatprep.subr.bf16.mxu1 %v1339_v5  ;;  %v1347_v13 = vld [vmem:[#allocation6 + $0xd8] sm:$0xff]   ;;  %v1351_v17 = vld [vmem:[#allocation6 + $0xe0] sm:$0xff]   ;;  %v1354_v20 = vld [vmem:[#allocation6 + $0x68] sm:$0xff]   ;;  %p1499_p13 = por %p1498_p12, %p1497_p11 }
  0x3e   :  { %v1348_v14 = vld [vmem:[#allocation6 + $0x18] sm:$0xff]   ;;  %v1352_v18 = vld [vmem:[#allocation6 + $0x20] sm:$0xff]   ;;  %v1355_v21 = vld [vmem:[#allocation6 + $0xe8] sm:$0xff]  }
  0x3f   :  { %1155 = vmatpush3.bf16.msra.mxu0 %v1340_v6  ;;  %v1349_v15 = vld [vmem:[#allocation6 + $0x98] sm:$0xff]   ;;  %v1353_v19 = vld [vmem:[#allocation6 + $0xa0] sm:$0xff]   ;;  %v1356_v22 = vld [vmem:[#allocation6 + $0x28] sm:$0xff]   ;;  %p1500_p0 = pnand %p1499_p13, %p1493_p10 }
  0x40   :  { %1219 = vmatpush3.bf16.msra.mxu1 %v1341_v7  ;;  %1156 = vmatprep.subr.bf16.mxu0 %v1342_v8  ;;  %v1357_v23 = vld [vmem:[#allocation6 + $0xa8] sm:$0xff]   ;;  %v1358_v24 = vld [vmem:[#allocation6 + $0x70] sm:$0xff]   ;;  %v1362_v28 = vld [vmem:[#allocation6 + $0x78] sm:$0xff]  }
  0x41   :  { %1220 = vmatprep.subr.bf16.mxu1 %v1343_v9  ;;  %v1359_v25 = vld [vmem:[#allocation6 + $0xf0] sm:$0xff]   ;;  %v1363_v29 = vld [vmem:[#allocation6 + $0xf8] sm:$0xff]   ;;  %v1371_v35 = vld [vmem:[#allocation3 + $0xc] ss:$20 sps:$4 sm:$0xff]  }
  0x42   :  { %v1360_v26 = vld [vmem:[#allocation6 + $0x30] sm:$0xff]   ;;  %v1364_v30 = vld [vmem:[#allocation6 + $0x38] sm:$0xff]   ;;  %v1372_v36 = vld [vmem:[#allocation6 + $0x100] sm:$0xff]   ;;  %781 = vmatprep.mubr.bf16.mxu1 %v1371_v35 }
  0x43   :  { %1157 = vmatpush3.bf16.msra.mxu0 %v1344_v10  ;;  %v1361_v27 = vld [vmem:[#allocation6 + $0xb0] sm:$0xff]   ;;  %v1365_v31 = vld [vmem:[#allocation6 + $0xb8] sm:$0xff]   ;;  %v1373_v37 = vld [vmem:[#allocation3 + $0x2c] ss:$20 sps:$4 sm:$0xff]  }
  0x44   :  { %1221 = vmatpush3.bf16.msra.mxu1 %v1345_v11  ;;  %1158 = vmatprep.subr.bf16.mxu0 %v1346_v12  ;;  %v1366_v32 = vld [vmem:[#allocation3] ss:$20 sps:$4 sm:$0xff]   ;;  %v1368_v33 = vld [vmem:[#allocation3 + $0x4] ss:$20 sps:$4 sm:$0xff]   ;;  %v1369_v34 = vld [vmem:[#allocation3 + $0x8] ss:$20 sps:$4 sm:$0xff]  }
  0x45   :  { %1222 = vmatprep.subr.bf16.mxu1 %v1347_v13  ;;  %684 = vmatprep.mubr.bf16.mxu0 %v1368_v33  ;;  %v1375_v38 = vld [vmem:[#allocation3 + $0x34] ss:$20 sps:$4 sm:$0xff]   ;;  %v1378_v40 = vld [vmem:[#allocation3 + $0x30] ss:$20 sps:$4 sm:$0xff]   ;;  %v1384_v45 = vld [vmem:[#allocation3 + $0x58] ss:$20 sps:$4 sm:$0xff]  }
  0x46   :  { %v1377_v39 = vld [vmem:[#allocation3 + $0x28] ss:$20 sps:$4 sm:$0xff]   ;;  %v1383_v44 = vld [vmem:[#allocation3 + $0x50] ss:$20 sps:$4 sm:$0xff]   ;;  %v1390_v50 = vld [vmem:[#allocation3 + $0x78] ss:$20 sps:$4 sm:$0xff]  }
  0x47   :  { %1159 = vmatpush3.bf16.msra.mxu0 %v1348_v14  ;;  %v1379_v41 = vld [vmem:[#allocation3 + $0x54] ss:$20 sps:$4 sm:$0xff]   ;;  %v1381_v43 = vld [vmem:[#allocation3 + $0x5c] ss:$20 sps:$4 sm:$0xff]   ;;  %v1388_v48 = vld [vmem:[#allocation3 + $0x84] ss:$20 sps:$4 sm:$0xff]  }
  0x48   :  { %1223 = vmatpush3.bf16.msra.mxu1 %v1349_v15  ;;  %1160 = vmatprep.subr.bf16.mxu0 %v1350_v16  ;;  %v1385_v42 = vld [vmem:[#allocation6 + $0x108] sm:$0xff]   ;;  %v1398_v46 = vld [vmem:[#allocation6 + $0x110] sm:$0xff]   ;;  %v1411_v49 = vld [vmem:[#allocation6 + $0x118] sm:$0xff]  }
  0x49   :  { %1224 = vmatprep.subr.bf16.mxu1 %v1351_v17  ;;  %v1386_v47 = vld [vmem:[#allocation3 + $0x7c] ss:$20 sps:$4 sm:$0xff]   ;;  %v1391_v51 = vld [vmem:[#allocation3 + $0x80] ss:$20 sps:$4 sm:$0xff]   ;;  %v1392_v52 = vld [vmem:[#allocation3 + $0xa4] ss:$20 sps:$4 sm:$0xff]  }
  0x4a   :  { %v1394_v53 = vld [vmem:[#allocation3 + $0xac] ss:$20 sps:$4 sm:$0xff]   ;;  %v1397_v55 = vld [vmem:[#allocation3 + $0xa8] ss:$20 sps:$4 sm:$0xff]   ;;  %v1404_v59 = vld [vmem:[#allocation3 + $0xd0] ss:$20 sps:$4 sm:$0xff]  }
  0x4b   :  { %1161 = vmatpush3.bf16.msra.mxu0 %v1352_v18  ;;  %v1396_v54 = vld [vmem:[#allocation3 + $0xa0] ss:$20 sps:$4 sm:$0xff]   ;;  %v1403_v58 = vld [vmem:[#allocation3 + $0xc8] ss:$20 sps:$4 sm:$0xff]   ;;  %v1409_v62 = vld [vmem:[#allocation3 + $0xf0] ss:$20 sps:$4 sm:$0xff]  }
  0x4c   :  { %1225 = vmatpush3.bf16.msra.mxu1 %v1353_v19  ;;  %1162 = vmatprep.subr.bf16.mxu0 %v1354_v20  ;;  %v1399_v56 = vld [vmem:[#allocation3 + $0xcc] ss:$20 sps:$4 sm:$0xff]   ;;  %v1401_v57 = vld [vmem:[#allocation3 + $0xd4] ss:$20 sps:$4 sm:$0xff]   ;;  %v1407_v61 = vld [vmem:[#allocation3 + $0xfc] ss:$20 sps:$4 sm:$0xff]  }
  0x4d   :  { %1226 = vmatprep.subr.bf16.mxu1 %v1355_v21  ;;  %v1405_v60 = vld [vmem:[#allocation3 + $0xf4] ss:$20 sps:$4 sm:$0xff]   ;;  %v1410_v63 = vld [vmem:[#allocation3 + $0xf8] ss:$20 sps:$4 sm:$0xff]   ;;  %v1412_v0 = vld [vmem:[#allocation3 + $0x11c] ss:$20 sps:$4 sm:$0xff]  }
  0x4e   :  { %v1414_v1 = vld [vmem:[#allocation3 + $0x124] ss:$20 sps:$4 sm:$0xff]   ;;  %v1417_v3 = vld [vmem:[#allocation3 + $0x120] ss:$20 sps:$4 sm:$0xff]   ;;  %v1424_v10 = vld [vmem:[#allocation3 + $0x88] ss:$20 sps:$4 sm:$0xff]  }
  0x4f   :  { %1163 = vmatpush3.bf16.msra.mxu0 %v1356_v22  ;;  %v1416_v2 = vld [vmem:[#allocation3 + $0x118] ss:$20 sps:$4 sm:$0xff]   ;;  %v1418_v4 = vld [vmem:[#allocation3 + $0x10] ss:$20 sps:$4 sm:$0xff]   ;;  %v1422_v8 = vld [vmem:[#allocation3 + $0x60] ss:$20 sps:$4 sm:$0xff]  }
  0x50   :  { %1227 = vmatpush3.bf16.msra.mxu1 %v1357_v23  ;;  %1164 = vmatprep.subr.bf16.mxu0 %v1358_v24  ;;  %v1419_v5 = vld [vmem:[#allocation3 + $0xb0] ss:$20 sps:$4 sm:$0xff]   ;;  %v1420_v6 = vld [vmem:[#allocation3 + $0x38] ss:$20 sps:$4 sm:$0xff]   ;;  %v1423_v9 = vld [vmem:[#allocation3 + $0x100] ss:$20 sps:$4 sm:$0xff]  }
  0x51   :  { %1228 = vmatprep.subr.bf16.mxu1 %v1359_v25  ;;  %v1421_v7 = vld [vmem:[#allocation3 + $0xd8] ss:$20 sps:$4 sm:$0xff]   ;;  %v1425_v11 = vld [vmem:[#allocation3 + $0x128] ss:$20 sps:$4 sm:$0xff]  }
  0x53   :  { %1165 = vmatpush3.bf16.msra.mxu0 %v1360_v26 }
  0x54   :  { %1229 = vmatpush3.bf16.msra.mxu1 %v1361_v27  ;;  %1166 = vmatprep.subr.bf16.mxu0 %v1362_v28 }
  0x55   :  { %1230 = vmatprep.subr.bf16.mxu1 %v1363_v29 }
  0x57   :  { %1167 = vmatpush3.bf16.msra.mxu0 %v1364_v30 }
  0x58   :  { %1231 = vmatpush3.bf16.msra.mxu1 %v1365_v31  ;;  %1292 = vmatprep.subr.bf16.mxu0 %v1372_v36 }
  0x59   :  { %1316 = vmatprep.subr.bf16.mxu1 %v1372_v36 }
  0x5a   :  { %685 = vmatmul.mubr.bf16.vlgmr.msra.gmra.mrb[0].mxu0 %v1366_v32 }
  0x5b   :  { %782 = vmatmul.mubr.bf16.vlgmr.msra.gmra.mrb[0].mxu1 %v1369_v34  ;;  %1293 = vmatpush3.bf16.msra.mxu0 %v1372_v36 }
  0x5c   :  { %1320 = vmatpush3.bf16.msra.mxu1 %v1372_v36  ;;  %692 = vmatprep.mubr.bf16.mxu0 %v1373_v37 }
  0x5d   :  { %789 = vmatprep.mubr.bf16.mxu1 %v1375_v38  ;;  %1294 = vmatprep.subr.bf16.mxu0 %v1385_v42 }
  0x5e   :  { %1317 = vmatprep.subr.bf16.mxu1 %v1385_v42 }
  0x5f   :  { %1295 = vmatpush3.bf16.msra.mxu0 %v1385_v42 }
  0x60   :  { %1321 = vmatpush3.bf16.msra.mxu1 %v1385_v42  ;;  %1296 = vmatprep.subr.bf16.mxu0 %v1398_v46 }
  0x61   :  { %1318 = vmatprep.subr.bf16.mxu1 %v1398_v46 }
  0x62   :  { %693 = vmatmul.mubr.bf16.gmra.mrb[4].mxu0 %v1377_v39 }
  0x63   :  { %790 = vmatmul.mubr.bf16.gmra.mrb[4].mxu1 %v1378_v40  ;;  %700 = vmatprep.mubr.bf16.mxu0 %v1379_v41 }
  0x64   :  { %797 = vmatprep.mubr.bf16.mxu1 %v1381_v43  ;;  %1297 = vmatpush3.bf16.msra.mxu0 %v1398_v46 }
  0x65   :  { %1322 = vmatpush3.bf16.msra.mxu1 %v1398_v46  ;;  %1298 = vmatprep.subr.bf16.mxu0 %v1411_v49 }
  0x66   :  { %1319 = vmatprep.subr.bf16.mxu1 %v1411_v49 }
  0x68   :  { %1299 = vmatpush3.bf16.msra.mxu0 %v1411_v49 }
  0x69   :  { %1323 = vmatpush3.bf16.msra.mxu1 %v1411_v49 }
  0x6a   :  { %701 = vmatmul.mubr.bf16.gmra.mrb[8].mxu0 %v1383_v44 }
  0x6b   :  { %798 = vmatmul.mubr.bf16.gmra.mrb[8].mxu1 %v1384_v45  ;;  %708 = vmatprep.mubr.bf16.mxu0 %v1386_v47 }
  0x6c   :  { %805 = vmatprep.mubr.bf16.mxu1 %v1388_v48 }
  0x72   :  { %709 = vmatmul.mubr.bf16.gmra.mrb[12].mxu0 %v1390_v50 }
  0x73   :  { %806 = vmatmul.mubr.bf16.gmra.mrb[12].mxu1 %v1391_v51  ;;  %716 = vmatprep.mubr.bf16.mxu0 %v1392_v52 }
  0x74   :  { %813 = vmatprep.mubr.bf16.mxu1 %v1394_v53 }
  0x7a   :  { %717 = vmatmul.mubr.bf16.gmra.mrb[16].mxu0 %v1396_v54 }
  0x7b   :  { %814 = vmatmul.mubr.bf16.gmra.mrb[16].mxu1 %v1397_v55  ;;  %724 = vmatprep.mubr.bf16.mxu0 %v1399_v56 }
  0x7c   :  { %821 = vmatprep.mubr.bf16.mxu1 %v1401_v57 }
  0x82   :  { %725 = vmatmul.mubr.bf16.gmra.mrb[20].mxu0 %v1403_v58 }
  0x83   :  { %822 = vmatmul.mubr.bf16.gmra.mrb[20].mxu1 %v1404_v59  ;;  %732 = vmatprep.mubr.bf16.mxu0 %v1405_v60 }
  0x84   :  { %829 = vmatprep.mubr.bf16.mxu1 %v1407_v61 }
  0x8a   :  { %733 = vmatmul.mubr.bf16.gmra.mrb[24].mxu0 %v1409_v62 }
  0x8b   :  { %830 = vmatmul.mubr.bf16.gmra.mrb[24].mxu1 %v1410_v63  ;;  %740 = vmatprep.mubr.bf16.mxu0 %v1412_v0 }
  0x8c   :  { %837 = vmatprep.mubr.bf16.mxu1 %v1414_v1 }
  0x92   :  { %741 = vmatmul.mubr.bf16.gmra.mrb[28].mxu0 %v1416_v2 }
  0x93   :  { %838 = vmatmul.mubr.bf16.gmra.mrb[28].mxu1 %v1417_v3  ;;  %1300 = vmatprep.mubr.msk.bf16.mxu0 %vm627_vm0, %v1418_v4 }
  0x94   :  { %1308 = vmatprep.mubr.msk.bf16.mxu1 %vm627_vm0, %v1419_v5 }
  0x9a   :  { %1301 = vmatmul.mubr.msk.bf16.vlgmr.msra.gmra.mrb[32].mxu0 %vm627_vm0, %v1420_v6 }
  0x9b   :  { %1309 = vmatmul.mubr.msk.bf16.vlgmr.msra.gmra.mrb[32].mxu1 %vm627_vm0, %v1421_v7  ;;  %1304 = vmatprep.mubr.msk.bf16.mxu0 %vm627_vm0, %v1422_v8 }
  0x9c   :  { %1312 = vmatprep.mubr.msk.bf16.mxu1 %vm627_vm0, %v1423_v9 }
  0xa2   :  { %1305 = vmatmul.mubr.msk.bf16.gmra.mrb[36].mxu0 %vm627_vm0, %v1424_v10 }
  0xa3   :  { %1313 = vmatmul.mubr.msk.bf16.gmra.mrb[36].mxu1 %vm627_vm0, %v1425_v11 }
 0x12d   :  { %v1168_v12 = vpop.f32.mrb[0].mxu0 }
 0x12e   :  { %v1232_v13 = vpop.f32.mrb[0].mxu1  ;;  %v1169_v14 = vpop.f32.mrb[1].mxu0 }
 0x12f   :  { %v1170_v15 = vadd.f32 %v1169_v14, %v1168_v12  ;;  %v1233_v16 = vpop.f32.mrb[1].mxu1  ;;  %v1171_v17 = vpop.f32.mrb[2].mxu0 }
 0x130   :  { %v1234_v18 = vadd.f32 %v1233_v16, %v1232_v13  ;;  %v1235_v19 = vpop.f32.mrb[2].mxu1  ;;  %v1172_v20 = vpop.f32.mrb[3].mxu0 }
 0x131   :  { %v1173_v21 = vadd.f32 %v1172_v20, %v1171_v17  ;;  %v1236_v22 = vpop.f32.mrb[3].mxu1 }
 0x132   :  { %v1237_v23 = vadd.f32 %v1236_v22, %v1235_v19  ;;  %v1594_v24 = vadd.f32 %v1234_v18, %v1170_v15 }
 0x134   :  { %v1596_v25 = vadd.f32 %v1237_v23, %v1173_v21 }
 0x135   :  { %v1174_v26 = vpop.f32.mrb[4].mxu0 }
 0x136   :  { %v1238_v27 = vpop.f32.mrb[4].mxu1  ;;  %v1175_v28 = vpop.f32.mrb[5].mxu0 }
 0x137   :  { %v1176_v29 = vadd.f32 %v1175_v28, %v1174_v26  ;;  %v1239_v30 = vpop.f32.mrb[5].mxu1  ;;  %v1177_v31 = vpop.f32.mrb[6].mxu0 }
 0x138   :  { %v1240_v32 = vadd.f32 %v1239_v30, %v1238_v27  ;;  %v1241_v33 = vpop.f32.mrb[6].mxu1  ;;  %v1178_v34 = vpop.f32.mrb[7].mxu0 }
 0x139   :  { %v1179_v35 = vadd.f32 %v1178_v34, %v1177_v31  ;;  %v1242_v36 = vpop.f32.mrb[7].mxu1 }
 0x13a   :  { %v1243_v37 = vadd.f32 %v1242_v36, %v1241_v33  ;;  %v1598_v38 = vadd.f32 %v1240_v32, %v1176_v29 }
 0x13c   :  { %v1600_v39 = vadd.f32 %v1243_v37, %v1179_v35 }
 0x13d   :  { %v1180_v40 = vpop.f32.mrb[8].mxu0 }
 0x13e   :  { %v1244_v41 = vpop.f32.mrb[8].mxu1  ;;  %v1181_v42 = vpop.f32.mrb[9].mxu0 }
 0x13f   :  { %v1182_v43 = vadd.f32 %v1181_v42, %v1180_v40  ;;  %v1245_v44 = vpop.f32.mrb[9].mxu1  ;;  %v1183_v45 = vpop.f32.mrb[10].mxu0 }
 0x140   :  { %v1246_v46 = vadd.f32 %v1245_v44, %v1244_v41  ;;  %v1247_v47 = vpop.f32.mrb[10].mxu1  ;;  %v1184_v48 = vpop.f32.mrb[11].mxu0 }
 0x141   :  { %v1185_v49 = vadd.f32 %v1184_v48, %v1183_v45  ;;  %v1248_v50 = vpop.f32.mrb[11].mxu1 }
 0x142   :  { %v1249_v51 = vadd.f32 %v1248_v50, %v1247_v47  ;;  %v1602_v52 = vadd.f32 %v1246_v46, %v1182_v43 }
 0x144   :  { %v1604_v53 = vadd.f32 %v1249_v51, %v1185_v49 }
 0x145   :  { %v1186_v54 = vpop.f32.mrb[12].mxu0 }
 0x146   :  { %v1250_v55 = vpop.f32.mrb[12].mxu1  ;;  %v1187_v56 = vpop.f32.mrb[13].mxu0 }
 0x147   :  { %v1188_v57 = vadd.f32 %v1187_v56, %v1186_v54  ;;  %v1251_v58 = vpop.f32.mrb[13].mxu1  ;;  %v1189_v59 = vpop.f32.mrb[14].mxu0 }
 0x148   :  { %v1252_v60 = vadd.f32 %v1251_v58, %v1250_v55  ;;  %v1253_v61 = vpop.f32.mrb[14].mxu1  ;;  %v1190_v62 = vpop.f32.mrb[15].mxu0 }
 0x149   :  { %v1191_v63 = vadd.f32 %v1190_v62, %v1189_v59  ;;  %v1254_v0 = vpop.f32.mrb[15].mxu1 }
 0x14a   :  { %v1255_v1 = vadd.f32 %v1254_v0, %v1253_v61  ;;  %v1606_v2 = vadd.f32 %v1252_v60, %v1188_v57 }
 0x14c   :  { %v1608_v3 = vadd.f32 %v1255_v1, %v1191_v63 }
 0x14d   :  { %v1192_v4 = vpop.f32.mrb[16].mxu0 }
 0x14e   :  { %v1256_v5 = vpop.f32.mrb[16].mxu1  ;;  %v1193_v6 = vpop.f32.mrb[17].mxu0 }
 0x14f   :  { %v1194_v7 = vadd.f32 %v1193_v6, %v1192_v4  ;;  %v1257_v8 = vpop.f32.mrb[17].mxu1  ;;  %v1195_v9 = vpop.f32.mrb[18].mxu0 }
 0x150   :  { %v1258_v10 = vadd.f32 %v1257_v8, %v1256_v5  ;;  %v1259_v11 = vpop.f32.mrb[18].mxu1  ;;  %v1196_v12 = vpop.f32.mrb[19].mxu0  ;;  %v1616_v5 = vld [vmem:[#allocation8] ss:$0 sm:$0xff] }
 0x151   :  { %v1197_v13 = vadd.f32 %v1196_v12, %v1195_v9  ;;  %v1260_v14 = vpop.f32.mrb[19].mxu1 }
 0x152   :  { %v1261_v15 = vadd.f32 %v1260_v14, %v1259_v11  ;;  %v816_v16 = vadd.f32 %v1258_v10, %v1194_v7 }
 0x154   :  { %v1610_v17 = vadd.f32 %v1261_v15, %v1197_v13 }
 0x155   :  { %v1198_v18 = vpop.f32.mrb[20].mxu0 }
 0x156   :  { %v1262_v19 = vpop.f32.mrb[20].mxu1  ;;  %v1199_v20 = vpop.f32.mrb[21].mxu0 }
 0x157   :  { %v1200_v21 = vadd.f32 %v1199_v20, %v1198_v18  ;;  %v1263_v22 = vpop.f32.mrb[21].mxu1  ;;  %v1201_v23 = vpop.f32.mrb[22].mxu0 }
 0x158   :  { %v1264_v26 = vadd.f32 %v1263_v22, %v1262_v19  ;;  %v1265_v27 = vpop.f32.mrb[22].mxu1  ;;  %v1202_v28 = vpop.f32.mrb[23].mxu0 }
 0x159   :  { %v1203_v29 = vadd.f32 %v1202_v28, %v1201_v23  ;;  %v1266_v30 = vpop.f32.mrb[23].mxu1 }
 0x15a   :  { %v1267_v31 = vadd.f32 %v1266_v30, %v1265_v27  ;;  %v824_v32 = vadd.f32 %v1264_v26, %v1200_v21 }
 0x15c   :  { %v827_v33 = vadd.f32 %v1267_v31, %v1203_v29 }
 0x15d   :  { %v1204_v34 = vpop.f32.mrb[24].mxu0 }
 0x15e   :  { %v1268_v35 = vpop.f32.mrb[24].mxu1  ;;  %v1205_v36 = vpop.f32.mrb[25].mxu0 }
 0x15f   :  { %v1206_v37 = vadd.f32 %v1205_v36, %v1204_v34  ;;  %v1269_v40 = vpop.f32.mrb[25].mxu1  ;;  %v1207_v41 = vpop.f32.mrb[26].mxu0 }
 0x160   :  { %v1270_v42 = vadd.f32 %v1269_v40, %v1268_v35  ;;  %v1271_v43 = vpop.f32.mrb[26].mxu1  ;;  %v1208_v44 = vpop.f32.mrb[27].mxu0 }
 0x161   :  { %v1209_v45 = vadd.f32 %v1208_v44, %v1207_v41  ;;  %v1272_v46 = vpop.f32.mrb[27].mxu1 }
 0x162   :  { %v1273_v47 = vadd.f32 %v1272_v46, %v1271_v43  ;;  %v1612_v48 = vadd.f32 %v1270_v42, %v1206_v37 }
 0x164   :  { %v1614_v49 = vadd.f32 %v1273_v47, %v1209_v45 }
 0x165   :  { %v1210_v50 = vpop.f32.mrb[28].mxu0 }
 0x166   :  { %v1274_v51 = vpop.f32.mrb[28].mxu1  ;;  %v1211_v54 = vpop.f32.mrb[29].mxu0 }
 0x167   :  { %v1212_v55 = vadd.f32 %v1211_v54, %v1210_v50  ;;  %v1275_v56 = vpop.f32.mrb[29].mxu1  ;;  %v1213_v57 = vpop.f32.mrb[30].mxu0 }
 0x168   :  { %v1276_v58 = vadd.f32 %v1275_v56, %v1274_v51  ;;  %v1277_v59 = vpop.f32.mrb[30].mxu1  ;;  %v1214_v60 = vpop.f32.mrb[31].mxu0 }
 0x169   :  { %v1215_v61 = vadd.f32 %v1214_v60, %v1213_v57  ;;  %v1278_v62 = vpop.f32.mrb[31].mxu1 }
 0x16a   :  { %v1279_v63 = vadd.f32 %v1278_v62, %v1277_v59  ;;  %v840_v0 = vadd.f32 %v1276_v58, %v1212_v55 }
 0x16c   :  { %v843_v1 = vadd.f32 %v1279_v63, %v1215_v61 }
 0x16d   :  { %v1302_v4 = vpop.f32.mrb[32].mxu0 }
 0x16e   :  { %v889_v6 = vadd.f32 %v1302_v4, %v1598_v38  ;;  %v1310_v7 = vpop.f32.mrb[32].mxu1  ;;  %v880_v8 = vpop.f32.mrb[33].mxu0 }
 0x16f   :  { %v921_v9 = vadd.f32 %v1310_v7, %v824_v32  ;;  %v881_v10 = vadd.f32 %v880_v8, %v1594_v24  ;;  %v912_v11 = vpop.f32.mrb[33].mxu1  ;;  %v1303_v12 = vpop.f32.mrb[34].mxu0 }
 0x170   :  { %v1003_v13 = vadd.f32 %v1616_v5, %v889_v6  ;;  %v913_v14 = vadd.f32 %v912_v11, %v816_v16  ;;  %v892_v15 = vadd.f32 %v1303_v12, %v1600_v39  ;;  %v1311_v18 = vpop.f32.mrb[34].mxu1  ;;  %v883_v19 = vpop.f32.mrb[35].mxu0 }
 0x171   :  { %v1011_v20 = vadd.f32 %v1616_v5, %v921_v9  ;;  %v1001_v21 = vadd.f32 %v1616_v5, %v881_v10  ;;  %v924_v22 = vadd.f32 %v1311_v18, %v827_v33  ;;  %v884_v38 = vadd.f32 %v883_v19, %v1596_v25  ;;  %v915_v23 = vpop.f32.mrb[35].mxu1 }
 0x172   :  { %v1019_v26 = vmax.f32 %v1003_v13, 0.0  ;;  %v1009_v24 = vadd.f32 %v1616_v5, %v913_v14  ;;  %v1004_v27 = vadd.f32 %v1616_v5, %v892_v15  ;;  %v916_v28 = vadd.f32 %v915_v23, %v1610_v17 }
 0x173   :  { %v1027_v16 = vmax.f32 %v1011_v20, 0.0  ;;  %v1017_v29 = vmax.f32 %v1001_v21, 0.0  ;;  %v1012_v39 = vadd.f32 %v1616_v5, %v924_v22  ;;  %v1002_v30 = vadd.f32 %v1616_v5, %v884_v38 }
 0x174   :  { %1035 = vst [vmem:[#allocation9 + $0x10] sm:$0xff] %v1019_v26  ;;  %v1025_v31 = vmax.f32 %v1009_v24, 0.0  ;;  %v1020_v32 = vmax.f32 %v1004_v27, 0.0  ;;  %v1010_v33 = vadd.f32 %v1616_v5, %v916_v28 }
 0x175   :  { %1043 = vst [vmem:[#allocation9 + $0x50] sm:$0xff] %v1027_v16  ;;  %1033 = vst [vmem:[#allocation9] sm:$0xff] %v1017_v29  ;;  %v1028_v25 = vmax.f32 %v1012_v39, 0.0  ;;  %v1018_v34 = vmax.f32 %v1002_v30, 0.0  ;;  %v1306_v35 = vpop.f32.mrb[36].mxu0 }
 0x176   :  { %1041 = vst [vmem:[#allocation9 + $0x40] sm:$0xff] %v1025_v31  ;;  %1036 = vst [vmem:[#allocation9 + $0x18] sm:$0xff] %v1020_v32  ;;  %v1026_v36 = vmax.f32 %v1010_v33, 0.0  ;;  %v905_v17 = vadd.f32 %v1306_v35, %v1606_v2  ;;  %v1314_v37 = vpop.f32.mrb[36].mxu1  ;;  %v896_v40 = vpop.f32.mrb[37].mxu0 }
 0x177   :  { %1044 = vst [vmem:[#allocation9 + $0x58] sm:$0xff] %v1028_v25  ;;  %1034 = vst [vmem:[#allocation9 + $0x8] sm:$0xff] %v1018_v34  ;;  %v937_v41 = vadd.f32 %v1314_v37, %v840_v0  ;;  %v897_v42 = vadd.f32 %v896_v40, %v1602_v52  ;;  %v928_v43 = vpop.f32.mrb[37].mxu1  ;;  %v1307_v44 = vpop.f32.mrb[38].mxu0 }
 0x178   :  { %1042 = vst [vmem:[#allocation9 + $0x48] sm:$0xff] %v1026_v36  ;;  %v1007_v45 = vadd.f32 %v1616_v5, %v905_v17  ;;  %v929_v46 = vadd.f32 %v928_v43, %v1612_v48  ;;  %v908_v47 = vadd.f32 %v1307_v44, %v1608_v3  ;;  %v1315_v50 = vpop.f32.mrb[38].mxu1  ;;  %v899_v51 = vpop.f32.mrb[39].mxu0 }
 0x179   :  { %v1015_v2 = vadd.f32 %v1616_v5, %v937_v41  ;;  %v1005_v54 = vadd.f32 %v1616_v5, %v897_v42  ;;  %v940_v55 = vadd.f32 %v1315_v50, %v843_v1  ;;  %v900_v56 = vadd.f32 %v899_v51, %v1604_v53  ;;  %v931_v57 = vpop.f32.mrb[39].mxu1 }
 0x17a   :  { %v1023_v52 = vmax.f32 %v1007_v45, 0.0  ;;  %v1013_v58 = vadd.f32 %v1616_v5, %v929_v46  ;;  %v1008_v59 = vadd.f32 %v1616_v5, %v908_v47  ;;  %v932_v60 = vadd.f32 %v931_v57, %v1614_v49 }
 0x17b   :  { %v1031_v3 = vmax.f32 %v1015_v2, 0.0  ;;  %v1021_v48 = vmax.f32 %v1005_v54, 0.0  ;;  %v1016_v61 = vadd.f32 %v1616_v5, %v940_v55  ;;  %v1006_v62 = vadd.f32 %v1616_v5, %v900_v56 }
 0x17c   :  { %1039 = vst [vmem:[#allocation9 + $0x30] sm:$0xff] %v1023_v52  ;;  %v1029_v63 = vmax.f32 %v1013_v58, 0.0  ;;  %v1024_v0 = vmax.f32 %v1008_v59, 0.0  ;;  %v1014_v53 = vadd.f32 %v1616_v5, %v932_v60 }
 0x17d   :  { %1047 = vst [vmem:[#allocation9 + $0x70] sm:$0xff] %v1031_v3  ;;  %1037 = vst [vmem:[#allocation9 + $0x20] sm:$0xff] %v1021_v48  ;;  %v1032_v1 = vmax.f32 %v1016_v61, 0.0  ;;  %v1022_v4 = vmax.f32 %v1006_v62, 0.0 }
 0x17e   :  { %1045 = vst [vmem:[#allocation9 + $0x60] sm:$0xff] %v1029_v63  ;;  %1040 = vst [vmem:[#allocation9 + $0x38] sm:$0xff] %v1024_v0  ;;  %v1030_v49 = vmax.f32 %v1014_v53, 0.0 }
 0x17f   :  { %1048 = vst [vmem:[#allocation9 + $0x78] sm:$0xff] %v1032_v1  ;;  %1038 = vst [vmem:[#allocation9 + $0x28] sm:$0xff] %v1022_v4 }
 0x180   :  { %1046 = vst [vmem:[#allocation9 + $0x68] sm:$0xff] %v1030_v49 }
 0x181   :  { %1503 = shalt.err (!%p1500_p0)
}
 0x182   :  { %s1504_s28 = scalar_lea.hbm %s1660_s3, 2048 }
 0x183   :  { %p1505_p1 = scmp.ne.s32.totalorder %s1660_s3, %s1504_s28  ;;  %p1508_p2 = scmp.lt.u32.totalorder %s1504_s28, %s1660_s3 }
 0x185   :  { %p1510_p3 = pnand %p1508_p2, %p1505_p1 }
 0x187   :  { %1513 = shalt.err (!%p1510_p3)
}
 0x188   :  { %s1528_s6 = smov 128   ;;  %s1529_s7 = smov 8  }
 0x189   :  { %1060 = dma.vmem_to_hbm [thread:$0]  %s1055_s24, 2048, %s1660_s3, [#allocation5], %s1528_s6, %s1528_s6, %s1529_s7  }
 0x18a   :  { %1518 = dma.done.wait [#allocation5], 2048  }
 0x18b   :  { %1519 = vsyncadd [#allocation5], 4294965248 }
 0x18c   :  { %1064 = vsyncpa [#allocation4], 1 }
 0x18d   :  { %1065 = vsyncpa [#allocation7], 1 }
 0x18e   :  { %1066 = vsyncpa [#allocation5], 1 }

// kernel: csrnet_forward.31
= control target key start
LH: loop header
LB: loop body
LE: loop exit
PB: predicated region body
PF: predicated region fallthrough
CT: control target
= control target key end

     0   :  { %6 = vsyncpa [#allocation3], 0  ;;  %s171_s0 = inlined_call_operand.hbm [shape: f32[4,32,128], index: 0, kind: input, shape index: {}]   ;;  %s172_s1 = inlined_call_operand.hbm [shape: f32[32,128], index: 1, kind: output, shape index: {}]  }
   0x1   :  { %7 = vsyncpa [#allocation4], 0  ;;  %s127_s6 = smov [#allocation2]   ;;  %s79_s10 = scalar_lea.hbm %s171_s0, 2048 }
   0x2   :  { %s13_s7 = sshll.u32 %s127_s6, 4  ;;  %p80_p0 = scmp.ne.s32.totalorder %s171_s0, %s79_s10  ;;  %s14_s7 = int_to_ptr.vmem [resolvable:$true] %s13_s7 }
   0x3   :  { %p83_p1 = scmp.lt.u32.totalorder %s79_s10, %s171_s0 }
   0x5   :  { %p85_p2 = pnand %p83_p1, %p80_p0 }
   0x7   :  { %88 = shalt.err (!%p85_p2)
}
   0x8   :  { %s89_s15 = scalar_lea.vmem %s14_s7, 2048  ;;  %p94_p4 = scmp.lt.s32.totalorder %s14_s7, %s14_s7 }
   0x9   :  { %p90_p3 = scmp.ne.s32.totalorder %s14_s7, %s89_s15  ;;  %p95_p5 = scmp.lt.s32.totalorder %s89_s15, %s89_s15 }
   0xb   :  { %p96_p6 = por %p95_p5, %p94_p4 }
   0xd   :  { %p97_p7 = pnand %p96_p6, %p90_p3 }
   0xf   :  { %100 = shalt.err (!%p97_p7)
}
  0x10   :  { %s128_s16 = smov 128   ;;  %s129_s17 = smov 8  }
  0x11   :  { %19 = dma.hbm_to_vmem [thread:$0]  %s171_s0, 2048, %s14_s7, [#allocation3], %s128_s16, %s128_s16, %s129_s17  }
  0x12   :  { %123 = dma.done.wait [#allocation3], 2048  }
  0x13   :  { %124 = vsyncadd [#allocation3], 4294965248  ;;  %v23_v0 = vld [vmem:[#allocation2] sm:$0xff]  ;;  %v24_v5 = vld [vmem:[#allocation2 + $0x8] sm:$0xff]  ;;  %s130_s0 = smov [#allocation5]  }
  0x14   :  { %v28_v1 = vld [vmem:[#allocation2 + $0x20] sm:$0xff]  ;;  %v29_v6 = vld [vmem:[#allocation2 + $0x28] sm:$0xff]  ;;  %v25_v11 = vld [vmem:[#allocation2 + $0x10] sm:$0xff]  ;;  %s63_s20 = sshll.u32 %s130_s0, 4  ;;  %s64_s20 = int_to_ptr.vmem [resolvable:$true] %s63_s20 }
  0x15   :  { %v37_v2 = vld [vmem:[#allocation2 + $0x40] sm:$0xff]  ;;  %v32_v3 = vmax.f32 %v23_v0, %v28_v1  ;;  %v33_v8 = vmax.f32 %v24_v5, %v29_v6  ;;  %v38_v9 = vld [vmem:[#allocation2 + $0x48] sm:$0xff]  ;;  %v30_v13 = vld [vmem:[#allocation2 + $0x30] sm:$0xff]  ;;  %s101_s21 = scalar_lea.vmem %s64_s20, 512  ;;  %p106_p9 = scmp.lt.s32.totalorder %s64_s20, %s64_s20 }
  0x16   :  { %v42_v4 = vld [vmem:[#allocation2 + $0x60] sm:$0xff]  ;;  %v43_v10 = vld [vmem:[#allocation2 + $0x68] sm:$0xff]  ;;  %v39_v14 = vld [vmem:[#allocation2 + $0x50] sm:$0xff]  ;;  %v34_v17 = vmax.f32 %v25_v11, %v30_v13  ;;  %p102_p8 = scmp.ne.s32.totalorder %s64_s20, %s101_s21  ;;  %p107_p10 = scmp.lt.s32.totalorder %s101_s21, %s101_s21 }
  0x17   :  { %v46_v7 = vmax.f32 %v37_v2, %v42_v4  ;;  %v47_v12 = vmax.f32 %v38_v9, %v43_v10  ;;  %v44_v15 = vld [vmem:[#allocation2 + $0x70] sm:$0xff]  ;;  %v26_v19 = vld [vmem:[#allocation2 + $0x18] sm:$0xff] }
  0x18   :  { %v48_v18 = vmax.f32 %v39_v14, %v44_v15  ;;  %v31_v20 = vld [vmem:[#allocation2 + $0x38] sm:$0xff]  ;;  %p108_p11 = por %p107_p10, %p106_p9 }
  0x19   :  { %v50_v16 = vmax.f32 %v32_v3, %v46_v7  ;;  %v40_v21 = vld [vmem:[#allocation2 + $0x58] sm:$0xff]  ;;  %v51_v22 = vmax.f32 %v33_v8, %v47_v12  ;;  %v35_v23 = vmax.f32 %v26_v19, %v31_v20 }
  0x1a   :  { %v45_v24 = vld [vmem:[#allocation2 + $0x78] sm:$0xff]  ;;  %v52_v25 = vmax.f32 %v34_v17, %v48_v18  ;;  %p109_p12 = pnand %p108_p11, %p102_p8 }
  0x1b   :  { %54 = vst [vmem:[#allocation5] sm:$0xff] %v50_v16  ;;  %v49_v26 = vmax.f32 %v40_v21, %v45_v24  ;;  %55 = vst [vmem:[#allocation5 + $0x8] sm:$0xff] %v51_v22 }
  0x1c   :  { %56 = vst [vmem:[#allocation5 + $0x10] sm:$0xff] %v52_v25 }
  0x1d   :  { %v53_v27 = vmax.f32 %v35_v23, %v49_v26 }
  0x1f   :  { %57 = vst [vmem:[#allocation5 + $0x18] sm:$0xff] %v53_v27 }
  0x20   :  { %112 = shalt.err (!%p109_p12)
}
  0x21   :  { %s113_s24 = scalar_lea.hbm %s172_s1, 512 }
  0x22   :  { %p114_p13 = scmp.ne.s32.totalorder %s172_s1, %s113_s24  ;;  %p117_p0 = scmp.lt.u32.totalorder %s113_s24, %s172_s1 }
  0x24   :  { %p119_p1 = pnand %p117_p0, %p114_p13 }
  0x26   :  { %122 = shalt.err (!%p119_p1)
}
  0x27   :  { %69 = dma.vmem_to_hbm [thread:$0]  %s64_s20, 512, %s172_s1, [#allocation4], %s128_s16, %s128_s16, %s129_s17  }
  0x28   :  { %125 = dma.done.wait [#allocation4], 512  }
  0x29   :  { %126 = vsyncadd [#allocation4], 4294966784 }
  0x2a   :  { %73 = vsyncpa [#allocation3], 1 }
  0x2b   :  { %74 = vsyncpa [#allocation4], 1 }

// kernel: csrnet_forward.30
= control target key start
LH: loop header
LB: loop body
LE: loop exit
PB: predicated region body
PF: predicated region fallthrough
CT: control target
= control target key end

     0   :  { %8 = vsyncpa [#allocation4], 0  ;;  %s1895_s0 = inlined_call_operand.hbm [shape: bf16[128,1152], index: 0, kind: input, shape index: {}]   ;;  %s1896_s1 = inlined_call_operand.hbm [shape: bf16[1152,128], index: 1, kind: input, shape index: {}]   ;;  %s1897_s2 = inlined_call_operand.hbm [shape: f32[1,128], index: 2, kind: input, shape index: {}]   ;;  %s1898_s3 = inlined_call_operand.hbm [shape: f32[128,128], index: 3, kind: output, shape index: {}]  }
   0x1   :  { %10 = vsyncpa [#allocation4 + $0x1], 0 }
   0x2   :  { %11 = vsyncpa [#allocation7], 0 }
   0x3   :  { %13 = vsyncpa [#allocation7 + $0x1], 0 }
   0x4   :  { %14 = vsyncpa [#allocation5], 0  ;;  %s1614_s12 = smov 0   ;;  %s1616_s13 = smov 0  }
   0x5   :  { %s1618_s14 = smov 0   ;;  %s1620_s15 = smov 0  }
   0x6   :  { %s1622_s16 = smov 0   ;;  %s1624_s17 = smov 0  }
   0x7 LB: > { %s1643_s18 = sadd.s32 4294967295, %s1580_s17   ;;  %s48_s19 = sadd.s32 1, %s1568_s14  ;;  %s1580_s17 = sphi %s1624_s17, %s20_s17   ;;  %s1576_s16 = sphi %s1622_s16, %s1916_s16   ;;  %s1572_s15 = sphi %s1620_s15, %s1915_s15   ;;  %s1568_s14 = sphi %s1618_s14, %s1914_s14   ;;  %s1564_s13 = sphi %s1616_s13, %s1913_s13   ;;  %s1560_s12 = sphi %s1614_s12, %s1912_s12  }
   0x8   : > { %p55_p0 = scmp.ne.s32.totalorder %s1568_s14, %s1564_s13  ;;  %p56_p1 = scmp.eq.s32.totalorder %s1580_s17, 0 }
   0x9   : > { %p61_p2 = scmp.ne.s32.totalorder %s1564_s13, %s1560_s12  ;;  %p1899_p3 = scmp.eq.s32.totalorder %s1643_s18, 0 }
   0xa   : > { %p57_p4 = por %p56_p1, %p55_p0  ;;  %p1083_p5 = scmp.ge.s32.totalorder %s1580_s17, 1 }
   0xb   : > { %p1654_p6 = por %p1899_p3, %p61_p2  ;;  %p154_p7 = scmp.lt.s32.totalorder %s1580_s17, 4 }
   0xc   : > { %s1582_s22 = smov [#allocation8]   ;;  %p1286_p10 = scmp.lt.s32.totalorder %s1580_s17, 3 }
   0xd   : > { %s1903_s20 = scalar_select %p1654_p6, 1, 0 }
   0xe   : > { %p1659_p8 = pnand %p1083_p5, %p154_p7  ;;  %s169_s23 = sshll.u32 %s1582_s22, 4  ;;  %s170_s23 = int_to_ptr.vmem [resolvable:$true] %s169_s23 }
   0xf   : > { %s180_s24 = sand.u32 1, %s1568_s14   ;;  %p1673_p12 = pnand %p1286_p10, %p57_p4 }
  0x10   : > { %s1904_s21 = scalar_select %p1659_p8, 1, 0 }
  0x11   : > { %p1274_p9 = pneg %p1659_p8  ;;  %s1404_s29 = scalar_lea.hbm %s1897_s2, 16 }
  0x12   : > { %s1906_s26 = scalar_select %p1673_p12, 1, 0 }
  0x13   : > { %p1669_p11 = pnand %p1274_p9, %p1899_p3  ;;  %p1405_p13 = scmp.ne.s32.totalorder %s1897_s2, %s1404_s29 }
  0x14   : > { %p1411_p5 = scmp.lt.u32.totalorder %s1404_s29, %s1897_s2 }
  0x15   : > { %p1406_p0 = pneg %p1669_p11 }
  0x17   : > { %p1407_p1 = pnand %p1406_p0, %p1405_p13 }
  0x19   : > { %p1408_p2 = pneg %p1407_p1 }
  0x1b   : > { %p1413_p4 = pnand %p1411_p5, %p1408_p2 }
  0x1d   : > { %1416 = shalt.err (!%p1413_p4)
}
  0x1e   : > { %s1417_s7 = scalar_lea.vmem %s170_s23, 16  ;;  %s1424_s8 = scalar_lea.vmem %s170_s23, 32 }
  0x1f   : > { %p1418_p7 = scmp.ne.s32.totalorder %s170_s23, %s1417_s7  ;;  %p1425_p3 = scmp.lt.s32.totalorder %s170_s23, %s170_s23 }
  0x20   : > { %p1426_p6 = scmp.lt.s32.totalorder %s1424_s8, %s1417_s7 }
  0x21   : > { %p1420_p9 = pnand %p1418_p7, %p1406_p0 }
  0x22   : > { %p1427_p8 = por %p1426_p6, %p1425_p3 }
  0x23   : > { %p1421_p10 = pneg %p1420_p9 }
  0x25   : > { %p1428_p12 = pnand %p1427_p8, %p1421_p10 }
  0x27   : > { %1431 = shalt.err (!%p1428_p12)
}
  0x28   : > { %1277 = dma.hbm_to_vmem [thread:$0]  (!%p1669_p11), %s1897_s2, 16, %s170_s23, [#allocation7]  }
  0x29   : > { %s32_s11 = sadd.s32 1, %s1576_s16  ;;  %s1696_s12 = smul.u32 192, %s180_s24 }
  0x2a   : > { %p33_p3 = scmp.ge.s32.totalorder %s32_s11, 3  ;;  %s1145_s22 = smul.u32 192, %s1576_s16 }
  0x2b   : > { %s184_s23 = scalar_lea.vmem [#allocation3], %s1696_s12  ;;  %s204_s4 = sand.u32 1, %s1580_s17  }
  0x2c   : > { %s1918_s11 = smov (%p33_p3, %s32_s11), 0  ;;  %s1704_s28 = scalar_lea.hbm %s1895_s0, %s1145_s22 }
  0x2d   : > { %s194_s29 = sshll.u32 %s184_s23, 4  ;;  %s44_s30 = ssub.s32 %s1576_s16, %s1918_s11  ;;  %s1709_s29 = int_to_ptr.vmem [resolvable:$true] %s194_s29 }
  0x2e   : > { %p46_p6 = scmp.eq.s32.totalorder %s44_s30, 0  ;;  %s1719_s6 = scalar_lea.sflag [#allocation4], %s180_s24 }
  0x2f   : > { %s1432_s7 = scalar_lea.hbm %s1704_s28, 3072  ;;  %p1907_p11 = scmp.ne.s32.totalorder %s1906_s26, 0 }
  0x30   : > { %s1715_s5 = scalar_select %p46_p6, %s1568_s14, %s48_s19  }
  0x31   : > { %p1433_p8 = scmp.ne.s32.totalorder %s1704_s28, %s1432_s7  ;;  %p1434_p12 = pneg %p1907_p11 }
  0x32   : > { %s1437_s10 = scalar_lea.hbm %s1895_s0, 9216  ;;  %p1438_p1 = scmp.lt.u32.totalorder %s1704_s28, %s1895_s0 }
  0x33   : > { %p1435_p13 = pnand %p1434_p12, %p1433_p8  ;;  %p1439_p2 = scmp.lt.u32.totalorder %s1437_s10, %s1432_s7 }
  0x34   : > { %p1441_p4 = scmp.lt.u32.totalorder %s1432_s7, %s1704_s28 }
  0x35   : > { %p1436_p0 = pneg %p1435_p13  ;;  %p1440_p5 = por %p1439_p2, %p1438_p1 }
  0x37   : > { %p1442_p7 = por %p1441_p4, %p1440_p5 }
  0x39   : > { %p1443_p9 = pnand %p1442_p7, %p1436_p0 }
  0x3b   : > { %1446 = shalt.err (!%p1443_p9)
}
  0x3c   : > { %s1447_s19 = scalar_lea.vmem %s1709_s29, 3072  ;;  %s1583_s24 = smov [#allocation3]  }
  0x3d   : > { %p1448_p10 = scmp.ne.s32.totalorder %s1709_s29, %s1447_s19  ;;  %s1452_s27 = sshll.u32 %s1583_s24, 4  ;;  %s1453_s27 = int_to_ptr.vmem [resolvable:$false] %s1452_s27 }
  0x3e   : > { %s1454_s23 = scalar_lea.vmem %s1453_s27, 6144  ;;  %p1455_p8 = scmp.lt.s32.totalorder %s1709_s29, %s1453_s27 }
  0x3f   : > { %p1450_p3 = pnand %p1448_p10, %p1434_p12  ;;  %p1456_p13 = scmp.lt.s32.totalorder %s1454_s23, %s1447_s19 }
  0x41   : > { %p1451_p6 = pneg %p1450_p3  ;;  %p1457_p1 = por %p1456_p13, %p1455_p8 }
  0x43   : > { %p1458_p2 = pnand %p1457_p1, %p1451_p6 }
  0x45   : > { %1461 = shalt.err (!%p1458_p2)
}
  0x46   : > { %s1584_s30 = smov 576   ;;  %s1585_s7 = smov 192  }
  0x47   : > { %s1586_s8 = smov 12   ;;  %s1146_s9 = smul.u32 3072, %s1576_s16 }
  0x48   : > { %1281 = dma.hbm_to_vmem [thread:$0]  (!%p1907_p11), %s1704_s28, 3072, %s1709_s29, %s1719_s6, %s1584_s30, %s1585_s7, %s1586_s8  }
  0x49   : > { %s208_s10 = scalar_lea.vmem [#allocation6], %s1696_s12  ;;  %s1754_s24 = scalar_lea.hbm %s1896_s1, %s1146_s9 }
  0x4a   : > { %s216_s22 = sshll.u32 %s208_s10, 4  ;;  %s1758_s27 = scalar_lea.sflag [#allocation7], %s204_s4  ;;  %s1749_s22 = int_to_ptr.vmem [resolvable:$true] %s216_s22 }
  0x4b   : > { %s1462_s23 = scalar_lea.hbm %s1754_s24, 3072  ;;  %s1467_s29 = scalar_lea.hbm %s1896_s1, 9216 }
  0x4c   : > { %p1463_p0 = scmp.ne.s32.totalorder %s1754_s24, %s1462_s23  ;;  %p1468_p7 = scmp.lt.u32.totalorder %s1754_s24, %s1896_s1 }
  0x4d   : > { %p1469_p9 = scmp.lt.u32.totalorder %s1467_s29, %s1462_s23  ;;  %p1471_p3 = scmp.lt.u32.totalorder %s1462_s23, %s1754_s24 }
  0x4e   : > { %p1465_p5 = pnand %p1463_p0, %p1434_p12 }
  0x4f   : > { %p1470_p10 = por %p1469_p9, %p1468_p7 }
  0x50   : > { %p1466_p4 = pneg %p1465_p5 }
  0x51   : > { %p1472_p6 = por %p1471_p3, %p1470_p10 }
  0x53   : > { %p1473_p8 = pnand %p1472_p6, %p1466_p4 }
  0x55   : > { %1476 = shalt.err (!%p1473_p8)
}
  0x56   : > { %s1477_s4 = scalar_lea.vmem %s1749_s22, 3072  ;;  %s1587_s7 = smov [#allocation6]  }
  0x57   : > { %p1478_p13 = scmp.ne.s32.totalorder %s1749_s22, %s1477_s4  ;;  %s1482_s8 = sshll.u32 %s1587_s7, 4  ;;  %s1483_s8 = int_to_ptr.vmem [resolvable:$false] %s1482_s8 }
  0x58   : > { %s1484_s9 = scalar_lea.vmem %s1483_s8, 6144  ;;  %p1485_p0 = scmp.lt.s32.totalorder %s1749_s22, %s1483_s8 }
  0x59   : > { %p1480_p1 = pnand %p1478_p13, %p1434_p12  ;;  %p1486_p5 = scmp.lt.s32.totalorder %s1484_s9, %s1477_s4 }
  0x5b   : > { %p1481_p2 = pneg %p1480_p1  ;;  %p1487_p7 = por %p1486_p5, %p1485_p0 }
  0x5d   : > { %p1488_p9 = pnand %p1487_p7, %p1481_p2 }
  0x5f   : > { %1491 = shalt.err (!%p1488_p9)
}
  0x60   : > { %s1588_s10 = smov 64   ;;  %s1589_s25 = smov 4  }
  0x61   : > { %1284 = dma.hbm_to_vmem [thread:$0]  (!%p1907_p11), %s1754_s24, 3072, %s1749_s22, %s1758_s27, %s1588_s10, %s1588_s10, %s1589_s25  }
  0x62   : > { %p1908_p12 = scmp.ne.s32.totalorder %s1904_s21, 0 }
  0x63   : > { %s230_s19 = sand.u32 (!%p1908_p12), 1, %s1564_s13   ;;  %p1909_p4 = scmp.ne.s32.totalorder (!%p1908_p12), %s1903_s20, 0 }
  0x64   : > { %228 = sbr.rel (%p1908_p12) target bundleno = 473 (0x1d9), region = 32  ;;  %s231_s12 = scalar_lea.sflag (!%p1908_p12), [#allocation4], %s230_s19 }
  0x65   : > { %s1261_s23 = smul.u32 (!%p1908_p12), 192, %s230_s19 }
  0x67   : > { %s1787_s28 = scalar_lea.vmem (!%p1908_p12), [#allocation3], %s1261_s23 }
  0x6b   : > { %1543 = dma.done.wait (%p1909_p4), %s231_s12, 3072  }
  0x6c   : > { %1545 = vsyncadd (%p1909_p4), %s231_s12, 4294964224  ;;  %s239_s29 = sand.u32 1, %s1643_s18   ;;  %s1794_s22 = scalar_lea.vmem [#allocation6], %s1261_s23 }
  0x6d   : > { %s240_s26 = scalar_lea.sflag [#allocation7], %s239_s29 }
  0x6e   : > { %1547 = dma.done.wait (%p1909_p4), %s240_s26, 3072  }
  0x6f   : > { %1549 = vsyncadd (%p1909_p4), %s240_s26, 4294964224  ;;  %p1910_p11 = scmp.eq.s32.totalorder %s1643_s18, 0 }
  0x71   : > { %1551 = dma.done.wait (%p1910_p11), [#allocation7], 16   ;;  %p1911_p10 = pmov %p1910_p11 }
  0x72   : > { %p1090_p3 = scmp.ne.s32.totalorder %s1572_s15, 0 }
  0x73   : > { %1553 = vsyncadd (%p1911_p10), [#allocation7], 4294967280  ;;  %v1590_v0 = vmov (!%p1090_p3), 0.0  }
  0x74   : > { %278 = sbr.rel (%p1090_p3) target bundleno = 124 (0x7c), region = 48  ;;  %279 = vst [vmem:[#allocation2] sm:$0xff] (!%p1090_p3), %v1590_v0  ;;  %280 = vst [vmem:[#allocation2 + $0x8] sm:$0xff] (!%p1090_p3), %v1590_v0 }
  0x75   : > { %281 = vst [vmem:[#allocation2 + $0x10] sm:$0xff] (!%p1090_p3), %v1590_v0  ;;  %282 = vst [vmem:[#allocation2 + $0x18] sm:$0xff] (!%p1090_p3), %v1590_v0 }
  0x76   : > { %283 = vst [vmem:[#allocation2 + $0x20] sm:$0xff] (!%p1090_p3), %v1590_v0  ;;  %284 = vst [vmem:[#allocation2 + $0x28] sm:$0xff] (!%p1090_p3), %v1590_v0 }
  0x77   : > { %285 = vst [vmem:[#allocation2 + $0x30] sm:$0xff] (!%p1090_p3), %v1590_v0  ;;  %286 = vst [vmem:[#allocation2 + $0x38] sm:$0xff] (!%p1090_p3), %v1590_v0 }
  0x78   : > { %287 = vst [vmem:[#allocation2 + $0x40] sm:$0xff] (!%p1090_p3), %v1590_v0  ;;  %288 = vst [vmem:[#allocation2 + $0x48] sm:$0xff] (!%p1090_p3), %v1590_v0 }
  0x79   : > { %289 = vst [vmem:[#allocation2 + $0x50] sm:$0xff] (!%p1090_p3), %v1590_v0  ;;  %290 = vst [vmem:[#allocation2 + $0x58] sm:$0xff] (!%p1090_p3), %v1590_v0 }
  0x7a   : > { %291 = vst [vmem:[#allocation2 + $0x60] sm:$0xff] (!%p1090_p3), %v1590_v0  ;;  %292 = vst [vmem:[#allocation2 + $0x68] sm:$0xff] (!%p1090_p3), %v1590_v0 }
  0x7b   : > { %293 = vst [vmem:[#allocation2 + $0x70] sm:$0xff] %v1590_v0  ;;  %294 = vst [vmem:[#allocation2 + $0x78] sm:$0xff] %v1590_v0 }
  0x7c PF: > { %v1348_v1 = vld [vmem:[%s1794_s22 + $0x40] sm:$0xff]   ;;  %v1351_v4 = vld [vmem:[%s1794_s22 + $0x48] sm:$0xff]   ;;  %v1354_v7 = vld [vmem:[%s1794_s22 + $0x50] sm:$0xff]   ;;  %p1139_p6 = scmp.ne.s32.totalorder %s1572_s15, 2 }
  0x7d   : > { %v1349_v2 = vld [vmem:[%s1794_s22] sm:$0xff]   ;;  %1147 = vmatprep.subr.bf16.mxu0 %v1348_v1  ;;  %v1352_v5 = vld [vmem:[%s1794_s22 + $0x8] sm:$0xff]   ;;  %v1355_v8 = vld [vmem:[%s1794_s22 + $0x10] sm:$0xff]  }
  0x7e   : > { %v1350_v3 = vld [vmem:[%s1794_s22 + $0x80] sm:$0xff]   ;;  %1148 = vmatpush3.bf16.msra.mxu0 %v1349_v2  ;;  %v1353_v6 = vld [vmem:[%s1794_s22 + $0x88] sm:$0xff]   ;;  %v1356_v9 = vld [vmem:[%s1794_s22 + $0x90] sm:$0xff]  }
  0x7f   : > { %1227 = vmatprep.subr.bf16.mxu1 %v1350_v3  ;;  %1149 = vmatprep.subr.bf16.mxu0 %v1351_v4  ;;  %v1357_v10 = vld [vmem:[%s1794_s22 + $0x58] sm:$0xff]   ;;  %v1360_v13 = vld [vmem:[%s1794_s22 + $0x60] sm:$0xff]   ;;  %v1363_v16 = vld [vmem:[%s1794_s22 + $0x68] sm:$0xff]  }
  0x80   : > { %1228 = vmatpush3.bf16.msra.mxu1 %v1350_v3  ;;  %v1358_v11 = vld [vmem:[%s1794_s22 + $0x18] sm:$0xff]   ;;  %v1362_v14 = vld [vmem:[%s1794_s22 + $0xa0] sm:$0xff]   ;;  %v1365_v17 = vld [vmem:[%s1794_s22 + $0xa8] sm:$0xff]  }
  0x81   : > { %1229 = vmatprep.subr.bf16.mxu1 %v1353_v6  ;;  %v1359_v12 = vld [vmem:[%s1794_s22 + $0x98] sm:$0xff]   ;;  %v1361_v15 = vld [vmem:[%s1794_s22 + $0x20] sm:$0xff]   ;;  %v1364_v18 = vld [vmem:[%s1794_s22 + $0x28] sm:$0xff]  }
  0x82   : > { %1150 = vmatpush3.bf16.msra.mxu0 %v1352_v5  ;;  %v1366_v19 = vld [vmem:[%s1794_s22 + $0x70] sm:$0xff]   ;;  %v1369_v22 = vld [vmem:[%s1794_s22 + $0x78] sm:$0xff]   ;;  %v1372_v27 = vld [vmem:[%s1787_s28] ss:$12 sps:$4 sm:$0xff]  }
  0x83   : > { %1151 = vmatprep.subr.bf16.mxu0 %v1354_v7  ;;  %v1367_v20 = vld [vmem:[%s1794_s22 + $0x30] sm:$0xff]   ;;  %v1371_v23 = vld [vmem:[%s1794_s22 + $0xb8] sm:$0xff]   ;;  %v1376_v29 = vld [vmem:[%s1787_s28 + $0x20] ss:$12 sps:$4 sm:$0xff]  }
  0x84   : > { %1230 = vmatpush3.bf16.msra.mxu1 %v1353_v6  ;;  %v1368_v21 = vld [vmem:[%s1794_s22 + $0xb0] sm:$0xff]   ;;  %v1370_v26 = vld [vmem:[%s1794_s22 + $0x38] sm:$0xff]   ;;  %v1392_v37 = vld [vmem:[%s1787_s28 + $0x80] ss:$12 sps:$4 sm:$0xff]  }
  0x85   : > { %1231 = vmatprep.subr.bf16.mxu1 %v1356_v9  ;;  %v1374_v24 = vld [vmem:[%s1787_s28 + $0x4] ss:$12 sps:$4 sm:$0xff]   ;;  %v1375_v25 = vld [vmem:[%s1787_s28 + $0x8] ss:$12 sps:$4 sm:$0xff]   ;;  %v1385_v36 = vld [vmem:[%s1787_s28 + $0x4c] ss:$12 sps:$4 sm:$0xff]  }
  0x86   : > { %1152 = vmatpush3.bf16.msra.mxu0 %v1355_v8  ;;  %695 = vmatprep.mubr.bf16.mxu0 %v1374_v24  ;;  %v1377_v28 = vld [vmem:[%s1787_s28 + $0x1c] ss:$12 sps:$4 sm:$0xff]   ;;  %v1383_v30 = vld [vmem:[%s1787_s28 + $0x38] ss:$12 sps:$4 sm:$0xff]   ;;  %v1380_v32 = vld [vmem:[%s1787_s28 + $0x34] ss:$12 sps:$4 sm:$0xff]  }
  0x87   : > { %1153 = vmatprep.subr.bf16.mxu0 %v1357_v10  ;;  %1243 = vmatprep.mubr.bf16.mxu1 %v1375_v25  ;;  %v1379_v31 = vld [vmem:[%s1787_s28 + $0x18] ss:$12 sps:$4 sm:$0xff]   ;;  %v1384_v33 = vld [vmem:[%s1787_s28 + $0x50] ss:$12 sps:$4 sm:$0xff]   ;;  %v1391_v34 = vld [vmem:[%s1787_s28 + $0x68] ss:$12 sps:$4 sm:$0xff]  }
  0x88   : > { %1232 = vmatpush3.bf16.msra.mxu1 %v1356_v9  ;;  %v1382_v35 = vld [vmem:[%s1787_s28 + $0x30] ss:$12 sps:$4 sm:$0xff]   ;;  %v1399_v38 = vld [vmem:[%s1787_s28 + $0x98] ss:$12 sps:$4 sm:$0xff]   ;;  %v1387_v39 = vld [vmem:[%s1787_s28 + $0x48] ss:$12 sps:$4 sm:$0xff]  }
  0x89   : > { %1233 = vmatprep.subr.bf16.mxu1 %v1359_v12  ;;  %v1388_v40 = vld [vmem:[%s1787_s28 + $0x64] ss:$12 sps:$4 sm:$0xff]   ;;  %v1390_v42 = vld [vmem:[%s1787_s28 + $0x60] ss:$12 sps:$4 sm:$0xff]   ;;  %v1393_v43 = vld [vmem:[%s1787_s28 + $0x7c] ss:$12 sps:$4 sm:$0xff]  }
  0x8a   : > { %1154 = vmatpush3.bf16.msra.mxu0 %v1358_v11  ;;  %v1400_v41 = vld [vmem:[%s1787_s28 + $0xb0] ss:$12 sps:$4 sm:$0xff]   ;;  %v1395_v44 = vld [vmem:[%s1787_s28 + $0x78] ss:$12 sps:$4 sm:$0xff]   ;;  %v1396_v45 = vld [vmem:[%s1787_s28 + $0x94] ss:$12 sps:$4 sm:$0xff]  }
  0x8b   : > { %1155 = vmatprep.subr.bf16.mxu0 %v1360_v13  ;;  %v1398_v46 = vld [vmem:[%s1787_s28 + $0x90] ss:$12 sps:$4 sm:$0xff]   ;;  %v1401_v47 = vld [vmem:[%s1787_s28 + $0xac] ss:$12 sps:$4 sm:$0xff]   ;;  %v1403_v48 = vld [vmem:[%s1787_s28 + $0xa8] ss:$12 sps:$4 sm:$0xff]  }
  0x8c   : > { %1234 = vmatpush3.bf16.msra.mxu1 %v1359_v12  ;;  %v295_v55 = vld [vmem:[#allocation2] sm:$0xff]  ;;  %v296_v60 = vld [vmem:[#allocation2 + $0x8] sm:$0xff]  ;;  %v297_v6 = vld [vmem:[#allocation2 + $0x10] sm:$0xff] }
  0x8d   : > { %1235 = vmatprep.subr.bf16.mxu1 %v1362_v14  ;;  %v298_v12 = vld [vmem:[#allocation2 + $0x18] sm:$0xff] }
  0x8e   : > { %1156 = vmatpush3.bf16.msra.mxu0 %v1361_v15 }
  0x8f   : > { %1157 = vmatprep.subr.bf16.mxu0 %v1363_v16 }
  0x90   : > { %1236 = vmatpush3.bf16.msra.mxu1 %v1362_v14 }
  0x91   : > { %1237 = vmatprep.subr.bf16.mxu1 %v1365_v17 }
  0x92   : > { %1158 = vmatpush3.bf16.msra.mxu0 %v1364_v18 }
  0x93   : > { %1159 = vmatprep.subr.bf16.mxu0 %v1366_v19 }
  0x94   : > { %1238 = vmatpush3.bf16.msra.mxu1 %v1365_v17 }
  0x95   : > { %1239 = vmatprep.subr.bf16.mxu1 %v1368_v21 }
  0x96   : > { %1160 = vmatpush3.bf16.msra.mxu0 %v1367_v20 }
  0x97   : > { %1161 = vmatprep.subr.bf16.mxu0 %v1369_v22 }
  0x98   : > { %1240 = vmatpush3.bf16.msra.mxu1 %v1368_v21 }
  0x99   : > { %1241 = vmatprep.subr.bf16.mxu1 %v1371_v23 }
  0x9a   : > { %1162 = vmatpush3.bf16.msra.mxu0 %v1370_v26 }
  0x9c   : > { %1242 = vmatpush3.bf16.msra.mxu1 %v1371_v23  ;;  %v299_v23 = vld [vmem:[#allocation2 + $0x20] sm:$0xff] }
  0x9d   : > { %696 = vmatmul.mubr.bf16.vlgmr.msra.gmra.mrb[0].mxu0 %v1372_v27 }
  0x9e   : > { %703 = vmatprep.mubr.bf16.mxu0 %v1377_v28  ;;  %v300_v28 = vld [vmem:[#allocation2 + $0x28] sm:$0xff] }
  0x9f   : > { %1244 = vmatmul.mubr.bf16.vlgmr.msra.gmra.mrb[0].mxu1 %v1376_v29 }
  0xa0   : > { %1247 = vmatprep.mubr.bf16.mxu1 %v1383_v30 }
  0xa5   : > { %704 = vmatmul.mubr.bf16.gmra.mrb[4].mxu0 %v1379_v31 }
  0xa6   : > { %711 = vmatprep.mubr.bf16.mxu0 %v1380_v32 }
  0xa7   : > { %1248 = vmatmul.mubr.bf16.gmra.mrb[4].mxu1 %v1384_v33 }
  0xa8   : > { %1251 = vmatprep.mubr.bf16.mxu1 %v1391_v34 }
  0xad   : > { %712 = vmatmul.mubr.bf16.gmra.mrb[8].mxu0 %v1382_v35 }
  0xae   : > { %719 = vmatprep.mubr.bf16.mxu0 %v1385_v36 }
  0xaf   : > { %1252 = vmatmul.mubr.bf16.gmra.mrb[8].mxu1 %v1392_v37 }
  0xb0   : > { %1255 = vmatprep.mubr.bf16.mxu1 %v1399_v38  ;;  %v301_v38 = vld [vmem:[#allocation2 + $0x30] sm:$0xff] }
  0xb5   : > { %720 = vmatmul.mubr.bf16.gmra.mrb[12].mxu0 %v1387_v39 }
  0xb6   : > { %727 = vmatprep.mubr.bf16.mxu0 %v1388_v40 }
  0xb7   : > { %1256 = vmatmul.mubr.bf16.gmra.mrb[12].mxu1 %v1400_v41 }
  0xbd   : > { %728 = vmatmul.mubr.bf16.gmra.mrb[16].mxu0 %v1390_v42 }
  0xbe   : > { %735 = vmatprep.mubr.bf16.mxu0 %v1393_v43 }
  0xc5   : > { %736 = vmatmul.mubr.bf16.gmra.mrb[20].mxu0 %v1395_v44  ;;  %v302_v44 = vld [vmem:[#allocation2 + $0x38] sm:$0xff] }
  0xc6   : > { %743 = vmatprep.mubr.bf16.mxu0 %v1396_v45 }
  0xcd   : > { %744 = vmatmul.mubr.bf16.gmra.mrb[24].mxu0 %v1398_v46 }
  0xce   : > { %751 = vmatprep.mubr.bf16.mxu0 %v1401_v47 }
  0xd5   : > { %752 = vmatmul.mubr.bf16.gmra.mrb[28].mxu0 %v1403_v48 }
 0x170   : > { %v1163_v49 = vpop.f32.mrb[0].mxu0 }
 0x171   : > { %v1164_v50 = vpop.f32.mrb[1].mxu0 }
 0x172   : > { %v1165_v51 = vadd.f32 %v1164_v50, %v1163_v49  ;;  %v1166_v52 = vpop.f32.mrb[2].mxu0  ;;  %v1245_v53 = vpop.f32.mrb[0].mxu1 }
 0x173   : > { %v1167_v54 = vpop.f32.mrb[3].mxu0  ;;  %v794_v56 = vpop.f32.mrb[1].mxu1 }
 0x174   : > { %v1168_v57 = vadd.f32 %v1167_v54, %v1166_v52  ;;  %v795_v58 = vadd.f32 %v1165_v51, %v794_v56  ;;  %v1246_v59 = vpop.f32.mrb[2].mxu1  ;;  %v303_v54 = vld [vmem:[#allocation2 + $0x40] sm:$0xff] }
 0x175   : > { %v797_v61 = vpop.f32.mrb[3].mxu1 }
 0x176   : > { %v857_v62 = vadd.f32 %v795_v58, %v295_v55  ;;  %v798_v63 = vadd.f32 %v1168_v57, %v797_v61  ;;  %v304_v57 = vld [vmem:[#allocation2 + $0x48] sm:$0xff] }
 0x178   : > { %873 = vst [vmem:[#allocation2] sm:$0xff] %v857_v62  ;;  %v858_v0 = vadd.f32 %v798_v63, %v296_v60  ;;  %v1169_v1 = vpop.f32.mrb[4].mxu0 }
 0x179   : > { %v1170_v2 = vpop.f32.mrb[5].mxu0 }
 0x17a   : > { %874 = vst [vmem:[#allocation2 + $0x8] sm:$0xff] %v858_v0  ;;  %v1171_v3 = vadd.f32 %v1170_v2, %v1169_v1  ;;  %v1172_v4 = vpop.f32.mrb[6].mxu0  ;;  %v1249_v5 = vpop.f32.mrb[4].mxu1  ;;  %v305_v1 = vld [vmem:[#allocation2 + $0x50] sm:$0xff] }
 0x17b   : > { %v1173_v7 = vpop.f32.mrb[7].mxu0  ;;  %v810_v8 = vpop.f32.mrb[5].mxu1 }
 0x17c   : > { %v803_v9 = vadd.f32 %v1245_v53, %v1171_v3  ;;  %v1174_v10 = vadd.f32 %v1173_v7, %v1172_v4  ;;  %v1250_v11 = vpop.f32.mrb[6].mxu1 }
 0x17d   : > { %v813_v13 = vpop.f32.mrb[7].mxu1 }
 0x17e   : > { %v859_v14 = vadd.f32 %v803_v9, %v297_v6  ;;  %v806_v15 = vadd.f32 %v1246_v59, %v1174_v10 }
 0x180   : > { %875 = vst [vmem:[#allocation2 + $0x10] sm:$0xff] %v859_v14  ;;  %v860_v16 = vadd.f32 %v806_v15, %v298_v12  ;;  %v1175_v17 = vpop.f32.mrb[8].mxu0  ;;  %v307_v14 = vld [vmem:[#allocation2 + $0x60] sm:$0xff] }
 0x181   : > { %v1176_v18 = vpop.f32.mrb[9].mxu0 }
 0x182   : > { %876 = vst [vmem:[#allocation2 + $0x18] sm:$0xff] %v860_v16  ;;  %v1177_v19 = vadd.f32 %v1176_v18, %v1175_v17  ;;  %v1178_v20 = vpop.f32.mrb[10].mxu0  ;;  %v1253_v21 = vpop.f32.mrb[8].mxu1  ;;  %v308_v17 = vld [vmem:[#allocation2 + $0x68] sm:$0xff] }
 0x183   : > { %v1179_v22 = vpop.f32.mrb[11].mxu0  ;;  %v826_v24 = vpop.f32.mrb[9].mxu1 }
 0x184   : > { %v1180_v25 = vadd.f32 %v1179_v22, %v1178_v20  ;;  %v811_v26 = vadd.f32 %v1177_v19, %v810_v8  ;;  %v1254_v27 = vpop.f32.mrb[10].mxu1 }
 0x185   : > { %v829_v29 = vpop.f32.mrb[11].mxu1 }
 0x186   : > { %v861_v30 = vadd.f32 %v811_v26, %v299_v23  ;;  %v814_v31 = vadd.f32 %v1180_v25, %v813_v13  ;;  %v309_v25 = vld [vmem:[#allocation2 + $0x70] sm:$0xff] }
 0x188   : > { %877 = vst [vmem:[#allocation2 + $0x20] sm:$0xff] %v861_v30  ;;  %v862_v32 = vadd.f32 %v814_v31, %v300_v28  ;;  %v1181_v33 = vpop.f32.mrb[12].mxu0 }
 0x189   : > { %v1182_v34 = vpop.f32.mrb[13].mxu0 }
 0x18a   : > { %878 = vst [vmem:[#allocation2 + $0x28] sm:$0xff] %v862_v32  ;;  %v1183_v35 = vadd.f32 %v1182_v34, %v1181_v33  ;;  %v1184_v36 = vpop.f32.mrb[14].mxu0  ;;  %v1257_v37 = vpop.f32.mrb[12].mxu1  ;;  %v893_v33 = vld [vmem:[#allocation2] sm:$0xff] (!%p1139_p6) }
 0x18b   : > { %v1185_v39 = vpop.f32.mrb[15].mxu0  ;;  %v842_v40 = vpop.f32.mrb[13].mxu1  ;;  %v1140_v34 = vld [vmem:[#allocation8] ss:$0 sm:$0xff] (!%p1139_p6) }
 0x18c   : > { %v819_v41 = vadd.f32 %v1249_v5, %v1183_v35  ;;  %v1186_v42 = vadd.f32 %v1185_v39, %v1184_v36  ;;  %v1258_v43 = vpop.f32.mrb[14].mxu1  ;;  %v306_v5 = vld [vmem:[#allocation2 + $0x58] sm:$0xff]  ;;  %v894_v35 = vld [vmem:[#allocation2 + $0x8] sm:$0xff] (!%p1139_p6)  ;;  %v916_v36 = vadd.f32 (!%p1139_p6), %v1140_v34, %v893_v33  ;;  %v895_v39 = vld [vmem:[#allocation2 + $0x10] sm:$0xff] (!%p1139_p6) }
 0x18d   : > { %v845_v45 = vpop.f32.mrb[15].mxu1 }
 0x18e   : > { %v863_v46 = vadd.f32 %v819_v41, %v301_v38  ;;  %v822_v47 = vadd.f32 %v1250_v11, %v1186_v42  ;;  %v917_v38 = vadd.f32 (!%p1139_p6), %v1140_v34, %v894_v35  ;;  %v918_v42 = vadd.f32 (!%p1139_p6), %v1140_v34, %v895_v39 }
 0x18f   : > { %v897_v41 = vld [vmem:[#allocation2 + $0x20] sm:$0xff] (!%p1139_p6) }
 0x190   : > { %879 = vst [vmem:[#allocation2 + $0x30] sm:$0xff] %v863_v46  ;;  %v864_v48 = vadd.f32 %v822_v47, %v302_v44  ;;  %v1187_v49 = vpop.f32.mrb[16].mxu0  ;;  %v920_v44 = vadd.f32 (!%p1139_p6), %v1140_v34, %v897_v41  ;;  %v932_v47 = vmax.f32 (!%p1139_p6), %v916_v36, 0.0 }
 0x191   : > { %v1188_v50 = vpop.f32.mrb[17].mxu0 }
 0x192   : > { %880 = vst [vmem:[#allocation2 + $0x38] sm:$0xff] %v864_v48  ;;  %v1189_v51 = vadd.f32 %v1188_v50, %v1187_v49  ;;  %v1190_v52 = vpop.f32.mrb[18].mxu0  ;;  %v933_v48 = vmax.f32 (!%p1139_p6), %v917_v38, 0.0  ;;  %948 = vst [vmem:[#allocation9] sm:$0xff] (!%p1139_p6), %v932_v47 }
 0x193   : > { %v1191_v53 = vpop.f32.mrb[19].mxu0 }
 0x194   : > { %v1192_v55 = vadd.f32 %v1191_v53, %v1190_v52  ;;  %v827_v56 = vadd.f32 %v1189_v51, %v826_v24  ;;  %949 = vst [vmem:[#allocation9 + $0x8] sm:$0xff] (!%p1139_p6), %v933_v48 }
 0x196   : > { %v865_v58 = vadd.f32 %v827_v56, %v303_v54  ;;  %v830_v59 = vadd.f32 %v1192_v55, %v829_v29  ;;  %v310_v29 = vld [vmem:[#allocation2 + $0x78] sm:$0xff]  ;;  %v934_v54 = vmax.f32 (!%p1139_p6), %v918_v42, 0.0  ;;  %v936_v56 = vmax.f32 (!%p1139_p6), %v920_v44, 0.0 }
 0x197   : > { %v899_v46 = vld [vmem:[#allocation2 + $0x30] sm:$0xff] (!%p1139_p6) }
 0x198   : > { %881 = vst [vmem:[#allocation2 + $0x40] sm:$0xff] %v865_v58  ;;  %v866_v60 = vadd.f32 %v830_v59, %v304_v57  ;;  %v1193_v61 = vpop.f32.mrb[20].mxu0  ;;  %v922_v50 = vadd.f32 (!%p1139_p6), %v1140_v34, %v899_v46  ;;  %950 = vst [vmem:[#allocation9 + $0x10] sm:$0xff] (!%p1139_p6), %v934_v54 }
 0x199   : > { %v1194_v62 = vpop.f32.mrb[21].mxu0  ;;  %952 = vst [vmem:[#allocation9 + $0x20] sm:$0xff] (!%p1139_p6), %v936_v56 }
 0x19a   : > { %882 = vst [vmem:[#allocation2 + $0x48] sm:$0xff] %v866_v60  ;;  %v1195_v63 = vadd.f32 %v1194_v62, %v1193_v61  ;;  %v1196_v0 = vpop.f32.mrb[22].mxu0  ;;  %v938_v62 = vmax.f32 (!%p1139_p6), %v922_v50, 0.0 }
 0x19b   : > { %v1197_v2 = vpop.f32.mrb[23].mxu0 }
 0x19c   : > { %v835_v3 = vadd.f32 %v1253_v21, %v1195_v63  ;;  %v1198_v4 = vadd.f32 %v1197_v2, %v1196_v0  ;;  %954 = vst [vmem:[#allocation9 + $0x30] sm:$0xff] (!%p1139_p6), %v938_v62 }
 0x19e   : > { %v867_v6 = vadd.f32 %v835_v3, %v305_v1  ;;  %v838_v7 = vadd.f32 %v1254_v27, %v1198_v4 }
 0x19f   : > { %v901_v51 = vld [vmem:[#allocation2 + $0x40] sm:$0xff] (!%p1139_p6) }
 0x1a0   : > { %883 = vst [vmem:[#allocation2 + $0x50] sm:$0xff] %v867_v6  ;;  %v868_v8 = vadd.f32 %v838_v7, %v306_v5  ;;  %v1199_v9 = vpop.f32.mrb[24].mxu0  ;;  %v924_v63 = vadd.f32 (!%p1139_p6), %v1140_v34, %v901_v51 }
 0x1a1   : > { %v1200_v10 = vpop.f32.mrb[25].mxu0  ;;  %v902_v52 = vld [vmem:[#allocation2 + $0x48] sm:$0xff] (!%p1139_p6) }
 0x1a2   : > { %884 = vst [vmem:[#allocation2 + $0x58] sm:$0xff] %v868_v8  ;;  %v1201_v11 = vadd.f32 %v1200_v10, %v1199_v9  ;;  %v1202_v12 = vpop.f32.mrb[26].mxu0  ;;  %v925_v0 = vadd.f32 (!%p1139_p6), %v1140_v34, %v902_v52  ;;  %v940_v7 = vmax.f32 (!%p1139_p6), %v924_v63, 0.0 }
 0x1a3   : > { %v1203_v13 = vpop.f32.mrb[27].mxu0 }
 0x1a4   : > { %v1204_v15 = vadd.f32 %v1203_v13, %v1202_v12  ;;  %v843_v16 = vadd.f32 %v1201_v11, %v842_v40  ;;  %v896_v40 = vld [vmem:[#allocation2 + $0x18] sm:$0xff] (!%p1139_p6)  ;;  %v941_v8 = vmax.f32 (!%p1139_p6), %v925_v0, 0.0  ;;  %956 = vst [vmem:[#allocation9 + $0x40] sm:$0xff] (!%p1139_p6), %v940_v7 }
 0x1a6   : > { %v869_v18 = vadd.f32 %v843_v16, %v307_v14  ;;  %v846_v19 = vadd.f32 %v1204_v15, %v845_v45  ;;  %v898_v45 = vld [vmem:[#allocation2 + $0x28] sm:$0xff] (!%p1139_p6)  ;;  %957 = vst [vmem:[#allocation9 + $0x48] sm:$0xff] (!%p1139_p6), %v941_v8 }
 0x1a7   : > { %v921_v49 = vadd.f32 (!%p1139_p6), %v1140_v34, %v898_v45  ;;  %v903_v53 = vld [vmem:[#allocation2 + $0x50] sm:$0xff] (!%p1139_p6) }
 0x1a8   : > { %885 = vst [vmem:[#allocation2 + $0x60] sm:$0xff] %v869_v18  ;;  %v870_v20 = vadd.f32 %v846_v19, %v308_v17  ;;  %v1205_v21 = vpop.f32.mrb[28].mxu0  ;;  %v926_v4 = vadd.f32 (!%p1139_p6), %v1140_v34, %v903_v53 }
 0x1a9   : > { %v1206_v22 = vpop.f32.mrb[29].mxu0  ;;  %v904_v58 = vld [vmem:[#allocation2 + $0x58] sm:$0xff] (!%p1139_p6)  ;;  %v937_v61 = vmax.f32 (!%p1139_p6), %v921_v49, 0.0 }
 0x1aa   : > { %886 = vst [vmem:[#allocation2 + $0x68] sm:$0xff] %v870_v20  ;;  %v1207_v23 = vadd.f32 %v1206_v22, %v1205_v21  ;;  %v1208_v24 = vpop.f32.mrb[30].mxu0  ;;  %v927_v5 = vadd.f32 (!%p1139_p6), %v1140_v34, %v904_v58  ;;  %v942_v11 = vmax.f32 (!%p1139_p6), %v926_v4, 0.0 }
 0x1ab   : > { %v1209_v26 = vpop.f32.mrb[31].mxu0  ;;  %953 = vst [vmem:[#allocation9 + $0x28] sm:$0xff] (!%p1139_p6), %v937_v61 }
 0x1ac   : > { %v851_v27 = vadd.f32 %v1257_v37, %v1207_v23  ;;  %v1210_v28 = vadd.f32 %v1209_v26, %v1208_v24  ;;  %892 = sbr.rel (%p1139_p6) target bundleno = 447 (0x1bf), region = 52  ;;  %v919_v37 = vadd.f32 (!%p1139_p6), %v1140_v34, %v896_v40  ;;  %v943_v12 = vmax.f32 (!%p1139_p6), %v927_v5, 0.0  ;;  %958 = vst [vmem:[#allocation9 + $0x50] sm:$0xff] (!%p1139_p6), %v942_v11 }
 0x1ae   : > { %v871_v30 = vadd.f32 %v851_v27, %v309_v25  ;;  %v854_v31 = vadd.f32 %v1258_v43, %v1210_v28  ;;  %v900_v43 = vld [vmem:[#allocation2 + $0x38] sm:$0xff] (!%p1139_p6)  ;;  %v935_v55 = vmax.f32 (!%p1139_p6), %v919_v37, 0.0  ;;  %959 = vst [vmem:[#allocation9 + $0x58] sm:$0xff] (!%p1139_p6), %v943_v12 }
 0x1af   : > { %v923_v57 = vadd.f32 (!%p1139_p6), %v1140_v34, %v900_v43  ;;  %v905_v59 = vld [vmem:[#allocation2 + $0x60] sm:$0xff] (!%p1139_p6) }
 0x1b0   : > { %887 = vst [vmem:[#allocation2 + $0x70] sm:$0xff] %v871_v30  ;;  %v872_v32 = vadd.f32 %v854_v31, %v310_v29  ;;  %951 = vst [vmem:[#allocation9 + $0x18] sm:$0xff] (!%p1139_p6), %v935_v55  ;;  %v928_v6 = vadd.f32 (!%p1139_p6), %v1140_v34, %v905_v59 }
 0x1b1   : > { %v906_v60 = vld [vmem:[#allocation2 + $0x68] sm:$0xff] (!%p1139_p6)  ;;  %v939_v3 = vmax.f32 (!%p1139_p6), %v923_v57, 0.0 }
 0x1b2   : > { %888 = vst [vmem:[#allocation2 + $0x78] sm:$0xff] %v872_v32  ;;  %v929_v9 = vadd.f32 (!%p1139_p6), %v1140_v34, %v906_v60  ;;  %v944_v13 = vmax.f32 (!%p1139_p6), %v928_v6, 0.0 }
 0x1b3   : > { %955 = vst [vmem:[#allocation9 + $0x38] sm:$0xff] %v939_v3 }
 0x1b4   : > { %v945_v15 = vmax.f32 %v929_v9, 0.0  ;;  %960 = vst [vmem:[#allocation9 + $0x60] sm:$0xff] %v944_v13 }
 0x1b6   : > { %961 = vst [vmem:[#allocation9 + $0x68] sm:$0xff] %v945_v15 }
 0x1b7   : > { %v907_v1 = vld [vmem:[#allocation2 + $0x70] sm:$0xff] }
 0x1b8   : > { %v930_v10 = vadd.f32 %v1140_v34, %v907_v1 }
 0x1b9   : > { %v908_v2 = vld [vmem:[#allocation2 + $0x78] sm:$0xff] }
 0x1ba   : > { %v931_v14 = vadd.f32 %v1140_v34, %v908_v2  ;;  %v946_v16 = vmax.f32 %v930_v10, 0.0 }
 0x1bc   : > { %v947_v17 = vmax.f32 %v931_v14, 0.0  ;;  %962 = vst [vmem:[#allocation9 + $0x70] sm:$0xff] %v946_v16 }
 0x1be   : > { %963 = vst [vmem:[#allocation9 + $0x78] sm:$0xff] %v947_v17 }
 0x1bf PF: > { %p1288_p8 = scmp.eq.s32.totalorder %s1643_s18, 2  ;;  %s1591_s15 = smov [#allocation9]  }
 0x1c0   : > { %s974_s20 = sshll.u32 %s1591_s15, 4  ;;  %s975_s20 = int_to_ptr.vmem [resolvable:$true] %s974_s20 }
 0x1c1   : > { %s1492_s21 = scalar_lea.vmem %s975_s20, 2048  ;;  %p1499_p0 = scmp.lt.s32.totalorder %s975_s20, %s975_s20 }
 0x1c2   : > { %p1493_p13 = scmp.ne.s32.totalorder %s975_s20, %s1492_s21  ;;  %p1500_p5 = scmp.lt.s32.totalorder %s1492_s21, %s1492_s21 }
 0x1c4   : > { %p1494_p1 = pnand %p1493_p13, %p1288_p8  ;;  %p1501_p7 = por %p1500_p5, %p1499_p0 }
 0x1c6   : > { %p1495_p2 = pneg %p1494_p1 }
 0x1c8   : > { %p1502_p9 = pnand %p1501_p7, %p1495_p2 }
 0x1ca   : > { %1505 = shalt.err (!%p1502_p9)
}
 0x1cb   : > { %s1506_s6 = scalar_lea.hbm %s1898_s3, 2048 }
 0x1cc   : > { %p1507_p12 = scmp.ne.s32.totalorder %s1898_s3, %s1506_s6  ;;  %p1512_p10 = scmp.lt.u32.totalorder %s1506_s6, %s1898_s3 }
 0x1ce   : > { %p1508_p4 = pnand %p1507_p12, %p1288_p8 }
 0x1d0   : > { %p1509_p11 = pneg %p1508_p4 }
 0x1d2   : > { %p1514_p3 = pnand %p1512_p10, %p1509_p11 }
 0x1d4   : > { %1517 = shalt.err (!%p1514_p3)
}
 0x1d5   : > { %s1592_s9 = smov 128   ;;  %s1593_s10 = smov 8  }
 0x1d6   : > { %1271 = dma.vmem_to_hbm [thread:$0]  (%p1288_p8), %s975_s20, 2048, %s1898_s3, [#allocation5], %s1592_s9, %s1592_s9, %s1593_s10  }
 0x1d7   : > { %1555 = dma.done.wait (%p1288_p8), [#allocation5], 2048  }
 0x1d8   : > { %1557 = vsyncadd (%p1288_p8), [#allocation5], 4294965248 }
 0x1d9 PF: > { %s20_s17 = sadd.s32 1, %s1580_s17   ;;  %s1912_s12 = smov %s1564_s13 }
 0x1da   : > { %p17_p6 = scmp.ge.s32.totalorder %s20_s17, 5   ;;  %s1913_s13 = smov %s1568_s14 }
 0x1db   : > { %s1914_s14 = smov %s1715_s5  ;;  %s1915_s15 = smov %s1576_s16 }
 0x1dc   : > { %s1916_s16 = smov %s1918_s11  ;;  %19 = sbr.rel (!%p17_p6) target bundleno = 7 (0x7), region = 96 }
 0x1e3   :  { %990 = vsyncpa [#allocation4], 1 }
 0x1e4   :  { %992 = vsyncpa [#allocation4 + $0x1], 1 }
 0x1e5   :  { %993 = vsyncpa [#allocation7], 1 }
 0x1e6   :  { %995 = vsyncpa [#allocation7 + $0x1], 1 }
 0x1e7   :  { %996 = vsyncpa [#allocation5], 1 }
 0x1e8   :  { %998 = vsyncpa [#allocation5 + $0x1], 1 }

// kernel: csrnet_forward.32
= control target key start
LH: loop header
LB: loop body
LE: loop exit
PB: predicated region body
PF: predicated region fallthrough
CT: control target
= control target key end

     0   :  { %s1669_s0 = inlined_call_operand.hbm [shape: bf16[32,1152], index: 0, kind: input, shape index: {}]   ;;  %s1670_s1 = inlined_call_operand.hbm [shape: bf16[1152,256], index: 1, kind: input, shape index: {}]   ;;  %s1671_s2 = inlined_call_operand.hbm [shape: f32[1,256], index: 2, kind: input, shape index: {}]   ;;  %s1672_s3 = inlined_call_operand.hbm [shape: f32[32,256], index: 3, kind: output, shape index: {}]  }
   0x1   :  { %1677 = sst [smem:[#allocation14_spill]] %s1669_s0 }
   0x2   :  { %8 = vsyncpa [#allocation4], 0 }
   0x3   :  { %10 = vsyncpa [#allocation4 + $0x1], 0 }
   0x4   :  { %11 = vsyncpa [#allocation7], 0 }
   0x5   :  { %13 = vsyncpa [#allocation7 + $0x1], 0 }
   0x6   :  { %14 = vsyncpa [#allocation5], 0  ;;  %s1384_s12 = smov 0   ;;  %s1386_s13 = smov 0  }
   0x7   :  { %s1388_s14 = smov 0   ;;  %s1390_s15 = smov 0  }
   0x8   :  { %s1392_s16 = smov 0   ;;  %s1394_s17 = smov 0  }
   0x9 LB: > { %s1413_s18 = sadd.s32 4294967295, %s1349_s17   ;;  %s48_s19 = sadd.s32 1, %s1337_s14  ;;  %s1349_s17 = sphi %s1394_s17, %s20_s17   ;;  %s1345_s16 = sphi %s1392_s16, %s1692_s16   ;;  %s1341_s15 = sphi %s1390_s15, %s1691_s15   ;;  %s1337_s14 = sphi %s1388_s14, %s1690_s14   ;;  %s1333_s13 = sphi %s1386_s13, %s1689_s13   ;;  %s1329_s12 = sphi %s1384_s12, %s1688_s12  }
   0xa   : > { %p55_p0 = scmp.ne.s32.totalorder %s1337_s14, %s1333_s13  ;;  %p56_p1 = scmp.eq.s32.totalorder %s1349_s17, 0 }
   0xb   : > { %p61_p2 = scmp.ne.s32.totalorder %s1333_s13, %s1329_s12  ;;  %p1673_p3 = scmp.eq.s32.totalorder %s1413_s18, 0 }
   0xc   : > { %p57_p4 = por %p56_p1, %p55_p0  ;;  %p922_p5 = scmp.ge.s32.totalorder %s1349_s17, 1 }
   0xd   : > { %p1424_p6 = por %p1673_p3, %p61_p2  ;;  %p154_p7 = scmp.lt.s32.totalorder %s1349_s17, 4 }
   0xe   : > { %s1351_s22 = smov [#allocation8]   ;;  %p1030_p10 = scmp.lt.s32.totalorder %s1349_s17, 3 }
   0xf   : > { %s1678_s20 = scalar_select %p1424_p6, 1, 0 }
  0x10   : > { %p1429_p8 = pnand %p922_p5, %p154_p7  ;;  %s170_s23 = sshll.u32 %s1351_s22, 4  ;;  %s171_s23 = int_to_ptr.vmem [resolvable:$true] %s170_s23 }
  0x11   : > { %s1437_s24 = sand.u32 1, %s1337_s14   ;;  %p1445_p12 = pnand %p1030_p10, %p57_p4 }
  0x12   : > { %s1679_s21 = scalar_select %p1429_p8, 1, 0 }
  0x13   : > { %p1018_p9 = pneg %p1429_p8  ;;  %s1173_s29 = scalar_lea.hbm %s1671_s2, 32 }
  0x14   : > { %s1681_s26 = scalar_select %p1445_p12, 1, 0 }
  0x15   : > { %p1441_p11 = pnand %p1018_p9, %p1673_p3  ;;  %p1174_p13 = scmp.ne.s32.totalorder %s1671_s2, %s1173_s29 }
  0x16   : > { %p1180_p5 = scmp.lt.u32.totalorder %s1173_s29, %s1671_s2 }
  0x17   : > { %p1175_p0 = pneg %p1441_p11 }
  0x19   : > { %p1176_p1 = pnand %p1175_p0, %p1174_p13 }
  0x1b   : > { %p1177_p2 = pneg %p1176_p1 }
  0x1d   : > { %p1182_p4 = pnand %p1180_p5, %p1177_p2 }
  0x1f   : > { %1185 = shalt.err (!%p1182_p4)
}
  0x20   : > { %s1186_s7 = scalar_lea.vmem %s171_s23, 32  ;;  %p1194_p3 = scmp.lt.s32.totalorder %s171_s23, %s171_s23 }
  0x21   : > { %p1187_p7 = scmp.ne.s32.totalorder %s171_s23, %s1186_s7  ;;  %p1195_p6 = scmp.lt.s32.totalorder %s1186_s7, %s1186_s7 }
  0x23   : > { %p1189_p9 = pnand %p1187_p7, %p1175_p0  ;;  %p1196_p8 = por %p1195_p6, %p1194_p3 }
  0x25   : > { %p1190_p10 = pneg %p1189_p9 }
  0x27   : > { %p1197_p12 = pnand %p1196_p8, %p1190_p10 }
  0x29   : > { %1200 = shalt.err (!%p1197_p12)
}
  0x2a   : > { %1021 = dma.hbm_to_vmem [thread:$0]  (!%p1441_p11), %s1671_s2, 32, %s171_s23, [#allocation7]  }
  0x2b   : > { %s32_s10 = sadd.s32 1, %s1345_s16  ;;  %s1002_s11 = smul.u32 48, %s1437_s24 }
  0x2c   : > { %p33_p3 = scmp.ge.s32.totalorder %s32_s10, 3  ;;  %s990_s12 = smul.u32 192, %s1345_s16 }
  0x2d   : > { %s1682_s0 = sld [smem:[#allocation14_spill]]  ;;  %s185_s28 = scalar_lea.vmem [#allocation3], %s1002_s11 }
  0x2e   : > { %s1694_s10 = smov (%p33_p3, %s32_s10), 0  ;;  %s195_s29 = sshll.u32 %s185_s28, 4  ;;  %s1477_s29 = int_to_ptr.vmem [resolvable:$true] %s195_s29 }
  0x2f   : > { %s44_s23 = ssub.s32 %s1345_s16, %s1694_s10  ;;  %s205_s30 = sand.u32 1, %s1349_s17  }
  0x30   : > { %p46_p6 = scmp.eq.s32.totalorder %s44_s23, 0  ;;  %s182_s5 = scalar_lea.sflag [#allocation4], %s1437_s24 }
  0x31   : > { %p1683_p11 = scmp.ne.s32.totalorder %s1681_s26, 0 }
  0x32   : > { %s1483_s4 = scalar_select %p46_p6, %s1337_s14, %s48_s19  }
  0x33   : > { %s1473_s27 = scalar_lea.hbm %s1682_s0, %s990_s12  ;;  %p1203_p12 = pneg %p1683_p11 }
  0x34   : > { %s1201_s6 = scalar_lea.hbm %s1473_s27, 768  ;;  %s1206_s9 = scalar_lea.hbm %s1682_s0, 2304 }
  0x35   : > { %p1202_p8 = scmp.ne.s32.totalorder %s1473_s27, %s1201_s6  ;;  %p1207_p1 = scmp.lt.u32.totalorder %s1473_s27, %s1682_s0 }
  0x36   : > { %p1208_p2 = scmp.lt.u32.totalorder %s1206_s9, %s1201_s6  ;;  %p1210_p4 = scmp.lt.u32.totalorder %s1201_s6, %s1473_s27 }
  0x37   : > { %p1204_p13 = pnand %p1203_p12, %p1202_p8 }
  0x38   : > { %p1209_p5 = por %p1208_p2, %p1207_p1 }
  0x39   : > { %p1205_p0 = pneg %p1204_p13 }
  0x3a   : > { %p1211_p7 = por %p1210_p4, %p1209_p5 }
  0x3c   : > { %p1212_p9 = pnand %p1211_p7, %p1205_p0 }
  0x3e   : > { %1215 = shalt.err (!%p1212_p9)
}
  0x3f   : > { %s1216_s19 = scalar_lea.vmem %s1477_s29, 768  ;;  %s1352_s22 = smov [#allocation3]  }
  0x40   : > { %p1217_p10 = scmp.ne.s32.totalorder %s1477_s29, %s1216_s19  ;;  %s1221_s25 = sshll.u32 %s1352_s22, 4  ;;  %s1222_s25 = int_to_ptr.vmem [resolvable:$false] %s1221_s25 }
  0x41   : > { %s1223_s28 = scalar_lea.vmem %s1222_s25, 1536  ;;  %p1224_p8 = scmp.lt.s32.totalorder %s1477_s29, %s1222_s25 }
  0x42   : > { %p1219_p3 = pnand %p1217_p10, %p1203_p12  ;;  %p1225_p13 = scmp.lt.s32.totalorder %s1223_s28, %s1216_s19 }
  0x44   : > { %p1220_p6 = pneg %p1219_p3  ;;  %p1226_p1 = por %p1225_p13, %p1224_p8 }
  0x46   : > { %p1227_p2 = pnand %p1226_p1, %p1220_p6 }
  0x48   : > { %1230 = shalt.err (!%p1227_p2)
}
  0x49   : > { %s1353_s23 = smov 576   ;;  %s1354_s6 = smov 192  }
  0x4a   : > { %s1355_s7 = smov 12   ;;  %s1003_s8 = smul.u32 384, %s1437_s24 }
  0x4b   : > { %1025 = dma.hbm_to_vmem [thread:$0]  (!%p1683_p11), %s1473_s27, 768, %s1477_s29, %s182_s5, %s1353_s23, %s1354_s6, %s1355_s7  }
  0x4c   : > { %s993_s9 = smul.u32 6144, %s1345_s16  ;;  %s209_s22 = scalar_lea.vmem [#allocation6], %s1003_s8 }
  0x4d   : > { %s219_s25 = sshll.u32 %s209_s22, 4  ;;  %s1524_s28 = scalar_lea.sflag [#allocation7], %s205_s30  ;;  %s1520_s25 = int_to_ptr.vmem [resolvable:$true] %s219_s25 }
  0x4e   : > { %s1518_s19 = scalar_lea.hbm %s1670_s1, %s993_s9  ;;  %s1236_s29 = scalar_lea.hbm %s1670_s1, 18432 }
  0x4f   : > { %s1231_s0 = scalar_lea.hbm %s1518_s19, 6144  ;;  %p1237_p7 = scmp.lt.u32.totalorder %s1518_s19, %s1670_s1 }
  0x50   : > { %p1232_p0 = scmp.ne.s32.totalorder %s1518_s19, %s1231_s0  ;;  %p1238_p9 = scmp.lt.u32.totalorder %s1236_s29, %s1231_s0 }
  0x51   : > { %p1240_p3 = scmp.lt.u32.totalorder %s1231_s0, %s1518_s19 }
  0x52   : > { %p1234_p5 = pnand %p1232_p0, %p1203_p12  ;;  %p1239_p10 = por %p1238_p9, %p1237_p7 }
  0x54   : > { %p1235_p4 = pneg %p1234_p5  ;;  %p1241_p6 = por %p1240_p3, %p1239_p10 }
  0x56   : > { %p1242_p8 = pnand %p1241_p6, %p1235_p4 }
  0x58   : > { %1245 = shalt.err (!%p1242_p8)
}
  0x59   : > { %s1246_s30 = scalar_lea.vmem %s1520_s25, 6144  ;;  %s1356_s6 = smov [#allocation6]  }
  0x5a   : > { %p1247_p13 = scmp.ne.s32.totalorder %s1520_s25, %s1246_s30  ;;  %s1251_s7 = sshll.u32 %s1356_s6, 4  ;;  %s1252_s7 = int_to_ptr.vmem [resolvable:$false] %s1251_s7 }
  0x5b   : > { %s1253_s8 = scalar_lea.vmem %s1252_s7, 12288  ;;  %p1254_p0 = scmp.lt.s32.totalorder %s1520_s25, %s1252_s7 }
  0x5c   : > { %p1249_p1 = pnand %p1247_p13, %p1203_p12  ;;  %p1255_p5 = scmp.lt.s32.totalorder %s1253_s8, %s1246_s30 }
  0x5e   : > { %p1250_p2 = pneg %p1249_p1  ;;  %p1256_p7 = por %p1255_p5, %p1254_p0 }
  0x60   : > { %p1257_p9 = pnand %p1256_p7, %p1250_p2 }
  0x62   : > { %1260 = shalt.err (!%p1257_p9)
}
  0x63   : > { %s1357_s0 = smov 128   ;;  %s1358_s9 = smov 8  }
  0x64   : > { %1028 = dma.hbm_to_vmem [thread:$0]  (!%p1683_p11), %s1518_s19, 6144, %s1520_s25, %s1524_s28, %s1357_s0, %s1357_s0, %s1358_s9  }
  0x65   : > { %p1684_p12 = scmp.ne.s32.totalorder %s1679_s21, 0 }
  0x66   : > { %s233_s11 = sand.u32 (!%p1684_p12), 1, %s1333_s13   ;;  %p1685_p4 = scmp.ne.s32.totalorder (!%p1684_p12), %s1678_s20, 0 }
  0x67   : > { %231 = sbr.rel (%p1684_p12) target bundleno = 458 (0x1ca), region = 32  ;;  %s234_s22 = scalar_lea.sflag (!%p1684_p12), [#allocation4], %s233_s11 }
  0x68   : > { %s1004_s12 = smul.u32 (!%p1684_p12), 48, %s233_s11 }
  0x6a   : > { %s1553_s24 = scalar_lea.vmem (!%p1684_p12), [#allocation3], %s1004_s12 }
  0x6e   : > { %1312 = dma.done.wait (%p1685_p4), %s234_s22, 768  }
  0x6f   : > { %1314 = vsyncadd (%p1685_p4), %s234_s22, 4294966528  ;;  %s242_s27 = sand.u32 1, %s1413_s18   ;;  %s1005_s26 = smul.u32 384, %s233_s11 }
  0x70   : > { %s243_s19 = scalar_lea.sflag [#allocation7], %s242_s27 }
  0x71   : > { %s1560_s25 = scalar_lea.vmem [#allocation6], %s1005_s26 }
  0x72   : > { %1316 = dma.done.wait (%p1685_p4), %s243_s19, 6144  }
  0x73   : > { %1318 = vsyncadd (%p1685_p4), %s243_s19, 4294961152  ;;  %p1686_p11 = scmp.eq.s32.totalorder %s1413_s18, 0 }
  0x75   : > { %1320 = dma.done.wait (%p1686_p11), [#allocation7], 32   ;;  %p1687_p10 = pmov %p1686_p11 }
  0x76   : > { %p930_p3 = scmp.ne.s32.totalorder %s1341_s15, 0 }
  0x77   : > { %1322 = vsyncadd (%p1687_p10), [#allocation7], 4294967264  ;;  %v1359_v0 = vmov (!%p930_p3), 0.0  }
  0x78   : > { %284 = sbr.rel (%p930_p3) target bundleno = 127 (0x7f), region = 48  ;;  %285 = vst [vmem:[#allocation2] sm:$0xff] (!%p930_p3), %v1359_v0  ;;  %286 = vst [vmem:[#allocation2 + $0x8] sm:$0xff] (!%p930_p3), %v1359_v0 }
  0x79   : > { %287 = vst [vmem:[#allocation2 + $0x10] sm:$0xff] (!%p930_p3), %v1359_v0  ;;  %288 = vst [vmem:[#allocation2 + $0x18] sm:$0xff] (!%p930_p3), %v1359_v0 }
  0x7a   : > { %289 = vst [vmem:[#allocation2 + $0x20] sm:$0xff] (!%p930_p3), %v1359_v0  ;;  %290 = vst [vmem:[#allocation2 + $0x28] sm:$0xff] (!%p930_p3), %v1359_v0 }
  0x7b   : > { %291 = vst [vmem:[#allocation2 + $0x30] sm:$0xff] (!%p930_p3), %v1359_v0  ;;  %292 = vst [vmem:[#allocation2 + $0x38] sm:$0xff] (!%p930_p3), %v1359_v0 }
  0x7f PF: > { %v1093_v1 = vld [vmem:[%s1560_s25 + $0x4] ss:$8 sps:$4 sm:$0xff]   ;;  %v1095_v2 = vld [vmem:[%s1560_s25] ss:$8 sps:$4 sm:$0xff]   ;;  %v1360_v3 = vmov 0   ;;  %p985_p6 = scmp.ne.s32.totalorder %s1341_s15, 2 }
  0x80   : > { %714 = vmatprep.mubr.bf16.mxu0 %v1360_v3  ;;  %629 = vmatprep.subr.bf16.mxu1 %v1093_v1  ;;  %v1096_v4 = vld [vmem:[%s1560_s25 + $0x14] ss:$8 sps:$4 sm:$0xff]   ;;  %v1098_v5 = vld [vmem:[%s1560_s25 + $0x10] ss:$8 sps:$4 sm:$0xff]   ;;  %v1099_v6 = vld [vmem:[%s1560_s25 + $0x24] ss:$8 sps:$4 sm:$0xff]  }
  0x81   : > { %630 = vmatpush1.bf16.msra.mxu1 %v1095_v2  ;;  %v1101_v7 = vld [vmem:[%s1560_s25 + $0x20] ss:$8 sps:$4 sm:$0xff]   ;;  %v1102_v8 = vld [vmem:[%s1560_s25 + $0x34] ss:$8 sps:$4 sm:$0xff]   ;;  %v1104_v9 = vld [vmem:[%s1560_s25 + $0x30] ss:$8 sps:$4 sm:$0xff]  }
  0x82   : > { %631 = vmatprep.subr.bf16.mxu1 %v1096_v4  ;;  %v1117_v10 = vld [vmem:[%s1560_s25 + $0x104] ss:$8 sps:$4 sm:$0xff]   ;;  %v1119_v11 = vld [vmem:[%s1560_s25 + $0x100] ss:$8 sps:$4 sm:$0xff]   ;;  %v1123_v13 = vld [vmem:[%s1560_s25 + $0x114] ss:$8 sps:$4 sm:$0xff]  }
  0x83   : > { %v1105_v12 = vld [vmem:[%s1560_s25 + $0x44] ss:$8 sps:$4 sm:$0xff]   ;;  %682 = vmatprep.subr.bf16.mxu0 %v1117_v10  ;;  %v1125_v14 = vld [vmem:[%s1560_s25 + $0x110] ss:$8 sps:$4 sm:$0xff]   ;;  %v1107_v15 = vld [vmem:[%s1560_s25 + $0x40] ss:$8 sps:$4 sm:$0xff]  }
  0x84   : > { %683 = vmatpush1.bf16.msra.mxu0 %v1119_v11  ;;  %v1108_v16 = vld [vmem:[%s1560_s25 + $0x54] ss:$8 sps:$4 sm:$0xff]   ;;  %v1129_v17 = vld [vmem:[%s1560_s25 + $0x124] ss:$8 sps:$4 sm:$0xff]   ;;  %v1131_v18 = vld [vmem:[%s1560_s25 + $0x120] ss:$8 sps:$4 sm:$0xff]  }
  0x85   : > { %632 = vmatpush1.bf16.msra.mxu1 %v1098_v5  ;;  %684 = vmatprep.subr.bf16.mxu0 %v1123_v13  ;;  %v1110_v19 = vld [vmem:[%s1560_s25 + $0x50] ss:$8 sps:$4 sm:$0xff]   ;;  %v1135_v20 = vld [vmem:[%s1560_s25 + $0x134] ss:$8 sps:$4 sm:$0xff]   ;;  %v1111_v21 = vld [vmem:[%s1560_s25 + $0x64] ss:$8 sps:$4 sm:$0xff]  }
  0x86   : > { %633 = vmatprep.subr.bf16.mxu1 %v1099_v6  ;;  %v1137_v22 = vld [vmem:[%s1560_s25 + $0x130] ss:$8 sps:$4 sm:$0xff]   ;;  %v1113_v23 = vld [vmem:[%s1560_s25 + $0x60] ss:$8 sps:$4 sm:$0xff]   ;;  %v1141_v24 = vld [vmem:[%s1560_s25 + $0x144] ss:$8 sps:$4 sm:$0xff]  }
  0x87   : > { %v1114_v25 = vld [vmem:[%s1560_s25 + $0x74] ss:$8 sps:$4 sm:$0xff]   ;;  %v1143_v26 = vld [vmem:[%s1560_s25 + $0x140] ss:$8 sps:$4 sm:$0xff]   ;;  %v1116_v27 = vld [vmem:[%s1560_s25 + $0x70] ss:$8 sps:$4 sm:$0xff]  }
  0x88   : > { %685 = vmatpush1.bf16.msra.mxu0 %v1125_v14  ;;  %v1147_v28 = vld [vmem:[%s1560_s25 + $0x154] ss:$8 sps:$4 sm:$0xff]   ;;  %v1120_v29 = vld [vmem:[%s1560_s25 + $0x84] ss:$8 sps:$4 sm:$0xff]   ;;  %v1149_v30 = vld [vmem:[%s1560_s25 + $0x150] ss:$8 sps:$4 sm:$0xff]  }
  0x89   : > { %634 = vmatpush1.bf16.msra.mxu1 %v1101_v7  ;;  %686 = vmatprep.subr.bf16.mxu0 %v1129_v17  ;;  %v1122_v31 = vld [vmem:[%s1560_s25 + $0x80] ss:$8 sps:$4 sm:$0xff]   ;;  %v1153_v32 = vld [vmem:[%s1560_s25 + $0x164] ss:$8 sps:$4 sm:$0xff]   ;;  %v1126_v33 = vld [vmem:[%s1560_s25 + $0x94] ss:$8 sps:$4 sm:$0xff]  }
  0x8a   : > { %635 = vmatprep.subr.bf16.mxu1 %v1102_v8  ;;  %v1128_v34 = vld [vmem:[%s1560_s25 + $0x90] ss:$8 sps:$4 sm:$0xff]   ;;  %v1155_v35 = vld [vmem:[%s1560_s25 + $0x160] ss:$8 sps:$4 sm:$0xff]   ;;  %v1159_v37 = vld [vmem:[%s1560_s25 + $0x174] ss:$8 sps:$4 sm:$0xff]  }
  0x8b   : > { %v1168_v36 = vld [vmem:[%s1553_s24 + $0x4] ss:$12 sps:$4 sm:$0xff]   ;;  %v1165_v42 = vld [vmem:[%s1553_s24 + $0x8] ss:$12 sps:$4 sm:$0xff]   ;;  %v1169_v47 = vld [vmem:[%s1553_s24 + $0x20] ss:$12 sps:$4 sm:$0xff]  }
  0x8c   : > { %687 = vmatpush1.bf16.msra.mxu0 %v1131_v18  ;;  %v1132_v38 = vld [vmem:[%s1560_s25 + $0xa4] ss:$8 sps:$4 sm:$0xff]   ;;  %661 = vmatprep.mubr.bf16.mxu1 %v1168_v36  ;;  %v1161_v39 = vld [vmem:[%s1560_s25 + $0x170] ss:$8 sps:$4 sm:$0xff]   ;;  %v1134_v40 = vld [vmem:[%s1560_s25 + $0xa0] ss:$8 sps:$4 sm:$0xff]  }
  0x8d   : > { %636 = vmatpush1.bf16.msra.mxu1 %v1104_v9  ;;  %688 = vmatprep.subr.bf16.mxu0 %v1135_v20  ;;  %v1138_v41 = vld [vmem:[%s1560_s25 + $0xb4] ss:$8 sps:$4 sm:$0xff]   ;;  %v1140_v43 = vld [vmem:[%s1560_s25 + $0xb0] ss:$8 sps:$4 sm:$0xff]   ;;  %v1144_v44 = vld [vmem:[%s1560_s25 + $0xc4] ss:$8 sps:$4 sm:$0xff]  }
  0x8e   : > { %637 = vmatprep.subr.bf16.mxu1 %v1105_v12  ;;  %v1146_v45 = vld [vmem:[%s1560_s25 + $0xc0] ss:$8 sps:$4 sm:$0xff]   ;;  %v1150_v46 = vld [vmem:[%s1560_s25 + $0xd4] ss:$8 sps:$4 sm:$0xff]   ;;  %v1152_v48 = vld [vmem:[%s1560_s25 + $0xd0] ss:$8 sps:$4 sm:$0xff]  }
  0x8f   : > { %v1156_v49 = vld [vmem:[%s1560_s25 + $0xe4] ss:$8 sps:$4 sm:$0xff]   ;;  %v1158_v50 = vld [vmem:[%s1560_s25 + $0xe0] ss:$8 sps:$4 sm:$0xff]   ;;  %v1162_v51 = vld [vmem:[%s1560_s25 + $0xf4] ss:$8 sps:$4 sm:$0xff]  }
  0x90   : > { %689 = vmatpush1.bf16.msra.mxu0 %v1137_v22  ;;  %v1164_v52 = vld [vmem:[%s1560_s25 + $0xf0] ss:$8 sps:$4 sm:$0xff]   ;;  %v293_v0 = vld [vmem:[#allocation2] sm:$0xff] }
  0x91   : > { %638 = vmatpush1.bf16.msra.mxu1 %v1107_v15  ;;  %690 = vmatprep.subr.bf16.mxu0 %v1141_v24  ;;  %v1166_v53 = vld [vmem:[%s1553_s24] ss:$12 sps:$4 sm:$0xff]   ;;  %v1170_v54 = vld [vmem:[%s1553_s24 + $0x1c] ss:$12 sps:$4 sm:$0xff]   ;;  %v1172_v55 = vld [vmem:[%s1553_s24 + $0x18] ss:$12 sps:$4 sm:$0xff]  }
  0x92   : > { %639 = vmatprep.subr.bf16.mxu1 %v1108_v16  ;;  %v295_v6 = vld [vmem:[#allocation2 + $0x10] sm:$0xff]  ;;  %v296_v10 = vld [vmem:[#allocation2 + $0x18] sm:$0xff]  ;;  %v297_v16 = vld [vmem:[#allocation2 + $0x20] sm:$0xff] }
  0x93   : > { %v299_v22 = vld [vmem:[#allocation2 + $0x30] sm:$0xff] }
  0x94   : > { %691 = vmatpush1.bf16.msra.mxu0 %v1143_v26  ;;  %v300_v26 = vld [vmem:[#allocation2 + $0x38] sm:$0xff] }
  0x95   : > { %640 = vmatpush1.bf16.msra.mxu1 %v1110_v19  ;;  %692 = vmatprep.subr.bf16.mxu0 %v1147_v28  ;;  %v298_v19 = vld [vmem:[#allocation2 + $0x28] sm:$0xff] }
  0x96   : > { %641 = vmatprep.subr.bf16.mxu1 %v1111_v21 }
  0x98   : > { %693 = vmatpush1.bf16.msra.mxu0 %v1149_v30 }
  0x99   : > { %642 = vmatpush1.bf16.msra.mxu1 %v1113_v23  ;;  %694 = vmatprep.subr.bf16.mxu0 %v1153_v32  ;;  %v765_v32 = vlaneseq (!%p985_p6) }
  0x9a   : > { %643 = vmatprep.subr.bf16.mxu1 %v1114_v25 }
  0x9c   : > { %695 = vmatpush1.bf16.msra.mxu0 %v1155_v35 }
  0x9d   : > { %644 = vmatpush1.bf16.msra.mxu1 %v1116_v27  ;;  %696 = vmatprep.subr.bf16.mxu0 %v1159_v37 }
  0x9e   : > { %645 = vmatprep.subr.bf16.mxu1 %v1120_v29 }
  0xa0   : > { %697 = vmatpush1.bf16.msra.mxu0 %v1161_v39 }
  0xa1   : > { %646 = vmatpush1.bf16.msra.mxu1 %v1122_v31 }
  0xa2   : > { %647 = vmatprep.subr.bf16.mxu1 %v1126_v33  ;;  %v766_v33 = vshrl.u32 (!%p985_p6), %v765_v32, 7 }
  0xa3   : > { %715 = vmatmul.mubr.bf16.vlgmr.msra.gmra.mrb[0].mxu0 %v1165_v42 }
  0xa4   : > { %724 = vmatprep.mubr.bf16.mxu0 %v1360_v3  ;;  %v294_v3 = vld [vmem:[#allocation2 + $0x8] sm:$0xff]  ;;  %v767_v36 = vsub.s32 (!%p985_p6), 0, %v766_v33 }
  0xa5   : > { %648 = vmatpush1.bf16.msra.mxu1 %v1128_v34  ;;  %v763_v34 = vld [vmem:[#allocation8] sm:$0x3] (!%p985_p6) }
  0xa6   : > { %649 = vmatprep.subr.bf16.mxu1 %v1132_v38  ;;  %v771_v38 = vsub.s32 (!%p985_p6), 1, %v766_v33  ;;  %v768_v42 = vrot.slane (!%p985_p6), %v763_v34, %v767_v36 }
  0xa9   : > { %650 = vmatpush1.bf16.msra.mxu1 %v1134_v40 }
  0xaa   : > { %651 = vmatprep.subr.bf16.mxu1 %v1138_v41 }
  0xab   : > { %725 = vmatmul.mubr.bf16.gmra.mrb[4].mxu0 %v1169_v47 }
  0xad   : > { %652 = vmatpush1.bf16.msra.mxu1 %v1140_v43  ;;  %v772_v43 = vrot.slane (!%p985_p6), %v763_v34, %v771_v38 }
  0xae   : > { %653 = vmatprep.subr.bf16.mxu1 %v1144_v44 }
  0xb1   : > { %654 = vmatpush1.bf16.msra.mxu1 %v1146_v45 }
  0xb2   : > { %655 = vmatprep.subr.bf16.mxu1 %v1150_v46 }
  0xb5   : > { %656 = vmatpush1.bf16.msra.mxu1 %v1152_v48 }
  0xb6   : > { %657 = vmatprep.subr.bf16.mxu1 %v1156_v49 }
  0xb9   : > { %658 = vmatpush1.bf16.msra.mxu1 %v1158_v50 }
  0xba   : > { %659 = vmatprep.subr.bf16.mxu1 %v1162_v51 }
  0xbd   : > { %660 = vmatpush1.bf16.msra.mxu1 %v1164_v52 }
  0xc0   : > { %662 = vmatmul.mubr.bf16.vlgmr.msra.gmra.mrb[0].mxu1 %v1166_v53 }
  0xc1   : > { %671 = vmatprep.mubr.bf16.mxu1 %v1170_v54 }
  0xc8   : > { %672 = vmatmul.mubr.bf16.gmra.mrb[4].mxu1 %v1172_v55 }
 0x176   : > { %v716_v56 = vpop.f32.mrb[0].mxu0 }
 0x177   : > { %v718_v57 = vpop.f32.mrb[1].mxu0 }
 0x178   : > { %v720_v58 = vpop.f32.mrb[2].mxu0 }
 0x179   : > { %v722_v59 = vpop.f32.mrb[3].mxu0 }
 0x17e   : > { %v726_v60 = vpop.f32.mrb[4].mxu0 }
 0x17f   : > { %v728_v61 = vpop.f32.mrb[5].mxu0 }
 0x180   : > { %v730_v62 = vpop.f32.mrb[6].mxu0 }
 0x181   : > { %v732_v63 = vpop.f32.mrb[7].mxu0 }
 0x193   : > { %v663_v1 = vpop.f32.mrb[0].mxu1 }
 0x194   : > { %v717_v2 = vadd.f32 %v716_v56, %v663_v1  ;;  %v665_v4 = vpop.f32.mrb[1].mxu1 }
 0x195   : > { %v719_v5 = vadd.f32 %v718_v57, %v665_v4  ;;  %v667_v7 = vpop.f32.mrb[2].mxu1 }
 0x196   : > { %v735_v8 = vadd.f32 %v717_v2, %v293_v0  ;;  %v721_v9 = vadd.f32 %v720_v58, %v667_v7  ;;  %v669_v11 = vpop.f32.mrb[3].mxu1 }
 0x197   : > { %v736_v12 = vadd.f32 %v719_v5, %v294_v3  ;;  %v723_v13 = vadd.f32 %v722_v59, %v669_v11 }
 0x198   : > { %743 = vst [vmem:[#allocation2] sm:$0xff] %v735_v8  ;;  %v737_v14 = vadd.f32 %v721_v9, %v295_v6 }
 0x199   : > { %744 = vst [vmem:[#allocation2 + $0x8] sm:$0xff] %v736_v12  ;;  %v738_v15 = vadd.f32 %v723_v13, %v296_v10 }
 0x19a   : > { %745 = vst [vmem:[#allocation2 + $0x10] sm:$0xff] %v737_v14 }
 0x19b   : > { %746 = vst [vmem:[#allocation2 + $0x18] sm:$0xff] %v738_v15  ;;  %v673_v17 = vpop.f32.mrb[4].mxu1 }
 0x19c   : > { %v727_v18 = vadd.f32 %v726_v60, %v673_v17  ;;  %v675_v20 = vpop.f32.mrb[5].mxu1 }
 0x19d   : > { %v729_v21 = vadd.f32 %v728_v61, %v675_v20  ;;  %v677_v23 = vpop.f32.mrb[6].mxu1  ;;  %754 = sbr.rel (%p985_p6) target bundleno = 432 (0x1b0), region = 52 }
 0x19e   : > { %v739_v24 = vadd.f32 %v727_v18, %v297_v16  ;;  %v731_v25 = vadd.f32 %v730_v62, %v677_v23  ;;  %v679_v27 = vpop.f32.mrb[7].mxu1 }
 0x19f   : > { %v740_v28 = vadd.f32 %v729_v21, %v298_v19  ;;  %v733_v29 = vadd.f32 %v732_v63, %v679_v27  ;;  %v755_v35 = vld [vmem:[#allocation2] sm:$0xff] (!%p985_p6) }
 0x1a0   : > { %747 = vst [vmem:[#allocation2 + $0x20] sm:$0xff] %v739_v24  ;;  %v741_v30 = vadd.f32 %v731_v25, %v299_v22  ;;  %v756_v37 = vld [vmem:[#allocation2 + $0x8] sm:$0xff] (!%p985_p6)  ;;  %v775_v47 = vadd.f32 (!%p985_p6), %v768_v42, %v755_v35 }
 0x1a1   : > { %748 = vst [vmem:[#allocation2 + $0x28] sm:$0xff] %v740_v28  ;;  %v742_v31 = vadd.f32 %v733_v29, %v300_v26  ;;  %v757_v39 = vld [vmem:[#allocation2 + $0x10] sm:$0xff] (!%p985_p6)  ;;  %v776_v48 = vadd.f32 (!%p985_p6), %v772_v43, %v756_v37 }
 0x1a2   : > { %749 = vst [vmem:[#allocation2 + $0x30] sm:$0xff] %v741_v30  ;;  %v758_v40 = vld [vmem:[#allocation2 + $0x18] sm:$0xff] (!%p985_p6)  ;;  %v777_v49 = vadd.f32 (!%p985_p6), %v768_v42, %v757_v39  ;;  %v783_v55 = vmax.f32 (!%p985_p6), %v775_v47, 0.0 }
 0x1a3   : > { %750 = vst [vmem:[#allocation2 + $0x38] sm:$0xff] %v742_v31  ;;  %v778_v50 = vadd.f32 (!%p985_p6), %v772_v43, %v758_v40  ;;  %v784_v56 = vmax.f32 (!%p985_p6), %v776_v48, 0.0 }
 0x1a4   : > { %v785_v57 = vmax.f32 %v777_v49, 0.0  ;;  %791 = vst [vmem:[#allocation9] sm:$0xff] %v783_v55 }
 0x1a5   : > { %v786_v58 = vmax.f32 %v778_v50, 0.0  ;;  %792 = vst [vmem:[#allocation9 + $0x8] sm:$0xff] %v784_v56 }
 0x1a6   : > { %793 = vst [vmem:[#allocation9 + $0x10] sm:$0xff] %v785_v57 }
 0x1a7   : > { %v759_v41 = vld [vmem:[#allocation2 + $0x20] sm:$0xff]  ;;  %794 = vst [vmem:[#allocation9 + $0x18] sm:$0xff] %v786_v58 }
 0x1a8   : > { %v760_v44 = vld [vmem:[#allocation2 + $0x28] sm:$0xff]  ;;  %v779_v51 = vadd.f32 %v768_v42, %v759_v41 }
 0x1a9   : > { %v761_v45 = vld [vmem:[#allocation2 + $0x30] sm:$0xff]  ;;  %v780_v52 = vadd.f32 %v772_v43, %v760_v44 }
 0x1aa   : > { %v762_v46 = vld [vmem:[#allocation2 + $0x38] sm:$0xff]  ;;  %v781_v53 = vadd.f32 %v768_v42, %v761_v45  ;;  %v787_v59 = vmax.f32 %v779_v51, 0.0 }
 0x1ab   : > { %v782_v54 = vadd.f32 %v772_v43, %v762_v46  ;;  %v788_v60 = vmax.f32 %v780_v52, 0.0 }
 0x1ac   : > { %v789_v61 = vmax.f32 %v781_v53, 0.0  ;;  %795 = vst [vmem:[#allocation9 + $0x20] sm:$0xff] %v787_v59 }
 0x1ad   : > { %v790_v62 = vmax.f32 %v782_v54, 0.0  ;;  %796 = vst [vmem:[#allocation9 + $0x28] sm:$0xff] %v788_v60 }
 0x1ae   : > { %797 = vst [vmem:[#allocation9 + $0x30] sm:$0xff] %v789_v61 }
 0x1af   : > { %798 = vst [vmem:[#allocation9 + $0x38] sm:$0xff] %v790_v62 }
 0x1b0 PF: > { %p1032_p8 = scmp.eq.s32.totalorder %s1413_s18, 2  ;;  %s1361_s15 = smov [#allocation9]  }
 0x1b1   : > { %s811_s20 = sshll.u32 %s1361_s15, 4  ;;  %s812_s20 = int_to_ptr.vmem [resolvable:$true] %s811_s20 }
 0x1b2   : > { %s1261_s21 = scalar_lea.vmem %s812_s20, 1024  ;;  %p1268_p0 = scmp.lt.s32.totalorder %s812_s20, %s812_s20 }
 0x1b3   : > { %p1262_p13 = scmp.ne.s32.totalorder %s812_s20, %s1261_s21  ;;  %p1269_p5 = scmp.lt.s32.totalorder %s1261_s21, %s1261_s21 }
 0x1b5   : > { %p1263_p1 = pnand %p1262_p13, %p1032_p8  ;;  %p1270_p7 = por %p1269_p5, %p1268_p0 }
 0x1b7   : > { %p1264_p2 = pneg %p1263_p1 }
 0x1b9   : > { %p1271_p9 = pnand %p1270_p7, %p1264_p2 }
 0x1bb   : > { %1274 = shalt.err (!%p1271_p9)
}
 0x1bc   : > { %s1275_s5 = scalar_lea.hbm %s1672_s3, 1024 }
 0x1bd   : > { %p1276_p12 = scmp.ne.s32.totalorder %s1672_s3, %s1275_s5  ;;  %p1281_p10 = scmp.lt.u32.totalorder %s1275_s5, %s1672_s3 }
 0x1bf   : > { %p1277_p4 = pnand %p1276_p12, %p1032_p8 }
 0x1c1   : > { %p1278_p11 = pneg %p1277_p4 }
 0x1c3   : > { %p1283_p3 = pnand %p1281_p10, %p1278_p11 }
 0x1c5   : > { %1286 = shalt.err (!%p1283_p3)
}
 0x1c6   : > { %s1362_s8 = smov 256   ;;  %s1363_s0 = smov 16  }
 0x1c7   : > { %1015 = dma.vmem_to_hbm [thread:$0]  (%p1032_p8), %s812_s20, 1024, %s1672_s3, [#allocation5], %s1362_s8, %s1362_s8, %s1363_s0  }
 0x1c8   : > { %1324 = dma.done.wait (%p1032_p8), [#allocation5], 1024  }
 0x1c9   : > { %1326 = vsyncadd (%p1032_p8), [#allocation5], 4294966272 }
 0x1ca PF: > { %s20_s17 = sadd.s32 1, %s1349_s17   ;;  %s1688_s12 = smov %s1333_s13 }
 0x1cb   : > { %p17_p6 = scmp.ge.s32.totalorder %s20_s17, 5   ;;  %s1689_s13 = smov %s1337_s14 }
 0x1cc   : > { %s1690_s14 = smov %s1483_s4  ;;  %s1691_s15 = smov %s1345_s16 }
 0x1cd   : > { %s1692_s16 = smov %s1694_s10  ;;  %19 = sbr.rel (!%p17_p6) target bundleno = 9 (0x9), region = 96 }
 0x1d4   :  { %827 = vsyncpa [#allocation4], 1 }
 0x1d5   :  { %829 = vsyncpa [#allocation4 + $0x1], 1 }
 0x1d6   :  { %830 = vsyncpa [#allocation7], 1 }
 0x1d7   :  { %832 = vsyncpa [#allocation7 + $0x1], 1 }
 0x1d8   :  { %833 = vsyncpa [#allocation5], 1 }
 0x1d9   :  { %835 = vsyncpa [#allocation5 + $0x1], 1 }

// kernel: csrnet_forward.35
= control target key start
LH: loop header
LB: loop body
LE: loop exit
PB: predicated region body
PF: predicated region fallthrough
CT: control target
= control target key end

     0   :  { %6 = vsyncpa [#allocation3], 0  ;;  %s147_s0 = inlined_call_operand.hbm [shape: f32[4,8,256], index: 0, kind: input, shape index: {}]   ;;  %s148_s1 = inlined_call_operand.hbm [shape: f32[8,256], index: 1, kind: output, shape index: {}]  }
   0x1   :  { %7 = vsyncpa [#allocation4], 0  ;;  %s109_s6 = smov [#allocation2]   ;;  %s61_s10 = scalar_lea.hbm %s147_s0, 1024 }
   0x2   :  { %s13_s7 = sshll.u32 %s109_s6, 4  ;;  %p62_p0 = scmp.ne.s32.totalorder %s147_s0, %s61_s10  ;;  %s14_s7 = int_to_ptr.vmem [resolvable:$true] %s13_s7 }
   0x3   :  { %p65_p1 = scmp.lt.u32.totalorder %s61_s10, %s147_s0 }
   0x5   :  { %p67_p2 = pnand %p65_p1, %p62_p0 }
   0x7   :  { %70 = shalt.err (!%p67_p2)
}
   0x8   :  { %s71_s15 = scalar_lea.vmem %s14_s7, 1024  ;;  %p76_p4 = scmp.lt.s32.totalorder %s14_s7, %s14_s7 }
   0x9   :  { %p72_p3 = scmp.ne.s32.totalorder %s14_s7, %s71_s15  ;;  %p77_p5 = scmp.lt.s32.totalorder %s71_s15, %s71_s15 }
   0xb   :  { %p78_p6 = por %p77_p5, %p76_p4 }
   0xd   :  { %p79_p7 = pnand %p78_p6, %p72_p3 }
   0xf   :  { %82 = shalt.err (!%p79_p7)
}
  0x10   :  { %s110_s16 = smov 256   ;;  %s111_s17 = smov 16  }
  0x11   :  { %19 = dma.hbm_to_vmem [thread:$0]  %s147_s0, 1024, %s14_s7, [#allocation3], %s110_s16, %s110_s16, %s111_s17  }
  0x12   :  { %105 = dma.done.wait [#allocation3], 1024  }
  0x13   :  { %106 = vsyncadd [#allocation3], 4294966272  ;;  %v23_v0 = vld [vmem:[#allocation2] sm:$0xff]  ;;  %v26_v1 = vld [vmem:[#allocation2 + $0x10] sm:$0xff]  ;;  %s112_s20 = smov [#allocation5]  }
  0x14   :  { %v31_v2 = vld [vmem:[#allocation2 + $0x20] sm:$0xff]  ;;  %v28_v3 = vmax.f32 %v23_v0, %v26_v1  ;;  %v34_v4 = vld [vmem:[#allocation2 + $0x30] sm:$0xff]  ;;  %v24_v5 = vld [vmem:[#allocation2 + $0x8] sm:$0xff]  ;;  %s48_s21 = sshll.u32 %s112_s20, 4  ;;  %s49_s21 = int_to_ptr.vmem [resolvable:$true] %s48_s21 }
  0x15   :  { %v27_v6 = vld [vmem:[#allocation2 + $0x18] sm:$0xff]  ;;  %v36_v7 = vmax.f32 %v31_v2, %v34_v4  ;;  %v32_v9 = vld [vmem:[#allocation2 + $0x28] sm:$0xff]  ;;  %s83_s0 = scalar_lea.vmem %s49_s21, 256  ;;  %p88_p9 = scmp.lt.s32.totalorder %s49_s21, %s49_s21 }
  0x16   :  { %v29_v8 = vmax.f32 %v24_v5, %v27_v6  ;;  %v35_v10 = vld [vmem:[#allocation2 + $0x38] sm:$0xff]  ;;  %p84_p8 = scmp.ne.s32.totalorder %s49_s21, %s83_s0  ;;  %p89_p10 = scmp.lt.s32.totalorder %s83_s0, %s83_s0 }
  0x17   :  { %v37_v11 = vmax.f32 %v32_v9, %v35_v10  ;;  %v38_v12 = vmax.f32 %v28_v3, %v36_v7 }
  0x18   :  { %p90_p11 = por %p89_p10, %p88_p9 }
  0x19   :  { %v39_v13 = vmax.f32 %v29_v8, %v37_v11  ;;  %40 = vst [vmem:[#allocation5] sm:$0xff] %v38_v12 }
  0x1a   :  { %p91_p12 = pnand %p90_p11, %p84_p8 }
  0x1b   :  { %41 = vst [vmem:[#allocation5 + $0x8] sm:$0xff] %v39_v13 }
  0x1c   :  { %94 = shalt.err (!%p91_p12)
}
  0x1d   :  { %s95_s24 = scalar_lea.hbm %s148_s1, 256 }
  0x1e   :  { %p96_p13 = scmp.ne.s32.totalorder %s148_s1, %s95_s24  ;;  %p99_p0 = scmp.lt.u32.totalorder %s95_s24, %s148_s1 }
  0x20   :  { %p101_p1 = pnand %p99_p0, %p96_p13 }
  0x22   :  { %104 = shalt.err (!%p101_p1)
}
  0x23   :  { %51 = dma.vmem_to_hbm [thread:$0]  %s49_s21, 256, %s148_s1, [#allocation4]  }
  0x24   :  { %107 = dma.done.wait [#allocation4], 256  }
  0x25   :  { %108 = vsyncadd [#allocation4], 4294967040 }
  0x26   :  { %55 = vsyncpa [#allocation3], 1 }
  0x27   :  { %56 = vsyncpa [#allocation4], 1 }

// kernel: csrnet_forward.33
= control target key start
LH: loop header
LB: loop body
LE: loop exit
PB: predicated region body
PF: predicated region fallthrough
CT: control target
= control target key end

     0   :  { %s1669_s0 = inlined_call_operand.hbm [shape: bf16[32,2304], index: 0, kind: input, shape index: {}]   ;;  %s1670_s1 = inlined_call_operand.hbm [shape: bf16[2304,256], index: 1, kind: input, shape index: {}]   ;;  %s1671_s2 = inlined_call_operand.hbm [shape: f32[1,256], index: 2, kind: input, shape index: {}]   ;;  %s1672_s3 = inlined_call_operand.hbm [shape: f32[32,256], index: 3, kind: output, shape index: {}]  }
   0x1   :  { %1677 = sst [smem:[#allocation14_spill]] %s1669_s0 }
   0x2   :  { %8 = vsyncpa [#allocation4], 0 }
   0x3   :  { %10 = vsyncpa [#allocation4 + $0x1], 0 }
   0x4   :  { %11 = vsyncpa [#allocation7], 0 }
   0x5   :  { %13 = vsyncpa [#allocation7 + $0x1], 0 }
   0x6   :  { %14 = vsyncpa [#allocation5], 0  ;;  %s1384_s12 = smov 0   ;;  %s1386_s13 = smov 0  }
   0x7   :  { %s1388_s14 = smov 0   ;;  %s1390_s15 = smov 0  }
   0x8   :  { %s1392_s16 = smov 0   ;;  %s1394_s17 = smov 0  }
   0x9 LB: > { %s1413_s18 = sadd.s32 4294967295, %s1349_s17   ;;  %s48_s19 = sadd.s32 1, %s1337_s14  ;;  %s1349_s17 = sphi %s1394_s17, %s20_s17   ;;  %s1345_s16 = sphi %s1392_s16, %s1692_s16   ;;  %s1341_s15 = sphi %s1390_s15, %s1691_s15   ;;  %s1337_s14 = sphi %s1388_s14, %s1690_s14   ;;  %s1333_s13 = sphi %s1386_s13, %s1689_s13   ;;  %s1329_s12 = sphi %s1384_s12, %s1688_s12  }
   0xa   : > { %p55_p0 = scmp.ne.s32.totalorder %s1337_s14, %s1333_s13  ;;  %p56_p1 = scmp.eq.s32.totalorder %s1349_s17, 0 }
   0xb   : > { %p61_p2 = scmp.ne.s32.totalorder %s1333_s13, %s1329_s12  ;;  %p1673_p3 = scmp.eq.s32.totalorder %s1413_s18, 0 }
   0xc   : > { %p57_p4 = por %p56_p1, %p55_p0  ;;  %p922_p5 = scmp.ge.s32.totalorder %s1349_s17, 1 }
   0xd   : > { %p1424_p6 = por %p1673_p3, %p61_p2  ;;  %p154_p7 = scmp.lt.s32.totalorder %s1349_s17, 7 }
   0xe   : > { %s1351_s22 = smov [#allocation8]   ;;  %p1030_p10 = scmp.lt.s32.totalorder %s1349_s17, 6 }
   0xf   : > { %s1678_s20 = scalar_select %p1424_p6, 1, 0 }
  0x10   : > { %p1429_p8 = pnand %p922_p5, %p154_p7  ;;  %s170_s23 = sshll.u32 %s1351_s22, 4  ;;  %s171_s23 = int_to_ptr.vmem [resolvable:$true] %s170_s23 }
  0x11   : > { %s1437_s24 = sand.u32 1, %s1337_s14   ;;  %p1445_p12 = pnand %p1030_p10, %p57_p4 }
  0x12   : > { %s1679_s21 = scalar_select %p1429_p8, 1, 0 }
  0x13   : > { %p1018_p9 = pneg %p1429_p8  ;;  %s1173_s29 = scalar_lea.hbm %s1671_s2, 32 }
  0x14   : > { %s1681_s26 = scalar_select %p1445_p12, 1, 0 }
  0x15   : > { %p1441_p11 = pnand %p1018_p9, %p1673_p3  ;;  %p1174_p13 = scmp.ne.s32.totalorder %s1671_s2, %s1173_s29 }
  0x16   : > { %p1180_p5 = scmp.lt.u32.totalorder %s1173_s29, %s1671_s2 }
  0x17   : > { %p1175_p0 = pneg %p1441_p11 }
  0x19   : > { %p1176_p1 = pnand %p1175_p0, %p1174_p13 }
  0x1b   : > { %p1177_p2 = pneg %p1176_p1 }
  0x1d   : > { %p1182_p4 = pnand %p1180_p5, %p1177_p2 }
  0x1f   : > { %1185 = shalt.err (!%p1182_p4)
}
  0x20   : > { %s1186_s7 = scalar_lea.vmem %s171_s23, 32  ;;  %p1194_p3 = scmp.lt.s32.totalorder %s171_s23, %s171_s23 }
  0x21   : > { %p1187_p7 = scmp.ne.s32.totalorder %s171_s23, %s1186_s7  ;;  %p1195_p6 = scmp.lt.s32.totalorder %s1186_s7, %s1186_s7 }
  0x23   : > { %p1189_p9 = pnand %p1187_p7, %p1175_p0  ;;  %p1196_p8 = por %p1195_p6, %p1194_p3 }
  0x25   : > { %p1190_p10 = pneg %p1189_p9 }
  0x27   : > { %p1197_p12 = pnand %p1196_p8, %p1190_p10 }
  0x29   : > { %1200 = shalt.err (!%p1197_p12)
}
  0x2a   : > { %1021 = dma.hbm_to_vmem [thread:$0]  (!%p1441_p11), %s1671_s2, 32, %s171_s23, [#allocation7]  }
  0x2b   : > { %s32_s10 = sadd.s32 1, %s1345_s16  ;;  %s1002_s11 = smul.u32 48, %s1437_s24 }
  0x2c   : > { %p33_p3 = scmp.ge.s32.totalorder %s32_s10, 6  ;;  %s990_s12 = smul.u32 192, %s1345_s16 }
  0x2d   : > { %s1682_s0 = sld [smem:[#allocation14_spill]]  ;;  %s185_s28 = scalar_lea.vmem [#allocation3], %s1002_s11 }
  0x2e   : > { %s1694_s10 = smov (%p33_p3, %s32_s10), 0  ;;  %s195_s29 = sshll.u32 %s185_s28, 4  ;;  %s1477_s29 = int_to_ptr.vmem [resolvable:$true] %s195_s29 }
  0x2f   : > { %s44_s23 = ssub.s32 %s1345_s16, %s1694_s10  ;;  %s205_s30 = sand.u32 1, %s1349_s17  }
  0x30   : > { %p46_p6 = scmp.eq.s32.totalorder %s44_s23, 0  ;;  %s182_s5 = scalar_lea.sflag [#allocation4], %s1437_s24 }
  0x31   : > { %p1683_p11 = scmp.ne.s32.totalorder %s1681_s26, 0 }
  0x32   : > { %s1483_s4 = scalar_select %p46_p6, %s1337_s14, %s48_s19  }
  0x33   : > { %s1473_s27 = scalar_lea.hbm %s1682_s0, %s990_s12  ;;  %p1203_p12 = pneg %p1683_p11 }
  0x34   : > { %s1201_s6 = scalar_lea.hbm %s1473_s27, 768  ;;  %s1206_s9 = scalar_lea.hbm %s1682_s0, 4608 }
  0x35   : > { %p1202_p8 = scmp.ne.s32.totalorder %s1473_s27, %s1201_s6  ;;  %p1207_p1 = scmp.lt.u32.totalorder %s1473_s27, %s1682_s0 }
  0x36   : > { %p1208_p2 = scmp.lt.u32.totalorder %s1206_s9, %s1201_s6  ;;  %p1210_p4 = scmp.lt.u32.totalorder %s1201_s6, %s1473_s27 }
  0x37   : > { %p1204_p13 = pnand %p1203_p12, %p1202_p8 }
  0x38   : > { %p1209_p5 = por %p1208_p2, %p1207_p1 }
  0x39   : > { %p1205_p0 = pneg %p1204_p13 }
  0x3a   : > { %p1211_p7 = por %p1210_p4, %p1209_p5 }
  0x3c   : > { %p1212_p9 = pnand %p1211_p7, %p1205_p0 }
  0x3e   : > { %1215 = shalt.err (!%p1212_p9)
}
  0x3f   : > { %s1216_s19 = scalar_lea.vmem %s1477_s29, 768  ;;  %s1352_s22 = smov [#allocation3]  }
  0x40   : > { %p1217_p10 = scmp.ne.s32.totalorder %s1477_s29, %s1216_s19  ;;  %s1221_s25 = sshll.u32 %s1352_s22, 4  ;;  %s1222_s25 = int_to_ptr.vmem [resolvable:$false] %s1221_s25 }
  0x41   : > { %s1223_s28 = scalar_lea.vmem %s1222_s25, 1536  ;;  %p1224_p8 = scmp.lt.s32.totalorder %s1477_s29, %s1222_s25 }
  0x42   : > { %p1219_p3 = pnand %p1217_p10, %p1203_p12  ;;  %p1225_p13 = scmp.lt.s32.totalorder %s1223_s28, %s1216_s19 }
  0x44   : > { %p1220_p6 = pneg %p1219_p3  ;;  %p1226_p1 = por %p1225_p13, %p1224_p8 }
  0x46   : > { %p1227_p2 = pnand %p1226_p1, %p1220_p6 }
  0x48   : > { %1230 = shalt.err (!%p1227_p2)
}
  0x49   : > { %s1353_s23 = smov 1152   ;;  %s1354_s6 = smov 192  }
  0x4a   : > { %s1355_s7 = smov 12   ;;  %s1003_s8 = smul.u32 384, %s1437_s24 }
  0x4b   : > { %1025 = dma.hbm_to_vmem [thread:$0]  (!%p1683_p11), %s1473_s27, 768, %s1477_s29, %s182_s5, %s1353_s23, %s1354_s6, %s1355_s7  }
  0x4c   : > { %s993_s9 = smul.u32 6144, %s1345_s16  ;;  %s209_s22 = scalar_lea.vmem [#allocation6], %s1003_s8 }
  0x4d   : > { %s219_s25 = sshll.u32 %s209_s22, 4  ;;  %s1524_s28 = scalar_lea.sflag [#allocation7], %s205_s30  ;;  %s1520_s25 = int_to_ptr.vmem [resolvable:$true] %s219_s25 }
  0x4e   : > { %s1518_s19 = scalar_lea.hbm %s1670_s1, %s993_s9  ;;  %s1236_s29 = scalar_lea.hbm %s1670_s1, 36864 }
  0x4f   : > { %s1231_s0 = scalar_lea.hbm %s1518_s19, 6144  ;;  %p1237_p7 = scmp.lt.u32.totalorder %s1518_s19, %s1670_s1 }
  0x50   : > { %p1232_p0 = scmp.ne.s32.totalorder %s1518_s19, %s1231_s0  ;;  %p1238_p9 = scmp.lt.u32.totalorder %s1236_s29, %s1231_s0 }
  0x51   : > { %p1240_p3 = scmp.lt.u32.totalorder %s1231_s0, %s1518_s19 }
  0x52   : > { %p1234_p5 = pnand %p1232_p0, %p1203_p12  ;;  %p1239_p10 = por %p1238_p9, %p1237_p7 }
  0x54   : > { %p1235_p4 = pneg %p1234_p5  ;;  %p1241_p6 = por %p1240_p3, %p1239_p10 }
  0x56   : > { %p1242_p8 = pnand %p1241_p6, %p1235_p4 }
  0x58   : > { %1245 = shalt.err (!%p1242_p8)
}
  0x59   : > { %s1246_s30 = scalar_lea.vmem %s1520_s25, 6144  ;;  %s1356_s6 = smov [#allocation6]  }
  0x5a   : > { %p1247_p13 = scmp.ne.s32.totalorder %s1520_s25, %s1246_s30  ;;  %s1251_s7 = sshll.u32 %s1356_s6, 4  ;;  %s1252_s7 = int_to_ptr.vmem [resolvable:$false] %s1251_s7 }
  0x5b   : > { %s1253_s8 = scalar_lea.vmem %s1252_s7, 12288  ;;  %p1254_p0 = scmp.lt.s32.totalorder %s1520_s25, %s1252_s7 }
  0x5c   : > { %p1249_p1 = pnand %p1247_p13, %p1203_p12  ;;  %p1255_p5 = scmp.lt.s32.totalorder %s1253_s8, %s1246_s30 }
  0x5e   : > { %p1250_p2 = pneg %p1249_p1  ;;  %p1256_p7 = por %p1255_p5, %p1254_p0 }
  0x60   : > { %p1257_p9 = pnand %p1256_p7, %p1250_p2 }
  0x62   : > { %1260 = shalt.err (!%p1257_p9)
}
  0x63   : > { %s1357_s0 = smov 128   ;;  %s1358_s9 = smov 8  }
  0x64   : > { %1028 = dma.hbm_to_vmem [thread:$0]  (!%p1683_p11), %s1518_s19, 6144, %s1520_s25, %s1524_s28, %s1357_s0, %s1357_s0, %s1358_s9  }
  0x65   : > { %p1684_p12 = scmp.ne.s32.totalorder %s1679_s21, 0 }
  0x66   : > { %s233_s11 = sand.u32 (!%p1684_p12), 1, %s1333_s13   ;;  %p1685_p4 = scmp.ne.s32.totalorder (!%p1684_p12), %s1678_s20, 0 }
  0x67   : > { %231 = sbr.rel (%p1684_p12) target bundleno = 458 (0x1ca), region = 32  ;;  %s234_s22 = scalar_lea.sflag (!%p1684_p12), [#allocation4], %s233_s11 }
  0x68   : > { %s1004_s12 = smul.u32 (!%p1684_p12), 48, %s233_s11 }
  0x6a   : > { %s1553_s24 = scalar_lea.vmem (!%p1684_p12), [#allocation3], %s1004_s12 }
  0x6e   : > { %1312 = dma.done.wait (%p1685_p4), %s234_s22, 768  }
  0x6f   : > { %1314 = vsyncadd (%p1685_p4), %s234_s22, 4294966528  ;;  %s242_s27 = sand.u32 1, %s1413_s18   ;;  %s1005_s26 = smul.u32 384, %s233_s11 }
  0x70   : > { %s243_s19 = scalar_lea.sflag [#allocation7], %s242_s27 }
  0x71   : > { %s1560_s25 = scalar_lea.vmem [#allocation6], %s1005_s26 }
  0x72   : > { %1316 = dma.done.wait (%p1685_p4), %s243_s19, 6144  }
  0x73   : > { %1318 = vsyncadd (%p1685_p4), %s243_s19, 4294961152  ;;  %p1686_p11 = scmp.eq.s32.totalorder %s1413_s18, 0 }
  0x75   : > { %1320 = dma.done.wait (%p1686_p11), [#allocation7], 32   ;;  %p1687_p10 = pmov %p1686_p11 }
  0x76   : > { %p930_p3 = scmp.ne.s32.totalorder %s1341_s15, 0 }
  0x77   : > { %1322 = vsyncadd (%p1687_p10), [#allocation7], 4294967264  ;;  %v1359_v0 = vmov (!%p930_p3), 0.0  }
  0x78   : > { %284 = sbr.rel (%p930_p3) target bundleno = 127 (0x7f), region = 48  ;;  %285 = vst [vmem:[#allocation2] sm:$0xff] (!%p930_p3), %v1359_v0  ;;  %286 = vst [vmem:[#allocation2 + $0x8] sm:$0xff] (!%p930_p3), %v1359_v0 }
  0x79   : > { %287 = vst [vmem:[#allocation2 + $0x10] sm:$0xff] (!%p930_p3), %v1359_v0  ;;  %288 = vst [vmem:[#allocation2 + $0x18] sm:$0xff] (!%p930_p3), %v1359_v0 }
  0x7a   : > { %289 = vst [vmem:[#allocation2 + $0x20] sm:$0xff] (!%p930_p3), %v1359_v0  ;;  %290 = vst [vmem:[#allocation2 + $0x28] sm:$0xff] (!%p930_p3), %v1359_v0 }
  0x7b   : > { %291 = vst [vmem:[#allocation2 + $0x30] sm:$0xff] (!%p930_p3), %v1359_v0  ;;  %292 = vst [vmem:[#allocation2 + $0x38] sm:$0xff] (!%p930_p3), %v1359_v0 }
  0x7f PF: > { %v1093_v1 = vld [vmem:[%s1560_s25 + $0x4] ss:$8 sps:$4 sm:$0xff]   ;;  %v1095_v2 = vld [vmem:[%s1560_s25] ss:$8 sps:$4 sm:$0xff]   ;;  %v1360_v3 = vmov 0   ;;  %p985_p6 = scmp.ne.s32.totalorder %s1341_s15, 5 }
  0x80   : > { %714 = vmatprep.mubr.bf16.mxu0 %v1360_v3  ;;  %629 = vmatprep.subr.bf16.mxu1 %v1093_v1  ;;  %v1096_v4 = vld [vmem:[%s1560_s25 + $0x14] ss:$8 sps:$4 sm:$0xff]   ;;  %v1098_v5 = vld [vmem:[%s1560_s25 + $0x10] ss:$8 sps:$4 sm:$0xff]   ;;  %v1099_v6 = vld [vmem:[%s1560_s25 + $0x24] ss:$8 sps:$4 sm:$0xff]  }
  0x81   : > { %630 = vmatpush1.bf16.msra.mxu1 %v1095_v2  ;;  %v1101_v7 = vld [vmem:[%s1560_s25 + $0x20] ss:$8 sps:$4 sm:$0xff]   ;;  %v1102_v8 = vld [vmem:[%s1560_s25 + $0x34] ss:$8 sps:$4 sm:$0xff]   ;;  %v1104_v9 = vld [vmem:[%s1560_s25 + $0x30] ss:$8 sps:$4 sm:$0xff]  }
  0x82   : > { %631 = vmatprep.subr.bf16.mxu1 %v1096_v4  ;;  %v1117_v10 = vld [vmem:[%s1560_s25 + $0x104] ss:$8 sps:$4 sm:$0xff]   ;;  %v1119_v11 = vld [vmem:[%s1560_s25 + $0x100] ss:$8 sps:$4 sm:$0xff]   ;;  %v1123_v13 = vld [vmem:[%s1560_s25 + $0x114] ss:$8 sps:$4 sm:$0xff]  }
  0x83   : > { %v1105_v12 = vld [vmem:[%s1560_s25 + $0x44] ss:$8 sps:$4 sm:$0xff]   ;;  %682 = vmatprep.subr.bf16.mxu0 %v1117_v10  ;;  %v1125_v14 = vld [vmem:[%s1560_s25 + $0x110] ss:$8 sps:$4 sm:$0xff]   ;;  %v1107_v15 = vld [vmem:[%s1560_s25 + $0x40] ss:$8 sps:$4 sm:$0xff]  }
  0x84   : > { %683 = vmatpush1.bf16.msra.mxu0 %v1119_v11  ;;  %v1108_v16 = vld [vmem:[%s1560_s25 + $0x54] ss:$8 sps:$4 sm:$0xff]   ;;  %v1129_v17 = vld [vmem:[%s1560_s25 + $0x124] ss:$8 sps:$4 sm:$0xff]   ;;  %v1131_v18 = vld [vmem:[%s1560_s25 + $0x120] ss:$8 sps:$4 sm:$0xff]  }
  0x85   : > { %632 = vmatpush1.bf16.msra.mxu1 %v1098_v5  ;;  %684 = vmatprep.subr.bf16.mxu0 %v1123_v13  ;;  %v1110_v19 = vld [vmem:[%s1560_s25 + $0x50] ss:$8 sps:$4 sm:$0xff]   ;;  %v1135_v20 = vld [vmem:[%s1560_s25 + $0x134] ss:$8 sps:$4 sm:$0xff]   ;;  %v1111_v21 = vld [vmem:[%s1560_s25 + $0x64] ss:$8 sps:$4 sm:$0xff]  }
  0x86   : > { %633 = vmatprep.subr.bf16.mxu1 %v1099_v6  ;;  %v1137_v22 = vld [vmem:[%s1560_s25 + $0x130] ss:$8 sps:$4 sm:$0xff]   ;;  %v1113_v23 = vld [vmem:[%s1560_s25 + $0x60] ss:$8 sps:$4 sm:$0xff]   ;;  %v1141_v24 = vld [vmem:[%s1560_s25 + $0x144] ss:$8 sps:$4 sm:$0xff]  }
  0x87   : > { %v1114_v25 = vld [vmem:[%s1560_s25 + $0x74] ss:$8 sps:$4 sm:$0xff]   ;;  %v1143_v26 = vld [vmem:[%s1560_s25 + $0x140] ss:$8 sps:$4 sm:$0xff]   ;;  %v1116_v27 = vld [vmem:[%s1560_s25 + $0x70] ss:$8 sps:$4 sm:$0xff]  }
  0x88   : > { %685 = vmatpush1.bf16.msra.mxu0 %v1125_v14  ;;  %v1147_v28 = vld [vmem:[%s1560_s25 + $0x154] ss:$8 sps:$4 sm:$0xff]   ;;  %v1120_v29 = vld [vmem:[%s1560_s25 + $0x84] ss:$8 sps:$4 sm:$0xff]   ;;  %v1149_v30 = vld [vmem:[%s1560_s25 + $0x150] ss:$8 sps:$4 sm:$0xff]  }
  0x89   : > { %634 = vmatpush1.bf16.msra.mxu1 %v1101_v7  ;;  %686 = vmatprep.subr.bf16.mxu0 %v1129_v17  ;;  %v1122_v31 = vld [vmem:[%s1560_s25 + $0x80] ss:$8 sps:$4 sm:$0xff]   ;;  %v1153_v32 = vld [vmem:[%s1560_s25 + $0x164] ss:$8 sps:$4 sm:$0xff]   ;;  %v1126_v33 = vld [vmem:[%s1560_s25 + $0x94] ss:$8 sps:$4 sm:$0xff]  }
  0x8a   : > { %635 = vmatprep.subr.bf16.mxu1 %v1102_v8  ;;  %v1128_v34 = vld [vmem:[%s1560_s25 + $0x90] ss:$8 sps:$4 sm:$0xff]   ;;  %v1155_v35 = vld [vmem:[%s1560_s25 + $0x160] ss:$8 sps:$4 sm:$0xff]   ;;  %v1159_v37 = vld [vmem:[%s1560_s25 + $0x174] ss:$8 sps:$4 sm:$0xff]  }
  0x8b   : > { %v1168_v36 = vld [vmem:[%s1553_s24 + $0x4] ss:$12 sps:$4 sm:$0xff]   ;;  %v1165_v42 = vld [vmem:[%s1553_s24 + $0x8] ss:$12 sps:$4 sm:$0xff]   ;;  %v1169_v47 = vld [vmem:[%s1553_s24 + $0x20] ss:$12 sps:$4 sm:$0xff]  }
  0x8c   : > { %687 = vmatpush1.bf16.msra.mxu0 %v1131_v18  ;;  %v1132_v38 = vld [vmem:[%s1560_s25 + $0xa4] ss:$8 sps:$4 sm:$0xff]   ;;  %661 = vmatprep.mubr.bf16.mxu1 %v1168_v36  ;;  %v1161_v39 = vld [vmem:[%s1560_s25 + $0x170] ss:$8 sps:$4 sm:$0xff]   ;;  %v1134_v40 = vld [vmem:[%s1560_s25 + $0xa0] ss:$8 sps:$4 sm:$0xff]  }
  0x8d   : > { %636 = vmatpush1.bf16.msra.mxu1 %v1104_v9  ;;  %688 = vmatprep.subr.bf16.mxu0 %v1135_v20  ;;  %v1138_v41 = vld [vmem:[%s1560_s25 + $0xb4] ss:$8 sps:$4 sm:$0xff]   ;;  %v1140_v43 = vld [vmem:[%s1560_s25 + $0xb0] ss:$8 sps:$4 sm:$0xff]   ;;  %v1144_v44 = vld [vmem:[%s1560_s25 + $0xc4] ss:$8 sps:$4 sm:$0xff]  }
  0x8e   : > { %637 = vmatprep.subr.bf16.mxu1 %v1105_v12  ;;  %v1146_v45 = vld [vmem:[%s1560_s25 + $0xc0] ss:$8 sps:$4 sm:$0xff]   ;;  %v1150_v46 = vld [vmem:[%s1560_s25 + $0xd4] ss:$8 sps:$4 sm:$0xff]   ;;  %v1152_v48 = vld [vmem:[%s1560_s25 + $0xd0] ss:$8 sps:$4 sm:$0xff]  }
  0x8f   : > { %v1156_v49 = vld [vmem:[%s1560_s25 + $0xe4] ss:$8 sps:$4 sm:$0xff]   ;;  %v1158_v50 = vld [vmem:[%s1560_s25 + $0xe0] ss:$8 sps:$4 sm:$0xff]   ;;  %v1162_v51 = vld [vmem:[%s1560_s25 + $0xf4] ss:$8 sps:$4 sm:$0xff]  }
  0x90   : > { %689 = vmatpush1.bf16.msra.mxu0 %v1137_v22  ;;  %v1164_v52 = vld [vmem:[%s1560_s25 + $0xf0] ss:$8 sps:$4 sm:$0xff]   ;;  %v293_v0 = vld [vmem:[#allocation2] sm:$0xff] }
  0x91   : > { %638 = vmatpush1.bf16.msra.mxu1 %v1107_v15  ;;  %690 = vmatprep.subr.bf16.mxu0 %v1141_v24  ;;  %v1166_v53 = vld [vmem:[%s1553_s24] ss:$12 sps:$4 sm:$0xff]   ;;  %v1170_v54 = vld [vmem:[%s1553_s24 + $0x1c] ss:$12 sps:$4 sm:$0xff]   ;;  %v1172_v55 = vld [vmem:[%s1553_s24 + $0x18] ss:$12 sps:$4 sm:$0xff]  }
  0x92   : > { %639 = vmatprep.subr.bf16.mxu1 %v1108_v16  ;;  %v295_v6 = vld [vmem:[#allocation2 + $0x10] sm:$0xff]  ;;  %v296_v10 = vld [vmem:[#allocation2 + $0x18] sm:$0xff]  ;;  %v297_v16 = vld [vmem:[#allocation2 + $0x20] sm:$0xff] }
  0x93   : > { %v299_v22 = vld [vmem:[#allocation2 + $0x30] sm:$0xff] }
  0x94   : > { %691 = vmatpush1.bf16.msra.mxu0 %v1143_v26  ;;  %v300_v26 = vld [vmem:[#allocation2 + $0x38] sm:$0xff] }
  0x95   : > { %640 = vmatpush1.bf16.msra.mxu1 %v1110_v19  ;;  %692 = vmatprep.subr.bf16.mxu0 %v1147_v28  ;;  %v298_v19 = vld [vmem:[#allocation2 + $0x28] sm:$0xff] }
  0x96   : > { %641 = vmatprep.subr.bf16.mxu1 %v1111_v21 }
  0x98   : > { %693 = vmatpush1.bf16.msra.mxu0 %v1149_v30 }
  0x99   : > { %642 = vmatpush1.bf16.msra.mxu1 %v1113_v23  ;;  %694 = vmatprep.subr.bf16.mxu0 %v1153_v32  ;;  %v765_v32 = vlaneseq (!%p985_p6) }
  0x9a   : > { %643 = vmatprep.subr.bf16.mxu1 %v1114_v25 }
  0x9c   : > { %695 = vmatpush1.bf16.msra.mxu0 %v1155_v35 }
  0x9d   : > { %644 = vmatpush1.bf16.msra.mxu1 %v1116_v27  ;;  %696 = vmatprep.subr.bf16.mxu0 %v1159_v37 }
  0x9e   : > { %645 = vmatprep.subr.bf16.mxu1 %v1120_v29 }
  0xa0   : > { %697 = vmatpush1.bf16.msra.mxu0 %v1161_v39 }
  0xa1   : > { %646 = vmatpush1.bf16.msra.mxu1 %v1122_v31 }
  0xa2   : > { %647 = vmatprep.subr.bf16.mxu1 %v1126_v33  ;;  %v766_v33 = vshrl.u32 (!%p985_p6), %v765_v32, 7 }
  0xa3   : > { %715 = vmatmul.mubr.bf16.vlgmr.msra.gmra.mrb[0].mxu0 %v1165_v42 }
  0xa4   : > { %724 = vmatprep.mubr.bf16.mxu0 %v1360_v3  ;;  %v294_v3 = vld [vmem:[#allocation2 + $0x8] sm:$0xff]  ;;  %v767_v36 = vsub.s32 (!%p985_p6), 0, %v766_v33 }
  0xa5   : > { %648 = vmatpush1.bf16.msra.mxu1 %v1128_v34  ;;  %v763_v34 = vld [vmem:[#allocation8] sm:$0x3] (!%p985_p6) }
  0xa6   : > { %649 = vmatprep.subr.bf16.mxu1 %v1132_v38  ;;  %v771_v38 = vsub.s32 (!%p985_p6), 1, %v766_v33  ;;  %v768_v42 = vrot.slane (!%p985_p6), %v763_v34, %v767_v36 }
  0xa9   : > { %650 = vmatpush1.bf16.msra.mxu1 %v1134_v40 }
  0xaa   : > { %651 = vmatprep.subr.bf16.mxu1 %v1138_v41 }
  0xab   : > { %725 = vmatmul.mubr.bf16.gmra.mrb[4].mxu0 %v1169_v47 }
  0xad   : > { %652 = vmatpush1.bf16.msra.mxu1 %v1140_v43  ;;  %v772_v43 = vrot.slane (!%p985_p6), %v763_v34, %v771_v38 }
  0xae   : > { %653 = vmatprep.subr.bf16.mxu1 %v1144_v44 }
  0xb1   : > { %654 = vmatpush1.bf16.msra.mxu1 %v1146_v45 }
  0xb2   : > { %655 = vmatprep.subr.bf16.mxu1 %v1150_v46 }
  0xb5   : > { %656 = vmatpush1.bf16.msra.mxu1 %v1152_v48 }
  0xb6   : > { %657 = vmatprep.subr.bf16.mxu1 %v1156_v49 }
  0xb9   : > { %658 = vmatpush1.bf16.msra.mxu1 %v1158_v50 }
  0xba   : > { %659 = vmatprep.subr.bf16.mxu1 %v1162_v51 }
  0xbd   : > { %660 = vmatpush1.bf16.msra.mxu1 %v1164_v52 }
  0xc0   : > { %662 = vmatmul.mubr.bf16.vlgmr.msra.gmra.mrb[0].mxu1 %v1166_v53 }
  0xc1   : > { %671 = vmatprep.mubr.bf16.mxu1 %v1170_v54 }
  0xc8   : > { %672 = vmatmul.mubr.bf16.gmra.mrb[4].mxu1 %v1172_v55 }
 0x176   : > { %v716_v56 = vpop.f32.mrb[0].mxu0 }
 0x177   : > { %v718_v57 = vpop.f32.mrb[1].mxu0 }
 0x178   : > { %v720_v58 = vpop.f32.mrb[2].mxu0 }
 0x179   : > { %v722_v59 = vpop.f32.mrb[3].mxu0 }
 0x17e   : > { %v726_v60 = vpop.f32.mrb[4].mxu0 }
 0x17f   : > { %v728_v61 = vpop.f32.mrb[5].mxu0 }
 0x180   : > { %v730_v62 = vpop.f32.mrb[6].mxu0 }
 0x181   : > { %v732_v63 = vpop.f32.mrb[7].mxu0 }
 0x193   : > { %v663_v1 = vpop.f32.mrb[0].mxu1 }
 0x194   : > { %v717_v2 = vadd.f32 %v716_v56, %v663_v1  ;;  %v665_v4 = vpop.f32.mrb[1].mxu1 }
 0x195   : > { %v719_v5 = vadd.f32 %v718_v57, %v665_v4  ;;  %v667_v7 = vpop.f32.mrb[2].mxu1 }
 0x196   : > { %v735_v8 = vadd.f32 %v717_v2, %v293_v0  ;;  %v721_v9 = vadd.f32 %v720_v58, %v667_v7  ;;  %v669_v11 = vpop.f32.mrb[3].mxu1 }
 0x197   : > { %v736_v12 = vadd.f32 %v719_v5, %v294_v3  ;;  %v723_v13 = vadd.f32 %v722_v59, %v669_v11 }
 0x198   : > { %743 = vst [vmem:[#allocation2] sm:$0xff] %v735_v8  ;;  %v737_v14 = vadd.f32 %v721_v9, %v295_v6 }
 0x199   : > { %744 = vst [vmem:[#allocation2 + $0x8] sm:$0xff] %v736_v12  ;;  %v738_v15 = vadd.f32 %v723_v13, %v296_v10 }
 0x19a   : > { %745 = vst [vmem:[#allocation2 + $0x10] sm:$0xff] %v737_v14 }
 0x19b   : > { %746 = vst [vmem:[#allocation2 + $0x18] sm:$0xff] %v738_v15  ;;  %v673_v17 = vpop.f32.mrb[4].mxu1 }
 0x19c   : > { %v727_v18 = vadd.f32 %v726_v60, %v673_v17  ;;  %v675_v20 = vpop.f32.mrb[5].mxu1 }
 0x19d   : > { %v729_v21 = vadd.f32 %v728_v61, %v675_v20  ;;  %v677_v23 = vpop.f32.mrb[6].mxu1  ;;  %754 = sbr.rel (%p985_p6) target bundleno = 432 (0x1b0), region = 52 }
 0x19e   : > { %v739_v24 = vadd.f32 %v727_v18, %v297_v16  ;;  %v731_v25 = vadd.f32 %v730_v62, %v677_v23  ;;  %v679_v27 = vpop.f32.mrb[7].mxu1 }
 0x19f   : > { %v740_v28 = vadd.f32 %v729_v21, %v298_v19  ;;  %v733_v29 = vadd.f32 %v732_v63, %v679_v27  ;;  %v755_v35 = vld [vmem:[#allocation2] sm:$0xff] (!%p985_p6) }
 0x1a0   : > { %747 = vst [vmem:[#allocation2 + $0x20] sm:$0xff] %v739_v24  ;;  %v741_v30 = vadd.f32 %v731_v25, %v299_v22  ;;  %v756_v37 = vld [vmem:[#allocation2 + $0x8] sm:$0xff] (!%p985_p6)  ;;  %v775_v47 = vadd.f32 (!%p985_p6), %v768_v42, %v755_v35 }
 0x1a1   : > { %748 = vst [vmem:[#allocation2 + $0x28] sm:$0xff] %v740_v28  ;;  %v742_v31 = vadd.f32 %v733_v29, %v300_v26  ;;  %v757_v39 = vld [vmem:[#allocation2 + $0x10] sm:$0xff] (!%p985_p6)  ;;  %v776_v48 = vadd.f32 (!%p985_p6), %v772_v43, %v756_v37 }
 0x1a2   : > { %749 = vst [vmem:[#allocation2 + $0x30] sm:$0xff] %v741_v30  ;;  %v758_v40 = vld [vmem:[#allocation2 + $0x18] sm:$0xff] (!%p985_p6)  ;;  %v777_v49 = vadd.f32 (!%p985_p6), %v768_v42, %v757_v39  ;;  %v783_v55 = vmax.f32 (!%p985_p6), %v775_v47, 0.0 }
 0x1a3   : > { %750 = vst [vmem:[#allocation2 + $0x38] sm:$0xff] %v742_v31  ;;  %v778_v50 = vadd.f32 (!%p985_p6), %v772_v43, %v758_v40  ;;  %v784_v56 = vmax.f32 (!%p985_p6), %v776_v48, 0.0 }
 0x1a4   : > { %v785_v57 = vmax.f32 %v777_v49, 0.0  ;;  %791 = vst [vmem:[#allocation9] sm:$0xff] %v783_v55 }
 0x1a5   : > { %v786_v58 = vmax.f32 %v778_v50, 0.0  ;;  %792 = vst [vmem:[#allocation9 + $0x8] sm:$0xff] %v784_v56 }
 0x1a6   : > { %793 = vst [vmem:[#allocation9 + $0x10] sm:$0xff] %v785_v57 }
 0x1a7   : > { %v759_v41 = vld [vmem:[#allocation2 + $0x20] sm:$0xff]  ;;  %794 = vst [vmem:[#allocation9 + $0x18] sm:$0xff] %v786_v58 }
 0x1a8   : > { %v760_v44 = vld [vmem:[#allocation2 + $0x28] sm:$0xff]  ;;  %v779_v51 = vadd.f32 %v768_v42, %v759_v41 }
 0x1a9   : > { %v761_v45 = vld [vmem:[#allocation2 + $0x30] sm:$0xff]  ;;  %v780_v52 = vadd.f32 %v772_v43, %v760_v44 }
 0x1aa   : > { %v762_v46 = vld [vmem:[#allocation2 + $0x38] sm:$0xff]  ;;  %v781_v53 = vadd.f32 %v768_v42, %v761_v45  ;;  %v787_v59 = vmax.f32 %v779_v51, 0.0 }
 0x1ab   : > { %v782_v54 = vadd.f32 %v772_v43, %v762_v46  ;;  %v788_v60 = vmax.f32 %v780_v52, 0.0 }
 0x1ac   : > { %v789_v61 = vmax.f32 %v781_v53, 0.0  ;;  %795 = vst [vmem:[#allocation9 + $0x20] sm:$0xff] %v787_v59 }
 0x1ad   : > { %v790_v62 = vmax.f32 %v782_v54, 0.0  ;;  %796 = vst [vmem:[#allocation9 + $0x28] sm:$0xff] %v788_v60 }
 0x1ae   : > { %797 = vst [vmem:[#allocation9 + $0x30] sm:$0xff] %v789_v61 }
 0x1af   : > { %798 = vst [vmem:[#allocation9 + $0x38] sm:$0xff] %v790_v62 }
 0x1b0 PF: > { %p1032_p8 = scmp.eq.s32.totalorder %s1413_s18, 5  ;;  %s1361_s15 = smov [#allocation9]  }
 0x1b1   : > { %s811_s20 = sshll.u32 %s1361_s15, 4  ;;  %s812_s20 = int_to_ptr.vmem [resolvable:$true] %s811_s20 }
 0x1b2   : > { %s1261_s21 = scalar_lea.vmem %s812_s20, 1024  ;;  %p1268_p0 = scmp.lt.s32.totalorder %s812_s20, %s812_s20 }
 0x1b3   : > { %p1262_p13 = scmp.ne.s32.totalorder %s812_s20, %s1261_s21  ;;  %p1269_p5 = scmp.lt.s32.totalorder %s1261_s21, %s1261_s21 }
 0x1b5   : > { %p1263_p1 = pnand %p1262_p13, %p1032_p8  ;;  %p1270_p7 = por %p1269_p5, %p1268_p0 }
 0x1b7   : > { %p1264_p2 = pneg %p1263_p1 }
 0x1b9   : > { %p1271_p9 = pnand %p1270_p7, %p1264_p2 }
 0x1bb   : > { %1274 = shalt.err (!%p1271_p9)
}
 0x1bc   : > { %s1275_s5 = scalar_lea.hbm %s1672_s3, 1024 }
 0x1bd   : > { %p1276_p12 = scmp.ne.s32.totalorder %s1672_s3, %s1275_s5  ;;  %p1281_p10 = scmp.lt.u32.totalorder %s1275_s5, %s1672_s3 }
 0x1bf   : > { %p1277_p4 = pnand %p1276_p12, %p1032_p8 }
 0x1c1   : > { %p1278_p11 = pneg %p1277_p4 }
 0x1c3   : > { %p1283_p3 = pnand %p1281_p10, %p1278_p11 }
 0x1c5   : > { %1286 = shalt.err (!%p1283_p3)
}
 0x1c6   : > { %s1362_s8 = smov 256   ;;  %s1363_s0 = smov 16  }
 0x1c7   : > { %1015 = dma.vmem_to_hbm [thread:$0]  (%p1032_p8), %s812_s20, 1024, %s1672_s3, [#allocation5], %s1362_s8, %s1362_s8, %s1363_s0  }
 0x1c8   : > { %1324 = dma.done.wait (%p1032_p8), [#allocation5], 1024  }
 0x1c9   : > { %1326 = vsyncadd (%p1032_p8), [#allocation5], 4294966272 }
 0x1ca PF: > { %s20_s17 = sadd.s32 1, %s1349_s17   ;;  %s1688_s12 = smov %s1333_s13 }
 0x1cb   : > { %p17_p6 = scmp.ge.s32.totalorder %s20_s17, 8   ;;  %s1689_s13 = smov %s1337_s14 }
 0x1cc   : > { %s1690_s14 = smov %s1483_s4  ;;  %s1691_s15 = smov %s1345_s16 }
 0x1cd   : > { %s1692_s16 = smov %s1694_s10  ;;  %19 = sbr.rel (!%p17_p6) target bundleno = 9 (0x9), region = 96 }
 0x1d4   :  { %827 = vsyncpa [#allocation4], 1 }
 0x1d5   :  { %829 = vsyncpa [#allocation4 + $0x1], 1 }
 0x1d6   :  { %830 = vsyncpa [#allocation7], 1 }
 0x1d7   :  { %832 = vsyncpa [#allocation7 + $0x1], 1 }
 0x1d8   :  { %833 = vsyncpa [#allocation5], 1 }
 0x1d9   :  { %835 = vsyncpa [#allocation5 + $0x1], 1 }

// kernel: csrnet_forward.36
= control target key start
LH: loop header
LB: loop body
LE: loop exit
PB: predicated region body
PF: predicated region fallthrough
CT: control target
= control target key end

     0   :  { %s1901_s0 = inlined_call_operand.hbm [shape: bf16[8,2304], index: 0, kind: input, shape index: {}]   ;;  %s1902_s1 = inlined_call_operand.hbm [shape: bf16[2304,512], index: 1, kind: input, shape index: {}]   ;;  %s1903_s2 = inlined_call_operand.hbm [shape: f32[1,512], index: 2, kind: input, shape index: {}]   ;;  %s1904_s3 = inlined_call_operand.hbm [shape: f32[8,512], index: 3, kind: output, shape index: {}]  }
   0x1   :  { %1918 = sst [smem:[#allocation20_spill]] %s1901_s0 }
   0x2   :  { %1919 = sst [smem:[#allocation21_spill]] %s1902_s1 }
   0x3   :  { %1920 = sst [smem:[#allocation22_spill]] %s1904_s3 }
   0x4   :  { %8 = vsyncpa [#allocation4], 0 }
   0x5   :  { %10 = vsyncpa [#allocation4 + $0x1], 0 }
   0x6   :  { %11 = vsyncpa [#allocation7], 0 }
   0x7   :  { %13 = vsyncpa [#allocation7 + $0x1], 0 }
   0x8   :  { %14 = vsyncpa [#allocation5], 0 }
   0x9   :  { %16 = vsyncpa [#allocation5 + $0x1], 0  ;;  %s1441_s12 = smov 0   ;;  %s1443_s13 = smov 0  }
   0xa   :  { %s1445_s14 = smov 0   ;;  %s1447_s15 = smov 0  }
   0xb   :  { %s1449_s16 = smov 0   ;;  %s1451_s17 = smov 0  }
   0xc   :  { %s1453_s18 = smov 0   ;;  %s1455_s19 = smov 0  }
   0xd   :  { %s1457_s20 = smov 0   ;;  %s1459_s21 = smov 0  }
   0xe   :  { %s1461_s22 = smov 0   ;;  %s1463_s23 = smov 0  }
   0xf   :  { %s1465_s24 = smov 0   ;;  %s1467_s25 = smov 0  }
  0x10 LB: > { %1921 = sst [smem:[#allocation14_spill]] %s1390_s20  ;;  %s34_s26 = sadd.s32 1, %s1402_s23  ;;  %s1410_s25 = sphi %s1467_s25, %s22_s25   ;;  %s1406_s24 = sphi %s1465_s24, %s1975_s24   ;;  %s1402_s23 = sphi %s1463_s23, %s1974_s23   ;;  %s1398_s22 = sphi %s1461_s22, %s1973_s22   ;;  %s1394_s21 = sphi %s1459_s21, %s1972_s21   ;;  %s1390_s20 = sphi %s1457_s20, %s1959_s20   ;;  %s1386_s19 = sphi %s1455_s19, %s1971_s19   ;;  %s1382_s18 = sphi %s1453_s18, %s1970_s18   ;;  %s1378_s17 = sphi %s1451_s17, %s1969_s17   ;;  %s1374_s16 = sphi %s1449_s16, %s1968_s16   ;;  %s1370_s15 = sphi %s1447_s15, %s1967_s15   ;;  %s1366_s14 = sphi %s1445_s14, %s1966_s14   ;;  %s1362_s13 = sphi %s1443_s13, %s1965_s13   ;;  %s1358_s12 = sphi %s1441_s12, %s1964_s12  }
  0x11   : > { %1922 = sst [smem:[#allocation15_spill]] %s1402_s23  ;;  %p1513_p0 = scmp.ge.s32.totalorder %s34_s26, 6 }
  0x12   : > { %p1908_p1 = scmp.eq.s32.totalorder %s1410_s25, 0  ;;  %p85_p2 = scmp.ne.s32.totalorder %s1378_s17, %s1374_s16 }
  0x13   : > { %s1977_s26 = smov (%p1513_p0, %s34_s26), 0  ;;  %p1907_p5 = scmp.lt.s32.totalorder %s1410_s25, 12 }
  0x14   : > { %1924 = sst [smem:[#allocation16_spill]] %s1977_s26  ;;  %p87_p3 = por %p85_p2, %p1908_p1 }
  0x15   : > { %s1906_s30 = smul.u32 192, %s1402_s23  ;;  %s190_s4 = sand.u32 1, %s1410_s25  }
  0x16   : > { %s192_s5 = sand.u32 1, %s1378_s17   ;;  %s875_s7 = sshll.u32 %s1406_s24, 1 }
  0x17   : > { %s947_s6 = smul.u32 384, %s192_s5  ;;  %s201_s8 = sadd.s32 %s1906_s30, %s875_s7 }
  0x18   : > { %p1538_p6 = pnand %p1907_p5, %p87_p3  ;;  %s877_s10 = sshll.u32 %s201_s8, 6 }
  0x19   : > { %s1926_s1 = sld [smem:[#allocation21_spill]]  ;;  %s194_s5 = scalar_lea.vmem [#allocation6], %s947_s6 }
  0x1a   : > { %s204_s3 = sshll.u32 %s194_s5, 4  ;;  %s1550_s7 = scalar_lea.sflag [#allocation7], %s190_s4  ;;  %s1547_s3 = int_to_ptr.vmem [resolvable:$true] %s204_s3 }
  0x1b   : > { %p1168_p9 = pneg %p1538_p6 }
  0x1f   : > { %s1545_s27 = scalar_lea.hbm %s1926_s1, %s877_s10  ;;  %s1171_s10 = scalar_lea.hbm %s1926_s1, 73728 }
  0x20   : > { %s1166_s30 = scalar_lea.hbm %s1545_s27, 6144  ;;  %p1172_p12 = scmp.lt.u32.totalorder %s1545_s27, %s1926_s1 }
  0x21   : > { %p1167_p8 = scmp.ne.s32.totalorder %s1545_s27, %s1166_s30  ;;  %p1173_p13 = scmp.lt.u32.totalorder %s1171_s10, %s1166_s30 }
  0x22   : > { %p1175_p3 = scmp.lt.u32.totalorder %s1166_s30, %s1545_s27 }
  0x23   : > { %p1169_p10 = pnand %p1168_p9, %p1167_p8  ;;  %p1174_p2 = por %p1173_p13, %p1172_p12 }
  0x25   : > { %p1170_p11 = pneg %p1169_p10  ;;  %p1176_p5 = por %p1175_p3, %p1174_p2 }
  0x27   : > { %p1177_p4 = pnand %p1176_p5, %p1170_p11 }
  0x29   : > { %1180 = shalt.err (!%p1177_p4)
}
  0x2a   : > { %s1181_s4 = scalar_lea.vmem %s1547_s3, 6144  ;;  %s1412_s5 = smov [#allocation6]  }
  0x2b   : > { %p1182_p8 = scmp.ne.s32.totalorder %s1547_s3, %s1181_s4  ;;  %s1186_s29 = sshll.u32 %s1412_s5, 4  ;;  %s1187_s29 = int_to_ptr.vmem [resolvable:$false] %s1186_s29 }
  0x2c   : > { %s1188_s8 = scalar_lea.vmem %s1187_s29, 12288  ;;  %p1189_p7 = scmp.lt.s32.totalorder %s1547_s3, %s1187_s29 }
  0x2d   : > { %p1184_p10 = pnand %p1182_p8, %p1168_p9  ;;  %p1190_p12 = scmp.lt.s32.totalorder %s1188_s8, %s1181_s4 }
  0x2f   : > { %p1185_p1 = pneg %p1184_p10  ;;  %p1191_p13 = por %p1190_p12, %p1189_p7 }
  0x31   : > { %p1192_p2 = pnand %p1191_p13, %p1185_p1 }
  0x33   : > { %1195 = shalt.err (!%p1192_p2)
}
  0x34   : > { %s1413_s30 = smov 256   ;;  %s1414_s10 = smov 128  }
  0x35   : > { %s1415_s11 = smov 8   ;;  %p231_p1 = scmp.lt.s32.totalorder %s1410_s25, 13 }
  0x36   : > { %964 = dma.hbm_to_vmem [thread:$0]  (!%p1538_p6), %s1545_s27, 6144, %s1547_s3, %s1550_s7, %s1413_s30, %s1414_s10, %s1415_s11  }
  0x37   : > { %p1927_p4 = scmp.ge.s32.totalorder %s1410_s25, 1  ;;  %s1586_s4 = sadd.s32 4294967295, %s1410_s25  }
  0x38   : > { %s46_s5 = ssub.s32 %s1402_s23, %s1977_s26  ;;  %s1929_s29 = sadd.s32 1, %s1406_s24 }
  0x39   : > { %p1581_p5 = pnand %p1927_p4, %p231_p1  ;;  %s1979_s29 = smov (!%p1513_p0, %s1929_s29), %s1406_s24 }
  0x3a   : > { %p48_p6 = scmp.eq.s32.totalorder %s46_s5, 0  ;;  %s50_s3 = sadd.s32 1, %s1390_s20 }
  0x3b   : > { %s1928_s6 = scalar_select %p1581_p5, 1, 0 }
  0x3c   : > { %p39_p7 = scmp.ge.s32.totalorder %s1979_s29, 2  ;;  %p57_p9 = scmp.ne.s32.totalorder %s1390_s20, %s1386_s19 }
  0x3d   : > { %s1599_s27 = scalar_select %p48_p6, %s1390_s20, %s50_s3  }
  0x3e   : > { %s1981_s29 = smov (%p39_p7, %s1979_s29), 0  ;;  %p1932_p11 = scmp.eq.s32.totalorder %s1410_s25, 0 }
  0x3f   : > { %1930 = sst [smem:[#allocation17_spill]] %s1599_s27  ;;  %p63_p8 = scmp.ne.s32.totalorder %s1386_s19, %s1382_s18 }
  0x40   : > { %1931 = sst [smem:[#allocation18_spill]] %s1981_s29  ;;  %p59_p3 = por %p1932_p11, %p57_p9 }
  0x41   : > { %p1913_p10 = scmp.eq.s32.totalorder %s1586_s4, 0  ;;  %s1610_s28 = ssub.s32 %s1406_s24, %s1981_s29 }
  0x42   : > { %s75_s9 = sor.u32 %s1610_s28, %s46_s5  ;;  %s169_s8 = sand.u32 1, %s1390_s20  }
  0x43   : > { %p1616_p0 = por %p1913_p10, %p63_p8  ;;  %p76_p12 = scmp.eq.s32.totalorder %s75_s9, 0 }
  0x44   : > { %p1934_p13 = scmp.ne.s32.totalorder %s1374_s16, %s1370_s15  ;;  %s1936_s11 = sadd.s32 1, %s1378_s17 }
  0x45   : > { %s1933_s30 = scalar_select %p1616_p0, 1, 0 }
  0x46   : > { %p1625_p2 = por %p1934_p13, %p1913_p10  ;;  %s946_s3 = smul.u32 12, %s169_s8 }
  0x47   : > { %s1632_s18 = scalar_select %p76_p12, %s1378_s17, %s1936_s11  }
  0x48   : > { %s1935_s10 = scalar_select %p1625_p2, 1, 0 }
  0x49   : > { %1937 = sst [smem:[#allocation19_spill]] %s1632_s18  ;;  %s1938_s1 = smul.u32 192, %s1402_s23 }
  0x4a   : > { %s1939_s0 = sld [smem:[#allocation20_spill]]  ;;  %p1940_p1 = scmp.lt.s32.totalorder %s1410_s25, 12 }
  0x4b   : > { %s173_s9 = scalar_lea.vmem [#allocation3], %s946_s3  ;;  %s170_s23 = scalar_lea.sflag [#allocation4], %s169_s8 }
  0x4c   : > { %p1643_p4 = pnand %p1940_p1, %p59_p3  ;;  %s183_s11 = sshll.u32 %s173_s9, 4  ;;  %s1647_s11 = int_to_ptr.vmem [resolvable:$true] %s183_s11 }
  0x4e   : > { %p1198_p7 = pneg %p1643_p4 }
  0x50   : > { %s1639_s26 = scalar_lea.hbm %s1939_s0, %s1938_s1  ;;  %s1201_s5 = scalar_lea.hbm %s1939_s0, 1152 }
  0x51   : > { %s1196_s27 = scalar_lea.hbm %s1639_s26, 192  ;;  %p1202_p3 = scmp.lt.u32.totalorder %s1639_s26, %s1939_s0 }
  0x52   : > { %p1197_p6 = scmp.ne.s32.totalorder %s1639_s26, %s1196_s27  ;;  %p1203_p8 = scmp.lt.u32.totalorder %s1201_s5, %s1196_s27 }
  0x53   : > { %p1205_p13 = scmp.lt.u32.totalorder %s1196_s27, %s1639_s26 }
  0x54   : > { %p1199_p9 = pnand %p1198_p7, %p1197_p6  ;;  %p1204_p12 = por %p1203_p8, %p1202_p3 }
  0x56   : > { %p1200_p11 = pneg %p1199_p9  ;;  %p1206_p1 = por %p1205_p13, %p1204_p12 }
  0x58   : > { %p1207_p10 = pnand %p1206_p1, %p1200_p11 }
  0x5a   : > { %1210 = shalt.err (!%p1207_p10)
}
  0x5b   : > { %s1211_s8 = scalar_lea.vmem %s1647_s11, 192  ;;  %s1416_s3 = smov [#allocation3]  }
  0x5c   : > { %p1212_p6 = scmp.ne.s32.totalorder %s1647_s11, %s1211_s8  ;;  %s1216_s9 = sshll.u32 %s1416_s3, 4  ;;  %s1217_s9 = int_to_ptr.vmem [resolvable:$false] %s1216_s9 }
  0x5d   : > { %s1218_s20 = scalar_lea.vmem %s1217_s9, 384  ;;  %p1219_p0 = scmp.lt.s32.totalorder %s1647_s11, %s1217_s9 }
  0x5e   : > { %p1214_p9 = pnand %p1212_p6, %p1198_p7  ;;  %p1220_p3 = scmp.lt.s32.totalorder %s1218_s20, %s1211_s8 }
  0x60   : > { %p1215_p2 = pneg %p1214_p9  ;;  %p1221_p8 = por %p1220_p3, %p1219_p0 }
  0x62   : > { %p1222_p12 = pnand %p1221_p8, %p1215_p2 }
  0x64   : > { %1225 = shalt.err (!%p1222_p12)
}
  0x65   : > { %961 = dma.hbm_to_vmem [thread:$0]  (!%p1643_p4), %s1639_s26, 192, %s1647_s11, %s170_s23  }
  0x66   : > { %s871_s27 = sadd.s32 4294967294, %s1410_s25   ;;  %p102_p10 = scmp.eq.s32.totalorder %s1610_s28, 0 }
  0x67   : > { %s104_s18 = sadd.s32 1, %s1366_s14  ;;  %p111_p0 = scmp.ne.s32.totalorder %s1366_s14, %s1362_s13 }
  0x68   : > { %p117_p2 = scmp.ne.s32.totalorder %s1362_s13, %s1358_s12  ;;  %p1942_p7 = scmp.eq.s32.totalorder %s1410_s25, 0 }
  0x69   : > { %s1682_s15 = scalar_select %p102_p10, %s1366_s14, %s104_s18  }
  0x6a   : > { %p113_p11 = por %p111_p0, %p1942_p7  ;;  %p1943_p13 = scmp.eq.s32.totalorder %s1586_s4, 0 }
  0x6b   : > { %p143_p6 = scmp.eq.s32.totalorder %s1586_s4, 11  ;;  %p149_p9 = scmp.eq.s32.totalorder %s871_s27, 11 }
  0x6c   : > { %p1688_p1 = por %p117_p2, %p1943_p13  ;;  %s216_s29 = sand.u32 1, %s1366_s14  }
  0x6d   : > { %s944_s5 = sshll.u32 %s1406_s24, 5  ;;  %p1695_p4 = por %p143_p6, %p111_p0 }
  0x6e   : > { %s1944_s1 = scalar_select %p1688_p1, 1, 0 }
  0x6f   : > { %s1945_s23 = scalar_select %p1695_p4, 1, 0 }
  0x70   : > { %p1699_p3 = por %p149_p9, %p117_p2  ;;  %s878_s28 = sshll.u32 %s216_s29, 1 }
  0x71   : > { %s1706_s3 = scalar_lea.hbm %s1903_s2, %s944_s5  ;;  %p1947_p8 = scmp.lt.s32.totalorder %s1410_s25, 12 }
  0x72   : > { %s1946_s26 = scalar_select %p1699_p3, 1, 0 }
  0x73   : > { %p1710_p12 = pnand %p1947_p8, %p113_p11  ;;  %s218_s20 = scalar_lea.vmem [#allocation8], %s878_s28 }
  0x74   : > { %s226_s27 = sshll.u32 %s218_s20, 4  ;;  %s1226_s18 = scalar_lea.hbm %s1706_s3, 32  ;;  %s227_s27 = int_to_ptr.vmem [resolvable:$true] %s226_s27 }
  0x75   : > { %p1227_p10 = scmp.ne.s32.totalorder %s1706_s3, %s1226_s18  ;;  %p1228_p0 = pneg %p1710_p12 }
  0x76   : > { %s1231_s11 = scalar_lea.hbm %s1903_s2, 64  ;;  %p1232_p11 = scmp.lt.u32.totalorder %s1706_s3, %s1903_s2 }
  0x77   : > { %p1229_p2 = pnand %p1228_p0, %p1227_p10  ;;  %p1233_p13 = scmp.lt.u32.totalorder %s1231_s11, %s1226_s18 }
  0x78   : > { %p1235_p9 = scmp.lt.u32.totalorder %s1226_s18, %s1706_s3 }
  0x79   : > { %p1230_p7 = pneg %p1229_p2  ;;  %p1234_p6 = por %p1233_p13, %p1232_p11 }
  0x7b   : > { %p1236_p8 = por %p1235_p9, %p1234_p6 }
  0x7d   : > { %p1237_p3 = pnand %p1236_p8, %p1230_p7 }
  0x7f   : > { %1240 = shalt.err (!%p1237_p3)
}
  0x80   : > { %s1241_s28 = scalar_lea.vmem %s227_s27, 32  ;;  %s1417_s20 = smov [#allocation8]  }
  0x81   : > { %p1242_p4 = scmp.ne.s32.totalorder %s227_s27, %s1241_s28  ;;  %s1246_s29 = sshll.u32 %s1417_s20, 4  ;;  %s1247_s29 = int_to_ptr.vmem [resolvable:$false] %s1246_s29 }
  0x82   : > { %s1248_s5 = scalar_lea.vmem %s1247_s29, 64  ;;  %p1249_p1 = scmp.lt.s32.totalorder %s227_s27, %s1247_s29 }
  0x83   : > { %p1244_p10 = pnand %p1242_p4, %p1228_p0  ;;  %p1250_p5 = scmp.lt.s32.totalorder %s1248_s5, %s1241_s28 }
  0x85   : > { %p1245_p2 = pneg %p1244_p10  ;;  %p1251_p11 = por %p1250_p5, %p1249_p1 }
  0x87   : > { %p1252_p13 = pnand %p1251_p11, %p1245_p2 }
  0x89   : > { %1255 = shalt.err (!%p1252_p13)
}
  0x8a   : > { %967 = dma.hbm_to_vmem [thread:$0]  (!%p1710_p12), %s1706_s3, 32, %s227_s27, %s1550_s7  }
  0x8b   : > { %p1949_p3 = scmp.ne.s32.totalorder %s1928_s6, 0 }
  0x8c   : > { %s237_s0 = sand.u32 (!%p1949_p3), 1, %s1386_s19   ;;  %p1950_p4 = scmp.ne.s32.totalorder (!%p1949_p3), %s1933_s30, 0 }
  0x8d   : > { %235 = sbr.rel (%p1949_p3) target bundleno = 488 (0x1e8), region = 32  ;;  %s238_s11 = scalar_lea.sflag (!%p1949_p3), [#allocation4], %s237_s0 }
  0x8e   : > { %s1739_s18 = smul.u32 (!%p1949_p3), 12, %s237_s0 }
  0x90   : > { %s241_s8 = scalar_lea.vmem (!%p1949_p3), [#allocation3], %s1739_s18 }
  0x94   : > { %1341 = dma.done.wait (%p1950_p4), %s238_s11, 192  }
  0x95   : > { %1343 = vsyncadd (%p1950_p4), %s238_s11, 4294967104  ;;  %s246_s7 = sand.u32 1, %s1586_s4   ;;  %s248_s3 = sand.u32 1, %s1374_s16  }
  0x96   : > { %s949_s6 = smul.u32 384, %s248_s3  ;;  %s247_s9 = scalar_lea.sflag [#allocation7], %s246_s7 }
  0x97   : > { %p1951_p5 = scmp.ne.s32.totalorder %s1935_s10, 0 }
  0x98   : > { %s1748_s27 = scalar_lea.vmem [#allocation6], %s949_s6 }
  0x99   : > { %1345 = dma.done.wait (%p1951_p5), %s247_s9, 6144  }
  0x9a   : > { %1347 = vsyncadd (%p1951_p5), %s247_s9, 4294961152  ;;  %s1755_s28 = sand.u32 1, %s1362_s13   ;;  %p1952_p1 = scmp.ne.s32.totalorder %s1944_s1, 0 }
  0x9b   : > { %s882_s30 = sshll.u32 %s1755_s28, 1 }
  0x9c   : > { %s1758_s20 = scalar_lea.vmem [#allocation8], %s882_s30 }
  0x9d   : > { %1349 = dma.done.wait (%p1952_p1), %s247_s9, 32  }
  0x9e   : > { %1351 = vsyncadd (%p1952_p1), %s247_s9, 4294967264  ;;  %s883_s4 = sshll.u32 %s1755_s28, 4  ;;  %p884_p12 = scmp.ne.s32.totalorder %s1394_s21, 0 }
  0x9f   : > { %s1765_s29 = scalar_lea.vmem [#allocation9], %s883_s4  ;;  %v1418_v0 = vmov (!%p884_p12), 0.0  }
  0xa0   : > { %301 = sbr.rel (%p884_p12) target bundleno = 167 (0xa7), region = 48  ;;  %302 = vst [vmem:[#allocation2] sm:$0xff] (!%p884_p12), %v1418_v0  ;;  %303 = vst [vmem:[#allocation2 + $0x8] sm:$0xff] (!%p884_p12), %v1418_v0 }
  0xa7 PF: > { %v1091_v1 = vld [vmem:[%s1748_s27 + $0x4] ss:$8 sps:$4 sm:$0xff]   ;;  %v1093_v2 = vld [vmem:[%s1748_s27] ss:$8 sps:$4 sm:$0xff]   ;;  %v1419_v3 = vmov 0   ;;  %v304_v58 = vld [vmem:[#allocation2] sm:$0xff] }
  0xa8   : > { %680 = vmatprep.mubr.bf16.mxu1 %v1419_v3  ;;  %607 = vmatprep.subr.bf16.mxu0 %v1091_v1  ;;  %v1094_v4 = vld [vmem:[%s1748_s27 + $0x14] ss:$8 sps:$4 sm:$0xff]   ;;  %v1096_v5 = vld [vmem:[%s1748_s27 + $0x10] ss:$8 sps:$4 sm:$0xff]   ;;  %v1097_v6 = vld [vmem:[%s1748_s27 + $0x24] ss:$8 sps:$4 sm:$0xff]  }
  0xa9   : > { %608 = vmatpush1.bf16.msra.mxu0 %v1093_v2  ;;  %v1099_v7 = vld [vmem:[%s1748_s27 + $0x20] ss:$8 sps:$4 sm:$0xff]   ;;  %v1100_v8 = vld [vmem:[%s1748_s27 + $0x34] ss:$8 sps:$4 sm:$0xff]   ;;  %v1102_v9 = vld [vmem:[%s1748_s27 + $0x30] ss:$8 sps:$4 sm:$0xff]  }
  0xaa   : > { %609 = vmatprep.subr.bf16.mxu0 %v1094_v4  ;;  %v1115_v10 = vld [vmem:[%s1748_s27 + $0x104] ss:$8 sps:$4 sm:$0xff]   ;;  %v1117_v11 = vld [vmem:[%s1748_s27 + $0x100] ss:$8 sps:$4 sm:$0xff]   ;;  %v1121_v13 = vld [vmem:[%s1748_s27 + $0x114] ss:$8 sps:$4 sm:$0xff]  }
  0xab   : > { %v1103_v12 = vld [vmem:[%s1748_s27 + $0x44] ss:$8 sps:$4 sm:$0xff]   ;;  %648 = vmatprep.subr.bf16.mxu1 %v1115_v10  ;;  %v1123_v14 = vld [vmem:[%s1748_s27 + $0x110] ss:$8 sps:$4 sm:$0xff]   ;;  %v1105_v15 = vld [vmem:[%s1748_s27 + $0x40] ss:$8 sps:$4 sm:$0xff]  }
  0xac   : > { %649 = vmatpush1.bf16.msra.mxu1 %v1117_v11  ;;  %v1106_v16 = vld [vmem:[%s1748_s27 + $0x54] ss:$8 sps:$4 sm:$0xff]   ;;  %v1127_v17 = vld [vmem:[%s1748_s27 + $0x124] ss:$8 sps:$4 sm:$0xff]   ;;  %v1129_v18 = vld [vmem:[%s1748_s27 + $0x120] ss:$8 sps:$4 sm:$0xff]  }
  0xad   : > { %610 = vmatpush1.bf16.msra.mxu0 %v1096_v5  ;;  %650 = vmatprep.subr.bf16.mxu1 %v1121_v13  ;;  %v1108_v19 = vld [vmem:[%s1748_s27 + $0x50] ss:$8 sps:$4 sm:$0xff]   ;;  %v1133_v20 = vld [vmem:[%s1748_s27 + $0x134] ss:$8 sps:$4 sm:$0xff]   ;;  %v1109_v21 = vld [vmem:[%s1748_s27 + $0x64] ss:$8 sps:$4 sm:$0xff]  }
  0xae   : > { %611 = vmatprep.subr.bf16.mxu0 %v1097_v6  ;;  %v1135_v22 = vld [vmem:[%s1748_s27 + $0x130] ss:$8 sps:$4 sm:$0xff]   ;;  %v1111_v23 = vld [vmem:[%s1748_s27 + $0x60] ss:$8 sps:$4 sm:$0xff]   ;;  %v1139_v24 = vld [vmem:[%s1748_s27 + $0x144] ss:$8 sps:$4 sm:$0xff]  }
  0xaf   : > { %v1112_v25 = vld [vmem:[%s1748_s27 + $0x74] ss:$8 sps:$4 sm:$0xff]   ;;  %v1141_v26 = vld [vmem:[%s1748_s27 + $0x140] ss:$8 sps:$4 sm:$0xff]   ;;  %v1114_v27 = vld [vmem:[%s1748_s27 + $0x70] ss:$8 sps:$4 sm:$0xff]  }
  0xb0   : > { %651 = vmatpush1.bf16.msra.mxu1 %v1123_v14  ;;  %v1145_v28 = vld [vmem:[%s1748_s27 + $0x154] ss:$8 sps:$4 sm:$0xff]   ;;  %v1118_v29 = vld [vmem:[%s1748_s27 + $0x84] ss:$8 sps:$4 sm:$0xff]   ;;  %v1147_v30 = vld [vmem:[%s1748_s27 + $0x150] ss:$8 sps:$4 sm:$0xff]  }
  0xb1   : > { %612 = vmatpush1.bf16.msra.mxu0 %v1099_v7  ;;  %652 = vmatprep.subr.bf16.mxu1 %v1127_v17  ;;  %v1120_v31 = vld [vmem:[%s1748_s27 + $0x80] ss:$8 sps:$4 sm:$0xff]   ;;  %v1151_v32 = vld [vmem:[%s1748_s27 + $0x164] ss:$8 sps:$4 sm:$0xff]   ;;  %v1124_v33 = vld [vmem:[%s1748_s27 + $0x94] ss:$8 sps:$4 sm:$0xff]  }
  0xb2   : > { %613 = vmatprep.subr.bf16.mxu0 %v1100_v8  ;;  %v306_v34 = vld [vmem:[%s241_s8] sm:$0xff]  ;;  %v1163_v43 = vld [vmem:[%s241_s8 + $0x8] ss:$0 sps:$4 sm:$0xff]   ;;  %v305_v61 = vld [vmem:[#allocation2 + $0x8] sm:$0xff]  ;;  %p936_p0 = scmp.ne.s32.totalorder %s1394_s21, 5 }
  0xb3   : > { %v886_v35 = vcombine.high %v306_v34, %v306_v34  ;;  %v1153_v36 = vld [vmem:[%s1748_s27 + $0x160] ss:$8 sps:$4 sm:$0xff]   ;;  %v1126_v37 = vld [vmem:[%s1748_s27 + $0x90] ss:$8 sps:$4 sm:$0xff]   ;;  %v1157_v38 = vld [vmem:[%s1748_s27 + $0x174] ss:$8 sps:$4 sm:$0xff]   ;;  %v885_v53 = vcombine.low %v306_v34, %v306_v34  ;;  %v701_v4 = vlaneseq (!%p936_p0) }
  0xb4   : > { %653 = vmatpush1.bf16.msra.mxu1 %v1129_v18  ;;  %v1130_v39 = vld [vmem:[%s1748_s27 + $0xa4] ss:$8 sps:$4 sm:$0xff]   ;;  %v1159_v40 = vld [vmem:[%s1748_s27 + $0x170] ss:$8 sps:$4 sm:$0xff]   ;;  %v1132_v41 = vld [vmem:[%s1748_s27 + $0xa0] ss:$8 sps:$4 sm:$0xff]  }
  0xb5   : > { %614 = vmatpush1.bf16.msra.mxu0 %v1102_v9  ;;  %654 = vmatprep.subr.bf16.mxu1 %v1133_v20  ;;  %v1136_v42 = vld [vmem:[%s1748_s27 + $0xb4] ss:$8 sps:$4 sm:$0xff]   ;;  %v1138_v44 = vld [vmem:[%s1748_s27 + $0xb0] ss:$8 sps:$4 sm:$0xff]   ;;  %v1142_v45 = vld [vmem:[%s1748_s27 + $0xc4] ss:$8 sps:$4 sm:$0xff]  }
  0xb6   : > { %615 = vmatprep.subr.bf16.mxu0 %v1103_v12  ;;  %639 = vmatprep.mubr.bf16.mxu0 %v886_v35  ;;  %v1144_v46 = vld [vmem:[%s1748_s27 + $0xc0] ss:$8 sps:$4 sm:$0xff]   ;;  %v1148_v47 = vld [vmem:[%s1748_s27 + $0xd4] ss:$8 sps:$4 sm:$0xff]   ;;  %v1150_v48 = vld [vmem:[%s1748_s27 + $0xd0] ss:$8 sps:$4 sm:$0xff]  }
  0xb7   : > { %v1154_v49 = vld [vmem:[%s1748_s27 + $0xe4] ss:$8 sps:$4 sm:$0xff]   ;;  %v1156_v50 = vld [vmem:[%s1748_s27 + $0xe0] ss:$8 sps:$4 sm:$0xff]   ;;  %v1160_v51 = vld [vmem:[%s1748_s27 + $0xf4] ss:$8 sps:$4 sm:$0xff]  }
  0xb8   : > { %655 = vmatpush1.bf16.msra.mxu1 %v1135_v22  ;;  %v1162_v52 = vld [vmem:[%s1748_s27 + $0xf0] ss:$8 sps:$4 sm:$0xff]   ;;  %v702_v5 = vshrl.u32 (!%p936_p0), %v701_v4, 7  ;;  %v699_v6 = vld [vmem:[%s1758_s20] sm:$0x3] (!%p936_p0) }
  0xb9   : > { %616 = vmatpush1.bf16.msra.mxu0 %v1105_v15  ;;  %656 = vmatprep.subr.bf16.mxu1 %v1139_v24 }
  0xba   : > { %617 = vmatprep.subr.bf16.mxu0 %v1106_v16  ;;  %v703_v7 = vsub.s32 (!%p936_p0), 0, %v702_v5  ;;  %v707_v8 = vsub.s32 (!%p936_p0), 1, %v702_v5 }
  0xbc   : > { %657 = vmatpush1.bf16.msra.mxu1 %v1141_v26  ;;  %v704_v11 = vrot.slane (!%p936_p0), %v699_v6, %v703_v7  ;;  %v708_v12 = vrot.slane (!%p936_p0), %v699_v6, %v707_v8 }
  0xbd   : > { %618 = vmatpush1.bf16.msra.mxu0 %v1108_v19  ;;  %658 = vmatprep.subr.bf16.mxu1 %v1145_v28 }
  0xbe   : > { %619 = vmatprep.subr.bf16.mxu0 %v1109_v21 }
  0xc0   : > { %659 = vmatpush1.bf16.msra.mxu1 %v1147_v30 }
  0xc1   : > { %620 = vmatpush1.bf16.msra.mxu0 %v1111_v23  ;;  %660 = vmatprep.subr.bf16.mxu1 %v1151_v32 }
  0xc2   : > { %621 = vmatprep.subr.bf16.mxu0 %v1112_v25 }
  0xc4   : > { %661 = vmatpush1.bf16.msra.mxu1 %v1153_v36 }
  0xc5   : > { %622 = vmatpush1.bf16.msra.mxu0 %v1114_v27  ;;  %662 = vmatprep.subr.bf16.mxu1 %v1157_v38 }
  0xc6   : > { %623 = vmatprep.subr.bf16.mxu0 %v1118_v29 }
  0xc8   : > { %663 = vmatpush1.bf16.msra.mxu1 %v1159_v40 }
  0xc9   : > { %624 = vmatpush1.bf16.msra.mxu0 %v1120_v31 }
  0xca   : > { %625 = vmatprep.subr.bf16.mxu0 %v1124_v33 }
  0xcb   : > { %681 = vmatmul.mubr.bf16.vlgmr.msra.gmra.mrb[0].mxu1 %v1163_v43 }
  0xcd   : > { %626 = vmatpush1.bf16.msra.mxu0 %v1126_v37 }
  0xce   : > { %627 = vmatprep.subr.bf16.mxu0 %v1130_v39 }
  0xd1   : > { %628 = vmatpush1.bf16.msra.mxu0 %v1132_v41 }
  0xd2   : > { %629 = vmatprep.subr.bf16.mxu0 %v1136_v42 }
  0xd5   : > { %630 = vmatpush1.bf16.msra.mxu0 %v1138_v44 }
  0xd6   : > { %631 = vmatprep.subr.bf16.mxu0 %v1142_v45 }
  0xd9   : > { %632 = vmatpush1.bf16.msra.mxu0 %v1144_v46 }
  0xda   : > { %633 = vmatprep.subr.bf16.mxu0 %v1148_v47 }
  0xdd   : > { %634 = vmatpush1.bf16.msra.mxu0 %v1150_v48 }
  0xde   : > { %635 = vmatprep.subr.bf16.mxu0 %v1154_v49 }
  0xe1   : > { %636 = vmatpush1.bf16.msra.mxu0 %v1156_v50 }
  0xe2   : > { %637 = vmatprep.subr.bf16.mxu0 %v1160_v51 }
  0xe5   : > { %638 = vmatpush1.bf16.msra.mxu0 %v1162_v52 }
  0xe8   : > { %640 = vmatmul.mubr.bf16.vlgmr.msra.gmra.mrb[0].mxu0 %v885_v53 }
 0x19e   : > { %v682_v54 = vpop.f32.mrb[0].mxu1 }
 0x19f   : > { %v684_v55 = vpop.f32.mrb[1].mxu1 }
 0x1a0   : > { %v686_v56 = vpop.f32.mrb[2].mxu1 }
 0x1a1   : > { %v687_v57 = vpop.f32.mrb[3].mxu1 }
 0x1bb   : > { %v641_v59 = vpop.f32.mrb[0].mxu0  ;;  %696 = sbr.rel (%p936_p0) target bundleno = 462 (0x1ce), region = 52 }
 0x1bc   : > { %v683_v60 = vadd.f32 %v682_v54, %v641_v59  ;;  %v643_v62 = vpop.f32.mrb[1].mxu0 }
 0x1bd   : > { %v685_v63 = vadd.f32 %v684_v55, %v643_v62  ;;  %v645_v0 = vpop.f32.mrb[2].mxu0 }
 0x1be   : > { %v689_v1 = vadd.f32 %v683_v60, %v304_v58  ;;  %v646_v2 = vpop.f32.mrb[3].mxu0 }
 0x1bf   : > { %v690_v3 = vadd.f32 %v685_v63, %v305_v61 }
 0x1c0   : > { %691 = vst [vmem:[#allocation2] sm:$0xff] %v689_v1 }
 0x1c1   : > { %692 = vst [vmem:[#allocation2 + $0x8] sm:$0xff] %v690_v3 }
 0x1c7   : > { %v697_v9 = vld [vmem:[#allocation2] sm:$0xff] }
 0x1c8   : > { %v698_v10 = vld [vmem:[#allocation2 + $0x8] sm:$0xff]  ;;  %v711_v13 = vadd.f32 %v704_v11, %v697_v9 }
 0x1c9   : > { %v712_v14 = vadd.f32 %v708_v12, %v698_v10 }
 0x1ca   : > { %v713_v15 = vmax.f32 %v711_v13, 0.0 }
 0x1cb   : > { %v714_v16 = vmax.f32 %v712_v14, 0.0 }
 0x1cc   : > { %715 = vst [vmem:[%s1765_s29] sm:$0xff] %v713_v15 }
 0x1cd   : > { %716 = vst [vmem:[%s1765_s29 + $0x8] sm:$0xff] %v714_v16 }
 0x1ce PF: > { %s945_s21 = sshll.u32 %s1398_s22, 8  ;;  %s1953_s5 = sld [smem:[#allocation22_spill]] }
 0x1cf   : > { %s734_s18 = sshll.u32 %s1765_s29, 4  ;;  %s718_s11 = scalar_lea.sflag [#allocation5], %s1755_s28  ;;  %s735_s18 = int_to_ptr.vmem [resolvable:$true] %s734_s18 }
 0x1d0   : > { %s1256_s8 = scalar_lea.vmem %s735_s18, 256  ;;  %p1954_p6 = scmp.ne.s32.totalorder %s1945_s23, 0 }
 0x1d1   : > { %p1257_p7 = scmp.ne.s32.totalorder %s735_s18, %s1256_s8  ;;  %s1420_s7 = smov [#allocation9]  }
 0x1d2   : > { %s1260_s3 = sshll.u32 %s1420_s7, 4  ;;  %s1261_s3 = int_to_ptr.vmem [resolvable:$false] %s1260_s3 }
 0x1d3   : > { %p1258_p9 = pnand %p1257_p7, %p1954_p6  ;;  %s1262_s6 = scalar_lea.vmem %s1261_s3, 512 }
 0x1d4   : > { %s1828_s0 = scalar_lea.hbm %s1953_s5, %s945_s21  ;;  %p1263_p10 = scmp.lt.s32.totalorder %s735_s18, %s1261_s3 }
 0x1d5   : > { %p1259_p8 = pneg %p1258_p9  ;;  %p1264_p2 = scmp.lt.s32.totalorder %s1262_s6, %s1256_s8 }
 0x1d7   : > { %p1265_p11 = por %p1264_p2, %p1263_p10 }
 0x1d9   : > { %p1266_p13 = pnand %p1265_p11, %p1259_p8 }
 0x1db   : > { %1269 = shalt.err (!%p1266_p13)
}
 0x1dc   : > { %s1270_s22 = scalar_lea.hbm %s1828_s0, 256  ;;  %s1274_s28 = scalar_lea.hbm %s1953_s5, 512 }
 0x1dd   : > { %p1271_p3 = scmp.ne.s32.totalorder %s1828_s0, %s1270_s22  ;;  %p1275_p1 = scmp.lt.u32.totalorder %s1828_s0, %s1953_s5 }
 0x1de   : > { %p1276_p12 = scmp.lt.u32.totalorder %s1274_s28, %s1270_s22  ;;  %p1278_p7 = scmp.lt.u32.totalorder %s1270_s22, %s1828_s0 }
 0x1df   : > { %p1272_p4 = pnand %p1271_p3, %p1954_p6 }
 0x1e0   : > { %p1277_p0 = por %p1276_p12, %p1275_p1 }
 0x1e1   : > { %p1273_p5 = pneg %p1272_p4 }
 0x1e2   : > { %p1279_p9 = por %p1278_p7, %p1277_p0 }
 0x1e4   : > { %p1280_p8 = pnand %p1279_p9, %p1273_p5 }
 0x1e6   : > { %1283 = shalt.err (!%p1280_p8)
}
 0x1e7   : > { %956 = dma.vmem_to_hbm [thread:$0]  (%p1954_p6), %s735_s18, 256, %s1828_s0, %s718_s11  }
 0x1e8 PF: > { %p973_p10 = scmp.ge.s32.totalorder %s1410_s25, 2  ;;  %s746_s4 = sand.u32 1, %s1358_s12  }
 0x1e9   : > { %p1955_p2 = scmp.ne.s32.totalorder %s1946_s26, 0  ;;  %s747_s29 = scalar_lea.sflag [#allocation5], %s746_s4 }
 0x1eb   : > { %p969_p11 = pnand %p973_p10, %p1955_p2 }
 0x1ed   : > { %1353 = dma.done.wait (!%p969_p11), %s747_s29, 256  }
 0x1ee   : > { %1355 = vsyncadd (!%p969_p11), %s747_s29, 4294967040  ;;  %s22_s25 = sadd.s32 1, %s1410_s25   ;;  %s1957_s23 = sld [smem:[#allocation19_spill]] }
 0x1ef   : > { %p1854_p13 = scmp.ge.s32.totalorder %s22_s25, 14   ;;  %s1958_s10 = sld [smem:[#allocation14_spill]] }
 0x1f0   : > { %s1959_s20 = sld [smem:[#allocation17_spill]]  ;;  %s1960_s26 = sld [smem:[#allocation15_spill]] }
 0x1f1   : > { %s1961_s1 = sld [smem:[#allocation16_spill]]  ;;  %s1962_s0 = sld [smem:[#allocation18_spill]] }
 0x1f2   : > { %s1964_s12 = smov %s1362_s13  ;;  %s1965_s13 = smov %s1366_s14 }
 0x1f3   : > { %s1966_s14 = smov %s1682_s15  ;;  %s1967_s15 = smov %s1374_s16 }
 0x1f4   : > { %s1968_s16 = smov %s1378_s17  ;;  %s1969_s17 = smov %s1957_s23 }
 0x1f5   : > { %s1970_s18 = smov %s1386_s19  ;;  %s1971_s19 = smov %s1958_s10 }
 0x1f6   : > { %s1972_s21 = smov %s1960_s26  ;;  %s1973_s22 = smov %s1406_s24 }
 0x1f7   : > { %s1974_s23 = smov %s1961_s1  ;;  %s1975_s24 = smov %s1962_s0 }
 0x1f8   :  { %21 = sbr.rel (!%p1854_p13) target bundleno = 16 (0x10), region = 109 }
 0x1ff   :  { %752 = vsyncpa [#allocation4], 1 }
 0x200   :  { %754 = vsyncpa [#allocation4 + $0x1], 1 }
 0x201   :  { %755 = vsyncpa [#allocation7], 1 }
 0x202   :  { %757 = vsyncpa [#allocation7 + $0x1], 1 }
 0x203   :  { %758 = vsyncpa [#allocation5], 1 }
 0x204   :  { %760 = vsyncpa [#allocation5 + $0x1], 1 }

// kernel: csrnet_forward.37
= control target key start
LH: loop header
LB: loop body
LE: loop exit
PB: predicated region body
PF: predicated region fallthrough
CT: control target
= control target key end

     0   :  { %s2053_s0 = inlined_call_operand.hbm [shape: bf16[8,4608], index: 0, kind: input, shape index: {}]   ;;  %s2054_s1 = inlined_call_operand.hbm [shape: bf16[4608,512], index: 1, kind: input, shape index: {}]   ;;  %s2055_s2 = inlined_call_operand.hbm [shape: f32[1,512], index: 2, kind: input, shape index: {}]   ;;  %s2056_s3 = inlined_call_operand.hbm [shape: f32[8,512], index: 3, kind: output, shape index: {}]  }
   0x1   :  { %2069 = sst [smem:[#allocation20_spill]] %s2053_s0 }
   0x2   :  { %2070 = sst [smem:[#allocation21_spill]] %s2054_s1 }
   0x3   :  { %2071 = sst [smem:[#allocation22_spill]] %s2055_s2 }
   0x4   :  { %2072 = sst [smem:[#allocation23_spill]] %s2056_s3 }
   0x5   :  { %8 = vsyncpa [#allocation4], 0 }
   0x6   :  { %10 = vsyncpa [#allocation4 + $0x1], 0 }
   0x7   :  { %11 = vsyncpa [#allocation7], 0 }
   0x8   :  { %13 = vsyncpa [#allocation7 + $0x1], 0 }
   0x9   :  { %14 = vsyncpa [#allocation5], 0 }
   0xa   :  { %16 = vsyncpa [#allocation5 + $0x1], 0  ;;  %s1581_s12 = smov 0   ;;  %s1583_s13 = smov 0  }
   0xb   :  { %s1585_s14 = smov 0   ;;  %s1587_s15 = smov 0  }
   0xc   :  { %s1589_s16 = smov 0   ;;  %s1591_s17 = smov 0  }
   0xd   :  { %s1593_s18 = smov 0   ;;  %s1595_s19 = smov 0  }
   0xe   :  { %s1597_s20 = smov 0   ;;  %s1599_s21 = smov 0  }
   0xf   :  { %s1601_s22 = smov 0   ;;  %s1603_s23 = smov 0  }
  0x10   :  { %s1605_s24 = smov 0   ;;  %s1607_s25 = smov 0  }
  0x11 LB: > { %2073 = sst [smem:[#allocation14_spill]] %s1499_s12  ;;  %s34_s26 = sadd.s32 1, %s1543_s23  ;;  %s1551_s25 = sphi %s1607_s25, %s22_s25   ;;  %s1547_s24 = sphi %s1605_s24, %s2112_s24   ;;  %s1543_s23 = sphi %s1603_s23, %s2124_s23   ;;  %s1539_s22 = sphi %s1601_s22, %s2110_s22   ;;  %s1535_s21 = sphi %s1599_s21, %s2123_s21   ;;  %s1531_s20 = sphi %s1597_s20, %s2122_s20   ;;  %s1527_s19 = sphi %s1595_s19, %s2121_s19   ;;  %s1523_s18 = sphi %s1593_s18, %s2120_s18   ;;  %s1519_s17 = sphi %s1591_s17, %s2119_s17   ;;  %s1515_s16 = sphi %s1589_s16, %s2118_s16   ;;  %s1511_s15 = sphi %s1587_s15, %s2117_s15   ;;  %s1507_s14 = sphi %s1585_s14, %s2116_s14   ;;  %s1503_s13 = sphi %s1583_s13, %s2115_s13   ;;  %s1499_s12 = sphi %s1581_s12, %s2114_s12  }
  0x12   : > { %2074 = sst [smem:[#allocation15_spill]] %s1535_s21  ;;  %s37_s27 = sadd.s32 1, %s1547_s24 }
  0x13   : > { %2075 = sst [smem:[#allocation16_spill]] %s1539_s22  ;;  %p35_p0 = scmp.ge.s32.totalorder %s34_s26, 9 }
  0x14   : > { %2076 = sst [smem:[#allocation17_spill]] %s1547_s24  ;;  %p2063_p1 = scmp.eq.s32.totalorder %s1551_s25, 0 }
  0x15   : > { %s78_s28 = sadd.s32 1, %s1519_s17  ;;  %p85_p2 = scmp.ne.s32.totalorder %s1519_s17, %s1515_s16 }
  0x16   : > { %s2126_s26 = smov (%p35_p0, %s34_s26), 0  ;;  %s2128_s27 = smov (!%p35_p0, %s37_s27), %s1547_s24 }
  0x17   : > { %2077 = sst [smem:[#allocation18_spill]] %s2126_s26  ;;  %s1662_s29 = ssub.s32 %s1543_s23, %s2126_s26 }
  0x18   : > { %p1666_p3 = por %p85_p2, %p2063_p1  ;;  %p39_p4 = scmp.ge.s32.totalorder %s2128_s27, 2 }
  0x19   : > { %p2061_p6 = scmp.lt.s32.totalorder %s1551_s25, 18  ;;  %s1063_s4 = sshll.u32 %s1543_s23, 8 }
  0x1a   : > { %s2130_s27 = smov (%p39_p4, %s2128_s27), 0  ;;  %s190_s5 = sand.u32 1, %s1551_s25  }
  0x1b   : > { %2079 = sst [smem:[#allocation19_spill]] %s2130_s27  ;;  %s1679_s6 = ssub.s32 %s1547_s24, %s2130_s27 }
  0x1c   : > { %s75_s7 = sor.u32 %s1679_s6, %s1662_s29  ;;  %s192_s8 = sand.u32 1, %s1519_s17  }
  0x1d   : > { %p76_p7 = scmp.eq.s32.totalorder %s75_s7, 0  ;;  %s975_s9 = sshll.u32 %s192_s8, 9 }
  0x1e   : > { %s977_s10 = sshll.u32 %s1547_s24, 1  ;;  %s194_s3 = scalar_lea.vmem [#allocation6], %s975_s9 }
  0x1f   : > { %s1686_s11 = scalar_select %p76_p7, %s1519_s17, %s78_s28  }
  0x20   : > { %s201_s26 = sadd.s32 %s1063_s4, %s977_s10  ;;  %s204_s22 = sshll.u32 %s194_s3, 4  ;;  %s1690_s22 = int_to_ptr.vmem [resolvable:$true] %s204_s22 }
  0x21   : > { %s979_s21 = sshll.u32 %s201_s26, 6  ;;  %s2080_s1 = sld [smem:[#allocation21_spill]] }
  0x22   : > { %p1701_p8 = pnand %p2061_p6, %p1666_p3  ;;  %s1705_s3 = scalar_lea.sflag [#allocation7], %s190_s5 }
  0x24   : > { %p1309_p10 = pneg %p1701_p8 }
  0x27   : > { %s1695_s27 = scalar_lea.hbm %s2080_s1, %s979_s21  ;;  %s1312_s21 = scalar_lea.hbm %s2080_s1, 147456 }
  0x28   : > { %s1307_s26 = scalar_lea.hbm %s1695_s27, 8192  ;;  %p1313_p13 = scmp.lt.u32.totalorder %s1695_s27, %s2080_s1 }
  0x29   : > { %p1308_p9 = scmp.ne.s32.totalorder %s1695_s27, %s1307_s26  ;;  %p1314_p0 = scmp.lt.u32.totalorder %s1312_s21, %s1307_s26 }
  0x2a   : > { %p1316_p3 = scmp.lt.u32.totalorder %s1307_s26, %s1695_s27 }
  0x2b   : > { %p1310_p11 = pnand %p1309_p10, %p1308_p9  ;;  %p1315_p2 = por %p1314_p0, %p1313_p13 }
  0x2d   : > { %p1311_p12 = pneg %p1310_p11  ;;  %p1317_p4 = por %p1316_p3, %p1315_p2 }
  0x2f   : > { %p1318_p7 = pnand %p1317_p4, %p1311_p12 }
  0x31   : > { %1321 = shalt.err (!%p1318_p7)
}
  0x32   : > { %s1322_s5 = scalar_lea.vmem %s1690_s22, 8192  ;;  %s1553_s8 = smov [#allocation6]  }
  0x33   : > { %p1323_p9 = scmp.ne.s32.totalorder %s1690_s22, %s1322_s5  ;;  %s1327_s9 = sshll.u32 %s1553_s8, 4  ;;  %s1328_s9 = int_to_ptr.vmem [resolvable:$false] %s1327_s9 }
  0x34   : > { %s1329_s10 = scalar_lea.vmem %s1328_s9, 16384  ;;  %p1330_p5 = scmp.lt.s32.totalorder %s1690_s22, %s1328_s9 }
  0x35   : > { %p1325_p11 = pnand %p1323_p9, %p1309_p10  ;;  %p1331_p13 = scmp.lt.s32.totalorder %s1329_s10, %s1322_s5 }
  0x37   : > { %p1326_p6 = pneg %p1325_p11  ;;  %p1332_p0 = por %p1331_p13, %p1330_p5 }
  0x39   : > { %p1333_p2 = pnand %p1332_p0, %p1326_p6 }
  0x3b   : > { %1336 = shalt.err (!%p1333_p2)
}
  0x3c   : > { %s1554_s26 = smov 256   ;;  %s1555_s2 = smov 128  }
  0x3d   : > { %s1556_s12 = smov 8   ;;  %p983_p5 = scmp.ge.s32.totalorder %s1551_s25, 1 }
  0x3e   : > { %1081 = dma.hbm_to_vmem [thread:$0]  (!%p1701_p8), %s1695_s27, 8192, %s1690_s22, %s1705_s3, %s1554_s26, %s1555_s2, %s1556_s12  }
  0x3f   : > { %p231_p6 = scmp.lt.s32.totalorder %s1551_s25, 19  ;;  %s1740_s30 = sadd.s32 4294967295, %s1551_s25  }
  0x40   : > { %p48_p12 = scmp.eq.s32.totalorder %s1662_s29, 0  ;;  %s50_s7 = sadd.s32 1, %s1531_s20 }
  0x41   : > { %p1735_p10 = pnand %p983_p5, %p231_p6  ;;  %p57_p3 = scmp.ne.s32.totalorder %s1531_s20, %s1527_s19 }
  0x42   : > { %p63_p4 = scmp.ne.s32.totalorder %s1527_s19, %s1523_s18  ;;  %p2062_p7 = scmp.eq.s32.totalorder %s1740_s30, 0 }
  0x43   : > { %s2082_s21 = scalar_select %p1735_p10, 1, 0 }
  0x44   : > { %s1749_s28 = scalar_select %p48_p12, %s1531_s20, %s50_s7  }
  0x45   : > { %p59_p8 = por %p2063_p1, %p57_p3  ;;  %s169_s22 = sand.u32 1, %s1531_s20  }
  0x46   : > { %s2083_s0 = sld [smem:[#allocation20_spill]]  ;;  %p1764_p9 = por %p2062_p7, %p63_p4 }
  0x47   : > { %p2085_p11 = scmp.ne.s32.totalorder %s1515_s16, %s1511_s15  ;;  %s972_s9 = sshll.u32 %s169_s22, 4 }
  0x48   : > { %s2084_s29 = scalar_select %p1764_p9, 1, 0 }
  0x49   : > { %p1773_p13 = por %p2085_p11, %p2062_p7  ;;  %p2087_p0 = scmp.lt.s32.totalorder %s1551_s25, 18 }
  0x4a   : > { %s173_s10 = scalar_lea.vmem [#allocation3], %s972_s9  ;;  %s170_s2 = scalar_lea.sflag [#allocation4], %s169_s22 }
  0x4b   : > { %s2086_s18 = scalar_select %p1773_p13, 1, 0 }
  0x4c   : > { %s1760_s8 = scalar_lea.hbm %s2083_s0, %s1063_s4  ;;  %p1779_p2 = pnand %p2087_p0, %p59_p8 }
  0x4d   : > { %s183_s26 = sshll.u32 %s173_s10, 4  ;;  %s1337_s12 = scalar_lea.hbm %s1760_s8, 256  ;;  %s1783_s26 = int_to_ptr.vmem [resolvable:$true] %s183_s26 }
  0x4e   : > { %p1338_p5 = scmp.ne.s32.totalorder %s1760_s8, %s1337_s12  ;;  %p1339_p6 = pneg %p1779_p2 }
  0x4f   : > { %s1342_s27 = scalar_lea.hbm %s2083_s0, 2304  ;;  %p1343_p4 = scmp.lt.u32.totalorder %s1760_s8, %s2083_s0 }
  0x50   : > { %p1340_p12 = pnand %p1339_p6, %p1338_p5  ;;  %p1344_p8 = scmp.lt.u32.totalorder %s1342_s27, %s1337_s12 }
  0x51   : > { %p1346_p0 = scmp.lt.u32.totalorder %s1337_s12, %s1760_s8 }
  0x52   : > { %p1341_p3 = pneg %p1340_p12  ;;  %p1345_p11 = por %p1344_p8, %p1343_p4 }
  0x54   : > { %p1347_p7 = por %p1346_p0, %p1345_p11 }
  0x56   : > { %p1348_p1 = pnand %p1347_p7, %p1341_p3 }
  0x58   : > { %1351 = shalt.err (!%p1348_p1)
}
  0x59   : > { %s1352_s22 = scalar_lea.vmem %s1783_s26, 256  ;;  %s1557_s9 = smov [#allocation3]  }
  0x5a   : > { %p1353_p5 = scmp.ne.s32.totalorder %s1783_s26, %s1352_s22  ;;  %s1357_s10 = sshll.u32 %s1557_s9, 4  ;;  %s1358_s10 = int_to_ptr.vmem [resolvable:$false] %s1357_s10 }
  0x5b   : > { %s1359_s1 = scalar_lea.vmem %s1358_s10, 512  ;;  %p1360_p9 = scmp.lt.s32.totalorder %s1783_s26, %s1358_s10 }
  0x5c   : > { %p1355_p12 = pnand %p1353_p5, %p1339_p6  ;;  %p1361_p4 = scmp.lt.s32.totalorder %s1359_s1, %s1352_s22 }
  0x5e   : > { %p1356_p13 = pneg %p1355_p12  ;;  %p1362_p8 = por %p1361_p4, %p1360_p9 }
  0x60   : > { %p1363_p11 = pnand %p1362_p8, %p1356_p13 }
  0x62   : > { %1366 = shalt.err (!%p1363_p11)
}
  0x63   : > { %s2089_s12 = sld [smem:[#allocation14_spill]]  ;;  %s969_s15 = sadd.s32 4294967294, %s1551_s25  }
  0x64   : > { %1078 = dma.hbm_to_vmem [thread:$0]  (!%p1779_p2), %s1760_s8, 256, %s1783_s26, %s170_s2  }
  0x65   : > { %p102_p1 = scmp.eq.s32.totalorder %s1679_s6, 0  ;;  %s104_s4 = sadd.s32 1, %s1507_s14 }
  0x66   : > { %p111_p7 = scmp.ne.s32.totalorder %s1507_s14, %s1503_s13  ;;  %p2090_p13 = scmp.eq.s32.totalorder %s1551_s25, 0 }
  0x67   : > { %s1818_s7 = scalar_select %p102_p1, %s1507_s14, %s104_s4  }
  0x68   : > { %p113_p6 = por %p111_p7, %p2090_p13  ;;  %p2091_p3 = scmp.eq.s32.totalorder %s1740_s30, 0 }
  0x69   : > { %p117_p9 = scmp.ne.s32.totalorder %s1503_s13, %s2089_s12  ;;  %p143_p5 = scmp.eq.s32.totalorder %s1740_s30, 17 }
  0x6a   : > { %p149_p12 = scmp.eq.s32.totalorder %s969_s15, 17  ;;  %s216_s5 = sand.u32 1, %s1507_s14  }
  0x6b   : > { %p1824_p0 = por %p117_p9, %p2091_p3  ;;  %s1065_s22 = sshll.u32 %s1547_s24, 5 }
  0x6c   : > { %p1831_p2 = por %p143_p5, %p111_p7  ;;  %p1835_p4 = por %p149_p12, %p117_p9 }
  0x6d   : > { %s2092_s27 = scalar_select %p1824_p0, 1, 0 }
  0x6e   : > { %s2093_s8 = scalar_select %p1831_p2, 1, 0 }
  0x6f   : > { %s2094_s6 = scalar_select %p1835_p4, 1, 0 }
  0x70   : > { %s980_s26 = sshll.u32 %s216_s5, 1  ;;  %s2095_s10 = sld [smem:[#allocation22_spill]] }
  0x71   : > { %p2096_p8 = scmp.lt.s32.totalorder %s1551_s25, 18  ;;  %s218_s15 = scalar_lea.vmem [#allocation8], %s980_s26 }
  0x72   : > { %s226_s4 = sshll.u32 %s218_s15, 4  ;;  %s227_s4 = int_to_ptr.vmem [resolvable:$true] %s226_s4 }
  0x73   : > { %p1846_p11 = pnand %p2096_p8, %p113_p6 }
  0x75   : > { %p1369_p7 = pneg %p1846_p11 }
  0x76   : > { %s1842_s1 = scalar_lea.hbm %s2095_s10, %s1065_s22  ;;  %s1372_s9 = scalar_lea.hbm %s2095_s10, 64 }
  0x77   : > { %s1367_s5 = scalar_lea.hbm %s1842_s1, 32  ;;  %p1373_p6 = scmp.lt.u32.totalorder %s1842_s1, %s2095_s10 }
  0x78   : > { %p1368_p1 = scmp.ne.s32.totalorder %s1842_s1, %s1367_s5  ;;  %p1374_p3 = scmp.lt.u32.totalorder %s1372_s9, %s1367_s5 }
  0x79   : > { %p1376_p12 = scmp.lt.u32.totalorder %s1367_s5, %s1842_s1 }
  0x7a   : > { %p1370_p9 = pnand %p1369_p7, %p1368_p1  ;;  %p1375_p5 = por %p1374_p3, %p1373_p6 }
  0x7c   : > { %p1371_p13 = pneg %p1370_p9  ;;  %p1377_p8 = por %p1376_p12, %p1375_p5 }
  0x7e   : > { %p1378_p4 = pnand %p1377_p8, %p1371_p13 }
  0x80   : > { %1381 = shalt.err (!%p1378_p4)
}
  0x81   : > { %s1382_s26 = scalar_lea.vmem %s227_s4, 32  ;;  %s1558_s15 = smov [#allocation8]  }
  0x82   : > { %p1383_p2 = scmp.ne.s32.totalorder %s227_s4, %s1382_s26  ;;  %s1387_s22 = sshll.u32 %s1558_s15, 4  ;;  %s1388_s22 = int_to_ptr.vmem [resolvable:$false] %s1387_s22 }
  0x83   : > { %s1389_s2 = scalar_lea.vmem %s1388_s22, 64  ;;  %p1390_p0 = scmp.lt.s32.totalorder %s227_s4, %s1388_s22 }
  0x84   : > { %p1385_p1 = pnand %p1383_p2, %p1369_p7  ;;  %p1391_p10 = scmp.lt.s32.totalorder %s1389_s2, %s1382_s26 }
  0x86   : > { %p1386_p9 = pneg %p1385_p1  ;;  %p1392_p3 = por %p1391_p10, %p1390_p0 }
  0x88   : > { %p1393_p6 = pnand %p1392_p3, %p1386_p9 }
  0x8a   : > { %1396 = shalt.err (!%p1393_p6)
}
  0x8b   : > { %1084 = dma.hbm_to_vmem [thread:$0]  (!%p1846_p11), %s1842_s1, 32, %s227_s4, %s1705_s3  }
  0x8c   : > { %p2098_p4 = scmp.ne.s32.totalorder %s2082_s21, 0 }
  0x8d   : > { %s237_s0 = sand.u32 (!%p2098_p4), 1, %s1527_s19   ;;  %p2099_p2 = scmp.ne.s32.totalorder (!%p2098_p4), %s2084_s29, 0 }
  0x8e   : > { %235 = sbr.rel (%p2098_p4) target bundleno = 497 (0x1f1), region = 32  ;;  %s1875_s24 = sshll.u32 (!%p2098_p4), %s237_s0, 4 }
  0x8f   : > { %s238_s5 = scalar_lea.sflag (!%p2098_p4), [#allocation4], %s237_s0  ;;  %s241_s9 = scalar_lea.vmem (!%p2098_p4), [#allocation3], %s1875_s24 }
  0x95   : > { %1482 = dma.done.wait (%p2099_p2), %s238_s5, 256  }
  0x96   : > { %1484 = vsyncadd (%p2099_p2), %s238_s5, 4294967040  ;;  %s246_s3 = sand.u32 1, %s1740_s30   ;;  %s248_s1 = sand.u32 1, %s1515_s16  }
  0x97   : > { %s985_s21 = sshll.u32 %s248_s1, 9  ;;  %s247_s12 = scalar_lea.sflag [#allocation7], %s246_s3 }
  0x98   : > { %s1884_s4 = scalar_lea.vmem [#allocation6], %s985_s21  ;;  %p2100_p10 = scmp.ne.s32.totalorder %s2086_s18, 0 }
  0x9a   : > { %1486 = dma.done.wait (%p2100_p10), %s247_s12, 8192  }
  0x9b   : > { %1488 = vsyncadd (%p2100_p10), %s247_s12, 4294959104  ;;  %s1891_s26 = sand.u32 1, %s1503_s13   ;;  %p2101_p0 = scmp.ne.s32.totalorder %s2092_s27, 0 }
  0x9c   : > { %s986_s29 = sshll.u32 %s1891_s26, 1 }
  0x9d   : > { %s1894_s15 = scalar_lea.vmem [#allocation8], %s986_s29 }
  0x9e   : > { %1490 = dma.done.wait (%p2101_p0), %s247_s12, 32  }
  0x9f   : > { %1492 = vsyncadd (%p2101_p0), %s247_s12, 4294967264  ;;  %s987_s30 = sshll.u32 %s1891_s26, 4  ;;  %s2102_s2 = sld [smem:[#allocation15_spill]] }
  0xa0   : > { %s1901_s22 = scalar_lea.vmem [#allocation9], %s987_s30 }
  0xa5   : > { %p988_p11 = scmp.ne.s32.totalorder %s2102_s2, 0 }
  0xa6   : > { %v1559_v0 = vmov (!%p988_p11), 0.0  }
  0xa7   : > { %300 = sbr.rel (%p988_p11) target bundleno = 174 (0xae), region = 48  ;;  %301 = vst [vmem:[#allocation2] sm:$0xff] (!%p988_p11), %v1559_v0  ;;  %302 = vst [vmem:[#allocation2 + $0x8] sm:$0xff] (!%p988_p11), %v1559_v0 }
  0xae PF: > { %v1207_v1 = vld [vmem:[%s1884_s4 + $0x4] ss:$8 sps:$4 sm:$0xff]   ;;  %v1211_v3 = vld [vmem:[%s1884_s4] ss:$8 sps:$4 sm:$0xff]   ;;  %v1213_v5 = vld [vmem:[%s1884_s4 + $0x14] ss:$8 sps:$4 sm:$0xff]  }
  0xaf   : > { %v1209_v2 = vld [vmem:[%s1884_s4 + $0x104] ss:$8 sps:$4 sm:$0xff]   ;;  %705 = vmatprep.subr.bf16.mxu0 %v1207_v1  ;;  %v1212_v4 = vld [vmem:[%s1884_s4 + $0x100] ss:$8 sps:$4 sm:$0xff]   ;;  %v1215_v6 = vld [vmem:[%s1884_s4 + $0x114] ss:$8 sps:$4 sm:$0xff]  }
  0xb0   : > { %746 = vmatprep.subr.bf16.mxu1 %v1209_v2  ;;  %706 = vmatpush1.bf16.msra.mxu0 %v1211_v3  ;;  %v1217_v7 = vld [vmem:[%s1884_s4 + $0x10] ss:$8 sps:$4 sm:$0xff]   ;;  %v1219_v9 = vld [vmem:[%s1884_s4 + $0x24] ss:$8 sps:$4 sm:$0xff]   ;;  %v1223_v11 = vld [vmem:[%s1884_s4 + $0x20] ss:$8 sps:$4 sm:$0xff]  }
  0xb1   : > { %747 = vmatpush1.bf16.msra.mxu1 %v1212_v4  ;;  %707 = vmatprep.subr.bf16.mxu0 %v1213_v5  ;;  %v1218_v8 = vld [vmem:[%s1884_s4 + $0x110] ss:$8 sps:$4 sm:$0xff]   ;;  %v1221_v10 = vld [vmem:[%s1884_s4 + $0x124] ss:$8 sps:$4 sm:$0xff]   ;;  %v1224_v12 = vld [vmem:[%s1884_s4 + $0x120] ss:$8 sps:$4 sm:$0xff]  }
  0xb2   : > { %748 = vmatprep.subr.bf16.mxu1 %v1215_v6  ;;  %v1225_v13 = vld [vmem:[%s1884_s4 + $0x34] ss:$8 sps:$4 sm:$0xff]   ;;  %v1229_v15 = vld [vmem:[%s1884_s4 + $0x30] ss:$8 sps:$4 sm:$0xff]   ;;  %v1231_v17 = vld [vmem:[%s1884_s4 + $0x44] ss:$8 sps:$4 sm:$0xff]  }
  0xb3   : > { %v1227_v14 = vld [vmem:[%s1884_s4 + $0x134] ss:$8 sps:$4 sm:$0xff]   ;;  %v1230_v16 = vld [vmem:[%s1884_s4 + $0x130] ss:$8 sps:$4 sm:$0xff]   ;;  %v1233_v18 = vld [vmem:[%s1884_s4 + $0x144] ss:$8 sps:$4 sm:$0xff]  }
  0xb4   : > { %708 = vmatpush1.bf16.msra.mxu0 %v1217_v7  ;;  %v1235_v19 = vld [vmem:[%s1884_s4 + $0x40] ss:$8 sps:$4 sm:$0xff]   ;;  %v1237_v21 = vld [vmem:[%s1884_s4 + $0x54] ss:$8 sps:$4 sm:$0xff]   ;;  %v1241_v23 = vld [vmem:[%s1884_s4 + $0x50] ss:$8 sps:$4 sm:$0xff]  }
  0xb5   : > { %749 = vmatpush1.bf16.msra.mxu1 %v1218_v8  ;;  %709 = vmatprep.subr.bf16.mxu0 %v1219_v9  ;;  %v1236_v20 = vld [vmem:[%s1884_s4 + $0x140] ss:$8 sps:$4 sm:$0xff]   ;;  %v1239_v22 = vld [vmem:[%s1884_s4 + $0x154] ss:$8 sps:$4 sm:$0xff]   ;;  %v1242_v24 = vld [vmem:[%s1884_s4 + $0x150] ss:$8 sps:$4 sm:$0xff]  }
  0xb6   : > { %750 = vmatprep.subr.bf16.mxu1 %v1221_v10  ;;  %v1243_v25 = vld [vmem:[%s1884_s4 + $0x64] ss:$8 sps:$4 sm:$0xff]   ;;  %v1247_v27 = vld [vmem:[%s1884_s4 + $0x60] ss:$8 sps:$4 sm:$0xff]   ;;  %v1249_v29 = vld [vmem:[%s1884_s4 + $0x74] ss:$8 sps:$4 sm:$0xff]  }
  0xb7   : > { %v1245_v26 = vld [vmem:[%s1884_s4 + $0x164] ss:$8 sps:$4 sm:$0xff]   ;;  %v1248_v28 = vld [vmem:[%s1884_s4 + $0x160] ss:$8 sps:$4 sm:$0xff]   ;;  %v1251_v30 = vld [vmem:[%s1884_s4 + $0x174] ss:$8 sps:$4 sm:$0xff]  }
  0xb8   : > { %710 = vmatpush1.bf16.msra.mxu0 %v1223_v11  ;;  %v1253_v31 = vld [vmem:[%s1884_s4 + $0x70] ss:$8 sps:$4 sm:$0xff]   ;;  %v1255_v33 = vld [vmem:[%s1884_s4 + $0x84] ss:$8 sps:$4 sm:$0xff]   ;;  %v1259_v35 = vld [vmem:[%s1884_s4 + $0x80] ss:$8 sps:$4 sm:$0xff]  }
  0xb9   : > { %751 = vmatpush1.bf16.msra.mxu1 %v1224_v12  ;;  %711 = vmatprep.subr.bf16.mxu0 %v1225_v13  ;;  %v1254_v32 = vld [vmem:[%s1884_s4 + $0x170] ss:$8 sps:$4 sm:$0xff]   ;;  %v1257_v34 = vld [vmem:[%s1884_s4 + $0x184] ss:$8 sps:$4 sm:$0xff]   ;;  %v1260_v36 = vld [vmem:[%s1884_s4 + $0x180] ss:$8 sps:$4 sm:$0xff]  }
  0xba   : > { %752 = vmatprep.subr.bf16.mxu1 %v1227_v14  ;;  %v1261_v37 = vld [vmem:[%s1884_s4 + $0x94] ss:$8 sps:$4 sm:$0xff]   ;;  %v1265_v39 = vld [vmem:[%s1884_s4 + $0x90] ss:$8 sps:$4 sm:$0xff]   ;;  %v1267_v41 = vld [vmem:[%s1884_s4 + $0xa4] ss:$8 sps:$4 sm:$0xff]  }
  0xbb   : > { %v1263_v38 = vld [vmem:[%s1884_s4 + $0x194] ss:$8 sps:$4 sm:$0xff]   ;;  %v1266_v40 = vld [vmem:[%s1884_s4 + $0x190] ss:$8 sps:$4 sm:$0xff]   ;;  %v1269_v42 = vld [vmem:[%s1884_s4 + $0x1a4] ss:$8 sps:$4 sm:$0xff]  }
  0xbc   : > { %712 = vmatpush1.bf16.msra.mxu0 %v1229_v15  ;;  %v1271_v43 = vld [vmem:[%s1884_s4 + $0xa0] ss:$8 sps:$4 sm:$0xff]   ;;  %v1273_v45 = vld [vmem:[%s1884_s4 + $0xb4] ss:$8 sps:$4 sm:$0xff]   ;;  %v1277_v50 = vld [vmem:[%s1884_s4 + $0xb0] ss:$8 sps:$4 sm:$0xff]  }
  0xbd   : > { %753 = vmatpush1.bf16.msra.mxu1 %v1230_v16  ;;  %713 = vmatprep.subr.bf16.mxu0 %v1231_v17  ;;  %v1272_v44 = vld [vmem:[%s1884_s4 + $0x1a0] ss:$8 sps:$4 sm:$0xff]   ;;  %v1275_v46 = vld [vmem:[%s1884_s4 + $0x1b4] ss:$8 sps:$4 sm:$0xff]   ;;  %v1278_v51 = vld [vmem:[%s1884_s4 + $0x1b0] ss:$8 sps:$4 sm:$0xff]  }
  0xbe   : > { %754 = vmatprep.subr.bf16.mxu1 %v1233_v18  ;;  %v305_v47 = vld [vmem:[%s241_s9] sm:$0xff]  ;;  %v306_v49 = vld [vmem:[%s241_s9 + $0x8] sm:$0xff]  ;;  %s2103_s18 = sld [smem:[#allocation15_spill]] }
  0xbf   : > { %v990_v48 = vcombine.high %v305_v47, %v305_v47  ;;  %v992_v52 = vcombine.high %v306_v49, %v306_v49  ;;  %v1279_v53 = vld [vmem:[%s1884_s4 + $0xc4] ss:$8 sps:$4 sm:$0xff]   ;;  %v1283_v55 = vld [vmem:[%s1884_s4 + $0xc0] ss:$8 sps:$4 sm:$0xff]   ;;  %v1285_v57 = vld [vmem:[%s1884_s4 + $0xd4] ss:$8 sps:$4 sm:$0xff]   ;;  %v989_v5 = vcombine.low %v305_v47, %v305_v47  ;;  %v991_v6 = vcombine.low %v306_v49, %v306_v49 }
  0xc0   : > { %714 = vmatpush1.bf16.msra.mxu0 %v1235_v19  ;;  %v1281_v54 = vld [vmem:[%s1884_s4 + $0x1c4] ss:$8 sps:$4 sm:$0xff]   ;;  %v1284_v56 = vld [vmem:[%s1884_s4 + $0x1c0] ss:$8 sps:$4 sm:$0xff]   ;;  %v1287_v58 = vld [vmem:[%s1884_s4 + $0x1d4] ss:$8 sps:$4 sm:$0xff]  }
  0xc1   : > { %755 = vmatpush1.bf16.msra.mxu1 %v1236_v20  ;;  %715 = vmatprep.subr.bf16.mxu0 %v1237_v21  ;;  %v1289_v59 = vld [vmem:[%s1884_s4 + $0xd0] ss:$8 sps:$4 sm:$0xff]   ;;  %v1291_v61 = vld [vmem:[%s1884_s4 + $0xe4] ss:$8 sps:$4 sm:$0xff]   ;;  %v1295_v63 = vld [vmem:[%s1884_s4 + $0xe0] ss:$8 sps:$4 sm:$0xff]  }
  0xc2   : > { %756 = vmatprep.subr.bf16.mxu1 %v1239_v22  ;;  %737 = vmatprep.mubr.bf16.mxu0 %v990_v48  ;;  %v1290_v60 = vld [vmem:[%s1884_s4 + $0x1d0] ss:$8 sps:$4 sm:$0xff]   ;;  %v1293_v62 = vld [vmem:[%s1884_s4 + $0x1e4] ss:$8 sps:$4 sm:$0xff]   ;;  %v1296_v0 = vld [vmem:[%s1884_s4 + $0x1e0] ss:$8 sps:$4 sm:$0xff]  }
  0xc3   : > { %778 = vmatprep.mubr.bf16.mxu1 %v992_v52  ;;  %v1297_v1 = vld [vmem:[%s1884_s4 + $0xf4] ss:$8 sps:$4 sm:$0xff]   ;;  %v1301_v3 = vld [vmem:[%s1884_s4 + $0xf0] ss:$8 sps:$4 sm:$0xff]  }
  0xc4   : > { %716 = vmatpush1.bf16.msra.mxu0 %v1241_v23  ;;  %v1299_v2 = vld [vmem:[%s1884_s4 + $0x1f4] ss:$8 sps:$4 sm:$0xff]   ;;  %v1302_v4 = vld [vmem:[%s1884_s4 + $0x1f0] ss:$8 sps:$4 sm:$0xff]   ;;  %p1057_p7 = scmp.ne.s32.totalorder %s2103_s18, 8 }
  0xc5   : > { %757 = vmatpush1.bf16.msra.mxu1 %v1242_v24  ;;  %717 = vmatprep.subr.bf16.mxu0 %v1243_v25  ;;  %v303_v8 = vld [vmem:[#allocation2] sm:$0xff]  ;;  %v304_v12 = vld [vmem:[#allocation2 + $0x8] sm:$0xff]  ;;  %v799_v21 = vlaneseq (!%p1057_p7)  ;;  %v797_v23 = vld [vmem:[%s1894_s15] sm:$0x3] (!%p1057_p7) }
  0xc6   : > { %758 = vmatprep.subr.bf16.mxu1 %v1245_v26 }
  0xc7   : > { %v800_v22 = vshrl.u32 (!%p1057_p7), %v799_v21, 7 }
  0xc8   : > { %718 = vmatpush1.bf16.msra.mxu0 %v1247_v27 }
  0xc9   : > { %759 = vmatpush1.bf16.msra.mxu1 %v1248_v28  ;;  %719 = vmatprep.subr.bf16.mxu0 %v1249_v29  ;;  %v801_v24 = vsub.s32 (!%p1057_p7), 0, %v800_v22  ;;  %v805_v25 = vsub.s32 (!%p1057_p7), 1, %v800_v22 }
  0xca   : > { %760 = vmatprep.subr.bf16.mxu1 %v1251_v30 }
  0xcb   : > { %v802_v28 = vrot.slane (!%p1057_p7), %v797_v23, %v801_v24  ;;  %v806_v29 = vrot.slane (!%p1057_p7), %v797_v23, %v805_v25 }
  0xcc   : > { %720 = vmatpush1.bf16.msra.mxu0 %v1253_v31 }
  0xcd   : > { %761 = vmatpush1.bf16.msra.mxu1 %v1254_v32  ;;  %721 = vmatprep.subr.bf16.mxu0 %v1255_v33 }
  0xce   : > { %762 = vmatprep.subr.bf16.mxu1 %v1257_v34 }
  0xd0   : > { %722 = vmatpush1.bf16.msra.mxu0 %v1259_v35 }
  0xd1   : > { %763 = vmatpush1.bf16.msra.mxu1 %v1260_v36  ;;  %723 = vmatprep.subr.bf16.mxu0 %v1261_v37 }
  0xd2   : > { %764 = vmatprep.subr.bf16.mxu1 %v1263_v38 }
  0xd4   : > { %724 = vmatpush1.bf16.msra.mxu0 %v1265_v39 }
  0xd5   : > { %765 = vmatpush1.bf16.msra.mxu1 %v1266_v40  ;;  %725 = vmatprep.subr.bf16.mxu0 %v1267_v41 }
  0xd6   : > { %766 = vmatprep.subr.bf16.mxu1 %v1269_v42 }
  0xd8   : > { %726 = vmatpush1.bf16.msra.mxu0 %v1271_v43 }
  0xd9   : > { %767 = vmatpush1.bf16.msra.mxu1 %v1272_v44  ;;  %727 = vmatprep.subr.bf16.mxu0 %v1273_v45 }
  0xda   : > { %768 = vmatprep.subr.bf16.mxu1 %v1275_v46 }
  0xdc   : > { %728 = vmatpush1.bf16.msra.mxu0 %v1277_v50 }
  0xdd   : > { %769 = vmatpush1.bf16.msra.mxu1 %v1278_v51  ;;  %729 = vmatprep.subr.bf16.mxu0 %v1279_v53 }
  0xde   : > { %770 = vmatprep.subr.bf16.mxu1 %v1281_v54 }
  0xe0   : > { %730 = vmatpush1.bf16.msra.mxu0 %v1283_v55 }
  0xe1   : > { %771 = vmatpush1.bf16.msra.mxu1 %v1284_v56  ;;  %731 = vmatprep.subr.bf16.mxu0 %v1285_v57 }
  0xe2   : > { %772 = vmatprep.subr.bf16.mxu1 %v1287_v58 }
  0xe4   : > { %732 = vmatpush1.bf16.msra.mxu0 %v1289_v59 }
  0xe5   : > { %773 = vmatpush1.bf16.msra.mxu1 %v1290_v60  ;;  %733 = vmatprep.subr.bf16.mxu0 %v1291_v61 }
  0xe6   : > { %774 = vmatprep.subr.bf16.mxu1 %v1293_v62 }
  0xe8   : > { %734 = vmatpush1.bf16.msra.mxu0 %v1295_v63 }
  0xe9   : > { %775 = vmatpush1.bf16.msra.mxu1 %v1296_v0  ;;  %735 = vmatprep.subr.bf16.mxu0 %v1297_v1 }
  0xea   : > { %776 = vmatprep.subr.bf16.mxu1 %v1299_v2 }
  0xec   : > { %736 = vmatpush1.bf16.msra.mxu0 %v1301_v3 }
  0xed   : > { %777 = vmatpush1.bf16.msra.mxu1 %v1302_v4 }
  0xef   : > { %738 = vmatmul.mubr.bf16.vlgmr.msra.gmra.mrb[0].mxu0 %v989_v5 }
  0xf0   : > { %779 = vmatmul.mubr.bf16.vlgmr.msra.gmra.mrb[0].mxu1 %v991_v6 }
 0x1c2   : > { %v739_v7 = vpop.f32.mrb[0].mxu0 }
 0x1c3   : > { %v780_v9 = vpop.f32.mrb[0].mxu1  ;;  %v741_v11 = vpop.f32.mrb[1].mxu0  ;;  %794 = sbr.rel (%p1057_p7) target bundleno = 470 (0x1d6), region = 52 }
 0x1c4   : > { %v781_v10 = vadd.f32 %v780_v9, %v739_v7  ;;  %v782_v13 = vpop.f32.mrb[1].mxu1  ;;  %v743_v15 = vpop.f32.mrb[2].mxu0 }
 0x1c5   : > { %v783_v14 = vadd.f32 %v782_v13, %v741_v11  ;;  %v784_v16 = vpop.f32.mrb[2].mxu1  ;;  %v744_v18 = vpop.f32.mrb[3].mxu0 }
 0x1c6   : > { %v787_v17 = vadd.f32 %v781_v10, %v303_v8  ;;  %v785_v19 = vpop.f32.mrb[3].mxu1 }
 0x1c7   : > { %v788_v20 = vadd.f32 %v783_v14, %v304_v12 }
 0x1c8   : > { %789 = vst [vmem:[#allocation2] sm:$0xff] %v787_v17 }
 0x1c9   : > { %790 = vst [vmem:[#allocation2 + $0x8] sm:$0xff] %v788_v20 }
 0x1cf   : > { %v795_v26 = vld [vmem:[#allocation2] sm:$0xff] }
 0x1d0   : > { %v796_v27 = vld [vmem:[#allocation2 + $0x8] sm:$0xff]  ;;  %v809_v30 = vadd.f32 %v802_v28, %v795_v26 }
 0x1d1   : > { %v810_v31 = vadd.f32 %v806_v29, %v796_v27 }
 0x1d2   : > { %v811_v32 = vmax.f32 %v809_v30, 0.0 }
 0x1d3   : > { %v812_v33 = vmax.f32 %v810_v31, 0.0 }
 0x1d4   : > { %813 = vst [vmem:[%s1901_s22] sm:$0xff] %v811_v32 }
 0x1d5   : > { %814 = vst [vmem:[%s1901_s22 + $0x8] sm:$0xff] %v812_v33 }
 0x1d6 PF: > { %s2104_s27 = sld [smem:[#allocation16_spill]]  ;;  %s2105_s9 = sld [smem:[#allocation23_spill]] }
 0x1d7   : > { %s832_s1 = sshll.u32 %s1901_s22, 4  ;;  %s816_s21 = scalar_lea.sflag [#allocation5], %s1891_s26  ;;  %s833_s1 = int_to_ptr.vmem [resolvable:$true] %s832_s1 }
 0x1d8   : > { %s1397_s12 = scalar_lea.vmem %s833_s1, 256  ;;  %p2106_p5 = scmp.ne.s32.totalorder %s2093_s8, 0 }
 0x1d9   : > { %p1398_p13 = scmp.ne.s32.totalorder %s833_s1, %s1397_s12  ;;  %s1560_s4 = smov [#allocation9]  }
 0x1da   : > { %s1401_s29 = sshll.u32 %s1560_s4, 4  ;;  %s1402_s29 = int_to_ptr.vmem [resolvable:$false] %s1401_s29 }
 0x1db   : > { %p1399_p12 = pnand %p1398_p13, %p2106_p5  ;;  %s1403_s15 = scalar_lea.vmem %s1402_s29, 512 }
 0x1dc   : > { %s1066_s0 = sshll.u32 %s2104_s27, 8  ;;  %p1404_p1 = scmp.lt.s32.totalorder %s833_s1, %s1402_s29 }
 0x1dd   : > { %s1980_s3 = scalar_lea.hbm %s2105_s9, %s1066_s0  ;;  %p1400_p8 = pneg %p1399_p12 }
 0x1de   : > { %p1405_p9 = scmp.lt.s32.totalorder %s1403_s15, %s1397_s12 }
 0x1e0   : > { %p1406_p3 = por %p1405_p9, %p1404_p1 }
 0x1e2   : > { %p1407_p6 = pnand %p1406_p3, %p1400_p8 }
 0x1e4   : > { %1410 = shalt.err (!%p1407_p6)
}
 0x1e5   : > { %s1411_s26 = scalar_lea.hbm %s1980_s3, 256  ;;  %s1415_s2 = scalar_lea.hbm %s2105_s9, 512 }
 0x1e6   : > { %p1412_p4 = scmp.ne.s32.totalorder %s1980_s3, %s1411_s26  ;;  %p1416_p0 = scmp.lt.u32.totalorder %s1980_s3, %s2105_s9 }
 0x1e7   : > { %p1417_p11 = scmp.lt.u32.totalorder %s1415_s2, %s1411_s26  ;;  %p1419_p13 = scmp.lt.u32.totalorder %s1411_s26, %s1980_s3 }
 0x1e8   : > { %p1413_p2 = pnand %p1412_p4, %p2106_p5 }
 0x1e9   : > { %p1418_p7 = por %p1417_p11, %p1416_p0 }
 0x1ea   : > { %p1414_p10 = pneg %p1413_p2 }
 0x1eb   : > { %p1420_p12 = por %p1419_p13, %p1418_p7 }
 0x1ed   : > { %p1421_p8 = pnand %p1420_p12, %p1414_p10 }
 0x1ef   : > { %1424 = shalt.err (!%p1421_p8)
}
 0x1f0   : > { %1073 = dma.vmem_to_hbm [thread:$0]  (%p2106_p5), %s833_s1, 256, %s1980_s3, %s816_s21  }
 0x1f1 PF: > { %s2107_s0 = sld [smem:[#allocation14_spill]]  ;;  %p1090_p1 = scmp.ge.s32.totalorder %s1551_s25, 2 }
 0x1f2   : > { %p2108_p9 = scmp.ne.s32.totalorder %s2094_s6, 0 }
 0x1f4   : > { %p1086_p3 = pnand %p1090_p1, %p2108_p9 }
 0x1f7   : > { %s844_s24 = sand.u32 1, %s2107_s0  }
 0x1f8   : > { %s845_s5 = scalar_lea.sflag [#allocation5], %s844_s24 }
 0x1f9   : > { %1494 = dma.done.wait (!%p1086_p3), %s845_s5, 256  }
 0x1fa   : > { %1496 = vsyncadd (!%p1086_p3), %s845_s5, 4294967040  ;;  %s22_s25 = sadd.s32 1, %s1551_s25   ;;  %s2110_s22 = sld [smem:[#allocation17_spill]] }
 0x1fb   : > { %p2006_p6 = scmp.ge.s32.totalorder %s22_s25, 20   ;;  %s2111_s8 = sld [smem:[#allocation18_spill]] }
 0x1fc   : > { %s2112_s24 = sld [smem:[#allocation19_spill]]  ;;  %s2114_s12 = smov %s1503_s13 }
 0x1fd   : > { %s2115_s13 = smov %s1507_s14  ;;  %s2116_s14 = smov %s1818_s7 }
 0x1fe   : > { %s2117_s15 = smov %s1515_s16  ;;  %s2118_s16 = smov %s1519_s17 }
 0x1ff   : > { %s2119_s17 = smov %s1686_s11  ;;  %s2120_s18 = smov %s1527_s19 }
 0x200   : > { %s2121_s19 = smov %s1531_s20  ;;  %s2122_s20 = smov %s1749_s28 }
 0x201   : > { %s2123_s21 = smov %s1543_s23  ;;  %s2124_s23 = smov %s2111_s8 }
 0x202   :  { %21 = sbr.rel (!%p2006_p6) target bundleno = 17 (0x11), region = 109 }
 0x209   :  { %850 = vsyncpa [#allocation4], 1 }
 0x20a   :  { %852 = vsyncpa [#allocation4 + $0x1], 1 }
 0x20b   :  { %853 = vsyncpa [#allocation7], 1 }
 0x20c   :  { %855 = vsyncpa [#allocation7 + $0x1], 1 }
 0x20d   :  { %856 = vsyncpa [#allocation5], 1 }
 0x20e   :  { %858 = vsyncpa [#allocation5 + $0x1], 1 }

// kernel: csrnet_forward.42
= control target key start
LH: loop header
LB: loop body
LE: loop exit
PB: predicated region body
PF: predicated region fallthrough
CT: control target
= control target key end

     0   :  { %8 = vsyncpa [#allocation4], 0  ;;  %s1700_s0 = inlined_call_operand.hbm [shape: bf16[8,4608], index: 0, kind: input, shape index: {}]   ;;  %s1701_s1 = inlined_call_operand.hbm [shape: bf16[4608,256], index: 1, kind: input, shape index: {}]   ;;  %s1702_s2 = inlined_call_operand.hbm [shape: f32[1,256], index: 2, kind: input, shape index: {}]   ;;  %s1703_s3 = inlined_call_operand.hbm [shape: f32[8,256], index: 3, kind: output, shape index: {}]  }
   0x1   :  { %10 = vsyncpa [#allocation4 + $0x1], 0 }
   0x2   :  { %11 = vsyncpa [#allocation7], 0 }
   0x3   :  { %13 = vsyncpa [#allocation7 + $0x1], 0 }
   0x4   :  { %14 = vsyncpa [#allocation5], 0  ;;  %s1390_s12 = smov 0   ;;  %s1392_s13 = smov 0  }
   0x5   :  { %s1394_s14 = smov 0   ;;  %s1396_s15 = smov 0  }
   0x6   :  { %s1398_s16 = smov 0   ;;  %s1400_s17 = smov 0  }
   0x7 LB: > { %s1419_s18 = sadd.s32 4294967295, %s1361_s17   ;;  %s48_s19 = sadd.s32 1, %s1349_s14  ;;  %s1361_s17 = sphi %s1400_s17, %s20_s17   ;;  %s1357_s16 = sphi %s1398_s16, %s1724_s16   ;;  %s1353_s15 = sphi %s1396_s15, %s1723_s15   ;;  %s1349_s14 = sphi %s1394_s14, %s1722_s14   ;;  %s1345_s13 = sphi %s1392_s13, %s1721_s13   ;;  %s1341_s12 = sphi %s1390_s12, %s1720_s12  }
   0x8   : > { %p55_p0 = scmp.ne.s32.totalorder %s1349_s14, %s1345_s13  ;;  %p61_p1 = scmp.ne.s32.totalorder %s1345_s13, %s1341_s12 }
   0x9   : > { %p1704_p2 = scmp.eq.s32.totalorder %s1419_s18, 0  ;;  %p913_p3 = scmp.ge.s32.totalorder %s1361_s17, 1 }
   0xa   : > { %p154_p4 = scmp.lt.s32.totalorder %s1361_s17, 10  ;;  %s1363_s22 = smov [#allocation8]  }
   0xb   : > { %p1430_p5 = por %p1704_p2, %p61_p1  ;;  %s170_s23 = sshll.u32 %s1363_s22, 4  ;;  %s171_s23 = int_to_ptr.vmem [resolvable:$true] %s170_s23 }
   0xc   : > { %p1434_p6 = pnand %p913_p3, %p154_p4  ;;  %p56_p8 = scmp.eq.s32.totalorder %s1361_s17, 0 }
   0xd   : > { %s1707_s20 = scalar_select %p1430_p5, 1, 0 }
   0xe   : > { %s1708_s21 = scalar_select %p1434_p6, 1, 0 }
   0xf   : > { %p1016_p7 = pneg %p1434_p6  ;;  %s32_s25 = sadd.s32 1, %s1357_s16 }
  0x10   : > { %p1448_p10 = scmp.ge.s32.totalorder %s32_s25, 9  ;;  %p1455_p11 = por %p56_p8, %p55_p0 }
  0x11   : > { %p1443_p9 = pnand %p1016_p7, %p1704_p2  ;;  %s1185_s30 = scalar_lea.hbm %s1702_s2, 32 }
  0x12   : > { %s1710_s26 = scalar_select %p1448_p10, 1, 0 }
  0x13   : > { %s1711_s27 = scalar_select %p1455_p11, 1, 0 }
  0x14   : > { %p1186_p13 = scmp.ne.s32.totalorder %s1702_s2, %s1185_s30  ;;  %p1187_p1 = pneg %p1443_p9 }
  0x15   : > { %p1192_p0 = scmp.lt.u32.totalorder %s1185_s30, %s1702_s2 }
  0x16   : > { %p1188_p3 = pnand %p1187_p1, %p1186_p13 }
  0x18   : > { %p1189_p4 = pneg %p1188_p3 }
  0x1a   : > { %p1194_p7 = pnand %p1192_p0, %p1189_p4 }
  0x1c   : > { %1197 = shalt.err (!%p1194_p7)
}
  0x1d   : > { %s1198_s8 = scalar_lea.vmem %s171_s23, 32  ;;  %p1206_p5 = scmp.lt.s32.totalorder %s171_s23, %s171_s23 }
  0x1e   : > { %p1199_p8 = scmp.ne.s32.totalorder %s171_s23, %s1198_s8  ;;  %p1207_p6 = scmp.lt.s32.totalorder %s1198_s8, %s1198_s8 }
  0x20   : > { %p1201_p2 = pnand %p1199_p8, %p1187_p1  ;;  %p1208_p11 = por %p1207_p6, %p1206_p5 }
  0x22   : > { %p1202_p12 = pneg %p1201_p2 }
  0x24   : > { %p1209_p10 = pnand %p1208_p11, %p1202_p12 }
  0x26   : > { %1212 = shalt.err (!%p1209_p10)
}
  0x27   : > { %1019 = dma.hbm_to_vmem [thread:$0]  (!%p1443_p9), %s1702_s2, 32, %s171_s23, [#allocation7]  }
  0x28   : > { %p1712_p2 = scmp.ne.s32.totalorder %s1710_s26, 0  ;;  %s1481_s11 = sand.u32 1, %s1349_s14  }
  0x29   : > { %s1001_s12 = sshll.u32 %s1357_s16, 8  ;;  %s916_s24 = sshll.u32 %s1481_s11, 4 }
  0x2a   : > { %s1726_s25 = smov (%p1712_p2, %s32_s25), 0  ;;  %s1490_s30 = scalar_lea.hbm %s1700_s0, %s1001_s12 }
  0x2b   : > { %s44_s22 = ssub.s32 %s1357_s16, %s1726_s25  ;;  %s185_s26 = scalar_lea.vmem [#allocation3], %s916_s24 }
  0x2c   : > { %p46_p5 = scmp.eq.s32.totalorder %s44_s22, 0  ;;  %s195_s4 = sshll.u32 %s185_s26, 4  ;;  %s1505_s4 = int_to_ptr.vmem [resolvable:$true] %s195_s4 }
  0x2d   : > { %p1713_p6 = scmp.ne.s32.totalorder %s1711_s27, 0  ;;  %p1714_p9 = scmp.lt.s32.totalorder %s1361_s17, 9 }
  0x2e   : > { %s1495_s23 = scalar_select %p46_p5, %s1349_s14, %s48_s19  }
  0x2f   : > { %p1501_p10 = pnand %p1714_p9, %p1713_p6  ;;  %s919_s6 = sshll.u32 %s1481_s11, 9 }
  0x30   : > { %s182_s7 = scalar_lea.sflag [#allocation4], %s1481_s11  ;;  %s1213_s8 = scalar_lea.hbm %s1490_s30, 256 }
  0x31   : > { %p1214_p11 = scmp.ne.s32.totalorder %s1490_s30, %s1213_s8  ;;  %p1215_p12 = pneg %p1501_p10 }
  0x32   : > { %s1218_s9 = scalar_lea.hbm %s1700_s0, 2304  ;;  %p1219_p3 = scmp.lt.u32.totalorder %s1490_s30, %s1700_s0 }
  0x33   : > { %p1216_p13 = pnand %p1215_p12, %p1214_p11  ;;  %p1220_p4 = scmp.lt.u32.totalorder %s1218_s9, %s1213_s8 }
  0x34   : > { %p1222_p7 = scmp.lt.u32.totalorder %s1213_s8, %s1490_s30 }
  0x35   : > { %p1217_p1 = pneg %p1216_p13  ;;  %p1221_p0 = por %p1220_p4, %p1219_p3 }
  0x37   : > { %p1223_p8 = por %p1222_p7, %p1221_p0 }
  0x39   : > { %p1224_p2 = pnand %p1223_p8, %p1217_p1 }
  0x3b   : > { %1227 = shalt.err (!%p1224_p2)
}
  0x3c   : > { %s1228_s22 = scalar_lea.vmem %s1505_s4, 256  ;;  %s1364_s24 = smov [#allocation3]  }
  0x3d   : > { %p1229_p5 = scmp.ne.s32.totalorder %s1505_s4, %s1228_s22  ;;  %s1233_s28 = sshll.u32 %s1364_s24, 4  ;;  %s1234_s28 = int_to_ptr.vmem [resolvable:$false] %s1233_s28 }
  0x3e   : > { %s1235_s29 = scalar_lea.vmem %s1234_s28, 512  ;;  %p1236_p11 = scmp.lt.s32.totalorder %s1505_s4, %s1234_s28 }
  0x3f   : > { %p1231_p6 = pnand %p1229_p5, %p1215_p12  ;;  %p1237_p13 = scmp.lt.s32.totalorder %s1235_s29, %s1228_s22 }
  0x41   : > { %p1232_p9 = pneg %p1231_p6  ;;  %p1238_p3 = por %p1237_p13, %p1236_p11 }
  0x43   : > { %p1239_p4 = pnand %p1238_p3, %p1232_p9 }
  0x45   : > { %1242 = shalt.err (!%p1239_p4)
}
  0x46   : > { %1023 = dma.hbm_to_vmem [thread:$0]  (!%p1501_p10), %s1490_s30, 256, %s1505_s4, %s182_s7  }
  0x47   : > { %s1003_s26 = sshll.u32 %s1357_s16, 13  ;;  %s206_s8 = scalar_lea.vmem [#allocation6], %s919_s6 }
  0x48   : > { %s216_s19 = sshll.u32 %s206_s8, 4  ;;  %s202_s27 = sand.u32 1, %s1361_s17   ;;  %s1537_s19 = int_to_ptr.vmem [resolvable:$true] %s216_s19 }
  0x49   : > { %s1543_s12 = scalar_lea.hbm %s1701_s1, %s1003_s26  ;;  %s1545_s22 = scalar_lea.sflag [#allocation7], %s202_s27 }
  0x4a   : > { %s1243_s24 = scalar_lea.hbm %s1543_s12, 8192  ;;  %s1248_s4 = scalar_lea.hbm %s1701_s1, 73728 }
  0x4b   : > { %p1244_p1 = scmp.ne.s32.totalorder %s1543_s12, %s1243_s24  ;;  %p1249_p8 = scmp.lt.u32.totalorder %s1543_s12, %s1701_s1 }
  0x4c   : > { %p1250_p2 = scmp.lt.u32.totalorder %s1248_s4, %s1243_s24  ;;  %p1252_p6 = scmp.lt.u32.totalorder %s1243_s24, %s1543_s12 }
  0x4d   : > { %p1246_p0 = pnand %p1244_p1, %p1215_p12 }
  0x4e   : > { %p1251_p5 = por %p1250_p2, %p1249_p8 }
  0x4f   : > { %p1247_p7 = pneg %p1246_p0 }
  0x50   : > { %p1253_p9 = por %p1252_p6, %p1251_p5 }
  0x52   : > { %p1254_p11 = pnand %p1253_p9, %p1247_p7 }
  0x54   : > { %1257 = shalt.err (!%p1254_p11)
}
  0x55   : > { %s1258_s28 = scalar_lea.vmem %s1537_s19, 8192  ;;  %s1365_s29 = smov [#allocation6]  }
  0x56   : > { %p1259_p13 = scmp.ne.s32.totalorder %s1537_s19, %s1258_s28  ;;  %s1263_s26 = sshll.u32 %s1365_s29, 4  ;;  %s1264_s26 = int_to_ptr.vmem [resolvable:$false] %s1263_s26 }
  0x57   : > { %s1265_s8 = scalar_lea.vmem %s1264_s26, 16384  ;;  %p1266_p1 = scmp.lt.s32.totalorder %s1537_s19, %s1264_s26 }
  0x58   : > { %p1261_p3 = pnand %p1259_p13, %p1215_p12  ;;  %p1267_p0 = scmp.lt.s32.totalorder %s1265_s8, %s1258_s28 }
  0x5a   : > { %p1262_p4 = pneg %p1261_p3  ;;  %p1268_p8 = por %p1267_p0, %p1266_p1 }
  0x5c   : > { %p1269_p2 = pnand %p1268_p8, %p1262_p4 }
  0x5e   : > { %1272 = shalt.err (!%p1269_p2)
}
  0x5f   : > { %s1366_s27 = smov 128   ;;  %s1367_s9 = smov 8  }
  0x60   : > { %1026 = dma.hbm_to_vmem [thread:$0]  (!%p1501_p10), %s1543_s12, 8192, %s1537_s19, %s1545_s22, %s1366_s27, %s1366_s27, %s1367_s9  }
  0x61   : > { %p1716_p12 = scmp.ne.s32.totalorder %s1708_s21, 0 }
  0x62   : > { %s230_s10 = sand.u32 (!%p1716_p12), 1, %s1345_s13   ;;  %p1717_p7 = scmp.ne.s32.totalorder (!%p1716_p12), %s1707_s20, 0 }
  0x63   : > { %228 = sbr.rel (%p1716_p12) target bundleno = 443 (0x1bb), region = 32  ;;  %s924_s24 = sshll.u32 (!%p1716_p12), %s230_s10, 4 }
  0x64   : > { %s231_s11 = scalar_lea.sflag (!%p1716_p12), [#allocation4], %s230_s10  ;;  %s1574_s30 = scalar_lea.vmem (!%p1716_p12), [#allocation3], %s924_s24 }
  0x6a   : > { %1324 = dma.done.wait (%p1717_p7), %s231_s11, 256  }
  0x6b   : > { %1326 = vsyncadd (%p1717_p7), %s231_s11, 4294967040  ;;  %s239_s4 = sand.u32 1, %s1419_s18   ;;  %s925_s5 = sshll.u32 %s230_s10, 9 }
  0x6c   : > { %s240_s19 = scalar_lea.sflag [#allocation7], %s239_s4  ;;  %s1581_s12 = scalar_lea.vmem [#allocation6], %s925_s5 }
  0x6d   : > { %1328 = dma.done.wait (%p1717_p7), %s240_s19, 8192  }
  0x6e   : > { %1330 = vsyncadd (%p1717_p7), %s240_s19, 4294959104  ;;  %p1718_p10 = scmp.eq.s32.totalorder %s1419_s18, 0 }
  0x70   : > { %1332 = dma.done.wait (%p1718_p10), [#allocation7], 32   ;;  %p1719_p5 = pmov %p1718_p10 }
  0x71   : > { %p927_p6 = scmp.ne.s32.totalorder %s1353_s15, 0 }
  0x72   : > { %1334 = vsyncadd (%p1719_p5), [#allocation7], 4294967264  ;;  %v1368_v0 = vmov (!%p927_p6), 0.0  }
  0x73   : > { %278 = sbr.rel (%p927_p6) target bundleno = 122 (0x7a), region = 48  ;;  %279 = vst [vmem:[#allocation2] sm:$0xff] (!%p927_p6), %v1368_v0  ;;  %280 = vst [vmem:[#allocation2 + $0x8] sm:$0xff] (!%p927_p6), %v1368_v0 }
  0x7a PF: > { %v1085_v1 = vld [vmem:[%s1581_s12 + $0x4] ss:$8 sps:$4 sm:$0xff]   ;;  %v1089_v3 = vld [vmem:[%s1581_s12] ss:$8 sps:$4 sm:$0xff]   ;;  %v1091_v5 = vld [vmem:[%s1581_s12 + $0x14] ss:$8 sps:$4 sm:$0xff]  }
  0x7b   : > { %v1087_v2 = vld [vmem:[%s1581_s12 + $0x104] ss:$8 sps:$4 sm:$0xff]   ;;  %683 = vmatprep.subr.bf16.mxu0 %v1085_v1  ;;  %v1090_v4 = vld [vmem:[%s1581_s12 + $0x100] ss:$8 sps:$4 sm:$0xff]   ;;  %v1093_v6 = vld [vmem:[%s1581_s12 + $0x114] ss:$8 sps:$4 sm:$0xff]  }
  0x7c   : > { %724 = vmatprep.subr.bf16.mxu1 %v1087_v2  ;;  %684 = vmatpush1.bf16.msra.mxu0 %v1089_v3  ;;  %v1095_v7 = vld [vmem:[%s1581_s12 + $0x10] ss:$8 sps:$4 sm:$0xff]   ;;  %v1097_v9 = vld [vmem:[%s1581_s12 + $0x24] ss:$8 sps:$4 sm:$0xff]   ;;  %v1101_v11 = vld [vmem:[%s1581_s12 + $0x20] ss:$8 sps:$4 sm:$0xff]  }
  0x7d   : > { %725 = vmatpush1.bf16.msra.mxu1 %v1090_v4  ;;  %685 = vmatprep.subr.bf16.mxu0 %v1091_v5  ;;  %v1096_v8 = vld [vmem:[%s1581_s12 + $0x110] ss:$8 sps:$4 sm:$0xff]   ;;  %v1099_v10 = vld [vmem:[%s1581_s12 + $0x124] ss:$8 sps:$4 sm:$0xff]   ;;  %v1102_v12 = vld [vmem:[%s1581_s12 + $0x120] ss:$8 sps:$4 sm:$0xff]  }
  0x7e   : > { %726 = vmatprep.subr.bf16.mxu1 %v1093_v6  ;;  %v1103_v13 = vld [vmem:[%s1581_s12 + $0x34] ss:$8 sps:$4 sm:$0xff]   ;;  %v1107_v15 = vld [vmem:[%s1581_s12 + $0x30] ss:$8 sps:$4 sm:$0xff]   ;;  %v1109_v17 = vld [vmem:[%s1581_s12 + $0x44] ss:$8 sps:$4 sm:$0xff]  }
  0x7f   : > { %v1105_v14 = vld [vmem:[%s1581_s12 + $0x134] ss:$8 sps:$4 sm:$0xff]   ;;  %v1108_v16 = vld [vmem:[%s1581_s12 + $0x130] ss:$8 sps:$4 sm:$0xff]   ;;  %v1111_v18 = vld [vmem:[%s1581_s12 + $0x144] ss:$8 sps:$4 sm:$0xff]  }
  0x80   : > { %686 = vmatpush1.bf16.msra.mxu0 %v1095_v7  ;;  %v1113_v19 = vld [vmem:[%s1581_s12 + $0x40] ss:$8 sps:$4 sm:$0xff]   ;;  %v1115_v21 = vld [vmem:[%s1581_s12 + $0x54] ss:$8 sps:$4 sm:$0xff]   ;;  %v1119_v23 = vld [vmem:[%s1581_s12 + $0x50] ss:$8 sps:$4 sm:$0xff]  }
  0x81   : > { %727 = vmatpush1.bf16.msra.mxu1 %v1096_v8  ;;  %687 = vmatprep.subr.bf16.mxu0 %v1097_v9  ;;  %v1114_v20 = vld [vmem:[%s1581_s12 + $0x140] ss:$8 sps:$4 sm:$0xff]   ;;  %v1117_v22 = vld [vmem:[%s1581_s12 + $0x154] ss:$8 sps:$4 sm:$0xff]   ;;  %v1120_v24 = vld [vmem:[%s1581_s12 + $0x150] ss:$8 sps:$4 sm:$0xff]  }
  0x82   : > { %728 = vmatprep.subr.bf16.mxu1 %v1099_v10  ;;  %v1121_v25 = vld [vmem:[%s1581_s12 + $0x64] ss:$8 sps:$4 sm:$0xff]   ;;  %v1125_v27 = vld [vmem:[%s1581_s12 + $0x60] ss:$8 sps:$4 sm:$0xff]   ;;  %v1127_v29 = vld [vmem:[%s1581_s12 + $0x74] ss:$8 sps:$4 sm:$0xff]  }
  0x83   : > { %v1123_v26 = vld [vmem:[%s1581_s12 + $0x164] ss:$8 sps:$4 sm:$0xff]   ;;  %v1126_v28 = vld [vmem:[%s1581_s12 + $0x160] ss:$8 sps:$4 sm:$0xff]   ;;  %v1129_v30 = vld [vmem:[%s1581_s12 + $0x174] ss:$8 sps:$4 sm:$0xff]  }
  0x84   : > { %688 = vmatpush1.bf16.msra.mxu0 %v1101_v11  ;;  %v1131_v31 = vld [vmem:[%s1581_s12 + $0x70] ss:$8 sps:$4 sm:$0xff]   ;;  %v1133_v33 = vld [vmem:[%s1581_s12 + $0x84] ss:$8 sps:$4 sm:$0xff]   ;;  %v1137_v35 = vld [vmem:[%s1581_s12 + $0x80] ss:$8 sps:$4 sm:$0xff]  }
  0x85   : > { %729 = vmatpush1.bf16.msra.mxu1 %v1102_v12  ;;  %689 = vmatprep.subr.bf16.mxu0 %v1103_v13  ;;  %v1132_v32 = vld [vmem:[%s1581_s12 + $0x170] ss:$8 sps:$4 sm:$0xff]   ;;  %v1135_v34 = vld [vmem:[%s1581_s12 + $0x184] ss:$8 sps:$4 sm:$0xff]   ;;  %v1138_v36 = vld [vmem:[%s1581_s12 + $0x180] ss:$8 sps:$4 sm:$0xff]  }
  0x86   : > { %730 = vmatprep.subr.bf16.mxu1 %v1105_v14  ;;  %v1139_v37 = vld [vmem:[%s1581_s12 + $0x94] ss:$8 sps:$4 sm:$0xff]   ;;  %v1143_v39 = vld [vmem:[%s1581_s12 + $0x90] ss:$8 sps:$4 sm:$0xff]   ;;  %v1145_v41 = vld [vmem:[%s1581_s12 + $0xa4] ss:$8 sps:$4 sm:$0xff]  }
  0x87   : > { %v1141_v38 = vld [vmem:[%s1581_s12 + $0x194] ss:$8 sps:$4 sm:$0xff]   ;;  %v1144_v40 = vld [vmem:[%s1581_s12 + $0x190] ss:$8 sps:$4 sm:$0xff]   ;;  %v1147_v42 = vld [vmem:[%s1581_s12 + $0x1a4] ss:$8 sps:$4 sm:$0xff]  }
  0x88   : > { %690 = vmatpush1.bf16.msra.mxu0 %v1107_v15  ;;  %v1149_v43 = vld [vmem:[%s1581_s12 + $0xa0] ss:$8 sps:$4 sm:$0xff]   ;;  %v1151_v45 = vld [vmem:[%s1581_s12 + $0xb4] ss:$8 sps:$4 sm:$0xff]   ;;  %v1155_v50 = vld [vmem:[%s1581_s12 + $0xb0] ss:$8 sps:$4 sm:$0xff]  }
  0x89   : > { %731 = vmatpush1.bf16.msra.mxu1 %v1108_v16  ;;  %691 = vmatprep.subr.bf16.mxu0 %v1109_v17  ;;  %v1150_v44 = vld [vmem:[%s1581_s12 + $0x1a0] ss:$8 sps:$4 sm:$0xff]   ;;  %v1153_v46 = vld [vmem:[%s1581_s12 + $0x1b4] ss:$8 sps:$4 sm:$0xff]   ;;  %v1156_v51 = vld [vmem:[%s1581_s12 + $0x1b0] ss:$8 sps:$4 sm:$0xff]  }
  0x8a   : > { %732 = vmatprep.subr.bf16.mxu1 %v1111_v18  ;;  %v283_v47 = vld [vmem:[%s1574_s30] sm:$0xff]  ;;  %v284_v49 = vld [vmem:[%s1574_s30 + $0x8] sm:$0xff]  ;;  %p996_p9 = scmp.ne.s32.totalorder %s1353_s15, 8 }
  0x8b   : > { %v929_v48 = vcombine.high %v283_v47, %v283_v47  ;;  %v931_v52 = vcombine.high %v284_v49, %v284_v49  ;;  %v1157_v53 = vld [vmem:[%s1581_s12 + $0xc4] ss:$8 sps:$4 sm:$0xff]   ;;  %v1161_v55 = vld [vmem:[%s1581_s12 + $0xc0] ss:$8 sps:$4 sm:$0xff]   ;;  %v1163_v57 = vld [vmem:[%s1581_s12 + $0xd4] ss:$8 sps:$4 sm:$0xff]   ;;  %v928_v5 = vcombine.low %v283_v47, %v283_v47  ;;  %v930_v6 = vcombine.low %v284_v49, %v284_v49 }
  0x8c   : > { %692 = vmatpush1.bf16.msra.mxu0 %v1113_v19  ;;  %v1159_v54 = vld [vmem:[%s1581_s12 + $0x1c4] ss:$8 sps:$4 sm:$0xff]   ;;  %v1162_v56 = vld [vmem:[%s1581_s12 + $0x1c0] ss:$8 sps:$4 sm:$0xff]   ;;  %v1165_v58 = vld [vmem:[%s1581_s12 + $0x1d4] ss:$8 sps:$4 sm:$0xff]  }
  0x8d   : > { %733 = vmatpush1.bf16.msra.mxu1 %v1114_v20  ;;  %693 = vmatprep.subr.bf16.mxu0 %v1115_v21  ;;  %v1167_v59 = vld [vmem:[%s1581_s12 + $0xd0] ss:$8 sps:$4 sm:$0xff]   ;;  %v1169_v61 = vld [vmem:[%s1581_s12 + $0xe4] ss:$8 sps:$4 sm:$0xff]   ;;  %v1173_v63 = vld [vmem:[%s1581_s12 + $0xe0] ss:$8 sps:$4 sm:$0xff]   ;;  %v777_v21 = vlaneseq (!%p996_p9) }
  0x8e   : > { %734 = vmatprep.subr.bf16.mxu1 %v1117_v22  ;;  %715 = vmatprep.mubr.bf16.mxu0 %v929_v48  ;;  %v1168_v60 = vld [vmem:[%s1581_s12 + $0x1d0] ss:$8 sps:$4 sm:$0xff]   ;;  %v1171_v62 = vld [vmem:[%s1581_s12 + $0x1e4] ss:$8 sps:$4 sm:$0xff]   ;;  %v1174_v0 = vld [vmem:[%s1581_s12 + $0x1e0] ss:$8 sps:$4 sm:$0xff]  }
  0x8f   : > { %756 = vmatprep.mubr.bf16.mxu1 %v931_v52  ;;  %v1175_v1 = vld [vmem:[%s1581_s12 + $0xf4] ss:$8 sps:$4 sm:$0xff]   ;;  %v1179_v3 = vld [vmem:[%s1581_s12 + $0xf0] ss:$8 sps:$4 sm:$0xff]   ;;  %v778_v22 = vshrl.u32 (!%p996_p9), %v777_v21, 7 }
  0x90   : > { %694 = vmatpush1.bf16.msra.mxu0 %v1119_v23  ;;  %v1177_v2 = vld [vmem:[%s1581_s12 + $0x1f4] ss:$8 sps:$4 sm:$0xff]   ;;  %v1180_v4 = vld [vmem:[%s1581_s12 + $0x1f0] ss:$8 sps:$4 sm:$0xff]   ;;  %v775_v23 = vld [vmem:[#allocation8] sm:$0x3] (!%p996_p9) }
  0x91   : > { %735 = vmatpush1.bf16.msra.mxu1 %v1120_v24  ;;  %695 = vmatprep.subr.bf16.mxu0 %v1121_v25  ;;  %v281_v8 = vld [vmem:[#allocation2] sm:$0xff]  ;;  %v282_v12 = vld [vmem:[#allocation2 + $0x8] sm:$0xff]  ;;  %v779_v24 = vsub.s32 (!%p996_p9), 0, %v778_v22  ;;  %v783_v25 = vsub.s32 (!%p996_p9), 1, %v778_v22 }
  0x92   : > { %736 = vmatprep.subr.bf16.mxu1 %v1123_v26 }
  0x94   : > { %696 = vmatpush1.bf16.msra.mxu0 %v1125_v27 }
  0x95   : > { %737 = vmatpush1.bf16.msra.mxu1 %v1126_v28  ;;  %697 = vmatprep.subr.bf16.mxu0 %v1127_v29  ;;  %v780_v28 = vrot.slane (!%p996_p9), %v775_v23, %v779_v24  ;;  %v784_v29 = vrot.slane (!%p996_p9), %v775_v23, %v783_v25 }
  0x96   : > { %738 = vmatprep.subr.bf16.mxu1 %v1129_v30 }
  0x98   : > { %698 = vmatpush1.bf16.msra.mxu0 %v1131_v31 }
  0x99   : > { %739 = vmatpush1.bf16.msra.mxu1 %v1132_v32  ;;  %699 = vmatprep.subr.bf16.mxu0 %v1133_v33 }
  0x9a   : > { %740 = vmatprep.subr.bf16.mxu1 %v1135_v34 }
  0x9c   : > { %700 = vmatpush1.bf16.msra.mxu0 %v1137_v35 }
  0x9d   : > { %741 = vmatpush1.bf16.msra.mxu1 %v1138_v36  ;;  %701 = vmatprep.subr.bf16.mxu0 %v1139_v37 }
  0x9e   : > { %742 = vmatprep.subr.bf16.mxu1 %v1141_v38 }
  0xa0   : > { %702 = vmatpush1.bf16.msra.mxu0 %v1143_v39 }
  0xa1   : > { %743 = vmatpush1.bf16.msra.mxu1 %v1144_v40  ;;  %703 = vmatprep.subr.bf16.mxu0 %v1145_v41 }
  0xa2   : > { %744 = vmatprep.subr.bf16.mxu1 %v1147_v42 }
  0xa4   : > { %704 = vmatpush1.bf16.msra.mxu0 %v1149_v43 }
  0xa5   : > { %745 = vmatpush1.bf16.msra.mxu1 %v1150_v44  ;;  %705 = vmatprep.subr.bf16.mxu0 %v1151_v45 }
  0xa6   : > { %746 = vmatprep.subr.bf16.mxu1 %v1153_v46 }
  0xa8   : > { %706 = vmatpush1.bf16.msra.mxu0 %v1155_v50 }
  0xa9   : > { %747 = vmatpush1.bf16.msra.mxu1 %v1156_v51  ;;  %707 = vmatprep.subr.bf16.mxu0 %v1157_v53 }
  0xaa   : > { %748 = vmatprep.subr.bf16.mxu1 %v1159_v54 }
  0xac   : > { %708 = vmatpush1.bf16.msra.mxu0 %v1161_v55 }
  0xad   : > { %749 = vmatpush1.bf16.msra.mxu1 %v1162_v56  ;;  %709 = vmatprep.subr.bf16.mxu0 %v1163_v57 }
  0xae   : > { %750 = vmatprep.subr.bf16.mxu1 %v1165_v58 }
  0xb0   : > { %710 = vmatpush1.bf16.msra.mxu0 %v1167_v59 }
  0xb1   : > { %751 = vmatpush1.bf16.msra.mxu1 %v1168_v60  ;;  %711 = vmatprep.subr.bf16.mxu0 %v1169_v61 }
  0xb2   : > { %752 = vmatprep.subr.bf16.mxu1 %v1171_v62 }
  0xb4   : > { %712 = vmatpush1.bf16.msra.mxu0 %v1173_v63 }
  0xb5   : > { %753 = vmatpush1.bf16.msra.mxu1 %v1174_v0  ;;  %713 = vmatprep.subr.bf16.mxu0 %v1175_v1 }
  0xb6   : > { %754 = vmatprep.subr.bf16.mxu1 %v1177_v2 }
  0xb8   : > { %714 = vmatpush1.bf16.msra.mxu0 %v1179_v3 }
  0xb9   : > { %755 = vmatpush1.bf16.msra.mxu1 %v1180_v4 }
  0xbb   : > { %716 = vmatmul.mubr.bf16.vlgmr.msra.gmra.mrb[0].mxu0 %v928_v5 }
  0xbc   : > { %757 = vmatmul.mubr.bf16.vlgmr.msra.gmra.mrb[0].mxu1 %v930_v6 }
 0x18e   : > { %v717_v7 = vpop.f32.mrb[0].mxu0 }
 0x18f   : > { %v758_v9 = vpop.f32.mrb[0].mxu1  ;;  %v719_v11 = vpop.f32.mrb[1].mxu0  ;;  %772 = sbr.rel (%p996_p9) target bundleno = 418 (0x1a2), region = 52 }
 0x190   : > { %v759_v10 = vadd.f32 %v758_v9, %v717_v7  ;;  %v760_v13 = vpop.f32.mrb[1].mxu1  ;;  %v721_v15 = vpop.f32.mrb[2].mxu0 }
 0x191   : > { %v761_v14 = vadd.f32 %v760_v13, %v719_v11  ;;  %v762_v16 = vpop.f32.mrb[2].mxu1  ;;  %v722_v18 = vpop.f32.mrb[3].mxu0 }
 0x192   : > { %v765_v17 = vadd.f32 %v759_v10, %v281_v8  ;;  %v763_v19 = vpop.f32.mrb[3].mxu1 }
 0x193   : > { %v766_v20 = vadd.f32 %v761_v14, %v282_v12 }
 0x194   : > { %767 = vst [vmem:[#allocation2] sm:$0xff] %v765_v17 }
 0x195   : > { %768 = vst [vmem:[#allocation2 + $0x8] sm:$0xff] %v766_v20 }
 0x19b   : > { %v773_v26 = vld [vmem:[#allocation2] sm:$0xff] }
 0x19c   : > { %v774_v27 = vld [vmem:[#allocation2 + $0x8] sm:$0xff]  ;;  %v787_v30 = vadd.f32 %v780_v28, %v773_v26 }
 0x19d   : > { %v788_v31 = vadd.f32 %v784_v29, %v774_v27 }
 0x19e   : > { %v789_v32 = vmax.f32 %v787_v30, 0.0 }
 0x19f   : > { %v790_v33 = vmax.f32 %v788_v31, 0.0 }
 0x1a0   : > { %791 = vst [vmem:[#allocation9] sm:$0xff] %v789_v32 }
 0x1a1   : > { %792 = vst [vmem:[#allocation9 + $0x8] sm:$0xff] %v790_v33 }
 0x1a2 PF: > { %p1030_p11 = scmp.eq.s32.totalorder %s1419_s18, 8  ;;  %s1369_s15 = smov [#allocation9]  }
 0x1a3   : > { %s805_s20 = sshll.u32 %s1369_s15, 4  ;;  %s806_s20 = int_to_ptr.vmem [resolvable:$true] %s805_s20 }
 0x1a4   : > { %s1273_s21 = scalar_lea.vmem %s806_s20, 256  ;;  %p1280_p1 = scmp.lt.s32.totalorder %s806_s20, %s806_s20 }
 0x1a5   : > { %p1274_p13 = scmp.ne.s32.totalorder %s806_s20, %s1273_s21  ;;  %p1281_p0 = scmp.lt.s32.totalorder %s1273_s21, %s1273_s21 }
 0x1a7   : > { %p1275_p3 = pnand %p1274_p13, %p1030_p11  ;;  %p1282_p8 = por %p1281_p0, %p1280_p1 }
 0x1a9   : > { %p1276_p4 = pneg %p1275_p3 }
 0x1ab   : > { %p1283_p2 = pnand %p1282_p8, %p1276_p4 }
 0x1ad   : > { %1286 = shalt.err (!%p1283_p2)
}
 0x1ae   : > { %s1287_s7 = scalar_lea.hbm %s1703_s3, 256 }
 0x1af   : > { %p1288_p12 = scmp.ne.s32.totalorder %s1703_s3, %s1287_s7  ;;  %p1293_p5 = scmp.lt.u32.totalorder %s1287_s7, %s1703_s3 }
 0x1b1   : > { %p1289_p7 = pnand %p1288_p12, %p1030_p11 }
 0x1b3   : > { %p1290_p10 = pneg %p1289_p7 }
 0x1b5   : > { %p1295_p6 = pnand %p1293_p5, %p1290_p10 }
 0x1b7   : > { %1298 = shalt.err (!%p1295_p6)
}
 0x1b8   : > { %1013 = dma.vmem_to_hbm [thread:$0]  (%p1030_p11), %s806_s20, 256, %s1703_s3, [#allocation5]  }
 0x1b9   : > { %1336 = dma.done.wait (%p1030_p11), [#allocation5], 256  }
 0x1ba   : > { %1338 = vsyncadd (%p1030_p11), [#allocation5], 4294967040 }
 0x1bb PF: > { %s20_s17 = sadd.s32 1, %s1361_s17   ;;  %s1720_s12 = smov %s1345_s13 }
 0x1bc   : > { %p17_p9 = scmp.ge.s32.totalorder %s20_s17, 11   ;;  %s1721_s13 = smov %s1349_s14 }
 0x1bd   : > { %s1722_s14 = smov %s1495_s23  ;;  %s1723_s15 = smov %s1357_s16 }
 0x1be   : > { %s1724_s16 = smov %s1726_s25  ;;  %19 = sbr.rel (!%p17_p9) target bundleno = 7 (0x7), region = 96 }
 0x1c5   :  { %818 = vsyncpa [#allocation4], 1 }
 0x1c6   :  { %820 = vsyncpa [#allocation4 + $0x1], 1 }
 0x1c7   :  { %821 = vsyncpa [#allocation7], 1 }
 0x1c8   :  { %823 = vsyncpa [#allocation7 + $0x1], 1 }
 0x1c9   :  { %824 = vsyncpa [#allocation5], 1 }
 0x1ca   :  { %826 = vsyncpa [#allocation5 + $0x1], 1 }

// kernel: csrnet_forward.46
= control target key start
LH: loop header
LB: loop body
LE: loop exit
PB: predicated region body
PF: predicated region fallthrough
CT: control target
= control target key end

     0   :  { %8 = vsyncpa [#allocation4], 0  ;;  %s1382_s0 = inlined_call_operand.hbm [shape: bf16[8,1152], index: 0, kind: input, shape index: {}]   ;;  %s1383_s1 = inlined_call_operand.hbm [shape: bf16[1152,64], index: 1, kind: input, shape index: {}]   ;;  %s1384_s2 = inlined_call_operand.hbm [shape: f32[1,64], index: 2, kind: input, shape index: {}]   ;;  %s1385_s3 = inlined_call_operand.hbm [shape: f32[8,64], index: 3, kind: output, shape index: {}]  }
   0x1   :  { %10 = vsyncpa [#allocation4 + $0x1], 0 }
   0x2   :  { %11 = vsyncpa [#allocation7], 0 }
   0x3   :  { %13 = vsyncpa [#allocation7 + $0x1], 0 }
   0x4   :  { %14 = vsyncpa [#allocation5], 0  ;;  %s1110_s12 = smov 0   ;;  %s1112_s13 = smov 0  }
   0x5   :  { %s1114_s14 = smov 0   ;;  %s1116_s15 = smov 0  }
   0x6   :  { %s1118_s16 = smov 0   ;;  %s1120_s17 = smov 0  }
   0x7 LB: > { %s1139_s18 = sadd.s32 4294967295, %s1079_s17   ;;  %s48_s19 = sadd.s32 1, %s1067_s14  ;;  %s1079_s17 = sphi %s1120_s17, %s20_s17   ;;  %s1075_s16 = sphi %s1118_s16, %s1406_s16   ;;  %s1071_s15 = sphi %s1116_s15, %s1405_s15   ;;  %s1067_s14 = sphi %s1114_s14, %s1404_s14   ;;  %s1063_s13 = sphi %s1112_s13, %s1403_s13   ;;  %s1059_s12 = sphi %s1110_s12, %s1402_s12  }
   0x8   : > { %p55_p0 = scmp.ne.s32.totalorder %s1067_s14, %s1063_s13  ;;  %p61_p1 = scmp.ne.s32.totalorder %s1063_s13, %s1059_s12 }
   0x9   : > { %p1386_p2 = scmp.eq.s32.totalorder %s1139_s18, 0  ;;  %p695_p3 = scmp.ge.s32.totalorder %s1079_s17, 1 }
   0xa   : > { %p154_p4 = scmp.lt.s32.totalorder %s1079_s17, 4  ;;  %s1081_s22 = smov [#allocation8]  }
   0xb   : > { %p1150_p5 = por %p1386_p2, %p61_p1  ;;  %s169_s23 = sshll.u32 %s1081_s22, 4  ;;  %s170_s23 = int_to_ptr.vmem [resolvable:$true] %s169_s23 }
   0xc   : > { %p1154_p6 = pnand %p695_p3, %p154_p4  ;;  %p56_p8 = scmp.eq.s32.totalorder %s1079_s17, 0 }
   0xd   : > { %s1389_s20 = scalar_select %p1150_p5, 1, 0 }
   0xe   : > { %s1390_s21 = scalar_select %p1154_p6, 1, 0 }
   0xf   : > { %p805_p7 = pneg %p1154_p6  ;;  %s32_s25 = sadd.s32 1, %s1075_s16 }
  0x10   : > { %p1168_p10 = scmp.ge.s32.totalorder %s32_s25, 3  ;;  %p1175_p11 = por %p56_p8, %p55_p0 }
  0x11   : > { %p1163_p9 = pnand %p805_p7, %p1386_p2  ;;  %s903_s30 = scalar_lea.hbm %s1384_s2, 16 }
  0x12   : > { %s1392_s26 = scalar_select %p1168_p10, 1, 0 }
  0x13   : > { %s1393_s27 = scalar_select %p1175_p11, 1, 0 }
  0x14   : > { %p904_p13 = scmp.ne.s32.totalorder %s1384_s2, %s903_s30  ;;  %p905_p1 = pneg %p1163_p9 }
  0x15   : > { %p910_p0 = scmp.lt.u32.totalorder %s903_s30, %s1384_s2 }
  0x16   : > { %p906_p3 = pnand %p905_p1, %p904_p13 }
  0x18   : > { %p907_p4 = pneg %p906_p3 }
  0x1a   : > { %p912_p7 = pnand %p910_p0, %p907_p4 }
  0x1c   : > { %915 = shalt.err (!%p912_p7)
}
  0x1d   : > { %s916_s8 = scalar_lea.vmem %s170_s23, 16  ;;  %s923_s9 = scalar_lea.vmem %s170_s23, 32 }
  0x1e   : > { %p917_p8 = scmp.ne.s32.totalorder %s170_s23, %s916_s8  ;;  %p924_p5 = scmp.lt.s32.totalorder %s170_s23, %s170_s23 }
  0x1f   : > { %p925_p6 = scmp.lt.s32.totalorder %s923_s9, %s916_s8 }
  0x20   : > { %p919_p2 = pnand %p917_p8, %p905_p1 }
  0x21   : > { %p926_p11 = por %p925_p6, %p924_p5 }
  0x22   : > { %p920_p12 = pneg %p919_p2 }
  0x24   : > { %p927_p10 = pnand %p926_p11, %p920_p12 }
  0x26   : > { %930 = shalt.err (!%p927_p10)
}
  0x27   : > { %808 = dma.hbm_to_vmem [thread:$0]  (!%p1163_p9), %s1384_s2, 16, %s170_s23, [#allocation7]  }
  0x28   : > { %p1394_p2 = scmp.ne.s32.totalorder %s1392_s26, 0  ;;  %s1201_s12 = sand.u32 1, %s1067_s14  }
  0x29   : > { %s736_s22 = smul.u32 192, %s1075_s16  ;;  %p1395_p6 = scmp.ne.s32.totalorder %s1393_s27, 0 }
  0x2a   : > { %s1408_s25 = smov (%p1394_p2, %s32_s25), 0  ;;  %s789_s28 = smul.u32 12, %s1201_s12 }
  0x2b   : > { %s44_s24 = ssub.s32 %s1075_s16, %s1408_s25  ;;  %s1210_s4 = scalar_lea.hbm %s1382_s0, %s736_s22 }
  0x2c   : > { %p46_p5 = scmp.eq.s32.totalorder %s44_s24, 0  ;;  %p1396_p9 = scmp.lt.s32.totalorder %s1079_s17, 3 }
  0x2d   : > { %s184_s5 = scalar_lea.vmem [#allocation3], %s789_s28  ;;  %s790_s7 = smul.u32 192, %s1201_s12 }
  0x2e   : > { %p1216_p10 = pnand %p1396_p9, %p1395_p6  ;;  %s194_s6 = sshll.u32 %s184_s5, 4  ;;  %s1226_s6 = int_to_ptr.vmem [resolvable:$true] %s194_s6 }
  0x2f   : > { %s1223_s26 = scalar_select %p46_p5, %s1067_s14, %s48_s19  }
  0x30   : > { %s737_s27 = smul.u32 3072, %s1075_s16  ;;  %s181_s8 = scalar_lea.sflag [#allocation4], %s1201_s12 }
  0x31   : > { %s931_s9 = scalar_lea.hbm %s1210_s4, 192  ;;  %p933_p12 = pneg %p1216_p10 }
  0x32   : > { %p932_p11 = scmp.ne.s32.totalorder %s1210_s4, %s931_s9  ;;  %s936_s19 = scalar_lea.hbm %s1382_s0, 576 }
  0x33   : > { %p937_p3 = scmp.lt.u32.totalorder %s1210_s4, %s1382_s0  ;;  %p938_p4 = scmp.lt.u32.totalorder %s936_s19, %s931_s9 }
  0x34   : > { %p934_p13 = pnand %p933_p12, %p932_p11  ;;  %p940_p7 = scmp.lt.u32.totalorder %s931_s9, %s1210_s4 }
  0x35   : > { %p939_p0 = por %p938_p4, %p937_p3 }
  0x36   : > { %p935_p1 = pneg %p934_p13 }
  0x37   : > { %p941_p8 = por %p940_p7, %p939_p0 }
  0x39   : > { %p942_p2 = pnand %p941_p8, %p935_p1 }
  0x3b   : > { %945 = shalt.err (!%p942_p2)
}
  0x3c   : > { %s946_s28 = scalar_lea.vmem %s1226_s6, 192  ;;  %s1082_s29 = smov [#allocation3]  }
  0x3d   : > { %p947_p5 = scmp.ne.s32.totalorder %s1226_s6, %s946_s28  ;;  %s951_s30 = sshll.u32 %s1082_s29, 4  ;;  %s952_s30 = int_to_ptr.vmem [resolvable:$false] %s951_s30 }
  0x3e   : > { %s953_s5 = scalar_lea.vmem %s952_s30, 384  ;;  %p954_p11 = scmp.lt.s32.totalorder %s1226_s6, %s952_s30 }
  0x3f   : > { %p949_p6 = pnand %p947_p5, %p933_p12  ;;  %p955_p13 = scmp.lt.s32.totalorder %s953_s5, %s946_s28 }
  0x41   : > { %p950_p9 = pneg %p949_p6  ;;  %p956_p3 = por %p955_p13, %p954_p11 }
  0x43   : > { %p957_p4 = pnand %p956_p3, %p950_p9 }
  0x45   : > { %960 = shalt.err (!%p957_p4)
}
  0x46   : > { %812 = dma.hbm_to_vmem [thread:$0]  (!%p1216_p10), %s1210_s4, 192, %s1226_s6, %s181_s8  }
  0x47   : > { %s201_s9 = sand.u32 1, %s1079_s17   ;;  %s205_s10 = scalar_lea.vmem [#allocation6], %s790_s7 }
  0x48   : > { %s213_s11 = sshll.u32 %s205_s10, 4  ;;  %s1265_s24 = scalar_lea.hbm %s1383_s1, %s737_s27  ;;  %s1258_s11 = int_to_ptr.vmem [resolvable:$true] %s213_s11 }
  0x49   : > { %s1267_s28 = scalar_lea.sflag [#allocation7], %s201_s9  ;;  %s961_s29 = scalar_lea.hbm %s1265_s24, 3072 }
  0x4a   : > { %p962_p1 = scmp.ne.s32.totalorder %s1265_s24, %s961_s29  ;;  %s966_s6 = scalar_lea.hbm %s1383_s1, 9216 }
  0x4b   : > { %p967_p8 = scmp.lt.u32.totalorder %s1265_s24, %s1383_s1  ;;  %p968_p2 = scmp.lt.u32.totalorder %s966_s6, %s961_s29 }
  0x4c   : > { %p964_p0 = pnand %p962_p1, %p933_p12  ;;  %p970_p6 = scmp.lt.u32.totalorder %s961_s29, %s1265_s24 }
  0x4d   : > { %p969_p5 = por %p968_p2, %p967_p8 }
  0x4e   : > { %p965_p7 = pneg %p964_p0 }
  0x4f   : > { %p971_p9 = por %p970_p6, %p969_p5 }
  0x51   : > { %p972_p11 = pnand %p971_p9, %p965_p7 }
  0x53   : > { %975 = shalt.err (!%p972_p11)
}
  0x54   : > { %s976_s27 = scalar_lea.vmem %s1258_s11, 3072  ;;  %s1083_s30 = smov [#allocation6]  }
  0x55   : > { %p977_p13 = scmp.ne.s32.totalorder %s1258_s11, %s976_s27  ;;  %s981_s5 = sshll.u32 %s1083_s30, 4  ;;  %s982_s5 = int_to_ptr.vmem [resolvable:$false] %s981_s5 }
  0x56   : > { %s983_s9 = scalar_lea.vmem %s982_s5, 6144  ;;  %p984_p1 = scmp.lt.s32.totalorder %s1258_s11, %s982_s5 }
  0x57   : > { %p979_p3 = pnand %p977_p13, %p933_p12  ;;  %p985_p0 = scmp.lt.s32.totalorder %s983_s9, %s976_s27 }
  0x59   : > { %p980_p4 = pneg %p979_p3  ;;  %p986_p8 = por %p985_p0, %p984_p1 }
  0x5b   : > { %p987_p2 = pnand %p986_p8, %p980_p4 }
  0x5d   : > { %990 = shalt.err (!%p987_p2)
}
  0x5e   : > { %s1084_s10 = smov 64   ;;  %s1085_s19 = smov 4  }
  0x5f   : > { %815 = dma.hbm_to_vmem [thread:$0]  (!%p1216_p10), %s1265_s24, 3072, %s1258_s11, %s1267_s28, %s1084_s10, %s1084_s10, %s1085_s19  }
  0x60   : > { %p1398_p12 = scmp.ne.s32.totalorder %s1390_s21, 0 }
  0x61   : > { %s227_s22 = sand.u32 (!%p1398_p12), 1, %s1063_s13   ;;  %p1399_p7 = scmp.ne.s32.totalorder (!%p1398_p12), %s1389_s20, 0 }
  0x62   : > { %225 = sbr.rel (%p1398_p12) target bundleno = 412 (0x19c), region = 32  ;;  %s228_s12 = scalar_lea.sflag (!%p1398_p12), [#allocation4], %s227_s22 }
  0x63   : > { %s791_s29 = smul.u32 (!%p1398_p12), 12, %s227_s22 }
  0x65   : > { %s1296_s4 = scalar_lea.vmem (!%p1398_p12), [#allocation3], %s791_s29 }
  0x69   : > { %1042 = dma.done.wait (%p1399_p7), %s228_s12, 192  }
  0x6a   : > { %1044 = vsyncadd (%p1399_p7), %s228_s12, 4294967104  ;;  %s236_s6 = sand.u32 1, %s1139_s18   ;;  %s792_s23 = smul.u32 192, %s227_s22 }
  0x6b   : > { %s237_s11 = scalar_lea.sflag [#allocation7], %s236_s6 }
  0x6c   : > { %s1303_s24 = scalar_lea.vmem [#allocation6], %s792_s23 }
  0x6d   : > { %1046 = dma.done.wait (%p1399_p7), %s237_s11, 3072  }
  0x6e   : > { %1048 = vsyncadd (%p1399_p7), %s237_s11, 4294964224  ;;  %p1400_p10 = scmp.eq.s32.totalorder %s1139_s18, 0 }
  0x70   : > { %1050 = dma.done.wait (%p1400_p10), [#allocation7], 16   ;;  %p1401_p5 = pmov %p1400_p10 }
  0x71   : > { %p702_p6 = scmp.ne.s32.totalorder %s1071_s15, 0 }
  0x72   : > { %1052 = vsyncadd (%p1401_p5), [#allocation7], 4294967280  ;;  %vm274_vm0 = vcmask (!%p702_p6), 523264   ;;  %v1086_v0 = vmov (!%p702_p6), 0.0  }
  0x73   : > { %273 = sbr.rel (%p702_p6) target bundleno = 122 (0x7a), region = 48  ;;  %275 = vst.msk [vmem:[#allocation2] sm:$0xff] (!%p702_p6), %vm274_vm0, %v1086_v0 }
  0x7a PF: > { %v876_v1 = vld [vmem:[%s1303_s24 + $0x40] sm:$0xff]   ;;  %v1087_v2 = vmov 0.0   ;;  %vm1088_vm1 = vmmov 0   ;;  %v879_v5 = vld [vmem:[%s1303_s24 + $0x48] sm:$0xff]   ;;  %v882_v8 = vld [vmem:[%s1303_s24 + $0x50] sm:$0xff]   ;;  %vm563_vm2 = vcmask 523264  }
  0x7b   : > { %769 = vmatprep.subr.bf16.mxu1 %v1087_v2  ;;  %v877_v3 = vld [vmem:[%s1303_s24] sm:$0xff]   ;;  %738 = vmatprep.subr.bf16.mxu0 %v876_v1  ;;  %v880_v6 = vld [vmem:[%s1303_s24 + $0x8] sm:$0xff]   ;;  %v883_v9 = vld [vmem:[%s1303_s24 + $0x10] sm:$0xff]   ;;  %p730_p9 = scmp.ne.s32.totalorder %s1071_s15, 2 }
  0x7c   : > { %v878_v4 = vld [vmem:[%s1303_s24 + $0x80] sm:$0xff]   ;;  %785 = vmatprep.mubr.msk.bf16.mxu1 %vm1088_vm1, %v1087_v2  ;;  %739 = vmatpush3.bf16.msra.mxu0 %v877_v3  ;;  %v881_v7 = vld [vmem:[%s1303_s24 + $0x88] sm:$0xff]   ;;  %v884_v10 = vld [vmem:[%s1303_s24 + $0x90] sm:$0xff]  }
  0x7d   : > { %770 = vmatpush3.bf16.msra.mxu1 %v878_v4  ;;  %740 = vmatprep.subr.bf16.mxu0 %v879_v5  ;;  %v885_v11 = vld [vmem:[%s1303_s24 + $0x58] sm:$0xff]   ;;  %v888_v14 = vld [vmem:[%s1303_s24 + $0x60] sm:$0xff]   ;;  %v891_v17 = vld [vmem:[%s1303_s24 + $0x68] sm:$0xff]  }
  0x7e   : > { %771 = vmatprep.subr.bf16.mxu1 %v1087_v2  ;;  %v886_v12 = vld [vmem:[%s1303_s24 + $0x18] sm:$0xff]   ;;  %v889_v15 = vld [vmem:[%s1303_s24 + $0x20] sm:$0xff]   ;;  %v892_v18 = vld [vmem:[%s1303_s24 + $0x28] sm:$0xff]  }
  0x7f   : > { %v887_v13 = vld [vmem:[%s1303_s24 + $0x98] sm:$0xff]   ;;  %v890_v16 = vld [vmem:[%s1303_s24 + $0xa0] sm:$0xff]   ;;  %v893_v19 = vld [vmem:[%s1303_s24 + $0xa8] sm:$0xff]  }
  0x80   : > { %741 = vmatpush3.bf16.msra.mxu0 %v880_v6  ;;  %v894_v20 = vld [vmem:[%s1303_s24 + $0x70] sm:$0xff]   ;;  %v897_v23 = vld [vmem:[%s1303_s24 + $0x78] sm:$0xff]   ;;  %v276_v36 = vld [vmem:[#allocation2] sm:$0xff] }
  0x81   : > { %772 = vmatpush3.bf16.msra.mxu1 %v881_v7  ;;  %742 = vmatprep.subr.bf16.mxu0 %v882_v8  ;;  %v895_v21 = vld [vmem:[%s1303_s24 + $0x30] sm:$0xff]   ;;  %v898_v26 = vld [vmem:[%s1303_s24 + $0x38] sm:$0xff]   ;;  %v731_v43 = vld [vmem:[#allocation8] ss:$0 sm:$0xff] (!%p730_p9) }
  0x82   : > { %773 = vmatprep.subr.bf16.mxu1 %v1087_v2  ;;  %v896_v22 = vld [vmem:[%s1303_s24 + $0xb0] sm:$0xff]   ;;  %v899_v27 = vld [vmem:[%s1303_s24 + $0xb8] sm:$0xff]  }
  0x83   : > { %v277_v24 = vld [vmem:[%s1296_s4] sm:$0xff]  ;;  %v902_v29 = vld [vmem:[%s1296_s4 + $0x8] ss:$0 sps:$4 sm:$0xff]  }
  0x84   : > { %743 = vmatpush3.bf16.msra.mxu0 %v883_v9  ;;  %v704_v25 = vcombine.high %v277_v24, %v277_v24  ;;  %v703_v28 = vcombine.low %v277_v24, %v277_v24 }
  0x85   : > { %774 = vmatpush3.bf16.msra.mxu1 %v884_v10  ;;  %744 = vmatprep.subr.bf16.mxu0 %v885_v11 }
  0x86   : > { %775 = vmatprep.subr.bf16.mxu1 %v1087_v2  ;;  %514 = vmatprep.mubr.bf16.mxu0 %v704_v25 }
  0x88   : > { %745 = vmatpush3.bf16.msra.mxu0 %v886_v12 }
  0x89   : > { %776 = vmatpush3.bf16.msra.mxu1 %v887_v13  ;;  %746 = vmatprep.subr.bf16.mxu0 %v888_v14 }
  0x8a   : > { %777 = vmatprep.subr.bf16.mxu1 %v1087_v2 }
  0x8c   : > { %747 = vmatpush3.bf16.msra.mxu0 %v889_v15 }
  0x8d   : > { %778 = vmatpush3.bf16.msra.mxu1 %v890_v16  ;;  %748 = vmatprep.subr.bf16.mxu0 %v891_v17 }
  0x8e   : > { %779 = vmatprep.subr.bf16.mxu1 %v1087_v2 }
  0x90   : > { %749 = vmatpush3.bf16.msra.mxu0 %v892_v18 }
  0x91   : > { %780 = vmatpush3.bf16.msra.mxu1 %v893_v19  ;;  %750 = vmatprep.subr.bf16.mxu0 %v894_v20 }
  0x92   : > { %781 = vmatprep.subr.bf16.mxu1 %v1087_v2 }
  0x94   : > { %751 = vmatpush3.bf16.msra.mxu0 %v895_v21 }
  0x95   : > { %782 = vmatpush3.bf16.msra.mxu1 %v896_v22  ;;  %752 = vmatprep.subr.bf16.mxu0 %v897_v23 }
  0x96   : > { %783 = vmatprep.subr.bf16.mxu1 %v1087_v2 }
  0x98   : > { %753 = vmatpush3.bf16.msra.mxu0 %v898_v26 }
  0x99   : > { %784 = vmatpush3.bf16.msra.mxu1 %v899_v27 }
  0x9b   : > { %515 = vmatmul.mubr.bf16.vlgmr.msra.gmra.mrb[0].mxu0 %v703_v28 }
  0x9c   : > { %786 = vmatmul.mubr.bf16.vlgmr.msra.gmra.mrb[0].mxu1 %v902_v29 }
 0x16e   : > { %v754_v30 = vpop.f32.mrb[0].mxu0 }
 0x16f   : > { %v556_v31 = vpop.f32.mrb[0].mxu1  ;;  %v755_v32 = vpop.f32.mrb[1].mxu0 }
 0x170   : > { %v756_v33 = vadd.f32 %v755_v32, %v754_v30  ;;  %v787_v34 = vpop.f32.mrb[1].mxu1  ;;  %v757_v35 = vpop.f32.mrb[2].mxu0  ;;  %568 = sbr.rel (%p730_p9) target bundleno = 387 (0x183), region = 52 }
 0x171   : > { %v559_v37 = vpop.f32.mrb[2].mxu1  ;;  %v758_v38 = vpop.f32.mrb[3].mxu0 }
 0x172   : > { %v557_v39 = vadd.f32 %v756_v33, %v556_v31  ;;  %v788_v40 = vpop.f32.mrb[3].mxu1 }
 0x174   : > { %v562_v41 = vadd.f32 %v557_v39, %v276_v36 }
 0x176   : > { %564 = vst.msk [vmem:[#allocation2] sm:$0xff] %vm563_vm2, %v562_v41 }
 0x17d   : > { %v569_v42 = vld [vmem:[#allocation2] sm:$0xff] }
 0x17e   : > { %v577_v44 = vadd.f32 %v731_v43, %v569_v42 }
 0x180   : > { %v578_v45 = vmax.f32 %v577_v44, 0.0 }
 0x182   : > { %579 = vst.msk [vmem:[#allocation9] sm:$0xff] %vm563_vm2, %v578_v45 }
 0x183 PF: > { %p819_p11 = scmp.eq.s32.totalorder %s1139_s18, 2  ;;  %s1089_s20 = smov [#allocation9]  }
 0x184   : > { %s590_s21 = sshll.u32 %s1089_s20, 4  ;;  %s591_s21 = int_to_ptr.vmem [resolvable:$true] %s590_s21 }
 0x185   : > { %s991_s28 = scalar_lea.vmem %s591_s21, 128  ;;  %p998_p1 = scmp.lt.s32.totalorder %s591_s21, %s591_s21 }
 0x186   : > { %p992_p13 = scmp.ne.s32.totalorder %s591_s21, %s991_s28  ;;  %p999_p0 = scmp.lt.s32.totalorder %s991_s28, %s991_s28 }
 0x188   : > { %p993_p3 = pnand %p992_p13, %p819_p11  ;;  %p1000_p8 = por %p999_p0, %p998_p1 }
 0x18a   : > { %p994_p4 = pneg %p993_p3 }
 0x18c   : > { %p1001_p2 = pnand %p1000_p8, %p994_p4 }
 0x18e   : > { %1004 = shalt.err (!%p1001_p2)
}
 0x18f   : > { %s1005_s8 = scalar_lea.hbm %s1385_s3, 128 }
 0x190   : > { %p1006_p12 = scmp.ne.s32.totalorder %s1385_s3, %s1005_s8  ;;  %p1011_p5 = scmp.lt.u32.totalorder %s1005_s8, %s1385_s3 }
 0x192   : > { %p1007_p7 = pnand %p1006_p12, %p819_p11 }
 0x194   : > { %p1008_p10 = pneg %p1007_p7 }
 0x196   : > { %p1013_p6 = pnand %p1011_p5, %p1008_p10 }
 0x198   : > { %1016 = shalt.err (!%p1013_p6)
}
 0x199   : > { %802 = dma.vmem_to_hbm [thread:$0]  (%p819_p11), %s591_s21, 128, %s1385_s3, [#allocation5]  }
 0x19a   : > { %1054 = dma.done.wait (%p819_p11), [#allocation5], 128  }
 0x19b   : > { %1056 = vsyncadd (%p819_p11), [#allocation5], 4294967168 }
 0x19c PF: > { %s20_s17 = sadd.s32 1, %s1079_s17   ;;  %s1402_s12 = smov %s1063_s13 }
 0x19d   : > { %p17_p9 = scmp.ge.s32.totalorder %s20_s17, 5   ;;  %s1403_s13 = smov %s1067_s14 }
 0x19e   : > { %s1404_s14 = smov %s1223_s26  ;;  %s1405_s15 = smov %s1075_s16 }
 0x19f   : > { %s1406_s16 = smov %s1408_s25  ;;  %19 = sbr.rel (!%p17_p9) target bundleno = 7 (0x7), region = 96 }
 0x1a6   :  { %603 = vsyncpa [#allocation4], 1 }
 0x1a7   :  { %605 = vsyncpa [#allocation4 + $0x1], 1 }
 0x1a8   :  { %606 = vsyncpa [#allocation7], 1 }
 0x1a9   :  { %608 = vsyncpa [#allocation7 + $0x1], 1 }
 0x1aa   :  { %609 = vsyncpa [#allocation5], 1 }
 0x1ab   :  { %611 = vsyncpa [#allocation5 + $0x1], 1 }

// kernel: csrnet_forward.47
= control target key start
LH: loop header
LB: loop body
LE: loop exit
PB: predicated region body
PF: predicated region fallthrough
CT: control target
= control target key end

     0   :  { %8 = vsyncpa [#allocation4], 0  ;;  %s372_s0 = inlined_call_operand.hbm [shape: bf16[8,64], index: 0, kind: input, shape index: {}]   ;;  %s373_s1 = inlined_call_operand.hbm [shape: bf16[64,128], index: 1, kind: input, shape index: {}]   ;;  %s374_s2 = inlined_call_operand.hbm [shape: f32[1,128], index: 2, kind: input, shape index: {}]   ;;  %s375_s3 = inlined_call_operand.hbm [shape: f32[8,128], index: 3, kind: output, shape index: {}]  }
   0x1   :  { %9 = vsyncpa [#allocation7], 0 }
   0x2   :  { %10 = vsyncpa [#allocation5], 0  ;;  %s296_s12 = smov [#allocation6]   ;;  %s202_s16 = scalar_lea.hbm %s373_s1, 512 }
   0x3   :  { %s26_s13 = sshll.u32 %s296_s12, 4  ;;  %p203_p0 = scmp.ne.s32.totalorder %s373_s1, %s202_s16  ;;  %s27_s13 = int_to_ptr.vmem [resolvable:$true] %s26_s13 }
   0x4   :  { %p206_p1 = scmp.lt.u32.totalorder %s202_s16, %s373_s1 }
   0x6   :  { %p208_p2 = pnand %p206_p1, %p203_p0 }
   0x8   :  { %211 = shalt.err (!%p208_p2)
}
   0x9   :  { %s212_s21 = scalar_lea.vmem %s27_s13, 512  ;;  %p217_p4 = scmp.lt.s32.totalorder %s27_s13, %s27_s13 }
   0xa   :  { %p213_p3 = scmp.ne.s32.totalorder %s27_s13, %s212_s21  ;;  %p218_p5 = scmp.lt.s32.totalorder %s212_s21, %s212_s21 }
   0xc   :  { %p219_p6 = por %p218_p5, %p217_p4 }
   0xe   :  { %p220_p7 = pnand %p219_p6, %p213_p3 }
  0x10   :  { %223 = shalt.err (!%p220_p7)
}
  0x11   :  { %s297_s22 = smov 64   ;;  %s298_s23 = smov 4  }
  0x12   :  { %32 = dma.hbm_to_vmem [thread:$0]  %s373_s1, 512, %s27_s13, [#allocation7], %s297_s22, %s297_s22, %s298_s23  }
  0x13   :  { %s299_s26 = smov [#allocation3]   ;;  %s300_s28 = smov [#allocation8]  }
  0x14   :  { %s17_s27 = sshll.u32 %s299_s26, 4  ;;  %s39_s29 = sshll.u32 %s300_s28, 4  ;;  %s18_s27 = int_to_ptr.vmem [resolvable:$true] %s17_s27  ;;  %s40_s29 = int_to_ptr.vmem [resolvable:$true] %s39_s29 }
  0x15   :  { %s224_s5 = scalar_lea.hbm %s372_s0, 64 }
  0x16   :  { %p225_p8 = scmp.ne.s32.totalorder %s372_s0, %s224_s5  ;;  %p228_p9 = scmp.lt.u32.totalorder %s224_s5, %s372_s0 }
  0x18   :  { %p230_p10 = pnand %p228_p9, %p225_p8 }
  0x1a   :  { %233 = shalt.err (!%p230_p10)
}
  0x1b   :  { %s234_s1 = scalar_lea.vmem %s18_s27, 64  ;;  %p239_p12 = scmp.lt.s32.totalorder %s18_s27, %s18_s27 }
  0x1c   :  { %p235_p11 = scmp.ne.s32.totalorder %s18_s27, %s234_s1  ;;  %p240_p13 = scmp.lt.s32.totalorder %s234_s1, %s234_s1 }
  0x1e   :  { %p241_p0 = por %p240_p13, %p239_p12 }
  0x20   :  { %p242_p1 = pnand %p241_p0, %p235_p11 }
  0x22   :  { %245 = shalt.err (!%p242_p1)
}
  0x23   :  { %20 = dma.hbm_to_vmem [thread:$0]  %s372_s0, 64, %s18_s27, [#allocation4]  }
  0x24   :  { %s246_s14 = scalar_lea.hbm %s374_s2, 16 }
  0x25   :  { %p247_p2 = scmp.ne.s32.totalorder %s374_s2, %s246_s14  ;;  %p250_p3 = scmp.lt.u32.totalorder %s246_s14, %s374_s2 }
  0x27   :  { %p252_p4 = pnand %p250_p3, %p247_p2 }
  0x29   :  { %255 = shalt.err (!%p252_p4)
}
  0x2a   :  { %s256_s19 = scalar_lea.vmem %s40_s29, 16  ;;  %s260_s20 = scalar_lea.vmem %s40_s29, 32 }
  0x2b   :  { %p257_p5 = scmp.ne.s32.totalorder %s40_s29, %s256_s19  ;;  %p261_p6 = scmp.lt.s32.totalorder %s40_s29, %s40_s29 }
  0x2c   :  { %p262_p7 = scmp.lt.s32.totalorder %s260_s20, %s256_s19 }
  0x2e   :  { %p263_p8 = por %p262_p7, %p261_p6 }
  0x30   :  { %p264_p9 = pnand %p263_p8, %p257_p5 }
  0x32   :  { %267 = shalt.err (!%p264_p9)
}
  0x33   :  { %42 = dma.hbm_to_vmem [thread:$0]  %s374_s2, 16, %s40_s29, [#allocation7]  }
  0x34   :  { %290 = dma.done.wait [#allocation4], 64  }
  0x35   :  { %291 = vsyncadd [#allocation4], 4294967232 }
  0x36   :  { %292 = dma.done.wait [#allocation7], 528  }
  0x37   :  { %293 = vsyncadd [#allocation7], 4294966768  ;;  %v301_v0 = vmov 0.0   ;;  %vm302_vm0 = vmmov 0   ;;  %v198_v1 = vld [vmem:[#allocation6] sm:$0xff]   ;;  %v199_v2 = vld [vmem:[#allocation6 + $0x8] sm:$0xff]  }
  0x38   :  { %178 = vmatprep.subr.bf16.mxu0 %v301_v0  ;;  %186 = vmatprep.mubr.msk.bf16.mxu0 %vm302_vm0, %v301_v0  ;;  %v200_v3 = vld [vmem:[#allocation6 + $0x10] sm:$0xff]   ;;  %v201_v4 = vld [vmem:[#allocation6 + $0x18] sm:$0xff]   ;;  %vm92_vm1 = vcmask 523264   ;;  %v172_v6 = vld [vmem:[#allocation8] ss:$0 sm:$0xff]  ;;  %s303_s2 = smov [#allocation9]  }
  0x39   :  { %179 = vmatpush3.bf16.msra.mxu0 %v198_v1  ;;  %v59_v5 = vld [vmem:[#allocation3] sm:$0xf]  ;;  %s157_s22 = sshll.u32 %s303_s2, 4  ;;  %s158_s22 = int_to_ptr.vmem [resolvable:$true] %s157_s22 }
  0x3a   :  { %180 = vmatprep.subr.bf16.mxu0 %v301_v0  ;;  %s268_s23 = scalar_lea.vmem %s158_s22, 128  ;;  %p273_p11 = scmp.lt.s32.totalorder %s158_s22, %s158_s22 }
  0x3b   :  { %p269_p10 = scmp.ne.s32.totalorder %s158_s22, %s268_s23  ;;  %p274_p12 = scmp.lt.s32.totalorder %s268_s23, %s268_s23 }
  0x3d   :  { %181 = vmatpush3.bf16.msra.mxu0 %v199_v2  ;;  %p275_p13 = por %p274_p12, %p273_p11 }
  0x3e   :  { %182 = vmatprep.subr.bf16.mxu0 %v301_v0 }
  0x3f   :  { %p276_p0 = pnand %p275_p13, %p269_p10 }
  0x41   :  { %183 = vmatpush3.bf16.msra.mxu0 %v200_v3 }
  0x42   :  { %184 = vmatprep.subr.bf16.mxu0 %v301_v0 }
  0x45   :  { %185 = vmatpush3.bf16.msra.mxu0 %v201_v4 }
  0x48   :  { %187 = vmatmul.mubr.msk.bf16.vlgmr.msra.gmra.mrb[0].mxu0 %vm92_vm1, %v59_v5 }
 0x11b   :  { %v130_v7 = vpop.f32.mrb[0].mxu0 }
 0x11c   :  { %v149_v8 = vadd.f32 %v172_v6, %v130_v7  ;;  %v188_v9 = vpop.f32.mrb[1].mxu0 }
 0x11d   :  { %v133_v10 = vpop.f32.mrb[2].mxu0 }
 0x11e   :  { %150 = vst [vmem:[#allocation9] sm:$0xff] %v149_v8  ;;  %v189_v11 = vpop.f32.mrb[3].mxu0 }
 0x11f   :  { %279 = shalt.err (!%p276_p0)
}
 0x120   :  { %s280_s26 = scalar_lea.hbm %s375_s3, 128 }
 0x121   :  { %p281_p1 = scmp.ne.s32.totalorder %s375_s3, %s280_s26  ;;  %p284_p2 = scmp.lt.u32.totalorder %s280_s26, %s375_s3 }
 0x123   :  { %p286_p3 = pnand %p284_p2, %p281_p1 }
 0x125   :  { %289 = shalt.err (!%p286_p3)
}
 0x126   :  { %160 = dma.vmem_to_hbm [thread:$0]  %s158_s22, 128, %s375_s3, [#allocation5]  }
 0x127   :  { %294 = dma.done.wait [#allocation5], 128  }
 0x128   :  { %295 = vsyncadd [#allocation5], 4294967168 }
 0x129   :  { %164 = vsyncpa [#allocation4], 1 }
 0x12a   :  { %165 = vsyncpa [#allocation7], 1 }
 0x12b   :  { %166 = vsyncpa [#allocation5], 1 }

// kernel: csrnet_forward.45
= control target key start
LH: loop header
LB: loop body
LE: loop exit
PB: predicated region body
PF: predicated region fallthrough
CT: control target
= control target key end

     0   :  { %8 = vsyncpa [#allocation4], 0  ;;  %s373_s0 = inlined_call_operand.hbm [shape: bf16[8,64], index: 0, kind: input, shape index: {}]   ;;  %s374_s1 = inlined_call_operand.hbm [shape: bf16[64,128], index: 1, kind: input, shape index: {}]   ;;  %s375_s2 = inlined_call_operand.hbm [shape: f32[1,128], index: 2, kind: input, shape index: {}]   ;;  %s376_s3 = inlined_call_operand.hbm [shape: f32[8,128], index: 3, kind: output, shape index: {}]  }
   0x1   :  { %9 = vsyncpa [#allocation7], 0 }
   0x2   :  { %10 = vsyncpa [#allocation5], 0  ;;  %s297_s12 = smov [#allocation6]   ;;  %s203_s16 = scalar_lea.hbm %s374_s1, 512 }
   0x3   :  { %s26_s13 = sshll.u32 %s297_s12, 4  ;;  %p204_p0 = scmp.ne.s32.totalorder %s374_s1, %s203_s16  ;;  %s27_s13 = int_to_ptr.vmem [resolvable:$true] %s26_s13 }
   0x4   :  { %p207_p1 = scmp.lt.u32.totalorder %s203_s16, %s374_s1 }
   0x6   :  { %p209_p2 = pnand %p207_p1, %p204_p0 }
   0x8   :  { %212 = shalt.err (!%p209_p2)
}
   0x9   :  { %s213_s21 = scalar_lea.vmem %s27_s13, 512  ;;  %p218_p4 = scmp.lt.s32.totalorder %s27_s13, %s27_s13 }
   0xa   :  { %p214_p3 = scmp.ne.s32.totalorder %s27_s13, %s213_s21  ;;  %p219_p5 = scmp.lt.s32.totalorder %s213_s21, %s213_s21 }
   0xc   :  { %p220_p6 = por %p219_p5, %p218_p4 }
   0xe   :  { %p221_p7 = pnand %p220_p6, %p214_p3 }
  0x10   :  { %224 = shalt.err (!%p221_p7)
}
  0x11   :  { %s298_s22 = smov 64   ;;  %s299_s23 = smov 4  }
  0x12   :  { %32 = dma.hbm_to_vmem [thread:$0]  %s374_s1, 512, %s27_s13, [#allocation7], %s298_s22, %s298_s22, %s299_s23  }
  0x13   :  { %s300_s26 = smov [#allocation3]   ;;  %s301_s28 = smov [#allocation8]  }
  0x14   :  { %s17_s27 = sshll.u32 %s300_s26, 4  ;;  %s39_s29 = sshll.u32 %s301_s28, 4  ;;  %s18_s27 = int_to_ptr.vmem [resolvable:$true] %s17_s27  ;;  %s40_s29 = int_to_ptr.vmem [resolvable:$true] %s39_s29 }
  0x15   :  { %s225_s5 = scalar_lea.hbm %s373_s0, 64 }
  0x16   :  { %p226_p8 = scmp.ne.s32.totalorder %s373_s0, %s225_s5  ;;  %p229_p9 = scmp.lt.u32.totalorder %s225_s5, %s373_s0 }
  0x18   :  { %p231_p10 = pnand %p229_p9, %p226_p8 }
  0x1a   :  { %234 = shalt.err (!%p231_p10)
}
  0x1b   :  { %s235_s1 = scalar_lea.vmem %s18_s27, 64  ;;  %p240_p12 = scmp.lt.s32.totalorder %s18_s27, %s18_s27 }
  0x1c   :  { %p236_p11 = scmp.ne.s32.totalorder %s18_s27, %s235_s1  ;;  %p241_p13 = scmp.lt.s32.totalorder %s235_s1, %s235_s1 }
  0x1e   :  { %p242_p0 = por %p241_p13, %p240_p12 }
  0x20   :  { %p243_p1 = pnand %p242_p0, %p236_p11 }
  0x22   :  { %246 = shalt.err (!%p243_p1)
}
  0x23   :  { %20 = dma.hbm_to_vmem [thread:$0]  %s373_s0, 64, %s18_s27, [#allocation4]  }
  0x24   :  { %s247_s14 = scalar_lea.hbm %s375_s2, 16 }
  0x25   :  { %p248_p2 = scmp.ne.s32.totalorder %s375_s2, %s247_s14  ;;  %p251_p3 = scmp.lt.u32.totalorder %s247_s14, %s375_s2 }
  0x27   :  { %p253_p4 = pnand %p251_p3, %p248_p2 }
  0x29   :  { %256 = shalt.err (!%p253_p4)
}
  0x2a   :  { %s257_s19 = scalar_lea.vmem %s40_s29, 16  ;;  %s261_s20 = scalar_lea.vmem %s40_s29, 32 }
  0x2b   :  { %p258_p5 = scmp.ne.s32.totalorder %s40_s29, %s257_s19  ;;  %p262_p6 = scmp.lt.s32.totalorder %s40_s29, %s40_s29 }
  0x2c   :  { %p263_p7 = scmp.lt.s32.totalorder %s261_s20, %s257_s19 }
  0x2e   :  { %p264_p8 = por %p263_p7, %p262_p6 }
  0x30   :  { %p265_p9 = pnand %p264_p8, %p258_p5 }
  0x32   :  { %268 = shalt.err (!%p265_p9)
}
  0x33   :  { %42 = dma.hbm_to_vmem [thread:$0]  %s375_s2, 16, %s40_s29, [#allocation7]  }
  0x34   :  { %291 = dma.done.wait [#allocation4], 64  }
  0x35   :  { %292 = vsyncadd [#allocation4], 4294967232 }
  0x36   :  { %293 = dma.done.wait [#allocation7], 528  }
  0x37   :  { %294 = vsyncadd [#allocation7], 4294966768  ;;  %v302_v0 = vmov 0.0   ;;  %vm303_vm0 = vmmov 0   ;;  %v199_v1 = vld [vmem:[#allocation6] sm:$0xff]   ;;  %v200_v2 = vld [vmem:[#allocation6 + $0x8] sm:$0xff]  }
  0x38   :  { %179 = vmatprep.subr.bf16.mxu0 %v302_v0  ;;  %187 = vmatprep.mubr.msk.bf16.mxu0 %vm303_vm0, %v302_v0  ;;  %v201_v3 = vld [vmem:[#allocation6 + $0x10] sm:$0xff]   ;;  %v202_v4 = vld [vmem:[#allocation6 + $0x18] sm:$0xff]   ;;  %vm92_vm1 = vcmask 523264   ;;  %v173_v6 = vld [vmem:[#allocation8] ss:$0 sm:$0xff]  ;;  %s304_s2 = smov [#allocation9]  }
  0x39   :  { %180 = vmatpush3.bf16.msra.mxu0 %v199_v1  ;;  %v59_v5 = vld [vmem:[#allocation3] sm:$0xf]  ;;  %s158_s22 = sshll.u32 %s304_s2, 4  ;;  %s159_s22 = int_to_ptr.vmem [resolvable:$true] %s158_s22 }
  0x3a   :  { %181 = vmatprep.subr.bf16.mxu0 %v302_v0  ;;  %s269_s23 = scalar_lea.vmem %s159_s22, 128  ;;  %p274_p11 = scmp.lt.s32.totalorder %s159_s22, %s159_s22 }
  0x3b   :  { %p270_p10 = scmp.ne.s32.totalorder %s159_s22, %s269_s23  ;;  %p275_p12 = scmp.lt.s32.totalorder %s269_s23, %s269_s23 }
  0x3d   :  { %182 = vmatpush3.bf16.msra.mxu0 %v200_v2  ;;  %p276_p13 = por %p275_p12, %p274_p11 }
  0x3e   :  { %183 = vmatprep.subr.bf16.mxu0 %v302_v0 }
  0x3f   :  { %p277_p0 = pnand %p276_p13, %p270_p10 }
  0x41   :  { %184 = vmatpush3.bf16.msra.mxu0 %v201_v3 }
  0x42   :  { %185 = vmatprep.subr.bf16.mxu0 %v302_v0 }
  0x45   :  { %186 = vmatpush3.bf16.msra.mxu0 %v202_v4 }
  0x48   :  { %188 = vmatmul.mubr.msk.bf16.vlgmr.msra.gmra.mrb[0].mxu0 %vm92_vm1, %v59_v5 }
 0x11b   :  { %v130_v7 = vpop.f32.mrb[0].mxu0 }
 0x11c   :  { %v149_v8 = vadd.f32 %v173_v6, %v130_v7  ;;  %v189_v9 = vpop.f32.mrb[1].mxu0 }
 0x11d   :  { %v133_v10 = vpop.f32.mrb[2].mxu0 }
 0x11e   :  { %v150_v11 = vmax.f32 %v149_v8, 0.0  ;;  %v190_v12 = vpop.f32.mrb[3].mxu0 }
 0x120   :  { %151 = vst [vmem:[#allocation9] sm:$0xff] %v150_v11 }
 0x121   :  { %280 = shalt.err (!%p277_p0)
}
 0x122   :  { %s281_s26 = scalar_lea.hbm %s376_s3, 128 }
 0x123   :  { %p282_p1 = scmp.ne.s32.totalorder %s376_s3, %s281_s26  ;;  %p285_p2 = scmp.lt.u32.totalorder %s281_s26, %s376_s3 }
 0x125   :  { %p287_p3 = pnand %p285_p2, %p282_p1 }
 0x127   :  { %290 = shalt.err (!%p287_p3)
}
 0x128   :  { %161 = dma.vmem_to_hbm [thread:$0]  %s159_s22, 128, %s376_s3, [#allocation5]  }
 0x129   :  { %295 = dma.done.wait [#allocation5], 128  }
 0x12a   :  { %296 = vsyncadd [#allocation5], 4294967168 }
 0x12b   :  { %165 = vsyncpa [#allocation4], 1 }
 0x12c   :  { %166 = vsyncpa [#allocation7], 1 }
 0x12d   :  { %167 = vsyncpa [#allocation5], 1 }

</bundles_post_ra>
